<compile_context>
chip_gen: v7x
topology: tpu7x:2x2x1
jax: 0.10.0
libtpu: 0.0.40
codegen_flags: <defaults>
</compile_context>

<pallas_src>
import jax
import jax.numpy as jnp
from jax.experimental import pallas as pl
from jax.experimental.pallas import tpu as pltpu

MAZE_WIDTH = 7
INPUT_SIZE = 3 * MAZE_WIDTH * MAZE_WIDTH + 2 * MAZE_WIDTH   # 161
HIDDEN_SIZE = 6 * INPUT_SIZE                                # 966
NUM_OF_MOVES = 4
NEG_SLOPE = 0.1

# Lane-aligned padded sizes (padding done once, outside the kernel).
PAD_IN = 256      # 161 -> 256
PAD_HID = 1024    # 966 -> 1024
PAD_OUT = 128     # 4   -> 128

MAX_TILE_B = 128  # largest batch tile; >128 rows => >=2 grid steps (v7x 2 TCs)


def _round_up(x, m):
    return (x + m - 1) // m * m


def _cdiv(a, b):
    return -(-a // b)


def _leaky_relu(x):
    return jnp.where(x > 0, x, NEG_SLOPE * x)


# ----------------------------------------------------------------------------
# Kernel
# ----------------------------------------------------------------------------
def mlp_kernel(x_ref,
               w1_ref, b1_ref,
               w2_ref, b2_ref,
               w3_ref, b3_ref,
               w4_ref, b4_ref,
               o_ref):
    # x: (tb, 256) bf16; weights bf16 (padded); biases f32; output f32.
    h = jnp.dot(x_ref[...], w1_ref[...],
                preferred_element_type=jnp.float32) + b1_ref[...]
    h = _leaky_relu(h)

    h = jnp.dot(h.astype(jnp.bfloat16), w2_ref[...],
                preferred_element_type=jnp.float32) + b2_ref[...]
    h = _leaky_relu(h)

    h = jnp.dot(h.astype(jnp.bfloat16), w3_ref[...],
                preferred_element_type=jnp.float32) + b3_ref[...]
    h = _leaky_relu(h)

    q = jnp.dot(h.astype(jnp.bfloat16), w4_ref[...],
                preferred_element_type=jnp.float32) + b4_ref[...]
    o_ref[...] = q.astype(o_ref.dtype)


# ----------------------------------------------------------------------------
# Parameter prep (done ONCE, amortized across calls)
# ----------------------------------------------------------------------------
def init_params(key):
    """PyTorch nn.Linear-style init: U(-1/sqrt(fan_in), 1/sqrt(fan_in)).
    Weights stored (in_features, out_features), f32, unpadded."""
    dims = [(INPUT_SIZE, HIDDEN_SIZE),
            (HIDDEN_SIZE, HIDDEN_SIZE),
            (HIDDEN_SIZE, HIDDEN_SIZE),
            (HIDDEN_SIZE, NUM_OF_MOVES)]
    params = []
    for fan_in, fan_out in dims:
        key, kw, kb = jax.random.split(key, 3)
        bound = 1.0 / jnp.sqrt(fan_in)
        w = jax.random.uniform(kw, (fan_in, fan_out), jnp.float32, -bound, bound)
        b = jax.random.uniform(kb, (1, fan_out), jnp.float32, -bound, bound)
        params.append((w, b))
    return params


def pad_and_cast_params(params):
    """Zero-pad to lane-aligned shapes and cast weights to bf16 (call once)."""
    dims = [(INPUT_SIZE, HIDDEN_SIZE, PAD_IN, PAD_HID),
            (HIDDEN_SIZE, HIDDEN_SIZE, PAD_HID, PAD_HID),
            (HIDDEN_SIZE, HIDDEN_SIZE, PAD_HID, PAD_HID),
            (HIDDEN_SIZE, NUM_OF_MOVES, PAD_HID, PAD_OUT)]
    padded = []
    for (w, b), (fi, fo, pi, po) in zip(params, dims):
        wp = jnp.zeros((pi, po), jnp.float32).at[:fi, :fo].set(w)
        bp = jnp.zeros((1, po), jnp.float32).at[:, :fo].set(b)
        padded.append((wp.astype(jnp.bfloat16), bp))  # bias stays f32 (tiny)
    return padded


# ----------------------------------------------------------------------------
# Batch tiling (review items: 16-row rounding, padding waste, v7x >=2 steps)
# ----------------------------------------------------------------------------
def _choose_tiling(batch):
    """Return (tile_b, padded_batch); tile_b is a multiple of 16.

    batch <= 128: one tile sized to the 16-rounded batch (minimal waste in the
    per-env-step regime). batch > 128: split into ceil(b16/128) equal 16-rounded
    tiles -> >=2 grid steps (v7x megacore) with padding waste <= 16*n_tiles rows
    (instead of round_up(batch, 256))."""
    b16 = _round_up(max(batch, 1), 16)
    if b16 <= MAX_TILE_B:
        return b16, b16
    n_tiles = _cdiv(b16, MAX_TILE_B)
    tb = _round_up(_cdiv(b16, n_tiles), 16)
    return tb, tb * n_tiles


# ----------------------------------------------------------------------------
# Forward wrapper
# ----------------------------------------------------------------------------
def _forward_2d(x2, padded_params):
    batch = x2.shape[0]
    tb, b_pad = _choose_tiling(batch)

    # TODO(synk): in throughput mode, avoid this extra pad+cast pass over x by
    # keeping upstream activations in a bf16, 256-wide layout.
    x_p = (jnp.zeros((b_pad, PAD_IN), jnp.bfloat16)
           .at[:batch, :INPUT_SIZE].set(x2.astype(jnp.bfloat16)))

    (w1, b1), (w2, b2), (w3, b3), (w4, b4) = padded_params
    grid = (b_pad // tb,)

    x_spec = pl.BlockSpec((tb, PAD_IN), lambda i: (i, 0))
    out_spec = pl.BlockSpec((tb, PAD_OUT), lambda i: (i, 0))

    def resident_spec(arr):
        # Full-array block, constant index -> fetched once, resident in VMEM
        # across grid steps (and per-core under "parallel" megacore sharding).
        return pl.BlockSpec(arr.shape, lambda i: (0, 0))

    flops = 2 * b_pad * (PAD_IN * PAD_HID + 2 * PAD_HID * PAD_HID
                         + PAD_HID * PAD_OUT)
    bytes_accessed = (
        x_p.size * 2                                        # bf16 input
        + sum(w.size * 2 + b.size * 4 for w, b in padded_params)
        + b_pad * PAD_OUT * 4                               # f32 output
    )

    out = pl.pallas_call(
        mlp_kernel,
        out_shape=jax.ShapeDtypeStruct((b_pad, PAD_OUT), jnp.float32),
        grid=grid,
        in_specs=[x_spec,
                  resident_spec(w1), resident_spec(b1),
                  resident_spec(w2), resident_spec(b2),
                  resident_spec(w3), resident_spec(b3),
                  resident_spec(w4), resident_spec(b4)],
        out_specs=out_spec,
        compiler_params=pltpu.CompilerParams(
            dimension_semantics=("parallel",),
            vmem_limit_bytes=32 << 20,
        ),
        cost_estimate=pl.CostEstimate(
            flops=flops, transcendentals=0, bytes_accessed=bytes_accessed),
    )(x_p, w1, b1, w2, b2, w3, b3, w4, b4)

    return out[:batch, :NUM_OF_MOVES]


@jax.jit
def neural_network_forward(x, padded_params):
    """x: (..., INPUT_SIZE) f32 -> (..., NUM_OF_MOVES) f32 (PyTorch semantics)."""
    lead = x.shape[:-1]
    out2 = _forward_2d(x.reshape((-1, INPUT_SIZE)), padded_params)
    return out2.reshape(lead + (NUM_OF_MOVES,))


# ----------------------------------------------------------------------------
# References
# ----------------------------------------------------------------------------
def reference_forward_f32(x, params):
    """True f32 semantics of the original PyTorch module (unpadded params)."""
    h = x
    for i, (w, b) in enumerate(params):
        h = jnp.dot(h, w) + b
        if i < len(params) - 1:
            h = _leaky_relu(h)
    return h


def reference_forward_bf16(x, padded_params):
    """Pure-JAX reference with the same bf16 quantization as the kernel."""
    h = (jnp.zeros((x.shape[0], PAD_IN), jnp.float32)
         .at[:, :INPUT_SIZE].set(x))
    for i, (w, b) in enumerate(padded_params):
        h = jnp.dot(h.astype(jnp.bfloat16), w,
                    preferred_element_type=jnp.float32) + b
        if i < len(padded_params) - 1:
            h = _leaky_relu(h)
    return h[:, :NUM_OF_MOVES]


if __name__ == "__main__":
    key = jax.random.PRNGKey(0)
    key, kx = jax.random.split(key)

    params = init_params(key)                    # f32, unpadded (PyTorch init)
    padded_params = pad_and_cast_params(params)  # one-time pad + bf16 cast

    # Small per-env-step batch.
    batch = 8
    x = jax.random.normal(kx, (batch, INPUT_SIZE), jnp.float32)
    out = jax.block_until_ready(neural_network_forward(x, padded_params))
    assert out.shape == (batch, NUM_OF_MOVES)

    # Tight check vs an identically-quantized (bf16) reference.
    ref_bf16 = reference_forward_bf16(x, padded_params)
    assert jnp.allclose(out, ref_bf16, atol=1e-3, rtol=1e-3), "kernel vs bf16 ref"

    # Looser check vs the true f32 PyTorch-semantics reference.
    ref_f32 = reference_forward_f32(x, params)
    assert jnp.allclose(out, ref_f32, atol=5e-2, rtol=5e-2), "kernel vs f32 ref"

    # Arbitrary leading dims, like the PyTorch '... input_size' contract.
    x2 = jax.random.normal(kx, (3, 5, INPUT_SIZE), jnp.float32)
    out2 = jax.block_until_ready(neural_network_forward(x2, padded_params))
    assert out2.shape == (3, 5, NUM_OF_MOVES)

    # Multi-tile grid path (batch=200 -> tb=112, grid=(2,)).
    x3 = jax.random.normal(kx, (200, INPUT_SIZE), jnp.float32)
    out3 = jax.block_until_ready(neural_network_forward(x3, padded_params))
    assert out3.shape == (200, NUM_OF_MOVES)
    ref3 = reference_forward_f32(x3, params)
    assert jnp.allclose(out3, ref3, atol=5e-2, rtol=5e-2), "multi-tile vs f32 ref"

    print("KERNEL_OK")
</pallas_src>

<mosaic_0001>
module attributes {stable_mosaic.version = 11 : i64} {
  func.func @mlp_kernel(%arg0: i32, %arg1: memref<16x256xbf16, #tpu.memory_space<vmem>>, %arg2: memref<256x1024xbf16, #tpu.memory_space<vmem>>, %arg3: memref<1x1024xf32, #tpu.memory_space<vmem>>, %arg4: memref<1024x1024xbf16, #tpu.memory_space<vmem>>, %arg5: memref<1x1024xf32, #tpu.memory_space<vmem>>, %arg6: memref<1024x1024xbf16, #tpu.memory_space<vmem>>, %arg7: memref<1x1024xf32, #tpu.memory_space<vmem>>, %arg8: memref<1024x128xbf16, #tpu.memory_space<vmem>>, %arg9: memref<1x128xf32, #tpu.memory_space<vmem>>, %arg10: memref<16x128xf32, #tpu.memory_space<vmem>>) attributes {dimension_semantics = [#tpu.dimension_semantics<parallel>], iteration_bounds = array<i64: 1>, scalar_prefetch = 0 : i64, scratch_operands = 0 : i64, tpu.core_type = #tpu.core_type<tc>, window_params = [{transform_indices = @transform_0, window_bounds = array<i64: 16, 256>}, {pipeline_mode = #tpu.pipeline_mode<synchronous>, transform_indices = @transform_1, window_bounds = array<i64: 256, 1024>}, {pipeline_mode = #tpu.pipeline_mode<synchronous>, transform_indices = @transform_2, window_bounds = array<i64: 1, 1024>}, {pipeline_mode = #tpu.pipeline_mode<synchronous>, transform_indices = @transform_3, window_bounds = array<i64: 1024, 1024>}, {pipeline_mode = #tpu.pipeline_mode<synchronous>, transform_indices = @transform_4, window_bounds = array<i64: 1, 1024>}, {pipeline_mode = #tpu.pipeline_mode<synchronous>, transform_indices = @transform_5, window_bounds = array<i64: 1024, 1024>}, {pipeline_mode = #tpu.pipeline_mode<synchronous>, transform_indices = @transform_6, window_bounds = array<i64: 1, 1024>}, {pipeline_mode = #tpu.pipeline_mode<synchronous>, transform_indices = @transform_7, window_bounds = array<i64: 1024, 128>}, {pipeline_mode = #tpu.pipeline_mode<synchronous>, transform_indices = @transform_8, window_bounds = array<i64: 1, 128>}, {transform_indices = @transform_9, window_bounds = array<i64: 16, 128>}]} {
    %c0 = arith.constant 0 : index
    %c0_0 = arith.constant 0 : index
    %0 = vector.load %arg1[%c0, %c0_0] : memref<16x256xbf16, #tpu.memory_space<vmem>>, vector<16x256xbf16>
    %c0_1 = arith.constant 0 : index
    %c0_2 = arith.constant 0 : index
    %1 = vector.load %arg2[%c0_1, %c0_2] : memref<256x1024xbf16, #tpu.memory_space<vmem>>, vector<256x1024xbf16>
    %cst = arith.constant dense<0.000000e+00> : vector<16x1024xf32>
    %2 = tpu.matmul %0, %1, %cst {dimension_numbers = #tpu.dot_dimension_numbers<[1], [0], [0], [1], [0, 0, 1, 1], [], []>} : vector<16x256xbf16>, vector<256x1024xbf16>, vector<16x1024xf32> -> vector<16x1024xf32>
    %c0_3 = arith.constant 0 : index
    %c0_4 = arith.constant 0 : index
    %3 = vector.load %arg3[%c0_3, %c0_4] : memref<1x1024xf32, #tpu.memory_space<vmem>>, vector<1x1024xf32>
    %4 = vector.broadcast %3 : vector<1x1024xf32> to vector<16x1024xf32>
    %5 = arith.addf %2, %4 : vector<16x1024xf32>
    %cst_5 = arith.constant 0.000000e+00 : f32
    %6 = vector.broadcast %cst_5 : f32 to vector<16x1024xf32>
    %7 = arith.cmpf ogt, %5, %6 : vector<16x1024xf32>
    %cst_6 = arith.constant 1.000000e-01 : f32
    %8 = vector.broadcast %cst_6 : f32 to vector<16x1024xf32>
    %9 = arith.mulf %8, %5 : vector<16x1024xf32>
    %10 = arith.select %7, %5, %9 : vector<16x1024xi1>, vector<16x1024xf32>
    %11 = arith.truncf %10 : vector<16x1024xf32> to vector<16x1024xbf16>
    %c0_7 = arith.constant 0 : index
    %c0_8 = arith.constant 0 : index
    %12 = vector.load %arg4[%c0_7, %c0_8] : memref<1024x1024xbf16, #tpu.memory_space<vmem>>, vector<1024x1024xbf16>
    %cst_9 = arith.constant dense<0.000000e+00> : vector<16x1024xf32>
    %13 = tpu.matmul %11, %12, %cst_9 {dimension_numbers = #tpu.dot_dimension_numbers<[1], [0], [0], [1], [0, 0, 1, 1], [], []>} : vector<16x1024xbf16>, vector<1024x1024xbf16>, vector<16x1024xf32> -> vector<16x1024xf32>
    %c0_10 = arith.constant 0 : index
    %c0_11 = arith.constant 0 : index
    %14 = vector.load %arg5[%c0_10, %c0_11] : memref<1x1024xf32, #tpu.memory_space<vmem>>, vector<1x1024xf32>
    %15 = vector.broadcast %14 : vector<1x1024xf32> to vector<16x1024xf32>
    %16 = arith.addf %13, %15 : vector<16x1024xf32>
    %cst_12 = arith.constant 0.000000e+00 : f32
    %17 = vector.broadcast %cst_12 : f32 to vector<16x1024xf32>
    %18 = arith.cmpf ogt, %16, %17 : vector<16x1024xf32>
    %cst_13 = arith.constant 1.000000e-01 : f32
    %19 = vector.broadcast %cst_13 : f32 to vector<16x1024xf32>
    %20 = arith.mulf %19, %16 : vector<16x1024xf32>
    %21 = arith.select %18, %16, %20 : vector<16x1024xi1>, vector<16x1024xf32>
    %22 = arith.truncf %21 : vector<16x1024xf32> to vector<16x1024xbf16>
    %c0_14 = arith.constant 0 : index
    %c0_15 = arith.constant 0 : index
    %23 = vector.load %arg6[%c0_14, %c0_15] : memref<1024x1024xbf16, #tpu.memory_space<vmem>>, vector<1024x1024xbf16>
    %cst_16 = arith.constant dense<0.000000e+00> : vector<16x1024xf32>
    %24 = tpu.matmul %22, %23, %cst_16 {dimension_numbers = #tpu.dot_dimension_numbers<[1], [0], [0], [1], [0, 0, 1, 1], [], []>} : vector<16x1024xbf16>, vector<1024x1024xbf16>, vector<16x1024xf32> -> vector<16x1024xf32>
    %c0_17 = arith.constant 0 : index
    %c0_18 = arith.constant 0 : index
    %25 = vector.load %arg7[%c0_17, %c0_18] : memref<1x1024xf32, #tpu.memory_space<vmem>>, vector<1x1024xf32>
    %26 = vector.broadcast %25 : vector<1x1024xf32> to vector<16x1024xf32>
    %27 = arith.addf %24, %26 : vector<16x1024xf32>
    %cst_19 = arith.constant 0.000000e+00 : f32
    %28 = vector.broadcast %cst_19 : f32 to vector<16x1024xf32>
    %29 = arith.cmpf ogt, %27, %28 : vector<16x1024xf32>
    %cst_20 = arith.constant 1.000000e-01 : f32
    %30 = vector.broadcast %cst_20 : f32 to vector<16x1024xf32>
    %31 = arith.mulf %30, %27 : vector<16x1024xf32>
    %32 = arith.select %29, %27, %31 : vector<16x1024xi1>, vector<16x1024xf32>
    %33 = arith.truncf %32 : vector<16x1024xf32> to vector<16x1024xbf16>
    %c0_21 = arith.constant 0 : index
    %c0_22 = arith.constant 0 : index
    %34 = vector.load %arg8[%c0_21, %c0_22] : memref<1024x128xbf16, #tpu.memory_space<vmem>>, vector<1024x128xbf16>
    %cst_23 = arith.constant dense<0.000000e+00> : vector<16x128xf32>
    %35 = tpu.matmul %33, %34, %cst_23 {dimension_numbers = #tpu.dot_dimension_numbers<[1], [0], [0], [1], [0, 0, 1, 1], [], []>} : vector<16x1024xbf16>, vector<1024x128xbf16>, vector<16x128xf32> -> vector<16x128xf32>
    %c0_24 = arith.constant 0 : index
    %c0_25 = arith.constant 0 : index
    %36 = vector.load %arg9[%c0_24, %c0_25] : memref<1x128xf32, #tpu.memory_space<vmem>>, vector<1x128xf32>
    %37 = vector.broadcast %36 : vector<1x128xf32> to vector<16x128xf32>
    %38 = arith.addf %35, %37 : vector<16x128xf32>
    %c0_26 = arith.constant 0 : index
    %c0_27 = arith.constant 0 : index
    %39 = vector.load %arg10[%c0_26, %c0_27] : memref<16x128xf32, #tpu.memory_space<vmem>>, vector<16x128xf32>
    tpu.vector_store %arg10[%c0_26, %c0_27], %38 {strides = array<i32>} : memref<16x128xf32, #tpu.memory_space<vmem>>, vector<16x128xf32>,
    return
  }
  func.func @transform_0(%arg0: i32) -> (i32, i32) {
    %c0_i32 = arith.constant 0 : i32
    %c0_i32_0 = arith.constant 0 : i32
    return %arg0, %c0_i32 : i32, i32
  }
  func.func @transform_1(%arg0: i32) -> (i32, i32) {
    %c0_i32 = arith.constant 0 : i32
    %c0_i32_0 = arith.constant 0 : i32
    %c0_i32_1 = arith.constant 0 : i32
    return %c0_i32, %c0_i32_0 : i32, i32
  }
  func.func @transform_2(%arg0: i32) -> (i32, i32) {
    %c0_i32 = arith.constant 0 : i32
    %c0_i32_0 = arith.constant 0 : i32
    %c0_i32_1 = arith.constant 0 : i32
    return %c0_i32, %c0_i32_0 : i32, i32
  }
  func.func @transform_3(%arg0: i32) -> (i32, i32) {
    %c0_i32 = arith.constant 0 : i32
    %c0_i32_0 = arith.constant 0 : i32
    %c0_i32_1 = arith.constant 0 : i32
    return %c0_i32, %c0_i32_0 : i32, i32
  }
  func.func @transform_4(%arg0: i32) -> (i32, i32) {
    %c0_i32 = arith.constant 0 : i32
    %c0_i32_0 = arith.constant 0 : i32
    %c0_i32_1 = arith.constant 0 : i32
    return %c0_i32, %c0_i32_0 : i32, i32
  }
  func.func @transform_5(%arg0: i32) -> (i32, i32) {
    %c0_i32 = arith.constant 0 : i32
    %c0_i32_0 = arith.constant 0 : i32
    %c0_i32_1 = arith.constant 0 : i32
    return %c0_i32, %c0_i32_0 : i32, i32
  }
  func.func @transform_6(%arg0: i32) -> (i32, i32) {
    %c0_i32 = arith.constant 0 : i32
    %c0_i32_0 = arith.constant 0 : i32
    %c0_i32_1 = arith.constant 0 : i32
    return %c0_i32, %c0_i32_0 : i32, i32
  }
  func.func @transform_7(%arg0: i32) -> (i32, i32) {
    %c0_i32 = arith.constant 0 : i32
    %c0_i32_0 = arith.constant 0 : i32
    %c0_i32_1 = arith.constant 0 : i32
    return %c0_i32, %c0_i32_0 : i32, i32
  }
  func.func @transform_8(%arg0: i32) -> (i32, i32) {
    %c0_i32 = arith.constant 0 : i32
    %c0_i32_0 = arith.constant 0 : i32
    %c0_i32_1 = arith.constant 0 : i32
    return %c0_i32, %c0_i32_0 : i32, i32
  }
  func.func @transform_9(%arg0: i32) -> (i32, i32) {
    %c0_i32 = arith.constant 0 : i32
    %c0_i32_0 = arith.constant 0 : i32
    return %arg0, %c0_i32 : i32, i32
  }
}

</mosaic_0001>

<bundles_post_ra>
// kernel: neural_network_forward.1
= control target key start
LH: loop header
LB: loop body
LE: loop exit
PB: predicated region body
PF: predicated region fallthrough
CT: control target
= control target key end

     0   :  { %14 = vsyncpa [#allocation3], 0  ;;  %s11854_s0 = inlined_call_operand.vmem [shape: bf16[16,256], index: 0, kind: input, shape index: {}]   ;;  %s11855_s1 = inlined_call_operand.hbm [shape: bf16[256,1024], index: 1, kind: input, shape index: {}]   ;;  %s11856_s2 = inlined_call_operand.hbm [shape: f32[1,1024], index: 2, kind: input, shape index: {}]   ;;  %s11857_s3 = inlined_call_operand.hbm [shape: bf16[1024,1024], index: 3, kind: input, shape index: {}]   ;;  %s11858_s4 = inlined_call_operand.hbm [shape: f32[1,1024], index: 4, kind: input, shape index: {}]   ;;  %s11859_s5 = inlined_call_operand.hbm [shape: bf16[1024,1024], index: 5, kind: input, shape index: {}]   ;;  %s11860_s6 = inlined_call_operand.hbm [shape: f32[1,1024], index: 6, kind: input, shape index: {}]   ;;  %s11861_s7 = inlined_call_operand.hbm [shape: bf16[1024,128], index: 7, kind: input, shape index: {}]   ;;  %s11862_s8 = inlined_call_operand.hbm [shape: f32[1,128], index: 8, kind: input, shape index: {}]   ;;  %s11863_s9 = inlined_call_operand.vmem [shape: f32[16,128], index: 9, kind: output, shape index: {}]  }
   0x1   :  { %15 = vsyncpa [#allocation5], 0 }
   0x2   :  { %16 = vsyncpa [#allocation8], 0 }
   0x3   :  { %17 = vsyncpa [#allocation11], 0 }
   0x4   :  { %18 = vsyncpa [#allocation14], 0  ;;  %s11295_s30 = smov [#allocation4]   ;;  %s11296_s11 = smov [#allocation7]  }
   0x5   :  { %s39_s10 = sshll.u32 %s11295_s30, 4  ;;  %s61_s12 = sshll.u32 %s11296_s11, 4  ;;  %s40_s10 = int_to_ptr.vmem [resolvable:$true] %s39_s10  ;;  %s62_s12 = int_to_ptr.vmem [resolvable:$true] %s61_s12 }
   0x6   :  { %s11109_s15 = scalar_lea.hbm %s11856_s2, 128 }
   0x7   :  { %p11110_p0 = scmp.ne.s32.totalorder %s11856_s2, %s11109_s15  ;;  %p11113_p1 = scmp.lt.u32.totalorder %s11109_s15, %s11856_s2 }
   0x9   :  { %p11115_p2 = pnand %p11113_p1, %p11110_p0 }
   0xb   :  { %11118 = shalt.err (!%p11115_p2)
}
   0xc   :  { %s11119_s20 = scalar_lea.vmem %s40_s10, 128  ;;  %p11124_p4 = scmp.lt.s32.totalorder %s40_s10, %s40_s10 }
   0xd   :  { %p11120_p3 = scmp.ne.s32.totalorder %s40_s10, %s11119_s20  ;;  %p11125_p5 = scmp.lt.s32.totalorder %s11119_s20, %s11119_s20 }
   0xf   :  { %p11126_p6 = por %p11125_p5, %p11124_p4 }
  0x11   :  { %p11127_p7 = pnand %p11126_p6, %p11120_p3 }
  0x13   :  { %11130 = shalt.err (!%p11127_p7)
}
  0x14   :  { %42 = dma.hbm_to_vmem [thread:$0]  %s11856_s2, 128, %s40_s10, [#allocation5]  }
  0x15   :  { %s11131_s25 = scalar_lea.hbm %s11858_s4, 128 }
  0x16   :  { %p11132_p8 = scmp.ne.s32.totalorder %s11858_s4, %s11131_s25  ;;  %p11135_p9 = scmp.lt.u32.totalorder %s11131_s25, %s11858_s4 }
  0x18   :  { %p11137_p10 = pnand %p11135_p9, %p11132_p8 }
  0x1a   :  { %11140 = shalt.err (!%p11137_p10)
}
  0x1b   :  { %s11141_s30 = scalar_lea.vmem %s62_s12, 128  ;;  %p11146_p12 = scmp.lt.s32.totalorder %s62_s12, %s62_s12 }
  0x1c   :  { %p11142_p11 = scmp.ne.s32.totalorder %s62_s12, %s11141_s30  ;;  %p11147_p13 = scmp.lt.s32.totalorder %s11141_s30, %s11141_s30 }
  0x1e   :  { %p11148_p0 = por %p11147_p13, %p11146_p12 }
  0x20   :  { %p11149_p1 = pnand %p11148_p0, %p11142_p11 }
  0x22   :  { %11152 = shalt.err (!%p11149_p1)
}
  0x23   :  { %64 = dma.hbm_to_vmem [thread:$0]  %s11858_s4, 128, %s62_s12, [#allocation8]  }
  0x24   :  { %s11297_s11 = smov [#allocation10]   ;;  %s11298_s14 = smov [#allocation2]  }
  0x25   :  { %s83_s13 = sshll.u32 %s11297_s11, 4  ;;  %s26_s15 = sshll.u32 %s11298_s14, 4  ;;  %s84_s13 = int_to_ptr.vmem [resolvable:$true] %s83_s13  ;;  %s11381_s15 = int_to_ptr.vmem [resolvable:$true] %s26_s15 }
  0x26   :  { %s11153_s18 = scalar_lea.hbm %s11860_s6, 128 }
  0x27   :  { %p11154_p2 = scmp.ne.s32.totalorder %s11860_s6, %s11153_s18  ;;  %p11157_p3 = scmp.lt.u32.totalorder %s11153_s18, %s11860_s6 }
  0x29   :  { %p11159_p4 = pnand %p11157_p3, %p11154_p2 }
  0x2b   :  { %11162 = shalt.err (!%p11159_p4)
}
  0x2c   :  { %s11163_s4 = scalar_lea.vmem %s84_s13, 128  ;;  %p11168_p6 = scmp.lt.s32.totalorder %s84_s13, %s84_s13 }
  0x2d   :  { %p11164_p5 = scmp.ne.s32.totalorder %s84_s13, %s11163_s4  ;;  %p11169_p7 = scmp.lt.s32.totalorder %s11163_s4, %s11163_s4 }
  0x2f   :  { %p11170_p8 = por %p11169_p7, %p11168_p6 }
  0x31   :  { %p11171_p9 = pnand %p11170_p8, %p11164_p5 }
  0x33   :  { %11174 = shalt.err (!%p11171_p9)
}
  0x34   :  { %86 = dma.hbm_to_vmem [thread:$0]  %s11860_s6, 128, %s84_s13, [#allocation11]  }
  0x35   :  { %s11175_s26 = scalar_lea.hbm %s11855_s1, 16384 }
  0x36   :  { %p11176_p10 = scmp.ne.s32.totalorder %s11855_s1, %s11175_s26  ;;  %p11179_p11 = scmp.lt.u32.totalorder %s11175_s26, %s11855_s1 }
  0x38   :  { %p11181_p12 = pnand %p11179_p11, %p11176_p10 }
  0x3a   :  { %11184 = shalt.err (!%p11181_p12)
}
  0x3b   :  { %s11185_s2 = scalar_lea.vmem %s11381_s15, 16384  ;;  %p11190_p0 = scmp.lt.s32.totalorder %s11381_s15, %s11381_s15 }
  0x3c   :  { %p11186_p13 = scmp.ne.s32.totalorder %s11381_s15, %s11185_s2  ;;  %p11191_p1 = scmp.lt.s32.totalorder %s11185_s2, %s11185_s2 }
  0x3e   :  { %p11192_p2 = por %p11191_p1, %p11190_p0 }
  0x40   :  { %p11193_p3 = pnand %p11192_p2, %p11186_p13 }
  0x42   :  { %11196 = shalt.err (!%p11193_p3)
}
  0x43   :  { %s11299_s6 = smov 512   ;;  %s11300_s10 = smov 32  }
  0x44   :  { %32 = dma.hbm_to_vmem [thread:$0]  %s11855_s1, 16384, %s11381_s15, [#allocation3], %s11299_s6, %s11299_s6, %s11300_s10  }
  0x45   :  { %s11301_s14 = smov [#allocation6]   ;;  %s11302_s17 = smov [#allocation9]  }
  0x46   :  { %s48_s16 = sshll.u32 %s11301_s14, 4  ;;  %s70_s18 = sshll.u32 %s11302_s17, 4  ;;  %s49_s16 = int_to_ptr.vmem [resolvable:$true] %s48_s16  ;;  %s11415_s18 = int_to_ptr.vmem [resolvable:$true] %s70_s18 }
  0x47   :  { %s11197_s21 = scalar_lea.hbm %s11857_s3, 65536 }
  0x48   :  { %p11198_p4 = scmp.ne.s32.totalorder %s11857_s3, %s11197_s21  ;;  %p11201_p5 = scmp.lt.u32.totalorder %s11197_s21, %s11857_s3 }
  0x4a   :  { %p11203_p6 = pnand %p11201_p5, %p11198_p4 }
  0x4c   :  { %11206 = shalt.err (!%p11203_p6)
}
  0x4d   :  { %s11207_s1 = scalar_lea.vmem %s49_s16, 65536  ;;  %p11212_p8 = scmp.lt.s32.totalorder %s49_s16, %s49_s16 }
  0x4e   :  { %p11208_p7 = scmp.ne.s32.totalorder %s49_s16, %s11207_s1  ;;  %p11213_p9 = scmp.lt.s32.totalorder %s11207_s1, %s11207_s1 }
  0x50   :  { %p11214_p10 = por %p11213_p9, %p11212_p8 }
  0x52   :  { %p11215_p11 = pnand %p11214_p10, %p11208_p7 }
  0x54   :  { %11218 = shalt.err (!%p11215_p11)
}
  0x55   :  { %54 = dma.hbm_to_vmem [thread:$0]  %s11857_s3, 65536, %s49_s16, [#allocation5], %s11299_s6, %s11299_s6, %s11300_s10  }
  0x56   :  { %s11219_s27 = scalar_lea.hbm %s11859_s5, 65536 }
  0x57   :  { %p11220_p12 = scmp.ne.s32.totalorder %s11859_s5, %s11219_s27  ;;  %p11223_p13 = scmp.lt.u32.totalorder %s11219_s27, %s11859_s5 }
  0x59   :  { %p11225_p0 = pnand %p11223_p13, %p11220_p12 }
  0x5b   :  { %11228 = shalt.err (!%p11225_p0)
}
  0x5c   :  { %s11229_s11 = scalar_lea.vmem %s11415_s18, 65536  ;;  %p11234_p2 = scmp.lt.s32.totalorder %s11415_s18, %s11415_s18 }
  0x5d   :  { %p11230_p1 = scmp.ne.s32.totalorder %s11415_s18, %s11229_s11  ;;  %p11235_p3 = scmp.lt.s32.totalorder %s11229_s11, %s11229_s11 }
  0x5f   :  { %p11236_p4 = por %p11235_p3, %p11234_p2 }
  0x61   :  { %p11237_p5 = pnand %p11236_p4, %p11230_p1 }
  0x63   :  { %11240 = shalt.err (!%p11237_p5)
}
  0x64   :  { %76 = dma.hbm_to_vmem [thread:$0]  %s11859_s5, 65536, %s11415_s18, [#allocation8], %s11299_s6, %s11299_s6, %s11300_s10  }
  0x65   :  { %s11303_s14 = smov [#allocation12]   ;;  %s11241_s20 = scalar_lea.hbm %s11861_s7, 8192 }
  0x66   :  { %s92_s16 = sshll.u32 %s11303_s14, 4  ;;  %p11242_p6 = scmp.ne.s32.totalorder %s11861_s7, %s11241_s20  ;;  %s93_s16 = int_to_ptr.vmem [resolvable:$true] %s92_s16 }
  0x67   :  { %p11245_p7 = scmp.lt.u32.totalorder %s11241_s20, %s11861_s7 }
  0x69   :  { %p11247_p8 = pnand %p11245_p7, %p11242_p6 }
  0x6b   :  { %11250 = shalt.err (!%p11247_p8)
}
  0x6c   :  { %s11251_s23 = scalar_lea.vmem %s93_s16, 8192  ;;  %p11256_p10 = scmp.lt.s32.totalorder %s93_s16, %s93_s16 }
  0x6d   :  { %p11252_p9 = scmp.ne.s32.totalorder %s93_s16, %s11251_s23  ;;  %p11257_p11 = scmp.lt.s32.totalorder %s11251_s23, %s11251_s23 }
  0x6f   :  { %p11258_p12 = por %p11257_p11, %p11256_p10 }
  0x71   :  { %p11259_p13 = pnand %p11258_p12, %p11252_p9 }
  0x73   :  { %11262 = shalt.err (!%p11259_p13)
}
  0x74   :  { %s11304_s5 = smov 64   ;;  %s11305_s6 = smov 4  }
  0x75   :  { %98 = dma.hbm_to_vmem [thread:$0]  %s11861_s7, 8192, %s93_s16, [#allocation11], %s11304_s5, %s11304_s5, %s11305_s6  }
  0x76   :  { %s11306_s1 = smov [#allocation13]   ;;  %s11263_s26 = scalar_lea.hbm %s11862_s8, 16 }
  0x77   :  { %s105_s15 = sshll.u32 %s11306_s1, 4  ;;  %p11264_p0 = scmp.ne.s32.totalorder %s11862_s8, %s11263_s26  ;;  %s106_s15 = int_to_ptr.vmem [resolvable:$true] %s105_s15 }
  0x78   :  { %p11267_p1 = scmp.lt.u32.totalorder %s11263_s26, %s11862_s8 }
  0x7a   :  { %p11269_p2 = pnand %p11267_p1, %p11264_p0 }
  0x7c   :  { %11272 = shalt.err (!%p11269_p2)
}
  0x7d   :  { %s11273_s2 = scalar_lea.vmem %s106_s15, 16  ;;  %s11277_s7 = scalar_lea.vmem %s106_s15, 32 }
  0x7e   :  { %p11274_p3 = scmp.ne.s32.totalorder %s106_s15, %s11273_s2  ;;  %p11278_p4 = scmp.lt.s32.totalorder %s106_s15, %s106_s15 }
  0x7f   :  { %p11279_p5 = scmp.lt.s32.totalorder %s11277_s7, %s11273_s2 }
  0x81   :  { %p11280_p6 = por %p11279_p5, %p11278_p4 }
  0x83   :  { %p11281_p7 = pnand %p11280_p6, %p11274_p3 }
  0x85   :  { %11284 = shalt.err (!%p11281_p7)
}
  0x86   :  { %108 = dma.hbm_to_vmem [thread:$0]  %s11862_s8, 16, %s106_s15, [#allocation14]  }
  0x87   :  { %11285 = dma.done.wait [#allocation3], 16384  }
  0x88   :  { %11286 = vsyncadd [#allocation3], 4294950912 }
  0x89   :  { %11287 = dma.done.wait [#allocation5], 65664  }
  0x8a   :  { %11288 = vsyncadd [#allocation5], 4294901632 }
  0x8b   :  { %11289 = dma.done.wait [#allocation8], 65664  }
  0x8c   :  { %11290 = vsyncadd [#allocation8], 4294901632 }
  0x8d   :  { %11291 = dma.done.wait [#allocation11], 8320  }
  0x8e   :  { %11292 = vsyncadd [#allocation11], 4294958976 }
  0x8f   :  { %11293 = dma.done.wait [#allocation14], 16  }
  0x90   :  { %11294 = vsyncadd [#allocation14], 4294967280  ;;  %v136_v0 = vld [vmem:[#allocation2] sm:$0xff]  ;;  %v137_v17 = vld [vmem:[#allocation2 + $0x8] sm:$0xff] }
  0x91   :  { %v140_v1 = vld [vmem:[#allocation2 + $0x20] sm:$0xff]  ;;  %v141_v18 = vld [vmem:[#allocation2 + $0x28] sm:$0xff] }
  0x92   :  { %v144_v2 = vld [vmem:[#allocation2 + $0x40] sm:$0xff]  ;;  %v9597_v3 = vcombine.high %v136_v0, %v140_v1  ;;  %v9596_v4 = vcombine.low %v136_v0, %v140_v1  ;;  %v9599_v19 = vcombine.high %v137_v17, %v141_v18  ;;  %v9598_v20 = vcombine.low %v137_v17, %v141_v18  ;;  %v145_v23 = vld [vmem:[#allocation2 + $0x48] sm:$0xff] }
  0x93   :  { %v148_v5 = vld [vmem:[#allocation2 + $0x60] sm:$0xff]  ;;  %v149_v24 = vld [vmem:[#allocation2 + $0x68] sm:$0xff] }
  0x94   :  { %v9605_v6 = vcombine.high %v144_v2, %v148_v5  ;;  %v152_v7 = vld [vmem:[#allocation2 + $0x80] sm:$0xff]  ;;  %956 = vmatprep.subr.bf16.mxu0 %v9597_v3  ;;  %v9604_v9 = vcombine.low %v144_v2, %v148_v5  ;;  %999 = vmatprep.subr.bf16.mxu1 %v9599_v19  ;;  %v9607_v26 = vcombine.high %v145_v23, %v149_v24  ;;  %v153_v27 = vld [vmem:[#allocation2 + $0x88] sm:$0xff] }
  0x95   :  { %v156_v8 = vld [vmem:[#allocation2 + $0xa0] sm:$0xff]  ;;  %957 = vmatpush1.bf16.msra.mxu0 %v9596_v4  ;;  %v157_v28 = vld [vmem:[#allocation2 + $0xa8] sm:$0xff]  ;;  %1000 = vmatpush1.bf16.msra.mxu1 %v9598_v20  ;;  %v9606_v31 = vcombine.low %v145_v23, %v149_v24 }
  0x96   :  { %958 = vmatprep.subr.bf16.mxu0 %v9605_v6  ;;  %v9613_v10 = vcombine.high %v152_v7, %v156_v8  ;;  %v160_v11 = vld [vmem:[#allocation2 + $0xc0] sm:$0xff]  ;;  %v9612_v13 = vcombine.low %v152_v7, %v156_v8  ;;  %1001 = vmatprep.subr.bf16.mxu1 %v9607_v26  ;;  %v9615_v32 = vcombine.high %v153_v27, %v157_v28  ;;  %v161_v34 = vld [vmem:[#allocation2 + $0xc8] sm:$0xff] }
  0x97   :  { %v164_v12 = vld [vmem:[#allocation2 + $0xe0] sm:$0xff]  ;;  %v165_v35 = vld [vmem:[#allocation2 + $0xe8] sm:$0xff]  ;;  %v9614_v39 = vcombine.low %v153_v27, %v157_v28 }
  0x98   :  { %v9621_v14 = vcombine.high %v160_v11, %v164_v12  ;;  %v168_v15 = vld [vmem:[#allocation2 + $0x100] sm:$0xff]  ;;  %v9620_v21 = vcombine.low %v160_v11, %v164_v12  ;;  %v9623_v40 = vcombine.high %v161_v34, %v165_v35  ;;  %v169_v42 = vld [vmem:[#allocation2 + $0x108] sm:$0xff]  ;;  %v9622_v47 = vcombine.low %v161_v34, %v165_v35 }
  0x99   :  { %959 = vmatpush1.bf16.msra.mxu0 %v9604_v9  ;;  %v172_v16 = vld [vmem:[#allocation2 + $0x120] sm:$0xff]  ;;  %1002 = vmatpush1.bf16.msra.mxu1 %v9606_v31  ;;  %v173_v43 = vld [vmem:[#allocation2 + $0x128] sm:$0xff] }
  0x9a   :  { %960 = vmatprep.subr.bf16.mxu0 %v9613_v10  ;;  %v11479_v22 = vld [vmem:[%s11854_s0 + $0x4] ss:$8 sps:$4 sm:$0xff]   ;;  %v9629_v25 = vcombine.high %v168_v15, %v172_v16  ;;  %v9628_v33 = vcombine.low %v168_v15, %v172_v16  ;;  %1003 = vmatprep.subr.bf16.mxu1 %v9615_v32  ;;  %v9631_v48 = vcombine.high %v169_v42, %v173_v43 }
  0x9b   :  { %v176_v29 = vld [vmem:[#allocation2 + $0x140] sm:$0xff]  ;;  %988 = vmatprep.mubr.bf16.mxu0 %v11479_v22  ;;  %1031 = vmatprep.mubr.bf16.mxu1 %v11479_v22  ;;  %v177_v50 = vld [vmem:[#allocation2 + $0x148] sm:$0xff]  ;;  %v9630_v55 = vcombine.low %v169_v42, %v173_v43 }
  0x9c   :  { %v180_v30 = vld [vmem:[#allocation2 + $0x160] sm:$0xff]  ;;  %v181_v51 = vld [vmem:[#allocation2 + $0x168] sm:$0xff] }
  0x9d   :  { %961 = vmatpush1.bf16.msra.mxu0 %v9612_v13  ;;  %v9637_v36 = vcombine.high %v176_v29, %v180_v30  ;;  %v184_v37 = vld [vmem:[#allocation2 + $0x180] sm:$0xff]  ;;  %v9636_v41 = vcombine.low %v176_v29, %v180_v30  ;;  %1004 = vmatpush1.bf16.msra.mxu1 %v9614_v39  ;;  %v9639_v56 = vcombine.high %v177_v50, %v181_v51  ;;  %v185_v58 = vld [vmem:[#allocation2 + $0x188] sm:$0xff] }
  0x9e   :  { %962 = vmatprep.subr.bf16.mxu0 %v9621_v14  ;;  %v188_v38 = vld [vmem:[#allocation2 + $0x1a0] sm:$0xff]  ;;  %1005 = vmatprep.subr.bf16.mxu1 %v9623_v40  ;;  %v189_v59 = vld [vmem:[#allocation2 + $0x1a8] sm:$0xff]  ;;  %v9638_v63 = vcombine.low %v177_v50, %v181_v51 }
  0x9f   :  { %v9645_v44 = vcombine.high %v184_v37, %v188_v38  ;;  %v192_v45 = vld [vmem:[#allocation2 + $0x1c0] sm:$0xff]  ;;  %v9644_v49 = vcombine.low %v184_v37, %v188_v38  ;;  %v9647_v0 = vcombine.high %v185_v58, %v189_v59  ;;  %v193_v2 = vld [vmem:[#allocation2 + $0x1c8] sm:$0xff]  ;;  %v9646_v7 = vcombine.low %v185_v58, %v189_v59 }
  0xa0   :  { %v196_v46 = vld [vmem:[#allocation2 + $0x1e0] sm:$0xff]  ;;  %v197_v3 = vld [vmem:[#allocation2 + $0x1e8] sm:$0xff] }
  0xa1   :  { %963 = vmatpush1.bf16.msra.mxu0 %v9620_v21  ;;  %v9653_v52 = vcombine.high %v192_v45, %v196_v46  ;;  %v200_v53 = vld [vmem:[#allocation2 + $0x200] sm:$0xff]  ;;  %1006 = vmatpush1.bf16.msra.mxu1 %v9622_v47  ;;  %v9652_v57 = vcombine.low %v192_v45, %v196_v46  ;;  %v9655_v8 = vcombine.high %v193_v2, %v197_v3  ;;  %v201_v10 = vld [vmem:[#allocation2 + $0x208] sm:$0xff] }
  0xa2   :  { %964 = vmatprep.subr.bf16.mxu0 %v9629_v25  ;;  %v204_v54 = vld [vmem:[#allocation2 + $0x220] sm:$0xff]  ;;  %1007 = vmatprep.subr.bf16.mxu1 %v9631_v48  ;;  %v205_v11 = vld [vmem:[#allocation2 + $0x228] sm:$0xff]  ;;  %v9654_v15 = vcombine.low %v193_v2, %v197_v3 }
  0xa3   :  { %v9661_v60 = vcombine.high %v200_v53, %v204_v54  ;;  %v208_v61 = vld [vmem:[#allocation2 + $0x240] sm:$0xff]  ;;  %v9660_v1 = vcombine.low %v200_v53, %v204_v54  ;;  %v9663_v16 = vcombine.high %v201_v10, %v205_v11  ;;  %v209_v18 = vld [vmem:[#allocation2 + $0x248] sm:$0xff]  ;;  %v9662_v24 = vcombine.low %v201_v10, %v205_v11  ;;  %v139_v10 = vld [vmem:[#allocation2 + $0x18] sm:$0xff] }
  0xa4   :  { %v212_v62 = vld [vmem:[#allocation2 + $0x260] sm:$0xff]  ;;  %v213_v19 = vld [vmem:[#allocation2 + $0x268] sm:$0xff] }
  0xa5   :  { %965 = vmatpush1.bf16.msra.mxu0 %v9628_v33  ;;  %1008 = vmatpush1.bf16.msra.mxu1 %v9630_v55  ;;  %v9669_v4 = vcombine.high %v208_v61, %v212_v62  ;;  %v216_v5 = vld [vmem:[#allocation2 + $0x280] sm:$0xff]  ;;  %v9668_v9 = vcombine.low %v208_v61, %v212_v62  ;;  %v9671_v25 = vcombine.high %v209_v18, %v213_v19  ;;  %v217_v27 = vld [vmem:[#allocation2 + $0x288] sm:$0xff]  ;;  %v138_v55 = vld [vmem:[#allocation2 + $0x10] sm:$0xff] }
  0xa6   :  { %966 = vmatprep.subr.bf16.mxu0 %v9637_v36  ;;  %1009 = vmatprep.subr.bf16.mxu1 %v9639_v56  ;;  %v220_v6 = vld [vmem:[#allocation2 + $0x2a0] sm:$0xff]  ;;  %v221_v28 = vld [vmem:[#allocation2 + $0x2a8] sm:$0xff]  ;;  %v9670_v32 = vcombine.low %v209_v18, %v213_v19  ;;  %v142_v56 = vld [vmem:[#allocation2 + $0x30] sm:$0xff] }
  0xa7   :  { %v9677_v12 = vcombine.high %v216_v5, %v220_v6  ;;  %v224_v13 = vld [vmem:[#allocation2 + $0x2c0] sm:$0xff]  ;;  %v9676_v17 = vcombine.low %v216_v5, %v220_v6  ;;  %v9679_v33 = vcombine.high %v217_v27, %v221_v28  ;;  %v225_v35 = vld [vmem:[#allocation2 + $0x2c8] sm:$0xff]  ;;  %v9678_v40 = vcombine.low %v217_v27, %v221_v28  ;;  %v154_v6 = vld [vmem:[#allocation2 + $0x90] sm:$0xff] }
  0xa8   :  { %v228_v14 = vld [vmem:[#allocation2 + $0x2e0] sm:$0xff]  ;;  %v229_v36 = vld [vmem:[#allocation2 + $0x2e8] sm:$0xff]  ;;  %v9601_v61 = vcombine.high %v138_v55, %v142_v56  ;;  %v9600_v5 = vcombine.low %v138_v55, %v142_v56  ;;  %v147_v18 = vld [vmem:[#allocation2 + $0x58] sm:$0xff] }
  0xa9   :  { %967 = vmatpush1.bf16.msra.mxu0 %v9636_v41  ;;  %1010 = vmatpush1.bf16.msra.mxu1 %v9638_v63  ;;  %v9685_v20 = vcombine.high %v224_v13, %v228_v14  ;;  %v232_v21 = vld [vmem:[#allocation2 + $0x300] sm:$0xff]  ;;  %v9684_v26 = vcombine.low %v224_v13, %v228_v14  ;;  %v9687_v41 = vcombine.high %v225_v35, %v229_v36  ;;  %v233_v43 = vld [vmem:[#allocation2 + $0x308] sm:$0xff]  ;;  %v162_v14 = vld [vmem:[#allocation2 + $0xd0] sm:$0xff] }
  0xaa   :  { %968 = vmatprep.subr.bf16.mxu0 %v9645_v44  ;;  %1011 = vmatprep.subr.bf16.mxu1 %v9647_v0  ;;  %v236_v23 = vld [vmem:[#allocation2 + $0x320] sm:$0xff]  ;;  %v237_v44 = vld [vmem:[#allocation2 + $0x328] sm:$0xff]  ;;  %v9686_v48 = vcombine.low %v225_v35, %v229_v36  ;;  %v146_v0 = vld [vmem:[#allocation2 + $0x50] sm:$0xff] }
  0xab   :  { %v9693_v29 = vcombine.high %v232_v21, %v236_v23  ;;  %v240_v30 = vld [vmem:[#allocation2 + $0x340] sm:$0xff]  ;;  %v9692_v34 = vcombine.low %v232_v21, %v236_v23  ;;  %v241_v51 = vld [vmem:[#allocation2 + $0x348] sm:$0xff]  ;;  %v9694_v54 = vcombine.low %v233_v43, %v237_v44  ;;  %v151_v19 = vld [vmem:[#allocation2 + $0x78] sm:$0xff] }
  0xac   :  { %v244_v31 = vld [vmem:[#allocation2 + $0x360] sm:$0xff]  ;;  %v249_v59 = vld [vmem:[#allocation2 + $0x388] sm:$0xff]  ;;  %v170_v23 = vld [vmem:[#allocation2 + $0x110] sm:$0xff] }
  0xad   :  { %969 = vmatpush1.bf16.msra.mxu0 %v9644_v49  ;;  %1012 = vmatpush1.bf16.msra.mxu1 %v9646_v7  ;;  %v9701_v37 = vcombine.high %v240_v30, %v244_v31  ;;  %v248_v38 = vld [vmem:[#allocation2 + $0x380] sm:$0xff]  ;;  %v9700_v42 = vcombine.low %v240_v30, %v244_v31  ;;  %v9695_v49 = vcombine.high %v233_v43, %v237_v44  ;;  %v257_v3 = vld [vmem:[#allocation2 + $0x3c8] sm:$0xff]  ;;  %v155_v27 = vld [vmem:[#allocation2 + $0x98] sm:$0xff] }
  0xae   :  { %970 = vmatprep.subr.bf16.mxu0 %v9653_v52  ;;  %1013 = vmatprep.subr.bf16.mxu1 %v9655_v8  ;;  %v252_v39 = vld [vmem:[#allocation2 + $0x3a0] sm:$0xff]  ;;  %v245_v52 = vld [vmem:[#allocation2 + $0x368] sm:$0xff]  ;;  %v158_v8 = vld [vmem:[#allocation2 + $0xb0] sm:$0xff] }
  0xaf   :  { %v9709_v45 = vcombine.high %v248_v38, %v252_v39  ;;  %v256_v46 = vld [vmem:[#allocation2 + $0x3c0] sm:$0xff]  ;;  %v9708_v50 = vcombine.low %v248_v38, %v252_v39  ;;  %v9702_v63 = vcombine.low %v241_v51, %v245_v52  ;;  %v9616_v21 = vcombine.low %v154_v6, %v158_v8  ;;  %v159_v28 = vld [vmem:[#allocation2 + $0xb8] sm:$0xff]  ;;  %v178_v31 = vld [vmem:[#allocation2 + $0x150] sm:$0xff] }
  0xb0   :  { %v260_v47 = vld [vmem:[#allocation2 + $0x3e0] sm:$0xff]  ;;  %v163_v35 = vld [vmem:[#allocation2 + $0xd8] sm:$0xff]  ;;  %v186_v39 = vld [vmem:[#allocation2 + $0x190] sm:$0xff] }
  0xb1   :  { %971 = vmatpush1.bf16.msra.mxu0 %v9652_v57  ;;  %1014 = vmatpush1.bf16.msra.mxu1 %v9654_v15  ;;  %v9717_v53 = vcombine.high %v256_v46, %v260_v47  ;;  %v9703_v57 = vcombine.high %v241_v51, %v245_v52  ;;  %v9716_v58 = vcombine.low %v256_v46, %v260_v47  ;;  %v11486_v62 = vld [vmem:[%s11854_s0] ss:$8 sps:$4 sm:$0xff]   ;;  %v166_v15 = vld [vmem:[#allocation2 + $0xf0] sm:$0xff]  ;;  %v167_v36 = vld [vmem:[#allocation2 + $0xf8] sm:$0xff] }
  0xb2   :  { %972 = vmatprep.subr.bf16.mxu0 %v9661_v60  ;;  %1015 = vmatprep.subr.bf16.mxu1 %v9663_v16  ;;  %v253_v60 = vld [vmem:[#allocation2 + $0x3a8] sm:$0xff]  ;;  %v9617_v16 = vcombine.high %v154_v6, %v158_v8  ;;  %v9624_v30 = vcombine.low %v162_v14, %v166_v15  ;;  %v171_v43 = vld [vmem:[#allocation2 + $0x118] sm:$0xff]  ;;  %v194_v47 = vld [vmem:[#allocation2 + $0x1d0] sm:$0xff] }
  0xb3   :  { %v9711_v2 = vcombine.high %v249_v59, %v253_v60  ;;  %v175_v44 = vld [vmem:[#allocation2 + $0x138] sm:$0xff]  ;;  %v206_v55 = vld [vmem:[#allocation2 + $0x230] sm:$0xff] }
  0xb4   :  { %v183_v51 = vld [vmem:[#allocation2 + $0x178] sm:$0xff]  ;;  %v9635_v52 = vcombine.high %v171_v43, %v175_v44  ;;  %v222_v8 = vld [vmem:[#allocation2 + $0x2b0] sm:$0xff] }
  0xb5   :  { %973 = vmatpush1.bf16.msra.mxu0 %v9660_v1  ;;  %1016 = vmatpush1.bf16.msra.mxu1 %v9662_v24  ;;  %v150_v1 = vld [vmem:[#allocation2 + $0x70] sm:$0xff] }
  0xb6   :  { %974 = vmatprep.subr.bf16.mxu0 %v9669_v4  ;;  %1017 = vmatprep.subr.bf16.mxu1 %v9671_v25  ;;  %v261_v4 = vld [vmem:[#allocation2 + $0x3e8] sm:$0xff]  ;;  %v9609_v7 = vcombine.high %v146_v0, %v150_v1  ;;  %v9608_v13 = vcombine.low %v146_v0, %v150_v1  ;;  %v174_v24 = vld [vmem:[#allocation2 + $0x130] sm:$0xff]  ;;  %v9625_v25 = vcombine.high %v162_v14, %v166_v15 }
  0xb7   :  { %v9719_v11 = vcombine.high %v257_v3, %v261_v4  ;;  %v9632_v38 = vcombine.low %v170_v23, %v174_v24  ;;  %v214_v0 = vld [vmem:[#allocation2 + $0x270] sm:$0xff] }
  0xb8   :  { %v226_v15 = vld [vmem:[#allocation2 + $0x2d0] sm:$0xff] }
  0xb9   :  { %975 = vmatpush1.bf16.msra.mxu0 %v9668_v9  ;;  %1018 = vmatpush1.bf16.msra.mxu1 %v9670_v32  ;;  %v9710_v9 = vcombine.low %v249_v59, %v253_v60  ;;  %v182_v32 = vld [vmem:[#allocation2 + $0x170] sm:$0xff]  ;;  %v191_v59 = vld [vmem:[#allocation2 + $0x1b8] sm:$0xff] }
  0xba   :  { %976 = vmatprep.subr.bf16.mxu0 %v9677_v12  ;;  %1019 = vmatprep.subr.bf16.mxu1 %v9679_v33  ;;  %v143_v12 = vld [vmem:[#allocation2 + $0x38] sm:$0xff]  ;;  %v9633_v33 = vcombine.high %v170_v23, %v174_v24  ;;  %v9640_v46 = vcombine.low %v178_v31, %v182_v32 }
  0xbd   :  { %977 = vmatpush1.bf16.msra.mxu0 %v9676_v17  ;;  %1020 = vmatpush1.bf16.msra.mxu1 %v9678_v40  ;;  %v9718_v17 = vcombine.low %v257_v3, %v261_v4  ;;  %v190_v40 = vld [vmem:[#allocation2 + $0x1b0] sm:$0xff]  ;;  %v195_v3 = vld [vmem:[#allocation2 + $0x1d8] sm:$0xff] }
  0xbe   :  { %978 = vmatprep.subr.bf16.mxu0 %v9685_v20  ;;  %1021 = vmatprep.subr.bf16.mxu1 %v9687_v41  ;;  %v9603_v20 = vcombine.high %v139_v10, %v143_v12  ;;  %v9641_v41 = vcombine.high %v178_v31, %v182_v32  ;;  %v199_v4 = vld [vmem:[#allocation2 + $0x1f8] sm:$0xff] }
  0xbf   :  { %v223_v31 = vld [vmem:[#allocation2 + $0x2b8] sm:$0xff] }
  0xc1   :  { %979 = vmatpush1.bf16.msra.mxu0 %v9684_v26  ;;  %1022 = vmatpush1.bf16.msra.mxu1 %v9686_v48  ;;  %v9602_v26 = vcombine.low %v139_v10, %v143_v12  ;;  %v198_v48 = vld [vmem:[#allocation2 + $0x1f0] sm:$0xff]  ;;  %v207_v12 = vld [vmem:[#allocation2 + $0x238] sm:$0xff] }
  0xc2   :  { %980 = vmatprep.subr.bf16.mxu0 %v9693_v29  ;;  %1023 = vmatprep.subr.bf16.mxu1 %v9695_v49  ;;  %v9611_v29 = vcombine.high %v147_v18, %v151_v19  ;;  %v9626_v49 = vcombine.low %v163_v35, %v167_v36  ;;  %v9657_v56 = vcombine.high %v194_v47, %v198_v48 }
  0xc5   :  { %981 = vmatpush1.bf16.msra.mxu0 %v9692_v34  ;;  %1024 = vmatpush1.bf16.msra.mxu1 %v9694_v54  ;;  %v9610_v34 = vcombine.low %v147_v18, %v151_v19  ;;  %v202_v54 = vld [vmem:[#allocation2 + $0x210] sm:$0xff]  ;;  %v9658_v18 = vcombine.low %v195_v3, %v199_v4  ;;  %v211_v19 = vld [vmem:[#allocation2 + $0x258] sm:$0xff] }
  0xc6   :  { %982 = vmatprep.subr.bf16.mxu0 %v9701_v37  ;;  %1025 = vmatprep.subr.bf16.mxu1 %v9703_v57  ;;  %v9619_v37 = vcombine.high %v155_v27, %v159_v28  ;;  %v9634_v57 = vcombine.low %v171_v43, %v175_v44  ;;  %v9665_v1 = vcombine.high %v202_v54, %v206_v55 }
  0xc7   :  { %v9664_v6 = vcombine.low %v202_v54, %v206_v55  ;;  %v247_v54 = vld [vmem:[#allocation2 + $0x378] sm:$0xff] }
  0xc9   :  { %983 = vmatpush1.bf16.msra.mxu0 %v9700_v42  ;;  %1026 = vmatpush1.bf16.msra.mxu1 %v9702_v63  ;;  %v9618_v42 = vcombine.low %v155_v27, %v159_v28  ;;  %v210_v63 = vld [vmem:[#allocation2 + $0x250] sm:$0xff] }
  0xca   :  { %984 = vmatprep.subr.bf16.mxu0 %v9709_v45  ;;  %1027 = vmatprep.subr.bf16.mxu1 %v9711_v2  ;;  %v9627_v45 = vcombine.high %v163_v35, %v167_v36  ;;  %v9672_v14 = vcombine.low %v210_v63, %v214_v0 }
  0xcd   :  { %985 = vmatpush1.bf16.msra.mxu0 %v9708_v50  ;;  %1028 = vmatpush1.bf16.msra.mxu1 %v9710_v9  ;;  %v179_v50 = vld [vmem:[#allocation2 + $0x158] sm:$0xff]  ;;  %v9673_v9 = vcombine.high %v210_v63, %v214_v0 }
  0xce   :  { %986 = vmatprep.subr.bf16.mxu0 %v9717_v53  ;;  %1029 = vmatprep.subr.bf16.mxu1 %v9719_v11  ;;  %v9648_v53 = vcombine.low %v186_v39, %v190_v40  ;;  %v9643_v60 = vcombine.high %v179_v50, %v183_v51  ;;  %v9642_v2 = vcombine.low %v179_v50, %v183_v51  ;;  %v203_v11 = vld [vmem:[#allocation2 + $0x218] sm:$0xff] }
  0xcf   :  { %v9666_v27 = vcombine.low %v203_v11, %v207_v12  ;;  %v255_v63 = vld [vmem:[#allocation2 + $0x3b8] sm:$0xff] }
  0xd1   :  { %987 = vmatpush1.bf16.msra.mxu0 %v9716_v58  ;;  %1030 = vmatpush1.bf16.msra.mxu1 %v9718_v17  ;;  %v187_v58 = vld [vmem:[#allocation2 + $0x198] sm:$0xff] }
  0xd2   :  { %1042 = vmatprep.subr.bf16.mxu0 %v9601_v61  ;;  %1085 = vmatprep.subr.bf16.mxu1 %v9603_v20  ;;  %v9656_v61 = vcombine.low %v194_v47, %v198_v48  ;;  %v9650_v10 = vcombine.low %v187_v58, %v191_v59  ;;  %v215_v20 = vld [vmem:[#allocation2 + $0x278] sm:$0xff] }
  0xd3   :  { %v9675_v28 = vcombine.high %v211_v19, %v215_v20  ;;  %v9674_v35 = vcombine.low %v211_v19, %v215_v20  ;;  %v239_v47 = vld [vmem:[#allocation2 + $0x338] sm:$0xff]  ;;  %v1212_v19 = vld [vmem:[#allocation6 + $0xe0] sm:$0xff] }
  0xd4   :  { %989 = vmatmul.mubr.bf16.vlgmr.msra.gmra.mrb[0].mxu0 %v11486_v62  ;;  %1032 = vmatmul.mubr.bf16.vlgmr.msra.gmra.mrb[0].mxu1 %v11486_v62 }
  0xd5   :  { %1043 = vmatpush1.bf16.msra.mxu0 %v9600_v5  ;;  %1074 = vmatprep.mubr.bf16.mxu0 %v11479_v22  ;;  %v9651_v5 = vcombine.high %v187_v58, %v191_v59  ;;  %v1188_v58 = vld [vmem:[#allocation6 + $0x20] sm:$0xff] }
  0xd6   :  { %1044 = vmatprep.subr.bf16.mxu0 %v9609_v7  ;;  %1086 = vmatpush1.bf16.msra.mxu1 %v9602_v26  ;;  %v218_v7 = vld [vmem:[#allocation2 + $0x290] sm:$0xff] }
  0xd7   :  { %1117 = vmatprep.mubr.bf16.mxu1 %v11479_v22  ;;  %1087 = vmatprep.subr.bf16.mxu1 %v9611_v29  ;;  %v9649_v22 = vcombine.high %v186_v39, %v190_v40  ;;  %v9681_v17 = vcombine.high %v218_v7, %v222_v8  ;;  %v9680_v23 = vcombine.low %v218_v7, %v222_v8  ;;  %v238_v26 = vld [vmem:[#allocation2 + $0x330] sm:$0xff]  ;;  %v231_v39 = vld [vmem:[#allocation2 + $0x2f8] sm:$0xff] }
  0xd9   :  { %1045 = vmatpush1.bf16.msra.mxu0 %v9608_v13  ;;  %v9659_v13 = vcombine.high %v195_v3, %v199_v4  ;;  %v1196_v3 = vld [vmem:[#allocation6 + $0x60] sm:$0xff] }
  0xda   :  { %1046 = vmatprep.subr.bf16.mxu0 %v9617_v16  ;;  %1088 = vmatpush1.bf16.msra.mxu1 %v9610_v34  ;;  %v230_v16 = vld [vmem:[#allocation2 + $0x2f0] sm:$0xff] }
  0xdb   :  { %1089 = vmatprep.subr.bf16.mxu1 %v9619_v37  ;;  %v9689_v24 = vcombine.high %v226_v15, %v230_v16  ;;  %v9688_v29 = vcombine.low %v226_v15, %v230_v16  ;;  %v246_v34 = vld [vmem:[#allocation2 + $0x370] sm:$0xff] }
  0xdd   :  { %1047 = vmatpush1.bf16.msra.mxu0 %v9616_v21  ;;  %v9667_v21 = vcombine.high %v203_v11, %v207_v12  ;;  %v1204_v11 = vld [vmem:[#allocation6 + $0xa0] sm:$0xff] }
  0xde   :  { %1048 = vmatprep.subr.bf16.mxu0 %v9625_v25  ;;  %1090 = vmatpush1.bf16.msra.mxu1 %v9618_v42  ;;  %v234_v25 = vld [vmem:[#allocation2 + $0x310] sm:$0xff] }
  0xdf   :  { %1091 = vmatprep.subr.bf16.mxu1 %v9627_v45  ;;  %v9697_v32 = vcombine.high %v234_v25, %v238_v26  ;;  %v9696_v37 = vcombine.low %v234_v25, %v238_v26  ;;  %v254_v42 = vld [vmem:[#allocation2 + $0x3b0] sm:$0xff] }
  0xe1   :  { %1049 = vmatpush1.bf16.msra.mxu0 %v9624_v30  ;;  %v219_v30 = vld [vmem:[#allocation2 + $0x298] sm:$0xff] }
  0xe2   :  { %1050 = vmatprep.subr.bf16.mxu0 %v9633_v33  ;;  %1092 = vmatpush1.bf16.msra.mxu1 %v9626_v49  ;;  %v242_v33 = vld [vmem:[#allocation2 + $0x350] sm:$0xff]  ;;  %v9683_v36 = vcombine.high %v219_v30, %v223_v31  ;;  %v9682_v43 = vcombine.low %v219_v30, %v223_v31 }
  0xe3   :  { %1093 = vmatprep.subr.bf16.mxu1 %v9635_v52  ;;  %v9705_v40 = vcombine.high %v242_v33, %v246_v34  ;;  %v9704_v45 = vcombine.low %v242_v33, %v246_v34  ;;  %v262_v49 = vld [vmem:[#allocation2 + $0x3f0] sm:$0xff] }
  0xe4   :  { %v1201_v30 = vld [vmem:[#allocation6 + $0x88] sm:$0xff] }
  0xe5   :  { %1051 = vmatpush1.bf16.msra.mxu0 %v9632_v38  ;;  %v227_v38 = vld [vmem:[#allocation2 + $0x2d8] sm:$0xff]  ;;  %v1205_v31 = vld [vmem:[#allocation6 + $0xa8] sm:$0xff] }
  0xe6   :  { %1052 = vmatprep.subr.bf16.mxu0 %v9641_v41  ;;  %1094 = vmatpush1.bf16.msra.mxu1 %v9634_v57  ;;  %v250_v41 = vld [vmem:[#allocation2 + $0x390] sm:$0xff]  ;;  %v9691_v44 = vcombine.high %v227_v38, %v231_v39  ;;  %v9690_v50 = vcombine.low %v227_v38, %v231_v39  ;;  %v1184_v57 = vld [vmem:[#allocation6] sm:$0xff] }
  0xe7   :  { %1095 = vmatprep.subr.bf16.mxu1 %v9643_v60  ;;  %v9713_v48 = vcombine.high %v250_v41, %v254_v42  ;;  %v9712_v52 = vcombine.low %v250_v41, %v254_v42  ;;  %v9725_v0 = vcombine.high %v1184_v57, %v1188_v58  ;;  %v9724_v7 = vcombine.low %v1184_v57, %v1188_v58  ;;  %v1209_v38 = vld [vmem:[#allocation6 + $0xc8] sm:$0xff]  ;;  %v1248_v57 = vld [vmem:[#allocation6 + $0x200] sm:$0xff] }
  0xe8   :  { %v1213_v39 = vld [vmem:[#allocation6 + $0xe8] sm:$0xff]  ;;  %v9742_v42 = vcombine.low %v1201_v30, %v1205_v31  ;;  %v1252_v58 = vld [vmem:[#allocation6 + $0x220] sm:$0xff] }
  0xe9   :  { %1053 = vmatpush1.bf16.msra.mxu0 %v9640_v46  ;;  %v235_v46 = vld [vmem:[#allocation2 + $0x318] sm:$0xff] }
  0xea   :  { %1054 = vmatprep.subr.bf16.mxu0 %v9649_v22  ;;  %1096 = vmatpush1.bf16.msra.mxu1 %v9642_v2  ;;  %v258_v22 = vld [vmem:[#allocation2 + $0x3d0] sm:$0xff]  ;;  %v9699_v51 = vcombine.high %v235_v46, %v239_v47  ;;  %v1192_v2 = vld [vmem:[#allocation6 + $0x40] sm:$0xff] }
  0xeb   :  { %1097 = vmatprep.subr.bf16.mxu1 %v9651_v5  ;;  %v9721_v55 = vcombine.high %v258_v22, %v262_v49  ;;  %v9720_v60 = vcombine.low %v258_v22, %v262_v49  ;;  %v259_v5 = vld [vmem:[#allocation2 + $0x3d8] sm:$0xff]  ;;  %v9733_v8 = vcombine.high %v1192_v2, %v1196_v3  ;;  %v9732_v15 = vcombine.low %v1192_v2, %v1196_v3  ;;  %v1240_v49 = vld [vmem:[#allocation6 + $0x1c0] sm:$0xff] }
  0xec   :  { %v9750_v22 = vcombine.low %v1209_v38, %v1213_v39  ;;  %v1260_v2 = vld [vmem:[#allocation6 + $0x260] sm:$0xff] }
  0xed   :  { %1055 = vmatpush1.bf16.msra.mxu0 %v9648_v53  ;;  %v243_v53 = vld [vmem:[#allocation2 + $0x358] sm:$0xff] }
  0xee   :  { %1056 = vmatprep.subr.bf16.mxu0 %v9657_v56  ;;  %1098 = vmatpush1.bf16.msra.mxu1 %v9650_v10  ;;  %v9698_v56 = vcombine.low %v235_v46, %v239_v47  ;;  %v9707_v59 = vcombine.high %v243_v53, %v247_v54  ;;  %v1200_v10 = vld [vmem:[#allocation6 + $0x80] sm:$0xff]  ;;  %v1221_v46 = vld [vmem:[#allocation6 + $0x128] sm:$0xff] }
  0xef   :  { %1099 = vmatprep.subr.bf16.mxu1 %v9659_v13  ;;  %v1185_v13 = vld [vmem:[#allocation6 + $0x8] sm:$0xff]  ;;  %v9741_v16 = vcombine.high %v1200_v10, %v1204_v11 }
  0xf1   :  { %1057 = vmatpush1.bf16.msra.mxu0 %v9656_v61  ;;  %v251_v61 = vld [vmem:[#allocation2 + $0x398] sm:$0xff] }
  0xf2   :  { %1058 = vmatprep.subr.bf16.mxu0 %v9665_v1  ;;  %1100 = vmatpush1.bf16.msra.mxu1 %v9658_v18  ;;  %v9706_v1 = vcombine.low %v243_v53, %v247_v54  ;;  %v9715_v4 = vcombine.high %v251_v61, %v255_v63  ;;  %v1208_v18 = vld [vmem:[#allocation6 + $0xc0] sm:$0xff]  ;;  %v1229_v53 = vld [vmem:[#allocation6 + $0x168] sm:$0xff] }
  0xf3   :  { %1101 = vmatprep.subr.bf16.mxu1 %v9667_v21  ;;  %v1193_v21 = vld [vmem:[#allocation6 + $0x48] sm:$0xff]  ;;  %v9749_v25 = vcombine.high %v1208_v18, %v1212_v19 }
  0xf5   :  { %1059 = vmatpush1.bf16.msra.mxu0 %v9664_v6  ;;  %v263_v6 = vld [vmem:[#allocation2 + $0x3f8] sm:$0xff] }
  0xf6   :  { %1060 = vmatprep.subr.bf16.mxu0 %v9673_v9  ;;  %1102 = vmatpush1.bf16.msra.mxu1 %v9666_v27  ;;  %v9714_v9 = vcombine.low %v251_v61, %v255_v63  ;;  %v9723_v12 = vcombine.high %v259_v5, %v263_v6  ;;  %v1216_v27 = vld [vmem:[#allocation6 + $0x100] sm:$0xff]  ;;  %v1237_v61 = vld [vmem:[#allocation6 + $0x1a8] sm:$0xff] }
  0xf7   :  { %1103 = vmatprep.subr.bf16.mxu1 %v9675_v28  ;;  %v1220_v28 = vld [vmem:[#allocation6 + $0x120] sm:$0xff] }
  0xf8   :  { %v9757_v33 = vcombine.high %v1216_v27, %v1220_v28 }
  0xf9   :  { %1061 = vmatpush1.bf16.msra.mxu0 %v9672_v14  ;;  %v1189_v14 = vld [vmem:[#allocation6 + $0x28] sm:$0xff] }
  0xfa   :  { %1062 = vmatprep.subr.bf16.mxu0 %v9681_v17  ;;  %1104 = vmatpush1.bf16.msra.mxu1 %v9674_v35  ;;  %v9722_v17 = vcombine.low %v259_v5, %v263_v6  ;;  %v9727_v20 = vcombine.high %v1185_v13, %v1189_v14  ;;  %v9726_v26 = vcombine.low %v1185_v13, %v1189_v14  ;;  %v1224_v35 = vld [vmem:[#allocation6 + $0x140] sm:$0xff]  ;;  %v11498_v6 = vld [vmem:[#allocation6 + $0x408] sm:$0xff] }
  0xfb   :  { %1105 = vmatprep.subr.bf16.mxu1 %v9683_v36  ;;  %v1228_v36 = vld [vmem:[#allocation6 + $0x160] sm:$0xff] }
  0xfc   :  { %v9765_v41 = vcombine.high %v1224_v35, %v1228_v36  ;;  %v9764_v47 = vcombine.low %v1224_v35, %v1228_v36  ;;  %v11496_v5 = vld [vmem:[#allocation6 + $0x420] sm:$0xff]  ;;  %v1265_v36 = vld [vmem:[#allocation6 + $0x288] sm:$0xff] }
  0xfd   :  { %1063 = vmatpush1.bf16.msra.mxu0 %v9680_v23  ;;  %v1197_v23 = vld [vmem:[#allocation6 + $0x68] sm:$0xff] }
  0xfe   :  { %1064 = vmatprep.subr.bf16.mxu0 %v9689_v24  ;;  %1106 = vmatpush1.bf16.msra.mxu1 %v9682_v43  ;;  %v9740_v24 = vcombine.low %v1200_v10, %v1204_v11  ;;  %v9734_v34 = vcombine.low %v1193_v21, %v1197_v23  ;;  %v1232_v43 = vld [vmem:[#allocation6 + $0x180] sm:$0xff]  ;;  %v1245_v10 = vld [vmem:[#allocation6 + $0x1e8] sm:$0xff]  ;;  %v9788_v11 = vcombine.low %v1248_v57, %v1252_v58 }
  0xff   :  { %1107 = vmatprep.subr.bf16.mxu1 %v9691_v44  ;;  %v1236_v44 = vld [vmem:[#allocation6 + $0x1a0] sm:$0xff] }
 0x100   :  { %v9772_v54 = vcombine.low %v1232_v43, %v1236_v44 }
 0x101   :  { %1065 = vmatpush1.bf16.msra.mxu0 %v9688_v29  ;;  %v9735_v29 = vcombine.high %v1193_v21, %v1197_v23 }
 0x102   :  { %1066 = vmatprep.subr.bf16.mxu0 %v9697_v32  ;;  %1108 = vmatpush1.bf16.msra.mxu1 %v9690_v50  ;;  %v9748_v32 = vcombine.low %v1208_v18, %v1212_v19  ;;  %v1244_v50 = vld [vmem:[#allocation6 + $0x1e0] sm:$0xff]  ;;  %v1249_v19 = vld [vmem:[#allocation6 + $0x208] sm:$0xff] }
 0x103   :  { %1109 = vmatprep.subr.bf16.mxu1 %v9699_v51  ;;  %v9780_v63 = vcombine.low %v1240_v49, %v1244_v50 }
 0x105   :  { %1067 = vmatpush1.bf16.msra.mxu0 %v9696_v37  ;;  %v9743_v37 = vcombine.high %v1201_v30, %v1205_v31 }
 0x106   :  { %1068 = vmatprep.subr.bf16.mxu0 %v9705_v40  ;;  %1110 = vmatpush1.bf16.msra.mxu1 %v9698_v56  ;;  %v9756_v40 = vcombine.low %v1216_v27, %v1220_v28  ;;  %v1257_v28 = vld [vmem:[#allocation6 + $0x248] sm:$0xff] }
 0x107   :  { %1111 = vmatprep.subr.bf16.mxu1 %v9707_v59 }
 0x109   :  { %1069 = vmatpush1.bf16.msra.mxu0 %v9704_v45  ;;  %v1217_v45 = vld [vmem:[#allocation6 + $0x108] sm:$0xff] }
 0x10a   :  { %1070 = vmatprep.subr.bf16.mxu0 %v9713_v48  ;;  %1112 = vmatpush1.bf16.msra.mxu1 %v9706_v1  ;;  %v9773_v48 = vcombine.high %v1232_v43, %v1236_v44  ;;  %v9759_v51 = vcombine.high %v1217_v45, %v1221_v46  ;;  %v9758_v56 = vcombine.low %v1217_v45, %v1221_v46  ;;  %v1256_v1 = vld [vmem:[#allocation6 + $0x240] sm:$0xff]  ;;  %v1273_v44 = vld [vmem:[#allocation6 + $0x2c8] sm:$0xff] }
 0x10b   :  { %1113 = vmatprep.subr.bf16.mxu1 %v9715_v4  ;;  %v11494_v4 = vld [vmem:[#allocation6 + $0x400] sm:$0xff]  ;;  %v9797_v14 = vcombine.high %v1256_v1, %v1260_v2  ;;  %v9796_v21 = vcombine.low %v1256_v1, %v1260_v2  ;;  %v1297_v1 = vld [vmem:[#allocation6 + $0x388] sm:$0xff] }
 0x10c   :  { %v1301_v2 = vld [vmem:[#allocation6 + $0x3a8] sm:$0xff] }
 0x10d   :  { %1071 = vmatpush1.bf16.msra.mxu0 %v9712_v52  ;;  %v1225_v52 = vld [vmem:[#allocation6 + $0x148] sm:$0xff] }
 0x10e   :  { %1072 = vmatprep.subr.bf16.mxu0 %v9721_v55  ;;  %1114 = vmatpush1.bf16.msra.mxu1 %v9714_v9  ;;  %v9781_v55 = vcombine.high %v1240_v49, %v1244_v50  ;;  %v9767_v59 = vcombine.high %v1225_v52, %v1229_v53  ;;  %v9766_v3 = vcombine.low %v1225_v52, %v1229_v53  ;;  %v1241_v9 = vld [vmem:[#allocation6 + $0x1c8] sm:$0xff] }
 0x10f   :  { %1115 = vmatprep.subr.bf16.mxu1 %v9723_v12  ;;  %v9852_v12 = vcombine.low %v11494_v4, %v11496_v5  ;;  %v9783_v18 = vcombine.high %v1241_v9, %v1245_v10  ;;  %v1281_v50 = vld [vmem:[#allocation6 + $0x308] sm:$0xff] }
 0x111   :  { %1073 = vmatpush1.bf16.msra.mxu0 %v9720_v60  ;;  %v1233_v60 = vld [vmem:[#allocation6 + $0x188] sm:$0xff] }
 0x112   :  { %4298 = vmatprep.subr.bf16.mxu0 %v9725_v0  ;;  %1116 = vmatpush1.bf16.msra.mxu1 %v9722_v17  ;;  %v9789_v0 = vcombine.high %v1248_v57, %v1252_v58  ;;  %v1268_v17 = vld [vmem:[#allocation6 + $0x2a0] sm:$0xff]  ;;  %v1289_v58 = vld [vmem:[#allocation6 + $0x348] sm:$0xff] }
 0x113   :  { %4470 = vmatprep.subr.bf16.mxu1 %v9727_v20  ;;  %v1253_v20 = vld [vmem:[#allocation6 + $0x228] sm:$0xff] }
 0x114   :  { %1075 = vmatmul.mubr.bf16.vlgmr.msra.gmra.mrb[4].mxu0 %v11486_v62  ;;  %v9791_v27 = vcombine.high %v1249_v19, %v1253_v20 }
 0x115   :  { %4299 = vmatpush1.bf16.msra.mxu0 %v9724_v7  ;;  %1118 = vmatmul.mubr.bf16.vlgmr.msra.gmra.mrb[4].mxu1 %v11486_v62  ;;  %v9751_v62 = vcombine.high %v1209_v38, %v1213_v39  ;;  %v9775_v7 = vcombine.high %v1233_v60, %v1237_v61 }
 0x116   :  { %4300 = vmatprep.subr.bf16.mxu0 %v9733_v8  ;;  %4471 = vmatpush1.bf16.msra.mxu1 %v9726_v26  ;;  %v11500_v8 = vld [vmem:[#allocation6 + $0x428] sm:$0xff]  ;;  %v1276_v26 = vld [vmem:[#allocation6 + $0x2e0] sm:$0xff] }
 0x117   :  { %4472 = vmatprep.subr.bf16.mxu1 %v9735_v29  ;;  %v9854_v13 = vcombine.low %v11498_v6, %v11500_v8  ;;  %v1261_v29 = vld [vmem:[#allocation6 + $0x268] sm:$0xff] }
 0x118   :  { %v9799_v35 = vcombine.high %v1257_v28, %v1261_v29 }
 0x119   :  { %4301 = vmatpush1.bf16.msra.mxu0 %v9732_v15  ;;  %v9774_v15 = vcombine.low %v1233_v60, %v1237_v61 }
 0x11a   :  { %4302 = vmatprep.subr.bf16.mxu0 %v9741_v16  ;;  %4473 = vmatpush1.bf16.msra.mxu1 %v9734_v34  ;;  %v1264_v16 = vld [vmem:[#allocation6 + $0x280] sm:$0xff] }
 0x11b   :  { %4474 = vmatprep.subr.bf16.mxu1 %v9743_v37  ;;  %v9805_v23 = vcombine.high %v1264_v16, %v1268_v17  ;;  %v9804_v30 = vcombine.low %v1264_v16, %v1268_v17  ;;  %v1284_v34 = vld [vmem:[#allocation6 + $0x320] sm:$0xff]  ;;  %v1269_v37 = vld [vmem:[#allocation6 + $0x2a8] sm:$0xff] }
 0x11c   :  { %v9807_v43 = vcombine.high %v1265_v36, %v1269_v37 }
 0x11d   :  { %4303 = vmatpush1.bf16.msra.mxu0 %v9740_v24  ;;  %v9782_v24 = vcombine.low %v1241_v9, %v1245_v10  ;;  %v9839_v10 = vcombine.high %v1297_v1, %v1301_v2 }
 0x11e   :  { %4304 = vmatprep.subr.bf16.mxu0 %v9749_v25  ;;  %4475 = vmatpush1.bf16.msra.mxu1 %v9742_v42  ;;  %v1272_v25 = vld [vmem:[#allocation6 + $0x2c0] sm:$0xff] }
 0x11f   :  { %4476 = vmatprep.subr.bf16.mxu1 %v9751_v62  ;;  %v9813_v31 = vcombine.high %v1272_v25, %v1276_v26  ;;  %v9812_v38 = vcombine.low %v1272_v25, %v1276_v26  ;;  %v1292_v42 = vld [vmem:[#allocation6 + $0x360] sm:$0xff]  ;;  %v1277_v62 = vld [vmem:[#allocation6 + $0x2e8] sm:$0xff] }
 0x120   :  { %v9815_v49 = vcombine.high %v1273_v44, %v1277_v62 }
 0x121   :  { %4305 = vmatpush1.bf16.msra.mxu0 %v9748_v32  ;;  %v9790_v32 = vcombine.low %v1249_v19, %v1253_v20  ;;  %v266_v19 = vlaneseq }
 0x122   :  { %4306 = vmatprep.subr.bf16.mxu0 %v9757_v33  ;;  %4477 = vmatpush1.bf16.msra.mxu1 %v9750_v22  ;;  %v1280_v33 = vld [vmem:[#allocation6 + $0x300] sm:$0xff] }
 0x123   :  { %4478 = vmatprep.subr.bf16.mxu1 %v9759_v51  ;;  %v9821_v39 = vcombine.high %v1280_v33, %v1284_v34  ;;  %v9820_v45 = vcombine.low %v1280_v33, %v1284_v34  ;;  %v1300_v22 = vld [vmem:[#allocation6 + $0x3a0] sm:$0xff]  ;;  %v1285_v51 = vld [vmem:[#allocation6 + $0x328] sm:$0xff]  ;;  %v11510_v20 = vshrl.u32 %v266_v19, 7 }
 0x124   :  { %v9823_v57 = vcombine.high %v1281_v50, %v1285_v51 }
 0x125   :  { %4307 = vmatpush1.bf16.msra.mxu0 %v9756_v40  ;;  %v9798_v40 = vcombine.low %v1257_v28, %v1261_v29 }
 0x126   :  { %4308 = vmatprep.subr.bf16.mxu0 %v9765_v41  ;;  %4479 = vmatpush1.bf16.msra.mxu1 %v9758_v56  ;;  %v1288_v41 = vld [vmem:[#allocation6 + $0x340] sm:$0xff] }
 0x127   :  { %4480 = vmatprep.subr.bf16.mxu1 %v9767_v59  ;;  %v9829_v46 = vcombine.high %v1288_v41, %v1292_v42  ;;  %v9828_v52 = vcombine.low %v1288_v41, %v1292_v42  ;;  %v1308_v56 = vld [vmem:[#allocation6 + $0x3e0] sm:$0xff]  ;;  %v1293_v59 = vld [vmem:[#allocation6 + $0x368] sm:$0xff] }
 0x128   :  { %v9830_v9 = vcombine.low %v1289_v58, %v1293_v59  ;;  %v1320_v41 = vld [vmem:[#allocation6 + $0x440] sm:$0xff] }
 0x129   :  { %4309 = vmatpush1.bf16.msra.mxu0 %v9764_v47  ;;  %v9806_v47 = vcombine.low %v1265_v36, %v1269_v37 }
 0x12a   :  { %4310 = vmatprep.subr.bf16.mxu0 %v9773_v48  ;;  %4481 = vmatpush1.bf16.msra.mxu1 %v9766_v3  ;;  %v1296_v48 = vld [vmem:[#allocation6 + $0x380] sm:$0xff] }
 0x12b   :  { %4482 = vmatprep.subr.bf16.mxu1 %v9775_v7  ;;  %v9837_v53 = vcombine.high %v1296_v48, %v1300_v22  ;;  %v9836_v60 = vcombine.low %v1296_v48, %v1300_v22  ;;  %v9853_v7 = vcombine.high %v11494_v4, %v11496_v5  ;;  %v1341_v4 = vld [vmem:[#allocation6 + $0x4e8] sm:$0xff] }
 0x12d   :  { %4311 = vmatpush1.bf16.msra.mxu0 %v9772_v54  ;;  %v9814_v54 = vcombine.low %v1273_v44, %v1277_v62  ;;  %v1324_v44 = vld [vmem:[#allocation6 + $0x460] sm:$0xff]  ;;  %v1321_v62 = vld [vmem:[#allocation6 + $0x448] sm:$0xff] }
 0x12e   :  { %4312 = vmatprep.subr.bf16.mxu0 %v9781_v55  ;;  %4483 = vmatpush1.bf16.msra.mxu1 %v9774_v15  ;;  %v1304_v55 = vld [vmem:[#allocation6 + $0x3c0] sm:$0xff]  ;;  %v9838_v15 = vcombine.low %v1297_v1, %v1301_v2 }
 0x12f   :  { %4484 = vmatprep.subr.bf16.mxu1 %v9783_v18  ;;  %v9845_v61 = vcombine.high %v1304_v55, %v1308_v56  ;;  %v9844_v3 = vcombine.low %v1304_v55, %v1308_v56  ;;  %v9855_v18 = vcombine.high %v11498_v6, %v11500_v8  ;;  %v1329_v56 = vld [vmem:[#allocation6 + $0x488] sm:$0xff] }
 0x131   :  { %4313 = vmatpush1.bf16.msra.mxu0 %v9780_v63  ;;  %v9822_v63 = vcombine.low %v1281_v50, %v1285_v51  ;;  %v9861_v51 = vcombine.high %v1320_v41, %v1324_v44 }
 0x132   :  { %4314 = vmatprep.subr.bf16.mxu0 %v9789_v0  ;;  %4485 = vmatpush1.bf16.msra.mxu1 %v9782_v24  ;;  %v9831_v0 = vcombine.high %v1289_v58, %v1293_v59  ;;  %v11518_v24 = vsub.s32 1, %v11510_v20 }
 0x133   :  { %4486 = vmatprep.subr.bf16.mxu1 %v9791_v27 }
 0x135   :  { %4315 = vmatpush1.bf16.msra.mxu0 %v9788_v11  ;;  %v1305_v11 = vld [vmem:[#allocation6 + $0x3c8] sm:$0xff] }
 0x136   :  { %4316 = vmatprep.subr.bf16.mxu0 %v9797_v14  ;;  %4487 = vmatpush1.bf16.msra.mxu1 %v9790_v32  ;;  %v1309_v14 = vld [vmem:[#allocation6 + $0x3e8] sm:$0xff] }
 0x137   :  { %4488 = vmatprep.subr.bf16.mxu1 %v9799_v35  ;;  %v9847_v16 = vcombine.high %v1305_v11, %v1309_v14  ;;  %v9846_v17 = vcombine.low %v1305_v11, %v1309_v14  ;;  %v11525_v35 = vsub.s32 2, %v11510_v20  ;;  %v1340_v11 = vld [vmem:[#allocation6 + $0x4e0] sm:$0xff] }
 0x139   :  { %4317 = vmatpush1.bf16.msra.mxu0 %v9796_v21  ;;  %v11513_v21 = vsub.s32 0, %v11510_v20 }
 0x13a   :  { %4318 = vmatprep.subr.bf16.mxu0 %v9805_v23  ;;  %4489 = vmatpush1.bf16.msra.mxu1 %v9798_v40  ;;  %v11515_v23 = vld [vmem:[#allocation4] sm:$0xff] }
 0x13b   :  { %4490 = vmatprep.subr.bf16.mxu1 %v9807_v43  ;;  %v269_v25 = vrot.slane %v11515_v23, %v11513_v21  ;;  %v273_v26 = vrot.slane %v11515_v23, %v11518_v24 }
 0x13d   :  { %4319 = vmatpush1.bf16.msra.mxu0 %v9804_v30 }
 0x13e   :  { %4320 = vmatprep.subr.bf16.mxu0 %v9813_v31  ;;  %4491 = vmatpush1.bf16.msra.mxu1 %v9806_v47 }
 0x13f   :  { %4492 = vmatprep.subr.bf16.mxu1 %v9815_v49 }
 0x141   :  { %4321 = vmatpush1.bf16.msra.mxu0 %v9812_v38  ;;  %v11528_v38 = vsub.s32 3, %v11510_v20 }
 0x142   :  { %4322 = vmatprep.subr.bf16.mxu0 %v9821_v39  ;;  %4493 = vmatpush1.bf16.msra.mxu1 %v9814_v54  ;;  %v1332_v54 = vld [vmem:[#allocation6 + $0x4a0] sm:$0xff] }
 0x143   :  { %4494 = vmatprep.subr.bf16.mxu1 %v9823_v57  ;;  %v281_v49 = vrot.slane %v11515_v23, %v11528_v38  ;;  %v1333_v57 = vld [vmem:[#allocation6 + $0x4a8] sm:$0xff] }
 0x145   :  { %4323 = vmatpush1.bf16.msra.mxu0 %v9820_v45  ;;  %v1325_v45 = vld [vmem:[#allocation6 + $0x468] sm:$0xff] }
 0x146   :  { %4324 = vmatprep.subr.bf16.mxu0 %v9829_v46  ;;  %4495 = vmatpush1.bf16.msra.mxu1 %v9822_v63  ;;  %v277_v46 = vrot.slane %v11515_v23, %v11525_v35 }
 0x147   :  { %4496 = vmatprep.subr.bf16.mxu1 %v9831_v0 }
 0x149   :  { %4325 = vmatpush1.bf16.msra.mxu0 %v9828_v52  ;;  %v9863_v52 = vcombine.high %v1321_v62, %v1325_v45 }
 0x14a   :  { %4326 = vmatprep.subr.bf16.mxu0 %v9837_v53  ;;  %4497 = vmatpush1.bf16.msra.mxu1 %v9830_v9  ;;  %v1328_v53 = vld [vmem:[#allocation6 + $0x480] sm:$0xff]  ;;  %v9871_v9 = vcombine.high %v1329_v56, %v1333_v57 }
 0x14b   :  { %4498 = vmatprep.subr.bf16.mxu1 %v9839_v10  ;;  %v9869_v1 = vcombine.high %v1328_v53, %v1332_v54  ;;  %v1336_v10 = vld [vmem:[#allocation6 + $0x4c0] sm:$0xff]  ;;  %v9868_v6 = vcombine.low %v1328_v53, %v1332_v54 }
 0x14d   :  { %4327 = vmatpush1.bf16.msra.mxu0 %v9836_v60  ;;  %v9860_v60 = vcombine.low %v1320_v41, %v1324_v44  ;;  %v1353_v41 = vld [vmem:[#allocation6 + $0x548] sm:$0xff] }
 0x14e   :  { %4328 = vmatprep.subr.bf16.mxu0 %v9845_v61  ;;  %4499 = vmatpush1.bf16.msra.mxu1 %v9838_v15  ;;  %v9862_v61 = vcombine.low %v1321_v62, %v1325_v45 }
 0x14f   :  { %4500 = vmatprep.subr.bf16.mxu1 %v9847_v16  ;;  %v1337_v16 = vld [vmem:[#allocation6 + $0x4c8] sm:$0xff] }
 0x151   :  { %4329 = vmatpush1.bf16.msra.mxu0 %v9844_v3 }
 0x152   :  { %4341 = vmatprep.subr.bf16.mxu0 %v9853_v7  ;;  %4501 = vmatpush1.bf16.msra.mxu1 %v9846_v17  ;;  %v9870_v17 = vcombine.low %v1329_v56, %v1333_v57  ;;  %v1372_v56 = vld [vmem:[#allocation6 + $0x5e0] sm:$0xff]  ;;  %v1369_v57 = vld [vmem:[#allocation6 + $0x5c8] sm:$0xff] }
 0x153   :  { %4513 = vmatprep.subr.bf16.mxu1 %v9855_v18  ;;  %v9877_v18 = vcombine.high %v1336_v10, %v1340_v11 }
 0x1a7   :  { %v990_v27 = vpop.f32.mrb[0].mxu0  ;;  %v1033_v55 = vpop.f32.mrb[0].mxu1 }
 0x1a8   :  { %v991_v28 = vadd.f32 %v990_v27, %v269_v25  ;;  %v992_v29 = vpop.f32.mrb[1].mxu0  ;;  %v1034_v58 = vadd.f32 %v1033_v55, %v277_v46  ;;  %v1035_v59 = vpop.f32.mrb[1].mxu1  ;;  %v1368_v55 = vld [vmem:[#allocation6 + $0x5c0] sm:$0xff] }
 0x1a9   :  { %v993_v30 = vadd.f32 %v992_v29, %v273_v26  ;;  %v994_v31 = vpop.f32.mrb[2].mxu0  ;;  %v1036_v63 = vadd.f32 %v1035_v59, %v281_v49  ;;  %v1037_v0 = vpop.f32.mrb[2].mxu1  ;;  %v1348_v29 = vld [vmem:[#allocation6 + $0x520] sm:$0xff] }
 0x1aa   :  { %v1144_v32 = vmul.f32 0.1, %v991_v28  ;;  %v995_v33 = vadd.f32 %v994_v31, %v269_v25  ;;  %v996_v34 = vpop.f32.mrb[3].mxu0  ;;  %vm1128_vm0 = vcmp.gt.f32.partialorder %v991_v28, 0.0  ;;  %vm1130_vm4 = vcmp.gt.f32.partialorder %v1034_v58, 0.0  ;;  %v1039_v7 = vpop.f32.mrb[3].mxu1 }
 0x1ab   :  { %v1145_v36 = vmul.f32 0.1, %v993_v30  ;;  %v997_v37 = vadd.f32 %v996_v34, %v273_v26  ;;  %vm1129_vm1 = vcmp.gt.f32.partialorder %v993_v30, 0.0  ;;  %v1146_v2 = vmul.f32 0.1, %v1034_v58  ;;  %v1344_v26 = vld [vmem:[#allocation6 + $0x500] sm:$0xff] }
 0x1ac   :  { %vm1136_vm2 = vcmp.gt.f32.partialorder %v995_v33, 0.0  ;;  %v1152_v39 = vmul.f32 0.1, %v995_v33  ;;  %v1160_v42 = vsel %vm1128_vm0, %v991_v28, %v1144_v32  ;;  %v1038_v3 = vadd.f32 %v1037_v0, %v277_v46  ;;  %v1349_v31 = vld [vmem:[#allocation6 + $0x528] sm:$0xff]  ;;  %v1360_v46 = vld [vmem:[#allocation6 + $0x580] sm:$0xff] }
 0x1ad   :  { %vm1137_vm3 = vcmp.gt.f32.partialorder %v997_v37, 0.0  ;;  %v1153_v40 = vmul.f32 0.1, %v997_v37  ;;  %v1161_v47 = vsel %vm1129_vm1, %v993_v30, %v1145_v36  ;;  %vm1131_vm5 = vcmp.gt.f32.partialorder %v1036_v63, 0.0  ;;  %v1345_v30 = vld [vmem:[#allocation6 + $0x508] sm:$0xff]  ;;  %v1376_v0 = vld [vmem:[#allocation6 + $0x600] sm:$0xff] }
 0x1ae   :  { %v1168_v43 = vsel %vm1136_vm2, %v995_v33, %v1152_v39  ;;  %v1147_v14 = vmul.f32 0.1, %v1036_v63  ;;  %v1040_v15 = vadd.f32 %v1039_v7, %v281_v49  ;;  %v1162_v5 = vsel %vm1130_vm4, %v1034_v58, %v1146_v2  ;;  %v1352_v39 = vld [vmem:[#allocation6 + $0x540] sm:$0xff]  ;;  %v1365_v49 = vld [vmem:[#allocation6 + $0x5a8] sm:$0xff] }
 0x1af   :  { %v11532_v48 = vpack.c.bf16 %v1168_v43, %v1160_v42  ;;  %v1169_v22 = vsel %vm1137_vm3, %v997_v37, %v1153_v40  ;;  %vm1138_vm6 = vcmp.gt.f32.partialorder %v1038_v3, 0.0  ;;  %v9879_v25 = vcombine.high %v1337_v16, %v1341_v4  ;;  %v1356_v40 = vld [vmem:[#allocation6 + $0x560] sm:$0xff]  ;;  %v1357_v42 = vld [vmem:[#allocation6 + $0x568] sm:$0xff] }
 0x1b0   :  { %v11536_v50 = vpack.c.bf16 %v1169_v22, %v1161_v47  ;;  %v1163_v8 = vsel %vm1131_vm5, %v1036_v63, %v1147_v14  ;;  %vm1139_vm7 = vcmp.gt.f32.partialorder %v1040_v15, 0.0  ;;  %v9876_v33 = vcombine.low %v1336_v10, %v1340_v11  ;;  %v1364_v47 = vld [vmem:[#allocation6 + $0x5a0] sm:$0xff]  ;;  %v1361_v22 = vld [vmem:[#allocation6 + $0x588] sm:$0xff] }
 0x1b1   :  { %v9878_v34 = vcombine.low %v1337_v16, %v1341_v4  ;;  %v9885_v36 = vcombine.high %v1344_v26, %v1348_v29  ;;  %v9887_v37 = vcombine.high %v1345_v30, %v1349_v31  ;;  %v9884_v43 = vcombine.low %v1344_v26, %v1348_v29  ;;  %v1373_v58 = vld [vmem:[#allocation6 + $0x5e8] sm:$0xff]  ;;  %v1384_v14 = vld [vmem:[#allocation6 + $0x640] sm:$0xff] }
 0x1b2   :  { %4330 = vmatprep.mubr.bf16.mxu0 %v11536_v50  ;;  %4502 = vmatprep.mubr.bf16.mxu1 %v11536_v50  ;;  %v9886_v44 = vcombine.low %v1345_v30, %v1349_v31  ;;  %v9893_v62 = vcombine.high %v1352_v39, %v1356_v40  ;;  %v9895_v45 = vcombine.high %v1353_v41, %v1357_v42  ;;  %v1377_v2 = vld [vmem:[#allocation6 + $0x608] sm:$0xff]  ;;  %v1400_v30 = vld [vmem:[#allocation6 + $0x6c0] sm:$0xff] }
 0x1b3   :  { %4331 = vmatmul.mubr.bf16.vlgmr.msra.gmra.mrb[8].mxu0 %v11532_v48  ;;  %4503 = vmatmul.mubr.bf16.vlgmr.msra.gmra.mrb[8].mxu1 %v11532_v48  ;;  %v9901_v53 = vcombine.high %v1360_v46, %v1364_v47  ;;  %v9903_v54 = vcombine.high %v1361_v22, %v1365_v49  ;;  %v9900_v59 = vcombine.low %v1360_v46, %v1364_v47  ;;  %v1385_v16 = vld [vmem:[#allocation6 + $0x648] sm:$0xff]  ;;  %v1404_v31 = vld [vmem:[#allocation6 + $0x6e0] sm:$0xff] }
 0x1b4   :  { %4342 = vmatpush1.bf16.msra.mxu0 %v9852_v12  ;;  %4514 = vmatpush1.bf16.msra.mxu1 %v9854_v13  ;;  %v1154_v12 = vmul.f32 0.1, %v1038_v3  ;;  %v1155_v13 = vmul.f32 0.1, %v1040_v15  ;;  %v9911_v63 = vcombine.high %v1369_v57, %v1373_v58  ;;  %v9908_v7 = vcombine.low %v1368_v55, %v1372_v56  ;;  %v1389_v4 = vld [vmem:[#allocation6 + $0x668] sm:$0xff] }
 0x1b5   :  { %4343 = vmatprep.subr.bf16.mxu0 %v9861_v51  ;;  %4515 = vmatprep.subr.bf16.mxu1 %v9863_v52  ;;  %v9892_v51 = vcombine.low %v1352_v39, %v1356_v40  ;;  %v9894_v52 = vcombine.low %v1353_v41, %v1357_v42  ;;  %v9926_v26 = vcombine.low %v1385_v16, %v1389_v4  ;;  %v1408_v41 = vld [vmem:[#allocation6 + $0x700] sm:$0xff] }
 0x1b6   :  { %v1170_v19 = vsel %vm1138_vm6, %v1038_v3, %v1154_v12  ;;  %v1171_v28 = vsel %vm1139_vm7, %v1040_v15, %v1155_v13  ;;  %v1381_v3 = vld [vmem:[#allocation6 + $0x628] sm:$0xff]  ;;  %v1388_v15 = vld [vmem:[#allocation6 + $0x660] sm:$0xff]  ;;  %v9941_v39 = vcombine.high %v1400_v30, %v1404_v31 }
 0x1b7   :  { %v11548_v27 = vpack.c.bf16 %v1170_v19, %v1162_v5  ;;  %v11550_v32 = vpack.c.bf16 %v1171_v28, %v1163_v8  ;;  %v9919_v11 = vcombine.high %v1377_v2, %v1381_v3  ;;  %v9918_v12 = vcombine.low %v1377_v2, %v1381_v3  ;;  %v1392_v13 = vld [vmem:[#allocation6 + $0x680] sm:$0xff]  ;;  %v1397_v19 = vld [vmem:[#allocation6 + $0x6a8] sm:$0xff] }
 0x1b8   :  { %4344 = vmatpush1.bf16.msra.mxu0 %v9860_v60  ;;  %4516 = vmatpush1.bf16.msra.mxu1 %v9862_v61  ;;  %v9902_v60 = vcombine.low %v1361_v22, %v1365_v49  ;;  %v9909_v61 = vcombine.high %v1368_v55, %v1372_v56  ;;  %v9927_v8 = vcombine.high %v1385_v16, %v1389_v4  ;;  %v1412_v42 = vld [vmem:[#allocation6 + $0x720] sm:$0xff]  ;;  %v11555_v55 = vsub.s32 4, %v11510_v20 }
 0x1b9   :  { %4345 = vmatprep.subr.bf16.mxu0 %v9869_v1  ;;  %4517 = vmatprep.subr.bf16.mxu1 %v9871_v9  ;;  %v1380_v1 = vld [vmem:[#allocation6 + $0x620] sm:$0xff]  ;;  %v9910_v9 = vcombine.low %v1369_v57, %v1373_v58  ;;  %v9949_v46 = vcombine.high %v1408_v41, %v1412_v42 }
 0x1ba   :  { %4373 = vmatprep.mubr.bf16.mxu0 %v11550_v32  ;;  %4545 = vmatprep.mubr.bf16.mxu1 %v11550_v32  ;;  %v9917_v10 = vcombine.high %v1376_v0, %v1380_v1  ;;  %v9916_v5 = vcombine.low %v1376_v0, %v1380_v1  ;;  %v1416_v22 = vld [vmem:[#allocation6 + $0x740] sm:$0xff]  ;;  %v285_v2 = vrot.slane %v11515_v23, %v11555_v55 }
 0x1bb   :  { %v1420_v49 = vld [vmem:[#allocation6 + $0x760] sm:$0xff] }
 0x1bc   :  { %4346 = vmatpush1.bf16.msra.mxu0 %v9868_v6  ;;  %4518 = vmatpush1.bf16.msra.mxu1 %v9870_v17  ;;  %v9925_v6 = vcombine.high %v1384_v14, %v1388_v15  ;;  %v1396_v17 = vld [vmem:[#allocation6 + $0x6a0] sm:$0xff]  ;;  %v9957_v56 = vcombine.high %v1416_v22, %v1420_v49  ;;  %v9956_v0 = vcombine.low %v1416_v22, %v1420_v49  ;;  %v1449_v22 = vld [vmem:[#allocation6 + $0x848] sm:$0xff] }
 0x1bd   :  { %4347 = vmatprep.subr.bf16.mxu0 %v9877_v18  ;;  %4519 = vmatprep.subr.bf16.mxu1 %v9879_v25  ;;  %v1393_v18 = vld [vmem:[#allocation6 + $0x688] sm:$0xff]  ;;  %v9924_v25 = vcombine.low %v1384_v14, %v1388_v15  ;;  %v9933_v28 = vcombine.high %v1392_v13, %v1396_v17  ;;  %v1424_v58 = vld [vmem:[#allocation6 + $0x780] sm:$0xff] }
 0x1be   :  { %v9935_v29 = vcombine.high %v1393_v18, %v1397_v19  ;;  %v1433_v14 = vld [vmem:[#allocation6 + $0x7c8] sm:$0xff] }
 0x1bf   :  { %v1437_v15 = vld [vmem:[#allocation6 + $0x7e8] sm:$0xff] }
 0x1c0   :  { %4348 = vmatpush1.bf16.msra.mxu0 %v9876_v33  ;;  %4520 = vmatpush1.bf16.msra.mxu1 %v9878_v34  ;;  %v1401_v33 = vld [vmem:[#allocation6 + $0x6c8] sm:$0xff] }
 0x1c1   :  { %4349 = vmatprep.subr.bf16.mxu0 %v9885_v36  ;;  %4521 = vmatprep.subr.bf16.mxu1 %v9887_v37  ;;  %v1405_v34 = vld [vmem:[#allocation6 + $0x6e8] sm:$0xff]  ;;  %v9932_v36 = vcombine.low %v1392_v13, %v1396_v17  ;;  %v9934_v37 = vcombine.low %v1393_v18, %v1397_v19  ;;  %v9974_v17 = vcombine.low %v1433_v14, %v1437_v15  ;;  %v1440_v19 = vld [vmem:[#allocation6 + $0x800] sm:$0xff] }
 0x1c2   :  { %v9943_v40 = vcombine.high %v1401_v33, %v1405_v34  ;;  %v9975_v18 = vcombine.high %v1433_v14, %v1437_v15  ;;  %v1453_v49 = vld [vmem:[#allocation6 + $0x868] sm:$0xff] }
 0x1c4   :  { %4350 = vmatpush1.bf16.msra.mxu0 %v9884_v43  ;;  %4522 = vmatpush1.bf16.msra.mxu1 %v9886_v44  ;;  %v1409_v43 = vld [vmem:[#allocation6 + $0x708] sm:$0xff] }
 0x1c5   :  { %4351 = vmatprep.subr.bf16.mxu0 %v9893_v62  ;;  %4523 = vmatprep.subr.bf16.mxu1 %v9895_v45  ;;  %v1413_v44 = vld [vmem:[#allocation6 + $0x728] sm:$0xff]  ;;  %v9940_v62 = vcombine.low %v1400_v30, %v1404_v31  ;;  %v9942_v45 = vcombine.low %v1401_v33, %v1405_v34 }
 0x1c6   :  { %v9951_v47 = vcombine.high %v1409_v43, %v1413_v44  ;;  %v1445_v30 = vld [vmem:[#allocation6 + $0x828] sm:$0xff] }
 0x1c8   :  { %4352 = vmatpush1.bf16.msra.mxu0 %v9892_v51  ;;  %4524 = vmatpush1.bf16.msra.mxu1 %v9894_v52  ;;  %v1417_v51 = vld [vmem:[#allocation6 + $0x748] sm:$0xff] }
 0x1c9   :  { %4353 = vmatprep.subr.bf16.mxu0 %v9901_v53  ;;  %4525 = vmatprep.subr.bf16.mxu1 %v9903_v54  ;;  %v1421_v52 = vld [vmem:[#allocation6 + $0x768] sm:$0xff]  ;;  %v9948_v53 = vcombine.low %v1408_v41, %v1412_v42  ;;  %v9950_v54 = vcombine.low %v1409_v43, %v1413_v44 }
 0x1ca   :  { %v9959_v57 = vcombine.high %v1417_v51, %v1421_v52  ;;  %v9958_v1 = vcombine.low %v1417_v51, %v1421_v52 }
 0x1cc   :  { %4354 = vmatpush1.bf16.msra.mxu0 %v9900_v59  ;;  %4526 = vmatpush1.bf16.msra.mxu1 %v9902_v60  ;;  %v11558_v59 = vsub.s32 5, %v11510_v20  ;;  %v1428_v60 = vld [vmem:[#allocation6 + $0x7a0] sm:$0xff] }
 0x1cd   :  { %4355 = vmatprep.subr.bf16.mxu0 %v9909_v61  ;;  %4527 = vmatprep.subr.bf16.mxu1 %v9911_v63  ;;  %v1425_v61 = vld [vmem:[#allocation6 + $0x788] sm:$0xff]  ;;  %v9965_v3 = vcombine.high %v1424_v58, %v1428_v60  ;;  %v9964_v16 = vcombine.low %v1424_v58, %v1428_v60 }
 0x1ce   :  { %v1429_v63 = vld [vmem:[#allocation6 + $0x7a8] sm:$0xff] }
 0x1cf   :  { %v9966_v4 = vcombine.low %v1425_v61, %v1429_v63 }
 0x1d0   :  { %4356 = vmatpush1.bf16.msra.mxu0 %v9908_v7  ;;  %4528 = vmatpush1.bf16.msra.mxu1 %v9910_v9  ;;  %v9967_v7 = vcombine.high %v1425_v61, %v1429_v63  ;;  %v1432_v9 = vld [vmem:[#allocation6 + $0x7c0] sm:$0xff]  ;;  %v9991_v61 = vcombine.high %v1449_v22, %v1453_v49 }
 0x1d1   :  { %4357 = vmatprep.subr.bf16.mxu0 %v9917_v10  ;;  %4529 = vmatprep.subr.bf16.mxu1 %v9919_v11  ;;  %v1436_v10 = vld [vmem:[#allocation6 + $0x7e0] sm:$0xff]  ;;  %v289_v11 = vrot.slane %v11515_v23, %v11558_v59 }
 0x1d2   :  { %v1456_v63 = vld [vmem:[#allocation6 + $0x880] sm:$0xff] }
 0x1d4   :  { %4358 = vmatpush1.bf16.msra.mxu0 %v9916_v5  ;;  %4530 = vmatpush1.bf16.msra.mxu1 %v9918_v12  ;;  %v9972_v12 = vcombine.low %v1432_v9, %v1436_v10 }
 0x1d5   :  { %4359 = vmatprep.subr.bf16.mxu0 %v9925_v6  ;;  %4531 = vmatprep.subr.bf16.mxu1 %v9927_v8  ;;  %v9973_v6 = vcombine.high %v1432_v9, %v1436_v10  ;;  %v9990_v10 = vcombine.low %v1449_v22, %v1453_v49 }
 0x1d8   :  { %4360 = vmatpush1.bf16.msra.mxu0 %v9924_v25  ;;  %4532 = vmatpush1.bf16.msra.mxu1 %v9926_v26  ;;  %v1444_v25 = vld [vmem:[#allocation6 + $0x820] sm:$0xff]  ;;  %v1441_v26 = vld [vmem:[#allocation6 + $0x808] sm:$0xff] }
 0x1d9   :  { %4361 = vmatprep.subr.bf16.mxu0 %v9933_v28  ;;  %4533 = vmatprep.subr.bf16.mxu1 %v9935_v29  ;;  %v9981_v41 = vcombine.high %v1440_v19, %v1444_v25  ;;  %v9983_v44 = vcombine.high %v1441_v26, %v1445_v30 }
 0x1dc   :  { %4362 = vmatpush1.bf16.msra.mxu0 %v9932_v36  ;;  %4534 = vmatpush1.bf16.msra.mxu1 %v9934_v37  ;;  %v11565_v36 = vsub.s32 6, %v11510_v20 }
 0x1dd   :  { %4363 = vmatprep.subr.bf16.mxu0 %v9941_v39  ;;  %4535 = vmatprep.subr.bf16.mxu1 %v9943_v40  ;;  %v11568_v40 = vsub.s32 7, %v11510_v20 }
 0x1de   :  { %v293_v20 = vrot.slane %v11515_v23, %v11565_v36 }
 0x1e0   :  { %4364 = vmatpush1.bf16.msra.mxu0 %v9940_v62  ;;  %4536 = vmatpush1.bf16.msra.mxu1 %v9942_v45  ;;  %v1448_v62 = vld [vmem:[#allocation6 + $0x840] sm:$0xff] }
 0x1e1   :  { %4365 = vmatprep.subr.bf16.mxu0 %v9949_v46  ;;  %4537 = vmatprep.subr.bf16.mxu1 %v9951_v47  ;;  %v1452_v47 = vld [vmem:[#allocation6 + $0x860] sm:$0xff] }
 0x1e2   :  { %v9989_v60 = vcombine.high %v1448_v62, %v1452_v47 }
 0x1e4   :  { %4366 = vmatpush1.bf16.msra.mxu0 %v9948_v53  ;;  %4538 = vmatpush1.bf16.msra.mxu1 %v9950_v54  ;;  %v297_v54 = vrot.slane %v11515_v23, %v11568_v40  ;;  %v9988_v23 = vcombine.low %v1448_v62, %v1452_v47  ;;  %v1477_v62 = vld [vmem:[#allocation6 + $0x928] sm:$0xff] }
 0x1e5   :  { %4367 = vmatprep.subr.bf16.mxu0 %v9957_v56  ;;  %4539 = vmatprep.subr.bf16.mxu1 %v9959_v57  ;;  %v9980_v56 = vcombine.low %v1440_v19, %v1444_v25  ;;  %v9982_v57 = vcombine.low %v1441_v26, %v1445_v30  ;;  %v1469_v19 = vld [vmem:[#allocation6 + $0x8e8] sm:$0xff] }
 0x1e7   :  { %v1076_v5 = vpop.f32.mrb[4].mxu0 }
 0x1e8   :  { %4368 = vmatpush1.bf16.msra.mxu0 %v9956_v0  ;;  %4540 = vmatpush1.bf16.msra.mxu1 %v9958_v1  ;;  %v1077_v8 = vadd.f32 %v1076_v5, %v285_v2  ;;  %v1078_v13 = vpop.f32.mrb[5].mxu0  ;;  %v1460_v0 = vld [vmem:[#allocation6 + $0x8a0] sm:$0xff]  ;;  %v1119_v1 = vpop.f32.mrb[4].mxu1 }
 0x1e9   :  { %4369 = vmatprep.subr.bf16.mxu0 %v9965_v3  ;;  %4541 = vmatprep.subr.bf16.mxu1 %v9967_v7  ;;  %v1079_v28 = vadd.f32 %v1078_v13, %v289_v11  ;;  %v1080_v29 = vpop.f32.mrb[6].mxu0  ;;  %v1461_v3 = vld [vmem:[#allocation6 + $0x8a8] sm:$0xff]  ;;  %v1120_v7 = vadd.f32 %v1119_v1, %v293_v20  ;;  %v1121_v9 = vpop.f32.mrb[5].mxu1  ;;  %v9997_v15 = vcombine.high %v1456_v63, %v1460_v0 }
 0x1ea   :  { %vm1132_vm8 = vcmp.gt.f32.partialorder %v1077_v8, 0.0  ;;  %v1148_v31 = vmul.f32 0.1, %v1077_v8  ;;  %v1081_v33 = vadd.f32 %v1080_v29, %v285_v2  ;;  %v1082_v34 = vpop.f32.mrb[7].mxu0  ;;  %v1457_v2 = vld [vmem:[#allocation6 + $0x888] sm:$0xff]  ;;  %v1123_v14 = vpop.f32.mrb[6].mxu1 }
 0x1eb   :  { %vm1133_vm9 = vcmp.gt.f32.partialorder %v1079_v28, 0.0  ;;  %v1149_v37 = vmul.f32 0.1, %v1079_v28  ;;  %v1083_v39 = vadd.f32 %v1082_v34, %v289_v11  ;;  %v1122_v11 = vadd.f32 %v1121_v9, %v297_v54  ;;  %v1125_v5 = vpop.f32.mrb[7].mxu1  ;;  %v1489_v1 = vld [vmem:[#allocation6 + $0x988] sm:$0xff] }
 0x1ec   :  { %4370 = vmatpush1.bf16.msra.mxu0 %v9964_v16  ;;  %4542 = vmatpush1.bf16.msra.mxu1 %v9966_v4  ;;  %v1164_v42 = vsel %vm1132_vm8, %v1077_v8, %v1148_v31  ;;  %vm1140_vm10 = vcmp.gt.f32.partialorder %v1081_v33, 0.0  ;;  %v1156_v43 = vmul.f32 0.1, %v1081_v33  ;;  %vm1134_vm12 = vcmp.gt.f32.partialorder %v1120_v7, 0.0  ;;  %v1468_v8 = vld [vmem:[#allocation6 + $0x8e0] sm:$0xff] }
 0x1ed   :  { %4371 = vmatprep.subr.bf16.mxu0 %v9973_v6  ;;  %4543 = vmatprep.subr.bf16.mxu1 %v9975_v18  ;;  %v1165_v45 = vsel %vm1133_vm9, %v1079_v28, %v1149_v37  ;;  %vm1141_vm11 = vcmp.gt.f32.partialorder %v1083_v39, 0.0  ;;  %v1157_v46 = vmul.f32 0.1, %v1083_v39  ;;  %v1150_v16 = vmul.f32 0.1, %v1120_v7  ;;  %v1464_v6 = vld [vmem:[#allocation6 + $0x8c0] sm:$0xff] }
 0x1ee   :  { %v1172_v51 = vsel %vm1140_vm10, %v1081_v33, %v1156_v43  ;;  %v1124_v4 = vadd.f32 %v1123_v14, %v293_v20  ;;  %vm1135_vm13 = vcmp.gt.f32.partialorder %v1122_v11, 0.0  ;;  %v1151_v13 = vmul.f32 0.1, %v1122_v11  ;;  %v1465_v18 = vld [vmem:[#allocation6 + $0x8c8] sm:$0xff]  ;;  %v1476_v43 = vld [vmem:[#allocation6 + $0x920] sm:$0xff] }
 0x1ef   :  { %v11572_v52 = vpack.c.bf16 %v1172_v51, %v1164_v42  ;;  %v1173_v53 = vsel %vm1141_vm11, %v1083_v39, %v1157_v46  ;;  %v1166_v25 = vsel %vm1134_vm12, %v1120_v7, %v1150_v16  ;;  %v9996_v28 = vcombine.low %v1456_v63, %v1460_v0  ;;  %v1472_v39 = vld [vmem:[#allocation6 + $0x900] sm:$0xff]  ;;  %v1497_v14 = vld [vmem:[#allocation6 + $0x9c8] sm:$0xff] }
 0x1f0   :  { %4372 = vmatpush1.bf16.msra.mxu0 %v9972_v12  ;;  %4544 = vmatpush1.bf16.msra.mxu1 %v9974_v17  ;;  %v11576_v58 = vpack.c.bf16 %v1173_v53, %v1165_v45  ;;  %v9999_v12 = vcombine.high %v1457_v2, %v1461_v3  ;;  %v1126_v17 = vadd.f32 %v1125_v5, %v297_v54  ;;  %vm1142_vm14 = vcmp.gt.f32.partialorder %v1124_v4, 0.0  ;;  %v1480_v51 = vld [vmem:[#allocation6 + $0x940] sm:$0xff]  ;;  %v1481_v53 = vld [vmem:[#allocation6 + $0x948] sm:$0xff] }
 0x1f1   :  { %4384 = vmatprep.subr.bf16.mxu0 %v9981_v41  ;;  %4556 = vmatprep.subr.bf16.mxu1 %v9983_v44  ;;  %v1158_v26 = vmul.f32 0.1, %v1124_v4  ;;  %v1167_v29 = vsel %vm1135_vm13, %v1122_v11, %v1151_v13  ;;  %v9998_v31 = vcombine.low %v1457_v2, %v1461_v3  ;;  %v10005_v33 = vcombine.high %v1464_v6, %v1468_v8  ;;  %v1473_v44 = vld [vmem:[#allocation6 + $0x908] sm:$0xff]  ;;  %v1484_v20 = vld [vmem:[#allocation6 + $0x960] sm:$0xff] }
 0x1f2   :  { %vm1143_vm15 = vcmp.gt.f32.partialorder %v1126_v17, 0.0  ;;  %v1159_v30 = vmul.f32 0.1, %v1126_v17  ;;  %v10007_v37 = vcombine.high %v1465_v18, %v1469_v19  ;;  %v10004_v46 = vcombine.low %v1464_v6, %v1468_v8  ;;  %v1485_v54 = vld [vmem:[#allocation6 + $0x968] sm:$0xff]  ;;  %v1488_v63 = vld [vmem:[#allocation6 + $0x980] sm:$0xff] }
 0x1f3   :  { %4374 = vmatmul.mubr.bf16.vlgmr.msra.gmra.mrb[8].mxu0 %v11548_v27  ;;  %4546 = vmatmul.mubr.bf16.vlgmr.msra.gmra.mrb[8].mxu1 %v11548_v27  ;;  %v1174_v34 = vsel %vm1142_vm14, %v1124_v4, %v1158_v26  ;;  %v10006_v47 = vcombine.low %v1465_v18, %v1469_v19  ;;  %v10013_v22 = vcombine.high %v1472_v39, %v1476_v43  ;;  %v1492_v0 = vld [vmem:[#allocation6 + $0x9a0] sm:$0xff]  ;;  %v1493_v2 = vld [vmem:[#allocation6 + $0x9a8] sm:$0xff] }
 0x1f4   :  { %4385 = vmatpush1.bf16.msra.mxu0 %v9980_v56  ;;  %4557 = vmatpush1.bf16.msra.mxu1 %v9982_v57  ;;  %v11583_v41 = vpack.c.bf16 %v1174_v34, %v1166_v25  ;;  %v1175_v42 = vsel %vm1143_vm15, %v1126_v17, %v1159_v30  ;;  %v10015_v49 = vcombine.high %v1473_v44, %v1477_v62  ;;  %v1500_v11 = vld [vmem:[#allocation6 + $0x9e0] sm:$0xff]  ;;  %v1505_v13 = vld [vmem:[#allocation6 + $0xa08] sm:$0xff] }
 0x1f5   :  { %4386 = vmatprep.subr.bf16.mxu0 %v9989_v60  ;;  %4558 = vmatprep.subr.bf16.mxu1 %v9991_v61  ;;  %v11585_v45 = vpack.c.bf16 %v1175_v42, %v1167_v29  ;;  %v10012_v56 = vcombine.low %v1472_v39, %v1476_v43  ;;  %v10014_v57 = vcombine.low %v1473_v44, %v1477_v62  ;;  %v1504_v6 = vld [vmem:[#allocation6 + $0xa00] sm:$0xff]  ;;  %v1509_v17 = vld [vmem:[#allocation6 + $0xa28] sm:$0xff] }
 0x1f6   :  { %4416 = vmatprep.mubr.bf16.mxu0 %v11576_v58  ;;  %4588 = vmatprep.mubr.bf16.mxu1 %v11576_v58  ;;  %v10021_v60 = vcombine.high %v1480_v51, %v1484_v20  ;;  %v10023_v61 = vcombine.high %v1481_v53, %v1485_v54  ;;  %v10020_v3 = vcombine.low %v1480_v51, %v1484_v20  ;;  %v1508_v8 = vld [vmem:[#allocation6 + $0xa20] sm:$0xff]  ;;  %v1513_v30 = vld [vmem:[#allocation6 + $0xa48] sm:$0xff] }
 0x1f7   :  { %v10022_v7 = vcombine.low %v1481_v53, %v1485_v54  ;;  %v10029_v9 = vcombine.high %v1488_v63, %v1492_v0  ;;  %v10028_v16 = vcombine.low %v1488_v63, %v1492_v0  ;;  %v10030_v4 = vcombine.low %v1489_v1, %v1493_v2  ;;  %v1516_v29 = vld [vmem:[#allocation6 + $0xa60] sm:$0xff]  ;;  %v1521_v44 = vld [vmem:[#allocation6 + $0xa88] sm:$0xff] }
 0x1f8   :  { %4387 = vmatpush1.bf16.msra.mxu0 %v9988_v23  ;;  %4559 = vmatpush1.bf16.msra.mxu1 %v9990_v10  ;;  %v10031_v23 = vcombine.high %v1489_v1, %v1493_v2  ;;  %v1496_v10 = vld [vmem:[#allocation6 + $0x9c0] sm:$0xff]  ;;  %v10045_v25 = vcombine.high %v1504_v6, %v1508_v8  ;;  %v10047_v26 = vcombine.high %v1505_v13, %v1509_v17  ;;  %v1525_v62 = vld [vmem:[#allocation6 + $0xaa8] sm:$0xff] }
 0x1f9   :  { %4388 = vmatprep.subr.bf16.mxu0 %v9997_v15  ;;  %4560 = vmatprep.subr.bf16.mxu1 %v9999_v12  ;;  %v1501_v15 = vld [vmem:[#allocation6 + $0x9e8] sm:$0xff]  ;;  %v10037_v5 = vcombine.high %v1496_v10, %v1500_v11  ;;  %v10036_v18 = vcombine.low %v1496_v10, %v1500_v11  ;;  %v10046_v34 = vcombine.low %v1505_v13, %v1509_v17  ;;  %v1520_v42 = vld [vmem:[#allocation6 + $0xa80] sm:$0xff] }
 0x1fa   :  { %v10039_v12 = vcombine.high %v1497_v14, %v1501_v15  ;;  %v10038_v19 = vcombine.low %v1497_v14, %v1501_v15  ;;  %v1524_v43 = vld [vmem:[#allocation6 + $0xaa0] sm:$0xff]  ;;  %v1529_v53 = vld [vmem:[#allocation6 + $0xac8] sm:$0xff] }
 0x1fb   :  { %v1528_v51 = vld [vmem:[#allocation6 + $0xac0] sm:$0xff]  ;;  %v1533_v54 = vld [vmem:[#allocation6 + $0xae8] sm:$0xff] }
 0x1fc   :  { %4389 = vmatpush1.bf16.msra.mxu0 %v9996_v28  ;;  %4561 = vmatpush1.bf16.msra.mxu1 %v9998_v31  ;;  %v1512_v28 = vld [vmem:[#allocation6 + $0xa40] sm:$0xff]  ;;  %v1517_v31 = vld [vmem:[#allocation6 + $0xa68] sm:$0xff] }
 0x1fd   :  { %4390 = vmatprep.subr.bf16.mxu0 %v10005_v33  ;;  %4562 = vmatprep.subr.bf16.mxu1 %v10007_v37  ;;  %v10044_v33 = vcombine.low %v1504_v6, %v1508_v8  ;;  %v10053_v37 = vcombine.high %v1512_v28, %v1516_v29  ;;  %v10055_v39 = vcombine.high %v1513_v30, %v1517_v31  ;;  %v1532_v20 = vld [vmem:[#allocation6 + $0xae0] sm:$0xff]  ;;  %v1537_v1 = vld [vmem:[#allocation6 + $0xb08] sm:$0xff] }
 0x1fe   :  { %v1536_v63 = vld [vmem:[#allocation6 + $0xb00] sm:$0xff]  ;;  %v1541_v2 = vld [vmem:[#allocation6 + $0xb28] sm:$0xff] }
 0x1ff   :  { %v1540_v0 = vld [vmem:[#allocation6 + $0xb20] sm:$0xff]  ;;  %v1545_v14 = vld [vmem:[#allocation6 + $0xb48] sm:$0xff] }
 0x200   :  { %4391 = vmatpush1.bf16.msra.mxu0 %v10004_v46  ;;  %4563 = vmatpush1.bf16.msra.mxu1 %v10006_v47  ;;  %v10052_v46 = vcombine.low %v1512_v28, %v1516_v29  ;;  %v10054_v47 = vcombine.low %v1513_v30, %v1517_v31  ;;  %v1544_v10 = vld [vmem:[#allocation6 + $0xb40] sm:$0xff]  ;;  %v1549_v15 = vld [vmem:[#allocation6 + $0xb68] sm:$0xff] }
 0x201   :  { %4392 = vmatprep.subr.bf16.mxu0 %v10013_v22  ;;  %4564 = vmatprep.subr.bf16.mxu1 %v10015_v49  ;;  %v10061_v22 = vcombine.high %v1520_v42, %v1524_v43  ;;  %v10063_v49 = vcombine.high %v1521_v44, %v1525_v62  ;;  %v1548_v11 = vld [vmem:[#allocation6 + $0xb60] sm:$0xff]  ;;  %v1553_v13 = vld [vmem:[#allocation6 + $0xb88] sm:$0xff] }
 0x202   :  { %v1552_v6 = vld [vmem:[#allocation6 + $0xb80] sm:$0xff]  ;;  %v1557_v17 = vld [vmem:[#allocation6 + $0xba8] sm:$0xff] }
 0x203   :  { %v1556_v8 = vld [vmem:[#allocation6 + $0xba0] sm:$0xff]  ;;  %v1561_v30 = vld [vmem:[#allocation6 + $0xbc8] sm:$0xff] }
 0x204   :  { %4393 = vmatpush1.bf16.msra.mxu0 %v10012_v56  ;;  %4565 = vmatpush1.bf16.msra.mxu1 %v10014_v57  ;;  %v10060_v56 = vcombine.low %v1520_v42, %v1524_v43  ;;  %v10062_v57 = vcombine.low %v1521_v44, %v1525_v62  ;;  %v1560_v28 = vld [vmem:[#allocation6 + $0xbc0] sm:$0xff]  ;;  %v1565_v31 = vld [vmem:[#allocation6 + $0xbe8] sm:$0xff] }
 0x205   :  { %4394 = vmatprep.subr.bf16.mxu0 %v10021_v60  ;;  %4566 = vmatprep.subr.bf16.mxu1 %v10023_v61  ;;  %v10069_v60 = vcombine.high %v1528_v51, %v1532_v20  ;;  %v10071_v61 = vcombine.high %v1529_v53, %v1533_v54  ;;  %v1564_v29 = vld [vmem:[#allocation6 + $0xbe0] sm:$0xff]  ;;  %v1569_v44 = vld [vmem:[#allocation6 + $0xc08] sm:$0xff] }
 0x206   :  { %v1568_v42 = vld [vmem:[#allocation6 + $0xc00] sm:$0xff]  ;;  %v1573_v62 = vld [vmem:[#allocation6 + $0xc28] sm:$0xff] }
 0x207   :  { %v1572_v43 = vld [vmem:[#allocation6 + $0xc20] sm:$0xff] }
 0x208   :  { %4395 = vmatpush1.bf16.msra.mxu0 %v10020_v3  ;;  %4567 = vmatpush1.bf16.msra.mxu1 %v10022_v7  ;;  %v10068_v3 = vcombine.low %v1528_v51, %v1532_v20  ;;  %v10070_v7 = vcombine.low %v1529_v53, %v1533_v54  ;;  %v1576_v51 = vld [vmem:[#allocation6 + $0xc40] sm:$0xff]  ;;  %v1577_v53 = vld [vmem:[#allocation6 + $0xc48] sm:$0xff] }
 0x209   :  { %4396 = vmatprep.subr.bf16.mxu0 %v10029_v9  ;;  %4568 = vmatprep.subr.bf16.mxu1 %v10031_v23  ;;  %v10077_v9 = vcombine.high %v1536_v63, %v1540_v0  ;;  %v10079_v23 = vcombine.high %v1537_v1, %v1541_v2  ;;  %v1580_v20 = vld [vmem:[#allocation6 + $0xc60] sm:$0xff]  ;;  %v1581_v54 = vld [vmem:[#allocation6 + $0xc68] sm:$0xff] }
 0x20c   :  { %4397 = vmatpush1.bf16.msra.mxu0 %v10028_v16  ;;  %4569 = vmatpush1.bf16.msra.mxu1 %v10030_v4  ;;  %v10076_v16 = vcombine.low %v1536_v63, %v1540_v0  ;;  %v10078_v4 = vcombine.low %v1537_v1, %v1541_v2  ;;  %v1584_v63 = vld [vmem:[#allocation6 + $0xc80] sm:$0xff]  ;;  %v1585_v1 = vld [vmem:[#allocation6 + $0xc88] sm:$0xff] }
 0x20d   :  { %4398 = vmatprep.subr.bf16.mxu0 %v10037_v5  ;;  %4570 = vmatprep.subr.bf16.mxu1 %v10039_v12  ;;  %v10085_v5 = vcombine.high %v1544_v10, %v1548_v11  ;;  %v10087_v12 = vcombine.high %v1545_v14, %v1549_v15  ;;  %v1588_v0 = vld [vmem:[#allocation6 + $0xca0] sm:$0xff]  ;;  %v1589_v2 = vld [vmem:[#allocation6 + $0xca8] sm:$0xff] }
 0x210   :  { %4399 = vmatpush1.bf16.msra.mxu0 %v10036_v18  ;;  %4571 = vmatpush1.bf16.msra.mxu1 %v10038_v19  ;;  %v10084_v18 = vcombine.low %v1544_v10, %v1548_v11  ;;  %v10086_v19 = vcombine.low %v1545_v14, %v1549_v15  ;;  %v1592_v10 = vld [vmem:[#allocation6 + $0xcc0] sm:$0xff]  ;;  %v1593_v14 = vld [vmem:[#allocation6 + $0xcc8] sm:$0xff] }
 0x211   :  { %4400 = vmatprep.subr.bf16.mxu0 %v10045_v25  ;;  %4572 = vmatprep.subr.bf16.mxu1 %v10047_v26  ;;  %v10093_v25 = vcombine.high %v1552_v6, %v1556_v8  ;;  %v10095_v26 = vcombine.high %v1553_v13, %v1557_v17  ;;  %v1596_v11 = vld [vmem:[#allocation6 + $0xce0] sm:$0xff]  ;;  %v1597_v15 = vld [vmem:[#allocation6 + $0xce8] sm:$0xff] }
 0x214   :  { %4401 = vmatpush1.bf16.msra.mxu0 %v10044_v33  ;;  %4573 = vmatpush1.bf16.msra.mxu1 %v10046_v34  ;;  %v10092_v33 = vcombine.low %v1552_v6, %v1556_v8  ;;  %v10094_v34 = vcombine.low %v1553_v13, %v1557_v17  ;;  %v1600_v6 = vld [vmem:[#allocation6 + $0xd00] sm:$0xff]  ;;  %v1601_v13 = vld [vmem:[#allocation6 + $0xd08] sm:$0xff] }
 0x215   :  { %4402 = vmatprep.subr.bf16.mxu0 %v10053_v37  ;;  %4574 = vmatprep.subr.bf16.mxu1 %v10055_v39  ;;  %v10101_v37 = vcombine.high %v1560_v28, %v1564_v29  ;;  %v10103_v39 = vcombine.high %v1561_v30, %v1565_v31  ;;  %v1604_v8 = vld [vmem:[#allocation6 + $0xd20] sm:$0xff]  ;;  %v1605_v17 = vld [vmem:[#allocation6 + $0xd28] sm:$0xff] }
 0x218   :  { %4403 = vmatpush1.bf16.msra.mxu0 %v10052_v46  ;;  %4575 = vmatpush1.bf16.msra.mxu1 %v10054_v47  ;;  %v10100_v46 = vcombine.low %v1560_v28, %v1564_v29  ;;  %v10102_v47 = vcombine.low %v1561_v30, %v1565_v31  ;;  %v1608_v28 = vld [vmem:[#allocation6 + $0xd40] sm:$0xff]  ;;  %v1609_v30 = vld [vmem:[#allocation6 + $0xd48] sm:$0xff] }
 0x219   :  { %4404 = vmatprep.subr.bf16.mxu0 %v10061_v22  ;;  %4576 = vmatprep.subr.bf16.mxu1 %v10063_v49  ;;  %v10109_v22 = vcombine.high %v1568_v42, %v1572_v43  ;;  %v10111_v49 = vcombine.high %v1569_v44, %v1573_v62  ;;  %v1612_v29 = vld [vmem:[#allocation6 + $0xd60] sm:$0xff]  ;;  %v1613_v31 = vld [vmem:[#allocation6 + $0xd68] sm:$0xff] }
 0x21c   :  { %4405 = vmatpush1.bf16.msra.mxu0 %v10060_v56  ;;  %4577 = vmatpush1.bf16.msra.mxu1 %v10062_v57  ;;  %v10108_v56 = vcombine.low %v1568_v42, %v1572_v43  ;;  %v10110_v57 = vcombine.low %v1569_v44, %v1573_v62  ;;  %v1616_v42 = vld [vmem:[#allocation6 + $0xd80] sm:$0xff]  ;;  %v1617_v44 = vld [vmem:[#allocation6 + $0xd88] sm:$0xff] }
 0x21d   :  { %4406 = vmatprep.subr.bf16.mxu0 %v10069_v60  ;;  %4578 = vmatprep.subr.bf16.mxu1 %v10071_v61  ;;  %v10117_v60 = vcombine.high %v1576_v51, %v1580_v20  ;;  %v10119_v61 = vcombine.high %v1577_v53, %v1581_v54  ;;  %v1620_v43 = vld [vmem:[#allocation6 + $0xda0] sm:$0xff]  ;;  %v1621_v62 = vld [vmem:[#allocation6 + $0xda8] sm:$0xff] }
 0x220   :  { %4407 = vmatpush1.bf16.msra.mxu0 %v10068_v3  ;;  %4579 = vmatpush1.bf16.msra.mxu1 %v10070_v7  ;;  %v10116_v3 = vcombine.low %v1576_v51, %v1580_v20  ;;  %v10118_v7 = vcombine.low %v1577_v53, %v1581_v54  ;;  %v1624_v51 = vld [vmem:[#allocation6 + $0xdc0] sm:$0xff]  ;;  %v1625_v53 = vld [vmem:[#allocation6 + $0xdc8] sm:$0xff] }
 0x221   :  { %4408 = vmatprep.subr.bf16.mxu0 %v10077_v9  ;;  %4580 = vmatprep.subr.bf16.mxu1 %v10079_v23  ;;  %v10125_v9 = vcombine.high %v1584_v63, %v1588_v0  ;;  %v10127_v23 = vcombine.high %v1585_v1, %v1589_v2  ;;  %v1628_v20 = vld [vmem:[#allocation6 + $0xde0] sm:$0xff]  ;;  %v1629_v54 = vld [vmem:[#allocation6 + $0xde8] sm:$0xff] }
 0x224   :  { %4409 = vmatpush1.bf16.msra.mxu0 %v10076_v16  ;;  %4581 = vmatpush1.bf16.msra.mxu1 %v10078_v4  ;;  %v10124_v16 = vcombine.low %v1584_v63, %v1588_v0  ;;  %v10126_v4 = vcombine.low %v1585_v1, %v1589_v2  ;;  %v1632_v63 = vld [vmem:[#allocation6 + $0xe00] sm:$0xff]  ;;  %v1633_v1 = vld [vmem:[#allocation6 + $0xe08] sm:$0xff] }
 0x225   :  { %4410 = vmatprep.subr.bf16.mxu0 %v10085_v5  ;;  %4582 = vmatprep.subr.bf16.mxu1 %v10087_v12  ;;  %v10133_v5 = vcombine.high %v1592_v10, %v1596_v11  ;;  %v10135_v12 = vcombine.high %v1593_v14, %v1597_v15  ;;  %v1636_v0 = vld [vmem:[#allocation6 + $0xe20] sm:$0xff]  ;;  %v1637_v2 = vld [vmem:[#allocation6 + $0xe28] sm:$0xff] }
 0x228   :  { %4411 = vmatpush1.bf16.msra.mxu0 %v10084_v18  ;;  %4583 = vmatpush1.bf16.msra.mxu1 %v10086_v19  ;;  %v10132_v18 = vcombine.low %v1592_v10, %v1596_v11  ;;  %v10134_v19 = vcombine.low %v1593_v14, %v1597_v15  ;;  %v1640_v10 = vld [vmem:[#allocation6 + $0xe40] sm:$0xff]  ;;  %v1641_v14 = vld [vmem:[#allocation6 + $0xe48] sm:$0xff] }
 0x229   :  { %4412 = vmatprep.subr.bf16.mxu0 %v10093_v25  ;;  %4584 = vmatprep.subr.bf16.mxu1 %v10095_v26  ;;  %v10141_v25 = vcombine.high %v1600_v6, %v1604_v8  ;;  %v10143_v26 = vcombine.high %v1601_v13, %v1605_v17  ;;  %v1644_v11 = vld [vmem:[#allocation6 + $0xe60] sm:$0xff]  ;;  %v1645_v15 = vld [vmem:[#allocation6 + $0xe68] sm:$0xff] }
 0x22c   :  { %4413 = vmatpush1.bf16.msra.mxu0 %v10092_v33  ;;  %4585 = vmatpush1.bf16.msra.mxu1 %v10094_v34  ;;  %v10140_v33 = vcombine.low %v1600_v6, %v1604_v8  ;;  %v10142_v34 = vcombine.low %v1601_v13, %v1605_v17  ;;  %v1648_v6 = vld [vmem:[#allocation6 + $0xe80] sm:$0xff]  ;;  %v1649_v13 = vld [vmem:[#allocation6 + $0xe88] sm:$0xff] }
 0x22d   :  { %4414 = vmatprep.subr.bf16.mxu0 %v10101_v37  ;;  %4586 = vmatprep.subr.bf16.mxu1 %v10103_v39  ;;  %v10149_v37 = vcombine.high %v1608_v28, %v1612_v29  ;;  %v10151_v39 = vcombine.high %v1609_v30, %v1613_v31  ;;  %v1652_v8 = vld [vmem:[#allocation6 + $0xea0] sm:$0xff]  ;;  %v1653_v17 = vld [vmem:[#allocation6 + $0xea8] sm:$0xff] }
 0x230   :  { %4415 = vmatpush1.bf16.msra.mxu0 %v10100_v46  ;;  %4587 = vmatpush1.bf16.msra.mxu1 %v10102_v47  ;;  %v10148_v46 = vcombine.low %v1608_v28, %v1612_v29  ;;  %v10150_v47 = vcombine.low %v1609_v30, %v1613_v31  ;;  %v1656_v28 = vld [vmem:[#allocation6 + $0xec0] sm:$0xff]  ;;  %v1657_v30 = vld [vmem:[#allocation6 + $0xec8] sm:$0xff] }
 0x231   :  { %4427 = vmatprep.subr.bf16.mxu0 %v10109_v22  ;;  %4599 = vmatprep.subr.bf16.mxu1 %v10111_v49  ;;  %v10157_v22 = vcombine.high %v1616_v42, %v1620_v43  ;;  %v10159_v49 = vcombine.high %v1617_v44, %v1621_v62  ;;  %v1660_v29 = vld [vmem:[#allocation6 + $0xee0] sm:$0xff]  ;;  %v1661_v31 = vld [vmem:[#allocation6 + $0xee8] sm:$0xff] }
 0x233   :  { %4417 = vmatmul.mubr.bf16.vlgmr.msra.gmra.mrb[8].mxu0 %v11572_v52  ;;  %4589 = vmatmul.mubr.bf16.vlgmr.msra.gmra.mrb[8].mxu1 %v11572_v52 }
 0x234   :  { %4428 = vmatpush1.bf16.msra.mxu0 %v10108_v56  ;;  %4600 = vmatpush1.bf16.msra.mxu1 %v10110_v57  ;;  %v10156_v56 = vcombine.low %v1616_v42, %v1620_v43  ;;  %v10158_v57 = vcombine.low %v1617_v44, %v1621_v62  ;;  %v1664_v42 = vld [vmem:[#allocation6 + $0xf00] sm:$0xff]  ;;  %v1665_v44 = vld [vmem:[#allocation6 + $0xf08] sm:$0xff] }
 0x235   :  { %4429 = vmatprep.subr.bf16.mxu0 %v10117_v60  ;;  %4601 = vmatprep.subr.bf16.mxu1 %v10119_v61  ;;  %v10165_v60 = vcombine.high %v1624_v51, %v1628_v20  ;;  %v10167_v61 = vcombine.high %v1625_v53, %v1629_v54  ;;  %v1668_v43 = vld [vmem:[#allocation6 + $0xf20] sm:$0xff]  ;;  %v1669_v62 = vld [vmem:[#allocation6 + $0xf28] sm:$0xff] }
 0x236   :  { %4459 = vmatprep.mubr.bf16.mxu0 %v11585_v45  ;;  %4631 = vmatprep.mubr.bf16.mxu1 %v11585_v45 }
 0x238   :  { %4430 = vmatpush1.bf16.msra.mxu0 %v10116_v3  ;;  %4602 = vmatpush1.bf16.msra.mxu1 %v10118_v7  ;;  %v10164_v3 = vcombine.low %v1624_v51, %v1628_v20  ;;  %v10166_v7 = vcombine.low %v1625_v53, %v1629_v54  ;;  %v1672_v51 = vld [vmem:[#allocation6 + $0xf40] sm:$0xff]  ;;  %v1673_v53 = vld [vmem:[#allocation6 + $0xf48] sm:$0xff] }
 0x239   :  { %4431 = vmatprep.subr.bf16.mxu0 %v10125_v9  ;;  %4603 = vmatprep.subr.bf16.mxu1 %v10127_v23  ;;  %v10173_v9 = vcombine.high %v1632_v63, %v1636_v0  ;;  %v10175_v23 = vcombine.high %v1633_v1, %v1637_v2  ;;  %v1676_v20 = vld [vmem:[#allocation6 + $0xf60] sm:$0xff]  ;;  %v1677_v54 = vld [vmem:[#allocation6 + $0xf68] sm:$0xff] }
 0x23c   :  { %4432 = vmatpush1.bf16.msra.mxu0 %v10124_v16  ;;  %4604 = vmatpush1.bf16.msra.mxu1 %v10126_v4  ;;  %v10172_v16 = vcombine.low %v1632_v63, %v1636_v0  ;;  %v10174_v4 = vcombine.low %v1633_v1, %v1637_v2  ;;  %v1680_v63 = vld [vmem:[#allocation6 + $0xf80] sm:$0xff]  ;;  %v1681_v1 = vld [vmem:[#allocation6 + $0xf88] sm:$0xff] }
 0x23d   :  { %4433 = vmatprep.subr.bf16.mxu0 %v10133_v5  ;;  %4605 = vmatprep.subr.bf16.mxu1 %v10135_v12  ;;  %v10181_v5 = vcombine.high %v1640_v10, %v1644_v11  ;;  %v10183_v12 = vcombine.high %v1641_v14, %v1645_v15  ;;  %v1684_v0 = vld [vmem:[#allocation6 + $0xfa0] sm:$0xff]  ;;  %v1685_v2 = vld [vmem:[#allocation6 + $0xfa8] sm:$0xff] }
 0x240   :  { %4434 = vmatpush1.bf16.msra.mxu0 %v10132_v18  ;;  %4606 = vmatpush1.bf16.msra.mxu1 %v10134_v19  ;;  %v10180_v18 = vcombine.low %v1640_v10, %v1644_v11  ;;  %v10182_v19 = vcombine.low %v1641_v14, %v1645_v15  ;;  %v1688_v10 = vld [vmem:[#allocation6 + $0xfc0] sm:$0xff]  ;;  %v1689_v14 = vld [vmem:[#allocation6 + $0xfc8] sm:$0xff] }
 0x241   :  { %4435 = vmatprep.subr.bf16.mxu0 %v10141_v25  ;;  %4607 = vmatprep.subr.bf16.mxu1 %v10143_v26  ;;  %v10189_v25 = vcombine.high %v1648_v6, %v1652_v8  ;;  %v10191_v26 = vcombine.high %v1649_v13, %v1653_v17  ;;  %v1692_v11 = vld [vmem:[#allocation6 + $0xfe0] sm:$0xff]  ;;  %v1693_v15 = vld [vmem:[#allocation6 + $0xfe8] sm:$0xff] }
 0x244   :  { %4436 = vmatpush1.bf16.msra.mxu0 %v10140_v33  ;;  %4608 = vmatpush1.bf16.msra.mxu1 %v10142_v34  ;;  %v10188_v33 = vcombine.low %v1648_v6, %v1652_v8  ;;  %v10190_v34 = vcombine.low %v1649_v13, %v1653_v17  ;;  %v1186_v6 = vld [vmem:[#allocation6 + $0x10] sm:$0xff]  ;;  %v1187_v13 = vld [vmem:[#allocation6 + $0x18] sm:$0xff] }
 0x245   :  { %4437 = vmatprep.subr.bf16.mxu0 %v10149_v37  ;;  %4609 = vmatprep.subr.bf16.mxu1 %v10151_v39  ;;  %v10197_v37 = vcombine.high %v1656_v28, %v1660_v29  ;;  %v10199_v39 = vcombine.high %v1657_v30, %v1661_v31  ;;  %v1190_v8 = vld [vmem:[#allocation6 + $0x30] sm:$0xff]  ;;  %v1191_v17 = vld [vmem:[#allocation6 + $0x38] sm:$0xff] }
 0x248   :  { %4438 = vmatpush1.bf16.msra.mxu0 %v10148_v46  ;;  %4610 = vmatpush1.bf16.msra.mxu1 %v10150_v47  ;;  %v10196_v46 = vcombine.low %v1656_v28, %v1660_v29  ;;  %v10198_v47 = vcombine.low %v1657_v30, %v1661_v31  ;;  %v1194_v28 = vld [vmem:[#allocation6 + $0x50] sm:$0xff]  ;;  %v1195_v30 = vld [vmem:[#allocation6 + $0x58] sm:$0xff] }
 0x249   :  { %4439 = vmatprep.subr.bf16.mxu0 %v10157_v22  ;;  %4611 = vmatprep.subr.bf16.mxu1 %v10159_v49  ;;  %v10205_v22 = vcombine.high %v1664_v42, %v1668_v43  ;;  %v10207_v49 = vcombine.high %v1665_v44, %v1669_v62  ;;  %v1198_v29 = vld [vmem:[#allocation6 + $0x70] sm:$0xff]  ;;  %v1199_v31 = vld [vmem:[#allocation6 + $0x78] sm:$0xff] }
 0x24c   :  { %4440 = vmatpush1.bf16.msra.mxu0 %v10156_v56  ;;  %4612 = vmatpush1.bf16.msra.mxu1 %v10158_v57  ;;  %v10204_v56 = vcombine.low %v1664_v42, %v1668_v43  ;;  %v10206_v57 = vcombine.low %v1665_v44, %v1669_v62  ;;  %v1202_v42 = vld [vmem:[#allocation6 + $0x90] sm:$0xff]  ;;  %v1203_v44 = vld [vmem:[#allocation6 + $0x98] sm:$0xff] }
 0x24d   :  { %4441 = vmatprep.subr.bf16.mxu0 %v10165_v60  ;;  %4613 = vmatprep.subr.bf16.mxu1 %v10167_v61  ;;  %v10213_v60 = vcombine.high %v1672_v51, %v1676_v20  ;;  %v10215_v61 = vcombine.high %v1673_v53, %v1677_v54  ;;  %v1206_v43 = vld [vmem:[#allocation6 + $0xb0] sm:$0xff]  ;;  %v1207_v62 = vld [vmem:[#allocation6 + $0xb8] sm:$0xff] }
 0x250   :  { %4442 = vmatpush1.bf16.msra.mxu0 %v10164_v3  ;;  %4614 = vmatpush1.bf16.msra.mxu1 %v10166_v7  ;;  %v10212_v3 = vcombine.low %v1672_v51, %v1676_v20  ;;  %v10214_v7 = vcombine.low %v1673_v53, %v1677_v54  ;;  %v1210_v51 = vld [vmem:[#allocation6 + $0xd0] sm:$0xff]  ;;  %v1211_v53 = vld [vmem:[#allocation6 + $0xd8] sm:$0xff] }
 0x251   :  { %4443 = vmatprep.subr.bf16.mxu0 %v10173_v9  ;;  %4615 = vmatprep.subr.bf16.mxu1 %v10175_v23  ;;  %v10221_v9 = vcombine.high %v1680_v63, %v1684_v0  ;;  %v10223_v23 = vcombine.high %v1681_v1, %v1685_v2  ;;  %v1214_v20 = vld [vmem:[#allocation6 + $0xf0] sm:$0xff]  ;;  %v1215_v54 = vld [vmem:[#allocation6 + $0xf8] sm:$0xff] }
 0x254   :  { %4444 = vmatpush1.bf16.msra.mxu0 %v10172_v16  ;;  %4616 = vmatpush1.bf16.msra.mxu1 %v10174_v4  ;;  %v10220_v16 = vcombine.low %v1680_v63, %v1684_v0  ;;  %v10222_v4 = vcombine.low %v1681_v1, %v1685_v2  ;;  %v1218_v63 = vld [vmem:[#allocation6 + $0x110] sm:$0xff]  ;;  %v1223_v1 = vld [vmem:[#allocation6 + $0x138] sm:$0xff]  ;;  %v9752_v2 = vcombine.low %v1210_v51, %v1214_v20 }
 0x255   :  { %4445 = vmatprep.subr.bf16.mxu0 %v10181_v5  ;;  %4617 = vmatprep.subr.bf16.mxu1 %v10183_v12  ;;  %v10229_v5 = vcombine.high %v1688_v10, %v1692_v11  ;;  %v10231_v12 = vcombine.high %v1689_v14, %v1693_v15  ;;  %v1222_v0 = vld [vmem:[#allocation6 + $0x130] sm:$0xff] }
 0x258   :  { %4446 = vmatpush1.bf16.msra.mxu0 %v10180_v18  ;;  %4618 = vmatpush1.bf16.msra.mxu1 %v10182_v19  ;;  %v10228_v18 = vcombine.low %v1688_v10, %v1692_v11  ;;  %v10230_v19 = vcombine.low %v1689_v14, %v1693_v15  ;;  %v1230_v10 = vld [vmem:[#allocation6 + $0x170] sm:$0xff]  ;;  %v1227_v11 = vld [vmem:[#allocation6 + $0x158] sm:$0xff]  ;;  %v9760_v15 = vcombine.low %v1218_v63, %v1222_v0 }
 0x259   :  { %4447 = vmatprep.subr.bf16.mxu0 %v10189_v25  ;;  %4619 = vmatprep.subr.bf16.mxu1 %v10191_v26  ;;  %v9729_v25 = vcombine.high %v1186_v6, %v1190_v8  ;;  %v9731_v26 = vcombine.high %v1187_v13, %v1191_v17  ;;  %v1231_v14 = vld [vmem:[#allocation6 + $0x178] sm:$0xff] }
 0x25c   :  { %4448 = vmatpush1.bf16.msra.mxu0 %v10188_v33  ;;  %4620 = vmatpush1.bf16.msra.mxu1 %v10190_v34  ;;  %v9728_v33 = vcombine.low %v1186_v6, %v1190_v8  ;;  %v9730_v34 = vcombine.low %v1187_v13, %v1191_v17  ;;  %v1238_v6 = vld [vmem:[#allocation6 + $0x1b0] sm:$0xff]  ;;  %v1235_v8 = vld [vmem:[#allocation6 + $0x198] sm:$0xff] }
 0x25d   :  { %4449 = vmatprep.subr.bf16.mxu0 %v10197_v37  ;;  %4621 = vmatprep.subr.bf16.mxu1 %v10199_v39  ;;  %v9737_v37 = vcombine.high %v1194_v28, %v1198_v29  ;;  %v9739_v39 = vcombine.high %v1195_v30, %v1199_v31  ;;  %v1239_v13 = vld [vmem:[#allocation6 + $0x1b8] sm:$0xff] }
 0x260   :  { %4450 = vmatpush1.bf16.msra.mxu0 %v10196_v46  ;;  %4622 = vmatpush1.bf16.msra.mxu1 %v10198_v47  ;;  %v9736_v46 = vcombine.low %v1194_v28, %v1198_v29  ;;  %v9738_v47 = vcombine.low %v1195_v30, %v1199_v31  ;;  %v1246_v28 = vld [vmem:[#allocation6 + $0x1f0] sm:$0xff]  ;;  %v1243_v29 = vld [vmem:[#allocation6 + $0x1d8] sm:$0xff] }
 0x261   :  { %4451 = vmatprep.subr.bf16.mxu0 %v10205_v22  ;;  %4623 = vmatprep.subr.bf16.mxu1 %v10207_v49  ;;  %v9745_v22 = vcombine.high %v1202_v42, %v1206_v43  ;;  %v9747_v49 = vcombine.high %v1203_v44, %v1207_v62  ;;  %v1247_v30 = vld [vmem:[#allocation6 + $0x1f8] sm:$0xff] }
 0x264   :  { %4452 = vmatpush1.bf16.msra.mxu0 %v10204_v56  ;;  %4624 = vmatpush1.bf16.msra.mxu1 %v10206_v57  ;;  %v9744_v56 = vcombine.low %v1202_v42, %v1206_v43  ;;  %v9746_v57 = vcombine.low %v1203_v44, %v1207_v62  ;;  %v1254_v42 = vld [vmem:[#allocation6 + $0x230] sm:$0xff]  ;;  %v1251_v43 = vld [vmem:[#allocation6 + $0x218] sm:$0xff] }
 0x265   :  { %4453 = vmatprep.subr.bf16.mxu0 %v10213_v60  ;;  %4625 = vmatprep.subr.bf16.mxu1 %v10215_v61  ;;  %v9753_v60 = vcombine.high %v1210_v51, %v1214_v20  ;;  %v9755_v61 = vcombine.high %v1211_v53, %v1215_v54  ;;  %v1255_v44 = vld [vmem:[#allocation6 + $0x238] sm:$0xff]  ;;  %v1262_v51 = vld [vmem:[#allocation6 + $0x270] sm:$0xff] }
 0x266   :  { %v1259_v20 = vld [vmem:[#allocation6 + $0x258] sm:$0xff] }
 0x268   :  { %4454 = vmatpush1.bf16.msra.mxu0 %v10212_v3  ;;  %4626 = vmatpush1.bf16.msra.mxu1 %v10214_v7  ;;  %v9754_v3 = vcombine.low %v1211_v53, %v1215_v54  ;;  %v9761_v7 = vcombine.high %v1218_v63, %v1222_v0  ;;  %v1263_v53 = vld [vmem:[#allocation6 + $0x278] sm:$0xff]  ;;  %v1270_v63 = vld [vmem:[#allocation6 + $0x2b0] sm:$0xff] }
 0x269   :  { %4455 = vmatprep.subr.bf16.mxu0 %v10221_v9  ;;  %4627 = vmatprep.subr.bf16.mxu1 %v10223_v23  ;;  %v1226_v23 = vld [vmem:[#allocation6 + $0x150] sm:$0xff]  ;;  %v1267_v0 = vld [vmem:[#allocation6 + $0x298] sm:$0xff] }
 0x26a   :  { %v9768_v17 = vcombine.low %v1226_v23, %v1230_v10 }
 0x26c   :  { %4456 = vmatpush1.bf16.msra.mxu0 %v10220_v16  ;;  %4628 = vmatpush1.bf16.msra.mxu1 %v10222_v4  ;;  %v9769_v4 = vcombine.high %v1226_v23, %v1230_v10  ;;  %v1278_v23 = vld [vmem:[#allocation6 + $0x2f0] sm:$0xff]  ;;  %v1275_v10 = vld [vmem:[#allocation6 + $0x2d8] sm:$0xff] }
 0x26d   :  { %4457 = vmatprep.subr.bf16.mxu0 %v10229_v5  ;;  %4629 = vmatprep.subr.bf16.mxu1 %v10231_v12  ;;  %v9771_v5 = vcombine.high %v1227_v11, %v1231_v14  ;;  %v1234_v12 = vld [vmem:[#allocation6 + $0x190] sm:$0xff] }
 0x26e   :  { %v9776_v31 = vcombine.low %v1234_v12, %v1238_v6 }
 0x270   :  { %4458 = vmatpush1.bf16.msra.mxu0 %v10228_v18  ;;  %4630 = vmatpush1.bf16.msra.mxu1 %v10230_v19  ;;  %v9770_v18 = vcombine.low %v1227_v11, %v1231_v14  ;;  %v9777_v19 = vcombine.high %v1234_v12, %v1238_v6  ;;  %v1279_v11 = vld [vmem:[#allocation6 + $0x2f8] sm:$0xff]  ;;  %v1286_v12 = vld [vmem:[#allocation6 + $0x330] sm:$0xff] }
 0x271   :  { %4642 = vmatprep.subr.bf16.mxu0 %v9729_v25  ;;  %4814 = vmatprep.subr.bf16.mxu1 %v9731_v26  ;;  %v9779_v25 = vcombine.high %v1235_v8, %v1239_v13  ;;  %v1242_v26 = vld [vmem:[#allocation6 + $0x1d0] sm:$0xff]  ;;  %v1283_v6 = vld [vmem:[#allocation6 + $0x318] sm:$0xff] }
 0x272   :  { %v9784_v62 = vcombine.low %v1242_v26, %v1246_v28 }
 0x273   :  { %4460 = vmatmul.mubr.bf16.vlgmr.msra.gmra.mrb[8].mxu0 %v11583_v41  ;;  %4632 = vmatmul.mubr.bf16.vlgmr.msra.gmra.mrb[8].mxu1 %v11583_v41 }
 0x274   :  { %4643 = vmatpush1.bf16.msra.mxu0 %v9728_v33  ;;  %4674 = vmatprep.mubr.bf16.mxu0 %v11536_v50  ;;  %v9778_v33 = vcombine.low %v1235_v8, %v1239_v13  ;;  %v1287_v8 = vld [vmem:[#allocation6 + $0x338] sm:$0xff] }
 0x275   :  { %4815 = vmatpush1.bf16.msra.mxu1 %v9730_v34  ;;  %4846 = vmatprep.mubr.bf16.mxu1 %v11536_v50  ;;  %v1219_v50 = vld [vmem:[#allocation6 + $0x118] sm:$0xff]  ;;  %v9785_v34 = vcombine.high %v1242_v26, %v1246_v28  ;;  %v1294_v26 = vld [vmem:[#allocation6 + $0x370] sm:$0xff] }
 0x276   :  { %4644 = vmatprep.subr.bf16.mxu0 %v9737_v37  ;;  %4816 = vmatprep.subr.bf16.mxu1 %v9739_v39  ;;  %v9763_v9 = vcombine.high %v1219_v50, %v1223_v1  ;;  %v9762_v16 = vcombine.low %v1219_v50, %v1223_v1  ;;  %v9787_v37 = vcombine.high %v1243_v29, %v1247_v30  ;;  %v1250_v39 = vld [vmem:[#allocation6 + $0x210] sm:$0xff]  ;;  %v1271_v50 = vld [vmem:[#allocation6 + $0x2b8] sm:$0xff] }
 0x277   :  { %v9792_v54 = vcombine.low %v1250_v39, %v1254_v42  ;;  %v1291_v28 = vld [vmem:[#allocation6 + $0x358] sm:$0xff] }
 0x278   :  { %4645 = vmatpush1.bf16.msra.mxu0 %v9736_v46  ;;  %v9786_v46 = vcombine.low %v1243_v29, %v1247_v30  ;;  %v1295_v29 = vld [vmem:[#allocation6 + $0x378] sm:$0xff] }
 0x279   :  { %4817 = vmatpush1.bf16.msra.mxu1 %v9738_v47  ;;  %4646 = vmatprep.subr.bf16.mxu0 %v9745_v22  ;;  %v9793_v47 = vcombine.high %v1250_v39, %v1254_v42  ;;  %v9795_v22 = vcombine.high %v1251_v43, %v1255_v44  ;;  %v1302_v39 = vld [vmem:[#allocation6 + $0x3b0] sm:$0xff]  ;;  %v1299_v42 = vld [vmem:[#allocation6 + $0x398] sm:$0xff] }
 0x27a   :  { %4818 = vmatprep.subr.bf16.mxu1 %v9747_v49  ;;  %v1258_v49 = vld [vmem:[#allocation6 + $0x250] sm:$0xff] }
 0x27b   :  { %v9800_v1 = vcombine.low %v1258_v49, %v1262_v51 }
 0x27c   :  { %4647 = vmatpush1.bf16.msra.mxu0 %v9744_v56  ;;  %v9794_v56 = vcombine.low %v1251_v43, %v1255_v44  ;;  %v1303_v43 = vld [vmem:[#allocation6 + $0x3b8] sm:$0xff] }
 0x27d   :  { %4819 = vmatpush1.bf16.msra.mxu1 %v9746_v57  ;;  %4648 = vmatprep.subr.bf16.mxu0 %v9753_v60  ;;  %v9801_v57 = vcombine.high %v1258_v49, %v1262_v51  ;;  %v9803_v60 = vcombine.high %v1259_v20, %v1263_v53  ;;  %v1310_v49 = vld [vmem:[#allocation6 + $0x3f0] sm:$0xff]  ;;  %v1307_v51 = vld [vmem:[#allocation6 + $0x3d8] sm:$0xff] }
 0x27e   :  { %4820 = vmatprep.subr.bf16.mxu1 %v9755_v61  ;;  %v1266_v61 = vld [vmem:[#allocation6 + $0x290] sm:$0xff] }
 0x27f   :  { %v9808_v14 = vcombine.low %v1266_v61, %v1270_v63 }
 0x280   :  { %4649 = vmatpush1.bf16.msra.mxu0 %v9752_v2  ;;  %v9802_v2 = vcombine.low %v1259_v20, %v1263_v53  ;;  %v1311_v20 = vld [vmem:[#allocation6 + $0x3f8] sm:$0xff] }
 0x281   :  { %4821 = vmatpush1.bf16.msra.mxu1 %v9754_v3  ;;  %4650 = vmatprep.subr.bf16.mxu0 %v9761_v7  ;;  %v9809_v3 = vcombine.high %v1266_v61, %v1270_v63  ;;  %v9811_v7 = vcombine.high %v1267_v0, %v1271_v50  ;;  %v1318_v61 = vld [vmem:[#allocation6 + $0x430] sm:$0xff]  ;;  %v1315_v63 = vld [vmem:[#allocation6 + $0x418] sm:$0xff] }
 0x282   :  { %4822 = vmatprep.subr.bf16.mxu1 %v9763_v9  ;;  %v1274_v9 = vld [vmem:[#allocation6 + $0x2d0] sm:$0xff] }
 0x283   :  { %v9816_v13 = vcombine.low %v1274_v9, %v1278_v23 }
 0x284   :  { %4651 = vmatpush1.bf16.msra.mxu0 %v9760_v15  ;;  %v9810_v15 = vcombine.low %v1267_v0, %v1271_v50  ;;  %v1319_v0 = vld [vmem:[#allocation6 + $0x438] sm:$0xff] }
 0x285   :  { %4823 = vmatpush1.bf16.msra.mxu1 %v9762_v16  ;;  %4652 = vmatprep.subr.bf16.mxu0 %v9769_v4  ;;  %v9817_v16 = vcombine.high %v1274_v9, %v1278_v23  ;;  %v9819_v4 = vcombine.high %v1275_v10, %v1279_v11  ;;  %v1326_v9 = vld [vmem:[#allocation6 + $0x470] sm:$0xff] }
 0x286   :  { %4824 = vmatprep.subr.bf16.mxu1 %v9771_v5  ;;  %v1282_v5 = vld [vmem:[#allocation6 + $0x310] sm:$0xff] }
 0x287   :  { %v9824_v30 = vcombine.low %v1282_v5, %v1286_v12 }
 0x288   :  { %4653 = vmatpush1.bf16.msra.mxu0 %v9768_v17  ;;  %v9818_v17 = vcombine.low %v1275_v10, %v1279_v11  ;;  %v1323_v10 = vld [vmem:[#allocation6 + $0x458] sm:$0xff] }
 0x289   :  { %4825 = vmatpush1.bf16.msra.mxu1 %v9770_v18  ;;  %4654 = vmatprep.subr.bf16.mxu0 %v9777_v19  ;;  %v9825_v18 = vcombine.high %v1282_v5, %v1286_v12  ;;  %v9827_v19 = vcombine.high %v1283_v6, %v1287_v8  ;;  %v1327_v11 = vld [vmem:[#allocation6 + $0x478] sm:$0xff] }
 0x28a   :  { %4826 = vmatprep.subr.bf16.mxu1 %v9779_v25  ;;  %v1290_v25 = vld [vmem:[#allocation6 + $0x350] sm:$0xff]  ;;  %v9867_v5 = vcombine.high %v1323_v10, %v1327_v11  ;;  %v1331_v12 = vld [vmem:[#allocation6 + $0x498] sm:$0xff] }
 0x28b   :  { %v9832_v44 = vcombine.low %v1290_v25, %v1294_v26 }
 0x28c   :  { %4655 = vmatpush1.bf16.msra.mxu0 %v9776_v31  ;;  %v9826_v31 = vcombine.low %v1283_v6, %v1287_v8  ;;  %v1335_v6 = vld [vmem:[#allocation6 + $0x4b8] sm:$0xff] }
 0x28d   :  { %4827 = vmatpush1.bf16.msra.mxu1 %v9778_v33  ;;  %4656 = vmatprep.subr.bf16.mxu0 %v9785_v34  ;;  %v9833_v33 = vcombine.high %v1290_v25, %v1294_v26  ;;  %v9835_v34 = vcombine.high %v1291_v28, %v1295_v29  ;;  %v1342_v25 = vld [vmem:[#allocation6 + $0x4f0] sm:$0xff]  ;;  %v1339_v26 = vld [vmem:[#allocation6 + $0x4d8] sm:$0xff] }
 0x28e   :  { %4828 = vmatprep.subr.bf16.mxu1 %v9787_v37  ;;  %v1298_v37 = vld [vmem:[#allocation6 + $0x390] sm:$0xff] }
 0x28f   :  { %v9840_v53 = vcombine.low %v1298_v37, %v1302_v39 }
 0x290   :  { %4657 = vmatpush1.bf16.msra.mxu0 %v9784_v62  ;;  %v9834_v62 = vcombine.low %v1291_v28, %v1295_v29  ;;  %v1343_v28 = vld [vmem:[#allocation6 + $0x4f8] sm:$0xff] }
 0x291   :  { %4829 = vmatpush1.bf16.msra.mxu1 %v9786_v46  ;;  %4658 = vmatprep.subr.bf16.mxu0 %v9793_v47  ;;  %v9841_v46 = vcombine.high %v1298_v37, %v1302_v39  ;;  %v9843_v47 = vcombine.high %v1299_v42, %v1303_v43  ;;  %v1347_v37 = vld [vmem:[#allocation6 + $0x518] sm:$0xff] }
 0x292   :  { %4830 = vmatprep.subr.bf16.mxu1 %v9795_v22  ;;  %v1306_v22 = vld [vmem:[#allocation6 + $0x3d0] sm:$0xff]  ;;  %v1351_v39 = vld [vmem:[#allocation6 + $0x538] sm:$0xff] }
 0x293   :  { %v9848_v50 = vcombine.low %v1306_v22, %v1310_v49 }
 0x294   :  { %4659 = vmatpush1.bf16.msra.mxu0 %v9792_v54  ;;  %v9842_v54 = vcombine.low %v1299_v42, %v1303_v43  ;;  %v9882_v42 = vcombine.low %v1339_v26, %v1343_v28 }
 0x295   :  { %4831 = vmatpush1.bf16.msra.mxu1 %v9794_v56  ;;  %4660 = vmatprep.subr.bf16.mxu0 %v9801_v57  ;;  %v9849_v56 = vcombine.high %v1306_v22, %v1310_v49  ;;  %v9851_v57 = vcombine.high %v1307_v51, %v1311_v20  ;;  %v1359_v22 = vld [vmem:[#allocation6 + $0x578] sm:$0xff] }
 0x296   :  { %4832 = vmatprep.subr.bf16.mxu1 %v9803_v60  ;;  %v1314_v60 = vld [vmem:[#allocation6 + $0x410] sm:$0xff] }
 0x297   :  { %v9856_v23 = vcombine.low %v1314_v60, %v1318_v61 }
 0x298   :  { %4661 = vmatpush1.bf16.msra.mxu0 %v9800_v1  ;;  %v9850_v1 = vcombine.low %v1307_v51, %v1311_v20  ;;  %v9890_v51 = vcombine.low %v1347_v37, %v1351_v39 }
 0x299   :  { %4833 = vmatpush1.bf16.msra.mxu1 %v9802_v2  ;;  %4662 = vmatprep.subr.bf16.mxu0 %v9809_v3  ;;  %v9857_v2 = vcombine.high %v1314_v60, %v1318_v61  ;;  %v9859_v3 = vcombine.high %v1315_v63, %v1319_v0  ;;  %v1367_v60 = vld [vmem:[#allocation6 + $0x5b8] sm:$0xff] }
 0x29a   :  { %4834 = vmatprep.subr.bf16.mxu1 %v9811_v7  ;;  %v1322_v7 = vld [vmem:[#allocation6 + $0x450] sm:$0xff] }
 0x29b   :  { %v9864_v8 = vcombine.low %v1322_v7, %v1326_v9 }
 0x29c   :  { %4663 = vmatpush1.bf16.msra.mxu0 %v9808_v14  ;;  %v9858_v14 = vcombine.low %v1315_v63, %v1319_v0 }
 0x29d   :  { %4835 = vmatpush1.bf16.msra.mxu1 %v9810_v15  ;;  %4664 = vmatprep.subr.bf16.mxu0 %v9817_v16  ;;  %v9865_v15 = vcombine.high %v1322_v7, %v1326_v9  ;;  %v1330_v16 = vld [vmem:[#allocation6 + $0x490] sm:$0xff]  ;;  %v1375_v7 = vld [vmem:[#allocation6 + $0x5f8] sm:$0xff] }
 0x29e   :  { %4836 = vmatprep.subr.bf16.mxu1 %v9819_v4  ;;  %v1334_v4 = vld [vmem:[#allocation6 + $0x4b0] sm:$0xff] }
 0x29f   :  { %v9872_v29 = vcombine.low %v1330_v16, %v1334_v4 }
 0x2a0   :  { %4665 = vmatpush1.bf16.msra.mxu0 %v9816_v13  ;;  %v9866_v13 = vcombine.low %v1323_v10, %v1327_v11 }
 0x2a1   :  { %4837 = vmatpush1.bf16.msra.mxu1 %v9818_v17  ;;  %4666 = vmatprep.subr.bf16.mxu0 %v9825_v18  ;;  %v9873_v17 = vcombine.high %v1330_v16, %v1334_v4  ;;  %v9875_v18 = vcombine.high %v1331_v12, %v1335_v6  ;;  %v1379_v16 = vld [vmem:[#allocation6 + $0x618] sm:$0xff] }
 0x2a2   :  { %4838 = vmatprep.subr.bf16.mxu1 %v9827_v19  ;;  %v1338_v19 = vld [vmem:[#allocation6 + $0x4d0] sm:$0xff]  ;;  %v1383_v4 = vld [vmem:[#allocation6 + $0x638] sm:$0xff] }
 0x2a4   :  { %4667 = vmatpush1.bf16.msra.mxu0 %v9824_v30  ;;  %v9881_v30 = vcombine.high %v1338_v19, %v1342_v25 }
 0x2a5   :  { %4839 = vmatpush1.bf16.msra.mxu1 %v9826_v31  ;;  %4668 = vmatprep.subr.bf16.mxu0 %v9833_v33  ;;  %v9883_v31 = vcombine.high %v1339_v26, %v1343_v28  ;;  %v1346_v33 = vld [vmem:[#allocation6 + $0x510] sm:$0xff]  ;;  %v9922_v26 = vcombine.low %v1379_v16, %v1383_v4 }
 0x2a6   :  { %4840 = vmatprep.subr.bf16.mxu1 %v9835_v34  ;;  %v1350_v34 = vld [vmem:[#allocation6 + $0x530] sm:$0xff] }
 0x2a7   :  { %v9889_v43 = vcombine.high %v1346_v33, %v1350_v34  ;;  %v9888_v49 = vcombine.low %v1346_v33, %v1350_v34  ;;  %v1399_v33 = vld [vmem:[#allocation6 + $0x6b8] sm:$0xff] }
 0x2a8   :  { %4669 = vmatpush1.bf16.msra.mxu0 %v9832_v44  ;;  %v9891_v44 = vcombine.high %v1347_v37, %v1351_v39 }
 0x2a9   :  { %4841 = vmatpush1.bf16.msra.mxu1 %v9834_v62  ;;  %4670 = vmatprep.subr.bf16.mxu0 %v9841_v46  ;;  %v1354_v62 = vld [vmem:[#allocation6 + $0x550] sm:$0xff] }
 0x2aa   :  { %4842 = vmatprep.subr.bf16.mxu1 %v9843_v47  ;;  %v1358_v46 = vld [vmem:[#allocation6 + $0x570] sm:$0xff]  ;;  %v1355_v47 = vld [vmem:[#allocation6 + $0x558] sm:$0xff] }
 0x2ab   :  { %v9897_v20 = vcombine.high %v1354_v62, %v1358_v46  ;;  %v9896_v61 = vcombine.low %v1354_v62, %v1358_v46  ;;  %v9898_v63 = vcombine.low %v1355_v47, %v1359_v22  ;;  %v1407_v62 = vld [vmem:[#allocation6 + $0x6f8] sm:$0xff] }
 0x2ac   :  { %4671 = vmatpush1.bf16.msra.mxu0 %v9840_v53  ;;  %v9899_v53 = vcombine.high %v1355_v47, %v1359_v22 }
 0x2ad   :  { %4843 = vmatpush1.bf16.msra.mxu1 %v9842_v54  ;;  %4672 = vmatprep.subr.bf16.mxu0 %v9849_v56  ;;  %v1362_v54 = vld [vmem:[#allocation6 + $0x590] sm:$0xff] }
 0x2ae   :  { %4844 = vmatprep.subr.bf16.mxu1 %v9851_v57  ;;  %v1366_v56 = vld [vmem:[#allocation6 + $0x5b0] sm:$0xff]  ;;  %v1363_v57 = vld [vmem:[#allocation6 + $0x598] sm:$0xff] }
 0x2af   :  { %v9905_v0 = vcombine.high %v1362_v54, %v1366_v56  ;;  %v9904_v9 = vcombine.low %v1362_v54, %v1366_v56  ;;  %v1415_v54 = vld [vmem:[#allocation6 + $0x738] sm:$0xff] }
 0x2b0   :  { %4673 = vmatpush1.bf16.msra.mxu0 %v9848_v50  ;;  %v9907_v50 = vcombine.high %v1363_v57, %v1367_v60 }
 0x2b1   :  { %4845 = vmatpush1.bf16.msra.mxu1 %v9850_v1  ;;  %4685 = vmatprep.subr.bf16.mxu0 %v9857_v2  ;;  %v1370_v1 = vld [vmem:[#allocation6 + $0x5d0] sm:$0xff] }
 0x2b2   :  { %4857 = vmatprep.subr.bf16.mxu1 %v9859_v3  ;;  %v1374_v2 = vld [vmem:[#allocation6 + $0x5f0] sm:$0xff]  ;;  %v1371_v3 = vld [vmem:[#allocation6 + $0x5d8] sm:$0xff] }
 0x2b3   :  { %4675 = vmatmul.mubr.bf16.vlgmr.msra.gmra.mrb[12].mxu0 %v11532_v48  ;;  %v9913_v10 = vcombine.high %v1370_v1, %v1374_v2  ;;  %v9915_v11 = vcombine.high %v1371_v3, %v1375_v7 }
 0x2b4   :  { %4847 = vmatmul.mubr.bf16.vlgmr.msra.gmra.mrb[12].mxu1 %v11532_v48  ;;  %4686 = vmatpush1.bf16.msra.mxu0 %v9856_v23  ;;  %v9874_v48 = vcombine.low %v1331_v12, %v1335_v6  ;;  %v9906_v23 = vcombine.low %v1363_v57, %v1367_v60  ;;  %v9914_v12 = vcombine.low %v1371_v3, %v1375_v7 }
 0x2b5   :  { %4717 = vmatprep.mubr.bf16.mxu0 %v11550_v32  ;;  %4858 = vmatpush1.bf16.msra.mxu1 %v9858_v14  ;;  %v1378_v14 = vld [vmem:[#allocation6 + $0x610] sm:$0xff] }
 0x2b6   :  { %4889 = vmatprep.mubr.bf16.mxu1 %v11550_v32  ;;  %4687 = vmatprep.subr.bf16.mxu0 %v9865_v15  ;;  %v9880_v32 = vcombine.low %v1338_v19, %v1342_v25  ;;  %v1382_v15 = vld [vmem:[#allocation6 + $0x630] sm:$0xff]  ;;  %v1391_v19 = vld [vmem:[#allocation6 + $0x678] sm:$0xff] }
 0x2b7   :  { %4859 = vmatprep.subr.bf16.mxu1 %v9867_v5  ;;  %v9912_v5 = vcombine.low %v1370_v1, %v1374_v2  ;;  %v9921_v6 = vcombine.high %v1378_v14, %v1382_v15  ;;  %v9920_v25 = vcombine.low %v1378_v14, %v1382_v15  ;;  %v1423_v1 = vld [vmem:[#allocation6 + $0x778] sm:$0xff] }
 0x2b8   :  { %4688 = vmatpush1.bf16.msra.mxu0 %v9864_v8  ;;  %v9923_v8 = vcombine.high %v1379_v16, %v1383_v4  ;;  %v1431_v14 = vld [vmem:[#allocation6 + $0x7b8] sm:$0xff] }
 0x2b9   :  { %4860 = vmatpush1.bf16.msra.mxu1 %v9866_v13  ;;  %4689 = vmatprep.subr.bf16.mxu0 %v9873_v17  ;;  %v1386_v13 = vld [vmem:[#allocation6 + $0x650] sm:$0xff] }
 0x2ba   :  { %4861 = vmatprep.subr.bf16.mxu1 %v9875_v18  ;;  %v1390_v17 = vld [vmem:[#allocation6 + $0x670] sm:$0xff]  ;;  %v1387_v18 = vld [vmem:[#allocation6 + $0x658] sm:$0xff] }
 0x2bb   :  { %v9929_v28 = vcombine.high %v1386_v13, %v1390_v17  ;;  %v9928_v34 = vcombine.low %v1386_v13, %v1390_v17  ;;  %v9930_v37 = vcombine.low %v1387_v18, %v1391_v19  ;;  %v1439_v13 = vld [vmem:[#allocation6 + $0x7f8] sm:$0xff] }
 0x2bc   :  { %4690 = vmatpush1.bf16.msra.mxu0 %v9872_v29  ;;  %v9931_v29 = vcombine.high %v1387_v18, %v1391_v19 }
 0x2bd   :  { %4862 = vmatpush1.bf16.msra.mxu1 %v9874_v48  ;;  %4691 = vmatprep.subr.bf16.mxu0 %v9881_v30  ;;  %v1394_v48 = vld [vmem:[#allocation6 + $0x690] sm:$0xff] }
 0x2be   :  { %4863 = vmatprep.subr.bf16.mxu1 %v9883_v31  ;;  %v1398_v30 = vld [vmem:[#allocation6 + $0x6b0] sm:$0xff]  ;;  %v1395_v31 = vld [vmem:[#allocation6 + $0x698] sm:$0xff] }
 0x2bf   :  { %v9937_v39 = vcombine.high %v1394_v48, %v1398_v30  ;;  %v9936_v46 = vcombine.low %v1394_v48, %v1398_v30  ;;  %v9938_v47 = vcombine.low %v1395_v31, %v1399_v33  ;;  %v1447_v48 = vld [vmem:[#allocation6 + $0x838] sm:$0xff] }
 0x2c0   :  { %4692 = vmatpush1.bf16.msra.mxu0 %v9880_v32  ;;  %v9939_v32 = vcombine.high %v1395_v31, %v1399_v33 }
 0x2c1   :  { %4864 = vmatpush1.bf16.msra.mxu1 %v9882_v42  ;;  %4693 = vmatprep.subr.bf16.mxu0 %v9889_v43  ;;  %v1402_v42 = vld [vmem:[#allocation6 + $0x6d0] sm:$0xff] }
 0x2c2   :  { %4865 = vmatprep.subr.bf16.mxu1 %v9891_v44  ;;  %v1406_v43 = vld [vmem:[#allocation6 + $0x6f0] sm:$0xff]  ;;  %v1403_v44 = vld [vmem:[#allocation6 + $0x6d8] sm:$0xff] }
 0x2c3   :  { %v9945_v22 = vcombine.high %v1402_v42, %v1406_v43  ;;  %v9944_v56 = vcombine.low %v1402_v42, %v1406_v43  ;;  %v9946_v57 = vcombine.low %v1403_v44, %v1407_v62  ;;  %v1451_v42 = vld [vmem:[#allocation6 + $0x858] sm:$0xff] }
 0x2c4   :  { %4694 = vmatpush1.bf16.msra.mxu0 %v9888_v49  ;;  %v9947_v49 = vcombine.high %v1403_v44, %v1407_v62  ;;  %v1455_v43 = vld [vmem:[#allocation6 + $0x878] sm:$0xff] }
 0x2c5   :  { %4866 = vmatpush1.bf16.msra.mxu1 %v9890_v51  ;;  %4695 = vmatprep.subr.bf16.mxu0 %v9897_v20  ;;  %v1410_v51 = vld [vmem:[#allocation6 + $0x710] sm:$0xff] }
 0x2c6   :  { %4867 = vmatprep.subr.bf16.mxu1 %v9899_v53  ;;  %v1414_v20 = vld [vmem:[#allocation6 + $0x730] sm:$0xff]  ;;  %v1411_v53 = vld [vmem:[#allocation6 + $0x718] sm:$0xff] }
 0x2c7   :  { %v9953_v60 = vcombine.high %v1410_v51, %v1414_v20  ;;  %v9952_v2 = vcombine.low %v1410_v51, %v1414_v20  ;;  %v9954_v3 = vcombine.low %v1411_v53, %v1415_v54  ;;  %v1463_v51 = vld [vmem:[#allocation6 + $0x8b8] sm:$0xff] }
 0x2c8   :  { %4696 = vmatpush1.bf16.msra.mxu0 %v9896_v61  ;;  %v9955_v61 = vcombine.high %v1411_v53, %v1415_v54  ;;  %v9994_v53 = vcombine.low %v1451_v42, %v1455_v43 }
 0x2c9   :  { %4868 = vmatpush1.bf16.msra.mxu1 %v9898_v63  ;;  %4697 = vmatprep.subr.bf16.mxu0 %v9905_v0  ;;  %v1418_v63 = vld [vmem:[#allocation6 + $0x750] sm:$0xff] }
 0x2ca   :  { %4869 = vmatprep.subr.bf16.mxu1 %v9907_v50  ;;  %v1422_v0 = vld [vmem:[#allocation6 + $0x770] sm:$0xff]  ;;  %v1419_v50 = vld [vmem:[#allocation6 + $0x758] sm:$0xff] }
 0x2cb   :  { %v9961_v7 = vcombine.high %v1418_v63, %v1422_v0  ;;  %v9960_v15 = vcombine.low %v1418_v63, %v1422_v0  ;;  %v9962_v16 = vcombine.low %v1419_v50, %v1423_v1  ;;  %v1471_v63 = vld [vmem:[#allocation6 + $0x8f8] sm:$0xff] }
 0x2cc   :  { %4698 = vmatpush1.bf16.msra.mxu0 %v9904_v9  ;;  %v9963_v9 = vcombine.high %v1419_v50, %v1423_v1 }
 0x2cd   :  { %4870 = vmatpush1.bf16.msra.mxu1 %v9906_v23  ;;  %4699 = vmatprep.subr.bf16.mxu0 %v9913_v10  ;;  %v1426_v23 = vld [vmem:[#allocation6 + $0x790] sm:$0xff] }
 0x2ce   :  { %4871 = vmatprep.subr.bf16.mxu1 %v9915_v11  ;;  %v1430_v10 = vld [vmem:[#allocation6 + $0x7b0] sm:$0xff]  ;;  %v1427_v11 = vld [vmem:[#allocation6 + $0x798] sm:$0xff] }
 0x2cf   :  { %v9969_v4 = vcombine.high %v1426_v23, %v1430_v10  ;;  %v9968_v17 = vcombine.low %v1426_v23, %v1430_v10  ;;  %v9970_v18 = vcombine.low %v1427_v11, %v1431_v14 }
 0x2d0   :  { %4700 = vmatpush1.bf16.msra.mxu0 %v9912_v5  ;;  %v9971_v5 = vcombine.high %v1427_v11, %v1431_v14  ;;  %v1482_v14 = vld [vmem:[#allocation6 + $0x950] sm:$0xff] }
 0x2d1   :  { %4872 = vmatpush1.bf16.msra.mxu1 %v9914_v12  ;;  %4701 = vmatprep.subr.bf16.mxu0 %v9921_v6  ;;  %v1434_v12 = vld [vmem:[#allocation6 + $0x7d0] sm:$0xff] }
 0x2d2   :  { %4873 = vmatprep.subr.bf16.mxu1 %v9923_v8  ;;  %v1438_v6 = vld [vmem:[#allocation6 + $0x7f0] sm:$0xff]  ;;  %v1435_v8 = vld [vmem:[#allocation6 + $0x7d8] sm:$0xff] }
 0x2d3   :  { %v9977_v19 = vcombine.high %v1434_v12, %v1438_v6  ;;  %v9976_v30 = vcombine.low %v1434_v12, %v1438_v6  ;;  %v9978_v31 = vcombine.low %v1435_v8, %v1439_v13 }
 0x2d4   :  { %4702 = vmatpush1.bf16.msra.mxu0 %v9920_v25  ;;  %v9979_v25 = vcombine.high %v1435_v8, %v1439_v13  ;;  %v1490_v13 = vld [vmem:[#allocation6 + $0x990] sm:$0xff] }
 0x2d5   :  { %4874 = vmatpush1.bf16.msra.mxu1 %v9922_v26  ;;  %4703 = vmatprep.subr.bf16.mxu0 %v9929_v28  ;;  %v1442_v26 = vld [vmem:[#allocation6 + $0x810] sm:$0xff] }
 0x2d6   :  { %4875 = vmatprep.subr.bf16.mxu1 %v9931_v29  ;;  %v1446_v28 = vld [vmem:[#allocation6 + $0x830] sm:$0xff]  ;;  %v1443_v29 = vld [vmem:[#allocation6 + $0x818] sm:$0xff] }
 0x2d7   :  { %v9985_v33 = vcombine.high %v1442_v26, %v1446_v28  ;;  %v9986_v44 = vcombine.low %v1443_v29, %v1447_v48 }
 0x2d8   :  { %4704 = vmatpush1.bf16.msra.mxu0 %v9928_v34  ;;  %v9987_v34 = vcombine.high %v1443_v29, %v1447_v48  ;;  %v1498_v48 = vld [vmem:[#allocation6 + $0x9d0] sm:$0xff] }
 0x2d9   :  { %4876 = vmatpush1.bf16.msra.mxu1 %v9930_v37  ;;  %4705 = vmatprep.subr.bf16.mxu0 %v9937_v39  ;;  %v1450_v37 = vld [vmem:[#allocation6 + $0x850] sm:$0xff] }
 0x2da   :  { %4877 = vmatprep.subr.bf16.mxu1 %v9939_v32  ;;  %v1454_v39 = vld [vmem:[#allocation6 + $0x870] sm:$0xff]  ;;  %v9984_v32 = vcombine.low %v1442_v26, %v1446_v28 }
 0x2db   :  { %v9993_v62 = vcombine.high %v1450_v37, %v1454_v39  ;;  %v9992_v20 = vcombine.low %v1450_v37, %v1454_v39 }
 0x2dc   :  { %4706 = vmatpush1.bf16.msra.mxu0 %v9936_v46  ;;  %v1458_v46 = vld [vmem:[#allocation6 + $0x890] sm:$0xff] }
 0x2dd   :  { %4878 = vmatpush1.bf16.msra.mxu1 %v9938_v47  ;;  %4707 = vmatprep.subr.bf16.mxu0 %v9945_v22  ;;  %v1462_v47 = vld [vmem:[#allocation6 + $0x8b0] sm:$0xff]  ;;  %v9995_v22 = vcombine.high %v1451_v42, %v1455_v43 }
 0x2de   :  { %4879 = vmatprep.subr.bf16.mxu1 %v9947_v49  ;;  %v1459_v49 = vld [vmem:[#allocation6 + $0x898] sm:$0xff]  ;;  %v10001_v54 = vcombine.high %v1458_v46, %v1462_v47  ;;  %v10000_v0 = vcombine.low %v1458_v46, %v1462_v47  ;;  %v1506_v42 = vld [vmem:[#allocation6 + $0xa10] sm:$0xff] }
 0x2df   :  { %v1510_v43 = vld [vmem:[#allocation6 + $0xa30] sm:$0xff] }
 0x2e0   :  { %4708 = vmatpush1.bf16.msra.mxu0 %v9944_v56  ;;  %v10003_v56 = vcombine.high %v1459_v49, %v1463_v51 }
 0x2e1   :  { %4880 = vmatpush1.bf16.msra.mxu1 %v9946_v57  ;;  %4709 = vmatprep.subr.bf16.mxu0 %v9953_v60  ;;  %v1466_v57 = vld [vmem:[#allocation6 + $0x8d0] sm:$0xff] }
 0x2e2   :  { %4881 = vmatprep.subr.bf16.mxu1 %v9955_v61  ;;  %v1470_v60 = vld [vmem:[#allocation6 + $0x8f0] sm:$0xff]  ;;  %v1467_v61 = vld [vmem:[#allocation6 + $0x8d8] sm:$0xff] }
 0x2e3   :  { %v10009_v50 = vcombine.high %v1466_v57, %v1470_v60  ;;  %v10011_v1 = vcombine.high %v1467_v61, %v1471_v63  ;;  %v10010_v23 = vcombine.low %v1467_v61, %v1471_v63  ;;  %v1522_v63 = vld [vmem:[#allocation6 + $0xa90] sm:$0xff] }
 0x2e4   :  { %4710 = vmatpush1.bf16.msra.mxu0 %v9952_v2  ;;  %v1474_v2 = vld [vmem:[#allocation6 + $0x910] sm:$0xff] }
 0x2e5   :  { %4882 = vmatpush1.bf16.msra.mxu1 %v9954_v3  ;;  %4711 = vmatprep.subr.bf16.mxu0 %v9961_v7  ;;  %v1478_v3 = vld [vmem:[#allocation6 + $0x930] sm:$0xff]  ;;  %v1475_v7 = vld [vmem:[#allocation6 + $0x918] sm:$0xff] }
 0x2e6   :  { %4883 = vmatprep.subr.bf16.mxu1 %v9963_v9  ;;  %v1479_v9 = vld [vmem:[#allocation6 + $0x938] sm:$0xff]  ;;  %v10017_v10 = vcombine.high %v1474_v2, %v1478_v3 }
 0x2e7   :  { %v10019_v11 = vcombine.high %v1475_v7, %v1479_v9  ;;  %v10018_v12 = vcombine.low %v1475_v7, %v1479_v9  ;;  %v1530_v9 = vld [vmem:[#allocation6 + $0xad0] sm:$0xff] }
 0x2e8   :  { %4712 = vmatpush1.bf16.msra.mxu0 %v9960_v15  ;;  %v1486_v15 = vld [vmem:[#allocation6 + $0x970] sm:$0xff] }
 0x2e9   :  { %4884 = vmatpush1.bf16.msra.mxu1 %v9962_v16  ;;  %4713 = vmatprep.subr.bf16.mxu0 %v9969_v4  ;;  %v1483_v16 = vld [vmem:[#allocation6 + $0x958] sm:$0xff]  ;;  %v10025_v6 = vcombine.high %v1482_v14, %v1486_v15 }
 0x2ea   :  { %4885 = vmatprep.subr.bf16.mxu1 %v9971_v5  ;;  %v1487_v4 = vld [vmem:[#allocation6 + $0x978] sm:$0xff]  ;;  %v10016_v5 = vcombine.low %v1474_v2, %v1478_v3 }
 0x2eb   :  { %v10027_v8 = vcombine.high %v1483_v16, %v1487_v4  ;;  %v10026_v26 = vcombine.low %v1483_v16, %v1487_v4  ;;  %v1538_v4 = vld [vmem:[#allocation6 + $0xb10] sm:$0xff] }
 0x2ec   :  { %4714 = vmatpush1.bf16.msra.mxu0 %v9968_v17  ;;  %v1494_v17 = vld [vmem:[#allocation6 + $0x9b0] sm:$0xff] }
 0x2ed   :  { %4886 = vmatpush1.bf16.msra.mxu1 %v9970_v18  ;;  %4715 = vmatprep.subr.bf16.mxu0 %v9977_v19  ;;  %v1491_v18 = vld [vmem:[#allocation6 + $0x998] sm:$0xff]  ;;  %v10033_v28 = vcombine.high %v1490_v13, %v1494_v17 }
 0x2ee   :  { %4887 = vmatprep.subr.bf16.mxu1 %v9979_v25  ;;  %v1495_v19 = vld [vmem:[#allocation6 + $0x9b8] sm:$0xff]  ;;  %v10024_v25 = vcombine.low %v1482_v14, %v1486_v15 }
 0x2ef   :  { %v10035_v29 = vcombine.high %v1491_v18, %v1495_v19  ;;  %v10034_v37 = vcombine.low %v1491_v18, %v1495_v19  ;;  %v1546_v19 = vld [vmem:[#allocation6 + $0xb50] sm:$0xff] }
 0x2f0   :  { %4716 = vmatpush1.bf16.msra.mxu0 %v9976_v30  ;;  %v1502_v30 = vld [vmem:[#allocation6 + $0x9f0] sm:$0xff] }
 0x2f1   :  { %4888 = vmatpush1.bf16.msra.mxu1 %v9978_v31  ;;  %4728 = vmatprep.subr.bf16.mxu0 %v9985_v33  ;;  %v1499_v31 = vld [vmem:[#allocation6 + $0x9d8] sm:$0xff]  ;;  %v10041_v39 = vcombine.high %v1498_v48, %v1502_v30  ;;  %v10040_v46 = vcombine.low %v1498_v48, %v1502_v30 }
 0x2f2   :  { %4900 = vmatprep.subr.bf16.mxu1 %v9987_v34  ;;  %v1503_v33 = vld [vmem:[#allocation6 + $0x9f8] sm:$0xff]  ;;  %v10032_v34 = vcombine.low %v1490_v13, %v1494_v17 }
 0x2f3   :  { %4718 = vmatmul.mubr.bf16.vlgmr.msra.gmra.mrb[12].mxu0 %v11548_v27  ;;  %v10042_v47 = vcombine.low %v1499_v31, %v1503_v33 }
 0x2f4   :  { %4890 = vmatmul.mubr.bf16.vlgmr.msra.gmra.mrb[12].mxu1 %v11548_v27  ;;  %4729 = vmatpush1.bf16.msra.mxu0 %v9984_v32  ;;  %v10002_v27 = vcombine.low %v1459_v49, %v1463_v51  ;;  %v10043_v32 = vcombine.high %v1499_v31, %v1503_v33  ;;  %v1514_v51 = vld [vmem:[#allocation6 + $0xa50] sm:$0xff] }
 0x2f5   :  { %4760 = vmatprep.mubr.bf16.mxu0 %v11576_v58  ;;  %4901 = vmatpush1.bf16.msra.mxu1 %v9986_v44  ;;  %v1507_v44 = vld [vmem:[#allocation6 + $0xa18] sm:$0xff]  ;;  %v1554_v33 = vld [vmem:[#allocation6 + $0xb90] sm:$0xff] }
 0x2f6   :  { %4932 = vmatprep.mubr.bf16.mxu1 %v11576_v58  ;;  %4730 = vmatprep.subr.bf16.mxu0 %v9993_v62  ;;  %v10008_v58 = vcombine.low %v1466_v57, %v1470_v60  ;;  %v1511_v62 = vld [vmem:[#allocation6 + $0xa38] sm:$0xff] }
 0x2f7   :  { %4902 = vmatprep.subr.bf16.mxu1 %v9995_v22  ;;  %v10049_v22 = vcombine.high %v1506_v42, %v1510_v43  ;;  %v10051_v49 = vcombine.high %v1507_v44, %v1511_v62  ;;  %v10050_v57 = vcombine.low %v1507_v44, %v1511_v62  ;;  %v1562_v62 = vld [vmem:[#allocation6 + $0xbd0] sm:$0xff] }
 0x2f8   :  { %4731 = vmatpush1.bf16.msra.mxu0 %v9992_v20  ;;  %v1518_v20 = vld [vmem:[#allocation6 + $0xa70] sm:$0xff] }
 0x2f9   :  { %4903 = vmatpush1.bf16.msra.mxu1 %v9994_v53  ;;  %4732 = vmatprep.subr.bf16.mxu0 %v10001_v54  ;;  %v1515_v53 = vld [vmem:[#allocation6 + $0xa58] sm:$0xff]  ;;  %v10057_v60 = vcombine.high %v1514_v51, %v1518_v20 }
 0x2fa   :  { %4904 = vmatprep.subr.bf16.mxu1 %v10003_v56  ;;  %v1519_v54 = vld [vmem:[#allocation6 + $0xa78] sm:$0xff]  ;;  %v10048_v56 = vcombine.low %v1506_v42, %v1510_v43 }
 0x2fb   :  { %v10059_v61 = vcombine.high %v1515_v53, %v1519_v54  ;;  %v10058_v2 = vcombine.low %v1515_v53, %v1519_v54  ;;  %v1570_v54 = vld [vmem:[#allocation6 + $0xc10] sm:$0xff] }
 0x2fc   :  { %4733 = vmatpush1.bf16.msra.mxu0 %v10000_v0  ;;  %v1526_v0 = vld [vmem:[#allocation6 + $0xab0] sm:$0xff] }
 0x2fd   :  { %4905 = vmatpush1.bf16.msra.mxu1 %v10002_v27  ;;  %4734 = vmatprep.subr.bf16.mxu0 %v10009_v50  ;;  %v1523_v27 = vld [vmem:[#allocation6 + $0xa98] sm:$0xff]  ;;  %v10065_v3 = vcombine.high %v1522_v63, %v1526_v0 }
 0x2fe   :  { %4906 = vmatprep.subr.bf16.mxu1 %v10011_v1  ;;  %v1527_v50 = vld [vmem:[#allocation6 + $0xab8] sm:$0xff]  ;;  %v10056_v1 = vcombine.low %v1514_v51, %v1518_v20 }
 0x2ff   :  { %v10067_v7 = vcombine.high %v1523_v27, %v1527_v50  ;;  %v10066_v14 = vcombine.low %v1523_v27, %v1527_v50  ;;  %v1578_v50 = vld [vmem:[#allocation6 + $0xc50] sm:$0xff] }
 0x300   :  { %4735 = vmatpush1.bf16.msra.mxu0 %v10008_v58  ;;  %v1534_v58 = vld [vmem:[#allocation6 + $0xaf0] sm:$0xff] }
 0x301   :  { %4907 = vmatpush1.bf16.msra.mxu1 %v10010_v23  ;;  %4736 = vmatprep.subr.bf16.mxu0 %v10017_v10  ;;  %v1531_v23 = vld [vmem:[#allocation6 + $0xad8] sm:$0xff]  ;;  %v10073_v15 = vcombine.high %v1530_v9, %v1534_v58 }
 0x302   :  { %4908 = vmatprep.subr.bf16.mxu1 %v10019_v11  ;;  %v1535_v10 = vld [vmem:[#allocation6 + $0xaf8] sm:$0xff]  ;;  %v10064_v11 = vcombine.low %v1522_v63, %v1526_v0 }
 0x303   :  { %v10075_v16 = vcombine.high %v1531_v23, %v1535_v10  ;;  %v10074_v13 = vcombine.low %v1531_v23, %v1535_v10  ;;  %v1586_v23 = vld [vmem:[#allocation6 + $0xc90] sm:$0xff] }
 0x304   :  { %4737 = vmatpush1.bf16.msra.mxu0 %v10016_v5  ;;  %v1542_v5 = vld [vmem:[#allocation6 + $0xb30] sm:$0xff] }
 0x305   :  { %4909 = vmatpush1.bf16.msra.mxu1 %v10018_v12  ;;  %4738 = vmatprep.subr.bf16.mxu0 %v10025_v6  ;;  %v1539_v12 = vld [vmem:[#allocation6 + $0xb18] sm:$0xff]  ;;  %v10081_v17 = vcombine.high %v1538_v4, %v1542_v5  ;;  %v1590_v10 = vld [vmem:[#allocation6 + $0xcb0] sm:$0xff] }
 0x306   :  { %4910 = vmatprep.subr.bf16.mxu1 %v10027_v8  ;;  %v1543_v6 = vld [vmem:[#allocation6 + $0xb38] sm:$0xff]  ;;  %v10072_v8 = vcombine.low %v1530_v9, %v1534_v58 }
 0x307   :  { %v10083_v18 = vcombine.high %v1539_v12, %v1543_v6  ;;  %v10082_v48 = vcombine.low %v1539_v12, %v1543_v6  ;;  %v1594_v6 = vld [vmem:[#allocation6 + $0xcd0] sm:$0xff] }
 0x308   :  { %4739 = vmatpush1.bf16.msra.mxu0 %v10024_v25  ;;  %v1550_v25 = vld [vmem:[#allocation6 + $0xb70] sm:$0xff] }
 0x309   :  { %4911 = vmatpush1.bf16.msra.mxu1 %v10026_v26  ;;  %4740 = vmatprep.subr.bf16.mxu0 %v10033_v28  ;;  %v1547_v26 = vld [vmem:[#allocation6 + $0xb58] sm:$0xff]  ;;  %v10089_v30 = vcombine.high %v1546_v19, %v1550_v25 }
 0x30a   :  { %4912 = vmatprep.subr.bf16.mxu1 %v10035_v29  ;;  %v1551_v28 = vld [vmem:[#allocation6 + $0xb78] sm:$0xff]  ;;  %v10080_v29 = vcombine.low %v1538_v4, %v1542_v5  ;;  %v10129_v5 = vcombine.high %v1586_v23, %v1590_v10 }
 0x30b   :  { %v10091_v31 = vcombine.high %v1547_v26, %v1551_v28  ;;  %v10090_v42 = vcombine.low %v1547_v26, %v1551_v28  ;;  %v1602_v26 = vld [vmem:[#allocation6 + $0xd10] sm:$0xff] }
 0x30c   :  { %4741 = vmatpush1.bf16.msra.mxu0 %v10032_v34  ;;  %v1558_v34 = vld [vmem:[#allocation6 + $0xbb0] sm:$0xff] }
 0x30d   :  { %4913 = vmatpush1.bf16.msra.mxu1 %v10034_v37  ;;  %4742 = vmatprep.subr.bf16.mxu0 %v10041_v39  ;;  %v1555_v37 = vld [vmem:[#allocation6 + $0xb98] sm:$0xff]  ;;  %v10097_v43 = vcombine.high %v1554_v33, %v1558_v34  ;;  %v1606_v28 = vld [vmem:[#allocation6 + $0xd30] sm:$0xff] }
 0x30e   :  { %4914 = vmatprep.subr.bf16.mxu1 %v10043_v32  ;;  %v1559_v39 = vld [vmem:[#allocation6 + $0xbb8] sm:$0xff]  ;;  %v10088_v32 = vcombine.low %v1546_v19, %v1550_v25 }
 0x30f   :  { %v10099_v44 = vcombine.high %v1555_v37, %v1559_v39  ;;  %v10098_v51 = vcombine.low %v1555_v37, %v1559_v39  ;;  %v1614_v37 = vld [vmem:[#allocation6 + $0xd70] sm:$0xff]  ;;  %v1611_v39 = vld [vmem:[#allocation6 + $0xd58] sm:$0xff] }
 0x310   :  { %4743 = vmatpush1.bf16.msra.mxu0 %v10040_v46  ;;  %v1566_v46 = vld [vmem:[#allocation6 + $0xbf0] sm:$0xff] }
 0x311   :  { %4915 = vmatpush1.bf16.msra.mxu1 %v10042_v47  ;;  %4744 = vmatprep.subr.bf16.mxu0 %v10049_v22  ;;  %v1563_v47 = vld [vmem:[#allocation6 + $0xbd8] sm:$0xff]  ;;  %v10105_v20 = vcombine.high %v1562_v62, %v1566_v46 }
 0x312   :  { %4916 = vmatprep.subr.bf16.mxu1 %v10051_v49  ;;  %v1567_v22 = vld [vmem:[#allocation6 + $0xbf8] sm:$0xff]  ;;  %v10096_v49 = vcombine.low %v1554_v33, %v1558_v34  ;;  %v1610_v34 = vld [vmem:[#allocation6 + $0xd50] sm:$0xff] }
 0x313   :  { %v10107_v53 = vcombine.high %v1563_v47, %v1567_v22  ;;  %v10106_v63 = vcombine.low %v1563_v47, %v1567_v22  ;;  %v11607_v47 = vld [vmem:[#allocation6 + $0xd90] sm:$0xff] }
 0x314   :  { %4745 = vmatpush1.bf16.msra.mxu0 %v10048_v56  ;;  %v1574_v56 = vld [vmem:[#allocation6 + $0xc30] sm:$0xff] }
 0x315   :  { %4917 = vmatpush1.bf16.msra.mxu1 %v10050_v57  ;;  %4746 = vmatprep.subr.bf16.mxu0 %v10057_v60  ;;  %v1571_v57 = vld [vmem:[#allocation6 + $0xc18] sm:$0xff]  ;;  %v10113_v0 = vcombine.high %v1570_v54, %v1574_v56  ;;  %v11609_v22 = vld [vmem:[#allocation6 + $0xdb0] sm:$0xff] }
 0x316   :  { %4918 = vmatprep.subr.bf16.mxu1 %v10059_v61  ;;  %v1575_v60 = vld [vmem:[#allocation6 + $0xc38] sm:$0xff]  ;;  %v10104_v61 = vcombine.low %v1562_v62, %v1566_v46  ;;  %v10153_v62 = vcombine.high %v1610_v34, %v1614_v37 }
 0x317   :  { %v10115_v27 = vcombine.high %v1571_v57, %v1575_v60  ;;  %v10114_v9 = vcombine.low %v1571_v57, %v1575_v60 }
 0x318   :  { %4747 = vmatpush1.bf16.msra.mxu0 %v10056_v1  ;;  %v1582_v1 = vld [vmem:[#allocation6 + $0xc70] sm:$0xff] }
 0x319   :  { %4919 = vmatpush1.bf16.msra.mxu1 %v10058_v2  ;;  %4748 = vmatprep.subr.bf16.mxu0 %v10065_v3  ;;  %v10112_v2 = vcombine.low %v1570_v54, %v1574_v56  ;;  %v1579_v3 = vld [vmem:[#allocation6 + $0xc58] sm:$0xff]  ;;  %v10121_v58 = vcombine.high %v1578_v50, %v1582_v1  ;;  %v11617_v54 = vld [vmem:[#allocation6 + $0xdd0] sm:$0xff] }
 0x31a   :  { %4920 = vmatprep.subr.bf16.mxu1 %v10067_v7  ;;  %v1583_v7 = vld [vmem:[#allocation6 + $0xc78] sm:$0xff]  ;;  %v11619_v56 = vld [vmem:[#allocation6 + $0xdf0] sm:$0xff] }
 0x31b   :  { %v10122_v4 = vcombine.low %v1579_v3, %v1583_v7 }
 0x31c   :  { %4749 = vmatpush1.bf16.msra.mxu0 %v10064_v11  ;;  %v10123_v11 = vcombine.high %v1579_v3, %v1583_v7  ;;  %v11633_v3 = vld [vmem:[#allocation6 + $0xe30] sm:$0xff] }
 0x31d   :  { %4921 = vmatpush1.bf16.msra.mxu1 %v10066_v14  ;;  %4750 = vmatprep.subr.bf16.mxu0 %v10073_v15  ;;  %v1587_v14 = vld [vmem:[#allocation6 + $0xc98] sm:$0xff] }
 0x31e   :  { %4922 = vmatprep.subr.bf16.mxu1 %v10075_v16  ;;  %v1591_v15 = vld [vmem:[#allocation6 + $0xcb8] sm:$0xff]  ;;  %v10120_v16 = vcombine.low %v1578_v50, %v1582_v1  ;;  %v10160_v50 = vcombine.low %v11607_v47, %v11609_v22  ;;  %v10161_v1 = vcombine.high %v11607_v47, %v11609_v22 }
 0x31f   :  { %v10131_v12 = vcombine.high %v1587_v14, %v1591_v15 }
 0x320   :  { %4751 = vmatpush1.bf16.msra.mxu0 %v10072_v8  ;;  %v1598_v8 = vld [vmem:[#allocation6 + $0xcf0] sm:$0xff] }
 0x321   :  { %4923 = vmatpush1.bf16.msra.mxu1 %v10074_v13  ;;  %4752 = vmatprep.subr.bf16.mxu0 %v10081_v17  ;;  %v1595_v13 = vld [vmem:[#allocation6 + $0xcd8] sm:$0xff]  ;;  %v10137_v19 = vcombine.high %v1594_v6, %v1598_v8 }
 0x322   :  { %4924 = vmatprep.subr.bf16.mxu1 %v10083_v18  ;;  %v1599_v17 = vld [vmem:[#allocation6 + $0xcf8] sm:$0xff]  ;;  %v10128_v18 = vcombine.low %v1586_v23, %v1590_v10  ;;  %v10168_v10 = vcombine.low %v11617_v54, %v11619_v56 }
 0x323   :  { %v10139_v25 = vcombine.high %v1595_v13, %v1599_v17 }
 0x324   :  { %4753 = vmatpush1.bf16.msra.mxu0 %v10080_v29  ;;  %v1603_v29 = vld [vmem:[#allocation6 + $0xd18] sm:$0xff] }
 0x325   :  { %4925 = vmatpush1.bf16.msra.mxu1 %v10082_v48  ;;  %4754 = vmatprep.subr.bf16.mxu0 %v10089_v30  ;;  %v1607_v48 = vld [vmem:[#allocation6 + $0xd38] sm:$0xff]  ;;  %v10138_v30 = vcombine.low %v1595_v13, %v1599_v17 }
 0x326   :  { %4926 = vmatprep.subr.bf16.mxu1 %v10091_v31  ;;  %v10145_v31 = vcombine.high %v1602_v26, %v1606_v28  ;;  %v10147_v33 = vcombine.high %v1603_v29, %v1607_v48 }
 0x328   :  { %4755 = vmatpush1.bf16.msra.mxu0 %v10088_v32  ;;  %v1615_v32 = vld [vmem:[#allocation6 + $0xd78] sm:$0xff] }
 0x329   :  { %4927 = vmatpush1.bf16.msra.mxu1 %v10090_v42  ;;  %4756 = vmatprep.subr.bf16.mxu0 %v10097_v43  ;;  %v10144_v42 = vcombine.low %v1602_v26, %v1606_v28  ;;  %v1696_v43 = vld [vmem:[#allocation7] sm:$0xff]  ;;  %v10155_v46 = vcombine.high %v1611_v39, %v1615_v32 }
 0x32a   :  { %4928 = vmatprep.subr.bf16.mxu1 %v10099_v44  ;;  %v10146_v44 = vcombine.low %v1603_v29, %v1607_v48  ;;  %v1705_v57 = vrot.slane %v1696_v43, %v11518_v24  ;;  %v1713_v60 = vrot.slane %v1696_v43, %v11528_v38 }
 0x32c   :  { %4757 = vmatpush1.bf16.msra.mxu0 %v10096_v49  ;;  %v11611_v49 = vld [vmem:[#allocation6 + $0xd98] sm:$0xff] }
 0x32d   :  { %4929 = vmatpush1.bf16.msra.mxu1 %v10098_v51  ;;  %4758 = vmatprep.subr.bf16.mxu0 %v10105_v20  ;;  %v1701_v51 = vrot.slane %v1696_v43, %v11513_v21  ;;  %v1709_v20 = vrot.slane %v1696_v43, %v11525_v35 }
 0x32e   :  { %4930 = vmatprep.subr.bf16.mxu1 %v10107_v53  ;;  %v11615_v53 = vld [vmem:[#allocation6 + $0xdb8] sm:$0xff] }
 0x32f   :  { %v10163_v23 = vcombine.high %v11611_v49, %v11615_v53 }
 0x330   :  { %4759 = vmatpush1.bf16.msra.mxu0 %v10104_v61  ;;  %v10152_v61 = vcombine.low %v1610_v34, %v1614_v37 }
 0x331   :  { %4931 = vmatpush1.bf16.msra.mxu1 %v10106_v63  ;;  %4771 = vmatprep.subr.bf16.mxu0 %v10113_v0  ;;  %v11623_v63 = vld [vmem:[#allocation6 + $0xdd8] sm:$0xff] }
 0x332   :  { %4943 = vmatprep.subr.bf16.mxu1 %v10115_v27  ;;  %v11625_v0 = vld [vmem:[#allocation6 + $0xdf8] sm:$0xff]  ;;  %v10154_v27 = vcombine.low %v1611_v39, %v1615_v32 }
 0x333   :  { %4761 = vmatmul.mubr.bf16.vlgmr.msra.gmra.mrb[12].mxu0 %v11572_v52 }
 0x334   :  { %4933 = vmatmul.mubr.bf16.vlgmr.msra.gmra.mrb[12].mxu1 %v11572_v52  ;;  %4772 = vmatpush1.bf16.msra.mxu0 %v10112_v2  ;;  %v10130_v52 = vcombine.low %v1587_v14, %v1591_v15  ;;  %v11631_v2 = vld [vmem:[#allocation6 + $0xe10] sm:$0xff] }
 0x335   :  { %4803 = vmatprep.mubr.bf16.mxu0 %v11585_v45  ;;  %4944 = vmatpush1.bf16.msra.mxu1 %v10114_v9 }
 0x336   :  { %4975 = vmatprep.mubr.bf16.mxu1 %v11585_v45  ;;  %4773 = vmatprep.subr.bf16.mxu0 %v10121_v58  ;;  %v10136_v45 = vcombine.low %v1594_v6, %v1598_v8  ;;  %v10162_v58 = vcombine.low %v11611_v49, %v11615_v53  ;;  %v11647_v6 = vld [vmem:[#allocation6 + $0xe18] sm:$0xff] }
 0x337   :  { %4945 = vmatprep.subr.bf16.mxu1 %v10123_v11  ;;  %v10169_v11 = vcombine.high %v11617_v54, %v11619_v56  ;;  %v11649_v8 = vld [vmem:[#allocation6 + $0xe38] sm:$0xff] }
 0x338   :  { %4774 = vmatpush1.bf16.msra.mxu0 %v10120_v16  ;;  %v10178_v48 = vcombine.low %v11647_v6, %v11649_v8 }
 0x339   :  { %4946 = vmatpush1.bf16.msra.mxu1 %v10122_v4  ;;  %4775 = vmatprep.subr.bf16.mxu0 %v10129_v5  ;;  %v10170_v5 = vcombine.low %v11623_v63, %v11625_v0 }
 0x33a   :  { %4947 = vmatprep.subr.bf16.mxu1 %v10131_v12  ;;  %v10171_v12 = vcombine.high %v11623_v63, %v11625_v0 }
 0x33c   :  { %4776 = vmatpush1.bf16.msra.mxu0 %v10128_v18 }
 0x33d   :  { %4948 = vmatpush1.bf16.msra.mxu1 %v10130_v52  ;;  %4777 = vmatprep.subr.bf16.mxu0 %v10137_v19  ;;  %v10176_v19 = vcombine.low %v11631_v2, %v11633_v3 }
 0x33e   :  { %4949 = vmatprep.subr.bf16.mxu1 %v10139_v25  ;;  %v10177_v25 = vcombine.high %v11631_v2, %v11633_v3 }
 0x340   :  { %4778 = vmatpush1.bf16.msra.mxu0 %v10136_v45  ;;  %v10179_v45 = vcombine.high %v11647_v6, %v11649_v8 }
 0x341   :  { %4950 = vmatpush1.bf16.msra.mxu1 %v10138_v30  ;;  %4779 = vmatprep.subr.bf16.mxu0 %v10145_v31 }
 0x342   :  { %4951 = vmatprep.subr.bf16.mxu1 %v10147_v33 }
 0x344   :  { %4780 = vmatpush1.bf16.msra.mxu0 %v10144_v42 }
 0x345   :  { %4952 = vmatpush1.bf16.msra.mxu1 %v10146_v44  ;;  %4781 = vmatprep.subr.bf16.mxu0 %v10153_v62  ;;  %v1642_v44 = vld [vmem:[#allocation6 + $0xe50] sm:$0xff] }
 0x346   :  { %v4461_v7 = vpop.f32.mrb[8].mxu0  ;;  %v4633_v9 = vpop.f32.mrb[8].mxu1  ;;  %4953 = vmatprep.subr.bf16.mxu1 %v10155_v46  ;;  %v1646_v62 = vld [vmem:[#allocation6 + $0xe70] sm:$0xff] }
 0x347   :  { %v10901_v14 = vadd.f32 %v4461_v7, %v1701_v51  ;;  %v10905_v15 = vadd.f32 %v4633_v9, %v1709_v20  ;;  %v4463_v16 = vpop.f32.mrb[9].mxu0  ;;  %v4635_v4 = vpop.f32.mrb[9].mxu1  ;;  %v10185_v3 = vcombine.high %v1642_v44, %v1646_v62  ;;  %v1650_v9 = vld [vmem:[#allocation6 + $0xe90] sm:$0xff] }
 0x348   :  { %v10902_v13 = vadd.f32 %v4463_v16, %v1705_v57  ;;  %v10906_v17 = vadd.f32 %v4635_v4, %v1713_v60  ;;  %v4465_v18 = vpop.f32.mrb[10].mxu0  ;;  %v4637_v52 = vpop.f32.mrb[10].mxu1  ;;  %4782 = vmatpush1.bf16.msra.mxu0 %v10152_v61  ;;  %v1647_v61 = vld [vmem:[#allocation6 + $0xe78] sm:$0xff]  ;;  %v1662_v16 = vld [vmem:[#allocation6 + $0xef0] sm:$0xff] }
 0x349   :  { %vm4986_vm0 = vcmp.gt.f32.partialorder %v10901_v14, 0.0  ;;  %v5002_v26 = vmul.f32 0.1, %v10901_v14  ;;  %vm4988_vm1 = vcmp.gt.f32.partialorder %v10905_v15, 0.0  ;;  %v5004_v28 = vmul.f32 0.1, %v10905_v15  ;;  %4954 = vmatpush1.bf16.msra.mxu1 %v10154_v27  ;;  %4783 = vmatprep.subr.bf16.mxu0 %v10161_v1 }
 0x34a   :  { %vm4987_vm2 = vcmp.gt.f32.partialorder %v10902_v13, 0.0  ;;  %v5003_v29 = vmul.f32 0.1, %v10902_v13  ;;  %4955 = vmatprep.subr.bf16.mxu1 %v10163_v23  ;;  %vm4989_vm3 = vcmp.gt.f32.partialorder %v10906_v17, 0.0  ;;  %v5005_v30 = vmul.f32 0.1, %v10906_v17 }
 0x34b   :  { %v10903_v31 = vadd.f32 %v4465_v18, %v1701_v51  ;;  %v10907_v33 = vadd.f32 %v4637_v52, %v1709_v20  ;;  %v4467_v34 = vpop.f32.mrb[11].mxu0  ;;  %v4639_v37 = vpop.f32.mrb[11].mxu1  ;;  %v5018_v39 = vsel %vm4986_vm0, %v10901_v14, %v5002_v26  ;;  %v5020_v32 = vsel %vm4988_vm1, %v10905_v15, %v5004_v28  ;;  %v1651_v23 = vld [vmem:[#allocation6 + $0xe98] sm:$0xff]  ;;  %v1670_v18 = vld [vmem:[#allocation6 + $0xf30] sm:$0xff] }
 0x34c   :  { %v10904_v42 = vadd.f32 %v4467_v34, %v1705_v57  ;;  %v10908_v43 = vadd.f32 %v4639_v37, %v1713_v60  ;;  %4784 = vmatpush1.bf16.msra.mxu0 %v10160_v50  ;;  %v5019_v51 = vsel %vm4987_vm2, %v10902_v13, %v5003_v29  ;;  %v5021_v20 = vsel %vm4989_vm3, %v10906_v17, %v5005_v30  ;;  %v1643_v60 = vld [vmem:[#allocation6 + $0xe58] sm:$0xff]  ;;  %v1666_v17 = vld [vmem:[#allocation6 + $0xf10] sm:$0xff] }
 0x34d   :  { %vm4994_vm4 = vcmp.gt.f32.partialorder %v10903_v31, 0.0  ;;  %v5010_v46 = vmul.f32 0.1, %v10903_v31  ;;  %vm4996_vm5 = vcmp.gt.f32.partialorder %v10907_v33, 0.0  ;;  %v5012_v47 = vmul.f32 0.1, %v10907_v33  ;;  %4956 = vmatpush1.bf16.msra.mxu1 %v10162_v58  ;;  %4785 = vmatprep.subr.bf16.mxu0 %v10169_v11 }
 0x34e   :  { %vm4995_vm6 = vcmp.gt.f32.partialorder %v10904_v42, 0.0  ;;  %v5011_v22 = vmul.f32 0.1, %v10904_v42  ;;  %vm4997_vm7 = vcmp.gt.f32.partialorder %v10908_v43, 0.0  ;;  %v5013_v49 = vmul.f32 0.1, %v10908_v43  ;;  %4957 = vmatprep.subr.bf16.mxu1 %v10171_v12 }
 0x34f   :  { %v5026_v53 = vsel %vm4994_vm4, %v10903_v31, %v5010_v46  ;;  %v5028_v57 = vsel %vm4996_vm5, %v10907_v33, %v5012_v47  ;;  %v10187_v7 = vcombine.high %v1643_v60, %v1647_v61  ;;  %v1654_v58 = vld [vmem:[#allocation6 + $0xeb0] sm:$0xff]  ;;  %v1655_v11 = vld [vmem:[#allocation6 + $0xeb8] sm:$0xff]  ;;  %v10184_v14 = vcombine.low %v1642_v44, %v1646_v62 }
 0x350   :  { %v11663_v63 = vpack.c.bf16 %v5026_v53, %v5018_v39  ;;  %v11665_v0 = vpack.c.bf16 %v5028_v57, %v5020_v32  ;;  %v5027_v27 = vsel %vm4995_vm6, %v10904_v42, %v5011_v22  ;;  %v5029_v50 = vsel %vm4997_vm7, %v10908_v43, %v5013_v49  ;;  %4786 = vmatpush1.bf16.msra.mxu0 %v10168_v10  ;;  %v1658_v10 = vld [vmem:[#allocation6 + $0xed0] sm:$0xff]  ;;  %v1659_v4 = vld [vmem:[#allocation6 + $0xed8] sm:$0xff] }
 0x351   :  { %v11670_v1 = vpack.c.bf16 %v5027_v27, %v5019_v51  ;;  %v11672_v2 = vpack.c.bf16 %v5029_v50, %v5021_v20  ;;  %4958 = vmatpush1.bf16.msra.mxu1 %v10170_v5  ;;  %4787 = vmatprep.subr.bf16.mxu0 %v10177_v25  ;;  %v10186_v15 = vcombine.low %v1643_v60, %v1647_v61  ;;  %v1663_v5 = vld [vmem:[#allocation6 + $0xef8] sm:$0xff]  ;;  %v1682_v32 = vld [vmem:[#allocation6 + $0xf90] sm:$0xff]  ;;  %v5042_v50 = vld [vmem:[#allocation9] sm:$0xff] }
 0x352   :  { %4959 = vmatprep.subr.bf16.mxu1 %v10179_v45  ;;  %v10193_v54 = vcombine.high %v1650_v9, %v1654_v58  ;;  %v10195_v56 = vcombine.high %v1651_v23, %v1655_v11  ;;  %v10192_v12 = vcombine.low %v1650_v9, %v1654_v58  ;;  %v10194_v6 = vcombine.low %v1651_v23, %v1655_v11  ;;  %v1667_v52 = vld [vmem:[#allocation6 + $0xf18] sm:$0xff]  ;;  %v1678_v45 = vld [vmem:[#allocation6 + $0xf70] sm:$0xff] }
 0x353   :  { %v10201_v8 = vcombine.high %v1658_v10, %v1662_v16  ;;  %v10203_v13 = vcombine.high %v1659_v4, %v1663_v5  ;;  %v10200_v25 = vcombine.low %v1658_v10, %v1662_v16  ;;  %v10202_v26 = vcombine.low %v1659_v4, %v1663_v5  ;;  %v1675_v30 = vld [vmem:[#allocation6 + $0xf58] sm:$0xff]  ;;  %v1686_v42 = vld [vmem:[#allocation6 + $0xfb0] sm:$0xff] }
 0x354   :  { %4788 = vmatpush1.bf16.msra.mxu0 %v10176_v19  ;;  %v1671_v19 = vld [vmem:[#allocation6 + $0xf38] sm:$0xff]  ;;  %v10209_v28 = vcombine.high %v1666_v17, %v1670_v18  ;;  %v10208_v33 = vcombine.low %v1666_v17, %v1670_v18  ;;  %v10225_v47 = vcombine.high %v1682_v32, %v1686_v42  ;;  %v1690_v49 = vld [vmem:[#allocation6 + $0xfd0] sm:$0xff]  ;;  %v10224_v57 = vcombine.low %v1682_v32, %v1686_v42 }
 0x355   :  { %4960 = vmatpush1.bf16.msra.mxu1 %v10178_v48  ;;  %4789 = vmatprep.subr.bf16.mxu0 %v10185_v3  ;;  %v10211_v29 = vcombine.high %v1667_v52, %v1671_v19  ;;  %v1674_v48 = vld [vmem:[#allocation6 + $0xf50] sm:$0xff]  ;;  %v1679_v31 = vld [vmem:[#allocation6 + $0xf78] sm:$0xff]  ;;  %v10210_v34 = vcombine.low %v1667_v52, %v1671_v19  ;;  %v5046_v3 = vld [vmem:[#allocation9 + $0x20] sm:$0xff] }
 0x356   :  { %4961 = vmatprep.subr.bf16.mxu1 %v10187_v7  ;;  %v10217_v37 = vcombine.high %v1674_v48, %v1678_v45  ;;  %v10219_v39 = vcombine.high %v1675_v30, %v1679_v31  ;;  %v1683_v43 = vld [vmem:[#allocation6 + $0xf98] sm:$0xff]  ;;  %v10216_v62 = vcombine.low %v1674_v48, %v1678_v45  ;;  %v10218_v46 = vcombine.low %v1675_v30, %v1679_v31  ;;  %v1694_v51 = vld [vmem:[#allocation6 + $0xff0] sm:$0xff] }
 0x357   :  { %v1687_v44 = vld [vmem:[#allocation6 + $0xfb8] sm:$0xff]  ;;  %v10233_v61 = vcombine.high %v1690_v49, %v1694_v51  ;;  %v5043_v7 = vld [vmem:[#allocation9 + $0x8] sm:$0xff]  ;;  %v10232_v58 = vcombine.low %v1690_v49, %v1694_v51  ;;  %v10237_v11 = vcombine.high %v5042_v50, %v5046_v3 }
 0x358   :  { %4790 = vmatpush1.bf16.msra.mxu0 %v10184_v14  ;;  %v10227_v22 = vcombine.high %v1683_v43, %v1687_v44  ;;  %v1691_v20 = vld [vmem:[#allocation6 + $0xfd8] sm:$0xff]  ;;  %v10226_v60 = vcombine.low %v1683_v43, %v1687_v44  ;;  %v5047_v9 = vld [vmem:[#allocation9 + $0x28] sm:$0xff] }
 0x359   :  { %4962 = vmatpush1.bf16.msra.mxu1 %v10186_v15  ;;  %4791 = vmatprep.subr.bf16.mxu0 %v10193_v54  ;;  %v1695_v53 = vld [vmem:[#allocation6 + $0xff8] sm:$0xff]  ;;  %v10239_v14 = vcombine.high %v5043_v7, %v5047_v9  ;;  %v5050_v15 = vld [vmem:[#allocation9 + $0x40] sm:$0xff]  ;;  %v5051_v10 = vld [vmem:[#allocation9 + $0x48] sm:$0xff]  ;;  %v10238_v4 = vcombine.low %v5043_v7, %v5047_v9 }
 0x35a   :  { %4963 = vmatprep.subr.bf16.mxu1 %v10195_v56  ;;  %v10235_v27 = vcombine.high %v1691_v20, %v1695_v53  ;;  %v10234_v23 = vcombine.low %v1691_v20, %v1695_v53  ;;  %v5054_v54 = vld [vmem:[#allocation9 + $0x60] sm:$0xff]  ;;  %v10236_v56 = vcombine.low %v5042_v50, %v5046_v3  ;;  %v5055_v16 = vld [vmem:[#allocation9 + $0x68] sm:$0xff] }
 0x35b   :  { %v10245_v5 = vcombine.high %v5050_v15, %v5054_v54  ;;  %v5063_v17 = vld [vmem:[#allocation9 + $0xa8] sm:$0xff]  ;;  %v10244_v18 = vcombine.low %v5050_v15, %v5054_v54  ;;  %v10246_v52 = vcombine.low %v5051_v10, %v5055_v16 }
 0x35c   :  { %4792 = vmatpush1.bf16.msra.mxu0 %v10192_v12  ;;  %v5058_v12 = vld [vmem:[#allocation9 + $0x80] sm:$0xff]  ;;  %v5071_v48 = vld [vmem:[#allocation9 + $0xe8] sm:$0xff] }
 0x35d   :  { %4964 = vmatpush1.bf16.msra.mxu1 %v10194_v6  ;;  %4793 = vmatprep.subr.bf16.mxu0 %v10201_v8  ;;  %v5062_v6 = vld [vmem:[#allocation9 + $0xa0] sm:$0xff]  ;;  %v10247_v8 = vcombine.high %v5051_v10, %v5055_v16 }
 0x35e   :  { %4965 = vmatprep.subr.bf16.mxu1 %v10203_v13  ;;  %v5059_v13 = vld [vmem:[#allocation9 + $0x88] sm:$0xff]  ;;  %v10253_v19 = vcombine.high %v5058_v12, %v5062_v6  ;;  %v10252_v45 = vcombine.low %v5058_v12, %v5062_v6  ;;  %v5106_v16 = vld [vmem:[#allocation9 + $0x200] sm:$0xff] }
 0x35f   :  { %v5111_v12 = vld [vmem:[#allocation9 + $0x228] sm:$0xff] }
 0x360   :  { %4794 = vmatpush1.bf16.msra.mxu0 %v10200_v25  ;;  %v10255_v25 = vcombine.high %v5059_v13, %v5063_v17 }
 0x361   :  { %4966 = vmatpush1.bf16.msra.mxu1 %v10202_v26  ;;  %4795 = vmatprep.subr.bf16.mxu0 %v10209_v28  ;;  %v5066_v26 = vld [vmem:[#allocation9 + $0xc0] sm:$0xff] }
 0x362   :  { %4967 = vmatprep.subr.bf16.mxu1 %v10211_v29  ;;  %v5070_v28 = vld [vmem:[#allocation9 + $0xe0] sm:$0xff]  ;;  %v5067_v29 = vld [vmem:[#allocation9 + $0xc8] sm:$0xff] }
 0x363   :  { %v10261_v30 = vcombine.high %v5066_v26, %v5070_v28  ;;  %v10263_v31 = vcombine.high %v5067_v29, %v5071_v48  ;;  %v10260_v32 = vcombine.low %v5066_v26, %v5070_v28  ;;  %v10262_v42 = vcombine.low %v5067_v29, %v5071_v48 }
 0x364   :  { %4796 = vmatpush1.bf16.msra.mxu0 %v10208_v33  ;;  %v5074_v33 = vld [vmem:[#allocation9 + $0x100] sm:$0xff] }
 0x365   :  { %4968 = vmatpush1.bf16.msra.mxu1 %v10210_v34  ;;  %4797 = vmatprep.subr.bf16.mxu0 %v10217_v37  ;;  %v5078_v34 = vld [vmem:[#allocation9 + $0x120] sm:$0xff]  ;;  %v5075_v37 = vld [vmem:[#allocation9 + $0x108] sm:$0xff] }
 0x366   :  { %4969 = vmatprep.subr.bf16.mxu1 %v10219_v39  ;;  %v5079_v39 = vld [vmem:[#allocation9 + $0x128] sm:$0xff]  ;;  %v10269_v43 = vcombine.high %v5074_v33, %v5078_v34  ;;  %v10268_v49 = vcombine.low %v5074_v33, %v5078_v34 }
 0x367   :  { %v10271_v44 = vcombine.high %v5075_v37, %v5079_v39  ;;  %v10270_v51 = vcombine.low %v5075_v37, %v5079_v39 }
 0x368   :  { %4798 = vmatpush1.bf16.msra.mxu0 %v10216_v62  ;;  %v5082_v62 = vld [vmem:[#allocation9 + $0x140] sm:$0xff] }
 0x369   :  { %4970 = vmatpush1.bf16.msra.mxu1 %v10218_v46  ;;  %4799 = vmatprep.subr.bf16.mxu0 %v10225_v47  ;;  %v5086_v46 = vld [vmem:[#allocation9 + $0x160] sm:$0xff]  ;;  %v5083_v47 = vld [vmem:[#allocation9 + $0x148] sm:$0xff] }
 0x36a   :  { %4971 = vmatprep.subr.bf16.mxu1 %v10227_v22  ;;  %v5087_v22 = vld [vmem:[#allocation9 + $0x168] sm:$0xff]  ;;  %v10277_v20 = vcombine.high %v5082_v62, %v5086_v46  ;;  %v10276_v50 = vcombine.low %v5082_v62, %v5086_v46 }
 0x36b   :  { %v10279_v53 = vcombine.high %v5083_v47, %v5087_v22  ;;  %v10278_v3 = vcombine.low %v5083_v47, %v5087_v22 }
 0x36c   :  { %4800 = vmatpush1.bf16.msra.mxu0 %v10224_v57  ;;  %v5090_v57 = vld [vmem:[#allocation9 + $0x180] sm:$0xff] }
 0x36d   :  { %4972 = vmatpush1.bf16.msra.mxu1 %v10226_v60  ;;  %4801 = vmatprep.subr.bf16.mxu0 %v10233_v61  ;;  %v5094_v60 = vld [vmem:[#allocation9 + $0x1a0] sm:$0xff]  ;;  %v5091_v61 = vld [vmem:[#allocation9 + $0x188] sm:$0xff] }
 0x36e   :  { %4973 = vmatprep.subr.bf16.mxu1 %v10235_v27  ;;  %v5095_v27 = vld [vmem:[#allocation9 + $0x1a8] sm:$0xff]  ;;  %v10285_v7 = vcombine.high %v5090_v57, %v5094_v60  ;;  %v10284_v15 = vcombine.low %v5090_v57, %v5094_v60 }
 0x36f   :  { %v10287_v9 = vcombine.high %v5091_v61, %v5095_v27  ;;  %v10286_v54 = vcombine.low %v5091_v61, %v5095_v27 }
 0x370   :  { %4802 = vmatpush1.bf16.msra.mxu0 %v10232_v58  ;;  %v5098_v58 = vld [vmem:[#allocation9 + $0x1c0] sm:$0xff] }
 0x371   :  { %4974 = vmatpush1.bf16.msra.mxu1 %v10234_v23  ;;  %8156 = vmatprep.subr.bf16.mxu0 %v10237_v11  ;;  %v5102_v23 = vld [vmem:[#allocation9 + $0x1e0] sm:$0xff]  ;;  %v5099_v11 = vld [vmem:[#allocation9 + $0x1c8] sm:$0xff] }
 0x372   :  { %8328 = vmatprep.subr.bf16.mxu1 %v10239_v14  ;;  %v5103_v14 = vld [vmem:[#allocation9 + $0x1e8] sm:$0xff]  ;;  %v10292_v6 = vcombine.low %v5098_v58, %v5102_v23 }
 0x373   :  { %4804 = vmatmul.mubr.bf16.vlgmr.msra.gmra.mrb[12].mxu0 %v11583_v41  ;;  %v10295_v10 = vcombine.high %v5099_v11, %v5103_v14 }
 0x374   :  { %4976 = vmatmul.mubr.bf16.vlgmr.msra.gmra.mrb[12].mxu1 %v11583_v41  ;;  %8157 = vmatpush1.bf16.msra.mxu0 %v10236_v56  ;;  %v10254_v41 = vcombine.low %v5059_v13, %v5063_v17  ;;  %v10293_v56 = vcombine.high %v5098_v58, %v5102_v23 }
 0x375   :  { %8188 = vmatprep.mubr.bf16.mxu0 %v11670_v1  ;;  %8329 = vmatpush1.bf16.msra.mxu1 %v10238_v4  ;;  %v5110_v4 = vld [vmem:[#allocation9 + $0x220] sm:$0xff] }
 0x376   :  { %8360 = vmatprep.mubr.bf16.mxu1 %v11670_v1  ;;  %8158 = vmatprep.subr.bf16.mxu0 %v10245_v5  ;;  %v5107_v5 = vld [vmem:[#allocation9 + $0x208] sm:$0xff]  ;;  %v10301_v13 = vcombine.high %v5106_v16, %v5110_v4  ;;  %v10300_v26 = vcombine.low %v5106_v16, %v5110_v4 }
 0x377   :  { %8330 = vmatprep.subr.bf16.mxu1 %v10247_v8  ;;  %v10294_v8 = vcombine.low %v5099_v11, %v5103_v14  ;;  %v10303_v17 = vcombine.high %v5107_v5, %v5111_v12  ;;  %v10302_v28 = vcombine.low %v5107_v5, %v5111_v12 }
 0x378   :  { %8159 = vmatpush1.bf16.msra.mxu0 %v10244_v18  ;;  %v5114_v18 = vld [vmem:[#allocation9 + $0x240] sm:$0xff] }
 0x379   :  { %8331 = vmatpush1.bf16.msra.mxu1 %v10246_v52  ;;  %8160 = vmatprep.subr.bf16.mxu0 %v10253_v19  ;;  %v5118_v52 = vld [vmem:[#allocation9 + $0x260] sm:$0xff]  ;;  %v5115_v19 = vld [vmem:[#allocation9 + $0x248] sm:$0xff] }
 0x37a   :  { %8332 = vmatprep.subr.bf16.mxu1 %v10255_v25  ;;  %v5119_v25 = vld [vmem:[#allocation9 + $0x268] sm:$0xff]  ;;  %v10309_v29 = vcombine.high %v5114_v18, %v5118_v52  ;;  %v10308_v33 = vcombine.low %v5114_v18, %v5118_v52 }
 0x37b   :  { %v10311_v48 = vcombine.high %v5115_v19, %v5119_v25  ;;  %v10310_v34 = vcombine.low %v5115_v19, %v5119_v25 }
 0x37c   :  { %8161 = vmatpush1.bf16.msra.mxu0 %v10252_v45  ;;  %v5122_v45 = vld [vmem:[#allocation9 + $0x280] sm:$0xff] }
 0x37d   :  { %8333 = vmatpush1.bf16.msra.mxu1 %v10254_v41  ;;  %8162 = vmatprep.subr.bf16.mxu0 %v10261_v30  ;;  %v5126_v41 = vld [vmem:[#allocation9 + $0x2a0] sm:$0xff]  ;;  %v5123_v30 = vld [vmem:[#allocation9 + $0x288] sm:$0xff] }
 0x37e   :  { %8334 = vmatprep.subr.bf16.mxu1 %v10263_v31  ;;  %v5127_v31 = vld [vmem:[#allocation9 + $0x2a8] sm:$0xff]  ;;  %v10317_v37 = vcombine.high %v5122_v45, %v5126_v41  ;;  %v10316_v62 = vcombine.low %v5122_v45, %v5126_v41 }
 0x37f   :  { %v10319_v39 = vcombine.high %v5123_v30, %v5127_v31  ;;  %v10318_v46 = vcombine.low %v5123_v30, %v5127_v31 }
 0x380   :  { %8163 = vmatpush1.bf16.msra.mxu0 %v10260_v32  ;;  %v5130_v32 = vld [vmem:[#allocation9 + $0x2c0] sm:$0xff] }
 0x381   :  { %8335 = vmatpush1.bf16.msra.mxu1 %v10262_v42  ;;  %8164 = vmatprep.subr.bf16.mxu0 %v10269_v43  ;;  %v5134_v42 = vld [vmem:[#allocation9 + $0x2e0] sm:$0xff]  ;;  %v5131_v43 = vld [vmem:[#allocation9 + $0x2c8] sm:$0xff] }
 0x382   :  { %8336 = vmatprep.subr.bf16.mxu1 %v10271_v44  ;;  %v5135_v44 = vld [vmem:[#allocation9 + $0x2e8] sm:$0xff]  ;;  %v10325_v47 = vcombine.high %v5130_v32, %v5134_v42  ;;  %v10324_v57 = vcombine.low %v5130_v32, %v5134_v42 }
 0x383   :  { %v10327_v22 = vcombine.high %v5131_v43, %v5135_v44  ;;  %v10326_v60 = vcombine.low %v5131_v43, %v5135_v44  ;;  %v5183_v32 = vld [vmem:[#allocation9 + $0x468] sm:$0xff]  ;;  %v5186_v44 = vld [vmem:[#allocation9 + $0x480] sm:$0xff] }
 0x384   :  { %8165 = vmatpush1.bf16.msra.mxu0 %v10268_v49  ;;  %v5138_v49 = vld [vmem:[#allocation9 + $0x300] sm:$0xff] }
 0x385   :  { %8337 = vmatpush1.bf16.msra.mxu1 %v10270_v51  ;;  %8166 = vmatprep.subr.bf16.mxu0 %v10277_v20  ;;  %v5142_v51 = vld [vmem:[#allocation9 + $0x320] sm:$0xff]  ;;  %v5139_v20 = vld [vmem:[#allocation9 + $0x308] sm:$0xff] }
 0x386   :  { %8338 = vmatprep.subr.bf16.mxu1 %v10279_v53  ;;  %v5143_v53 = vld [vmem:[#allocation9 + $0x328] sm:$0xff]  ;;  %v10333_v61 = vcombine.high %v5138_v49, %v5142_v51  ;;  %v10332_v58 = vcombine.low %v5138_v49, %v5142_v51 }
 0x387   :  { %v10335_v27 = vcombine.high %v5139_v20, %v5143_v53  ;;  %v10334_v23 = vcombine.low %v5139_v20, %v5143_v53 }
 0x388   :  { %8167 = vmatpush1.bf16.msra.mxu0 %v10276_v50  ;;  %v5146_v50 = vld [vmem:[#allocation9 + $0x340] sm:$0xff] }
 0x389   :  { %8339 = vmatpush1.bf16.msra.mxu1 %v10278_v3  ;;  %8168 = vmatprep.subr.bf16.mxu0 %v10285_v7  ;;  %v5150_v3 = vld [vmem:[#allocation9 + $0x360] sm:$0xff]  ;;  %v5147_v7 = vld [vmem:[#allocation9 + $0x348] sm:$0xff] }
 0x38a   :  { %8340 = vmatprep.subr.bf16.mxu1 %v10287_v9  ;;  %v5151_v9 = vld [vmem:[#allocation9 + $0x368] sm:$0xff]  ;;  %v10341_v11 = vcombine.high %v5146_v50, %v5150_v3  ;;  %v10340_v16 = vcombine.low %v5146_v50, %v5150_v3 }
 0x38b   :  { %v10343_v14 = vcombine.high %v5147_v7, %v5151_v9  ;;  %v10342_v4 = vcombine.low %v5147_v7, %v5151_v9 }
 0x38c   :  { %8169 = vmatpush1.bf16.msra.mxu0 %v10284_v15  ;;  %v5154_v15 = vld [vmem:[#allocation9 + $0x380] sm:$0xff] }
 0x38d   :  { %8341 = vmatpush1.bf16.msra.mxu1 %v10286_v54  ;;  %8170 = vmatprep.subr.bf16.mxu0 %v10293_v56  ;;  %v5158_v54 = vld [vmem:[#allocation9 + $0x3a0] sm:$0xff]  ;;  %v5155_v56 = vld [vmem:[#allocation9 + $0x388] sm:$0xff] }
 0x38e   :  { %8342 = vmatprep.subr.bf16.mxu1 %v10295_v10  ;;  %v5159_v10 = vld [vmem:[#allocation9 + $0x3a8] sm:$0xff]  ;;  %v10349_v5 = vcombine.high %v5154_v15, %v5158_v54  ;;  %v10348_v18 = vcombine.low %v5154_v15, %v5158_v54 }
 0x38f   :  { %v10351_v12 = vcombine.high %v5155_v56, %v5159_v10  ;;  %v10350_v52 = vcombine.low %v5155_v56, %v5159_v10 }
 0x390   :  { %8171 = vmatpush1.bf16.msra.mxu0 %v10292_v6  ;;  %v5162_v6 = vld [vmem:[#allocation9 + $0x3c0] sm:$0xff] }
 0x391   :  { %8343 = vmatpush1.bf16.msra.mxu1 %v10294_v8  ;;  %8172 = vmatprep.subr.bf16.mxu0 %v10301_v13  ;;  %v5166_v8 = vld [vmem:[#allocation9 + $0x3e0] sm:$0xff]  ;;  %v5163_v13 = vld [vmem:[#allocation9 + $0x3c8] sm:$0xff] }
 0x392   :  { %8344 = vmatprep.subr.bf16.mxu1 %v10303_v17  ;;  %v5167_v17 = vld [vmem:[#allocation9 + $0x3e8] sm:$0xff]  ;;  %v10357_v19 = vcombine.high %v5162_v6, %v5166_v8  ;;  %v10356_v45 = vcombine.low %v5162_v6, %v5166_v8 }
 0x393   :  { %v10359_v25 = vcombine.high %v5163_v13, %v5167_v17  ;;  %v10358_v41 = vcombine.low %v5163_v13, %v5167_v17 }
 0x394   :  { %8173 = vmatpush1.bf16.msra.mxu0 %v10300_v26  ;;  %v5170_v26 = vld [vmem:[#allocation9 + $0x400] sm:$0xff] }
 0x395   :  { %8345 = vmatpush1.bf16.msra.mxu1 %v10302_v28  ;;  %8174 = vmatprep.subr.bf16.mxu0 %v10309_v29  ;;  %v5174_v28 = vld [vmem:[#allocation9 + $0x420] sm:$0xff]  ;;  %v5171_v29 = vld [vmem:[#allocation9 + $0x408] sm:$0xff] }
 0x396   :  { %8346 = vmatprep.subr.bf16.mxu1 %v10311_v48  ;;  %v5175_v48 = vld [vmem:[#allocation9 + $0x428] sm:$0xff]  ;;  %v10365_v30 = vcombine.high %v5170_v26, %v5174_v28 }
 0x397   :  { %v10367_v31 = vcombine.high %v5171_v29, %v5175_v48  ;;  %v10366_v42 = vcombine.low %v5171_v29, %v5175_v48 }
 0x398   :  { %8175 = vmatpush1.bf16.msra.mxu0 %v10308_v33  ;;  %v5178_v33 = vld [vmem:[#allocation9 + $0x440] sm:$0xff] }
 0x399   :  { %8347 = vmatpush1.bf16.msra.mxu1 %v10310_v34  ;;  %8176 = vmatprep.subr.bf16.mxu0 %v10317_v37  ;;  %v5182_v34 = vld [vmem:[#allocation9 + $0x460] sm:$0xff]  ;;  %v10364_v37 = vcombine.low %v5170_v26, %v5174_v28 }
 0x39a   :  { %8348 = vmatprep.subr.bf16.mxu1 %v10319_v39  ;;  %v5179_v39 = vld [vmem:[#allocation9 + $0x448] sm:$0xff]  ;;  %v10373_v43 = vcombine.high %v5178_v33, %v5182_v34  ;;  %v10372_v49 = vcombine.low %v5178_v33, %v5182_v34 }
 0x39b   :  { %v10374_v51 = vcombine.low %v5179_v39, %v5183_v32 }
 0x39c   :  { %8177 = vmatpush1.bf16.msra.mxu0 %v10316_v62  ;;  %v5190_v62 = vld [vmem:[#allocation9 + $0x4a0] sm:$0xff] }
 0x39d   :  { %8349 = vmatpush1.bf16.msra.mxu1 %v10318_v46  ;;  %8178 = vmatprep.subr.bf16.mxu0 %v10325_v47  ;;  %v10375_v46 = vcombine.high %v5179_v39, %v5183_v32  ;;  %v5187_v47 = vld [vmem:[#allocation9 + $0x488] sm:$0xff]  ;;  %v10381_v20 = vcombine.high %v5186_v44, %v5190_v62  ;;  %v10380_v50 = vcombine.low %v5186_v44, %v5190_v62  ;;  %v5234_v32 = vld [vmem:[#allocation9 + $0x600] sm:$0xff] }
 0x39e   :  { %8350 = vmatprep.subr.bf16.mxu1 %v10327_v22  ;;  %v5191_v22 = vld [vmem:[#allocation9 + $0x4a8] sm:$0xff] }
 0x39f   :  { %v10383_v53 = vcombine.high %v5187_v47, %v5191_v22  ;;  %v10382_v3 = vcombine.low %v5187_v47, %v5191_v22  ;;  %v5239_v44 = vld [vmem:[#allocation9 + $0x628] sm:$0xff] }
 0x3a0   :  { %8179 = vmatpush1.bf16.msra.mxu0 %v10324_v57  ;;  %v5194_v57 = vld [vmem:[#allocation9 + $0x4c0] sm:$0xff] }
 0x3a1   :  { %8351 = vmatpush1.bf16.msra.mxu1 %v10326_v60  ;;  %8180 = vmatprep.subr.bf16.mxu0 %v10333_v61  ;;  %v5198_v60 = vld [vmem:[#allocation9 + $0x4e0] sm:$0xff]  ;;  %v5195_v61 = vld [vmem:[#allocation9 + $0x4c8] sm:$0xff] }
 0x3a2   :  { %8352 = vmatprep.subr.bf16.mxu1 %v10335_v27  ;;  %v5199_v27 = vld [vmem:[#allocation9 + $0x4e8] sm:$0xff]  ;;  %v10389_v7 = vcombine.high %v5194_v57, %v5198_v60  ;;  %v10388_v15 = vcombine.low %v5194_v57, %v5198_v60 }
 0x3a3   :  { %v10391_v9 = vcombine.high %v5195_v61, %v5199_v27  ;;  %v10390_v54 = vcombine.low %v5195_v61, %v5199_v27 }
 0x3a4   :  { %8181 = vmatpush1.bf16.msra.mxu0 %v10332_v58  ;;  %v5202_v58 = vld [vmem:[#allocation9 + $0x500] sm:$0xff] }
 0x3a5   :  { %8353 = vmatpush1.bf16.msra.mxu1 %v10334_v23  ;;  %8182 = vmatprep.subr.bf16.mxu0 %v10341_v11  ;;  %v5206_v23 = vld [vmem:[#allocation9 + $0x520] sm:$0xff]  ;;  %v5203_v11 = vld [vmem:[#allocation9 + $0x508] sm:$0xff] }
 0x3a6   :  { %8354 = vmatprep.subr.bf16.mxu1 %v10343_v14  ;;  %v5207_v14 = vld [vmem:[#allocation9 + $0x528] sm:$0xff]  ;;  %v10397_v56 = vcombine.high %v5202_v58, %v5206_v23  ;;  %v10396_v6 = vcombine.low %v5202_v58, %v5206_v23 }
 0x3a7   :  { %v10399_v10 = vcombine.high %v5203_v11, %v5207_v14  ;;  %v10398_v8 = vcombine.low %v5203_v11, %v5207_v14 }
 0x3a8   :  { %8183 = vmatpush1.bf16.msra.mxu0 %v10340_v16  ;;  %v5210_v16 = vld [vmem:[#allocation9 + $0x540] sm:$0xff] }
 0x3a9   :  { %8355 = vmatpush1.bf16.msra.mxu1 %v10342_v4  ;;  %8184 = vmatprep.subr.bf16.mxu0 %v10349_v5  ;;  %v5214_v4 = vld [vmem:[#allocation9 + $0x560] sm:$0xff]  ;;  %v5211_v5 = vld [vmem:[#allocation9 + $0x548] sm:$0xff] }
 0x3aa   :  { %8356 = vmatprep.subr.bf16.mxu1 %v10351_v12  ;;  %v5215_v12 = vld [vmem:[#allocation9 + $0x568] sm:$0xff]  ;;  %v10405_v13 = vcombine.high %v5210_v16, %v5214_v4  ;;  %v10404_v26 = vcombine.low %v5210_v16, %v5214_v4 }
 0x3ab   :  { %v10407_v17 = vcombine.high %v5211_v5, %v5215_v12  ;;  %v10406_v28 = vcombine.low %v5211_v5, %v5215_v12 }
 0x3ac   :  { %8185 = vmatpush1.bf16.msra.mxu0 %v10348_v18  ;;  %v5218_v18 = vld [vmem:[#allocation9 + $0x580] sm:$0xff] }
 0x3ad   :  { %8357 = vmatpush1.bf16.msra.mxu1 %v10350_v52  ;;  %8186 = vmatprep.subr.bf16.mxu0 %v10357_v19  ;;  %v5222_v52 = vld [vmem:[#allocation9 + $0x5a0] sm:$0xff]  ;;  %v5219_v19 = vld [vmem:[#allocation9 + $0x588] sm:$0xff] }
 0x3ae   :  { %8358 = vmatprep.subr.bf16.mxu1 %v10359_v25  ;;  %v5223_v25 = vld [vmem:[#allocation9 + $0x5a8] sm:$0xff]  ;;  %v10413_v29 = vcombine.high %v5218_v18, %v5222_v52  ;;  %v10412_v33 = vcombine.low %v5218_v18, %v5222_v52 }
 0x3af   :  { %v10415_v48 = vcombine.high %v5219_v19, %v5223_v25  ;;  %v10414_v34 = vcombine.low %v5219_v19, %v5223_v25 }
 0x3b0   :  { %8187 = vmatpush1.bf16.msra.mxu0 %v10356_v45  ;;  %v5226_v45 = vld [vmem:[#allocation9 + $0x5c0] sm:$0xff] }
 0x3b1   :  { %8359 = vmatpush1.bf16.msra.mxu1 %v10358_v41  ;;  %8199 = vmatprep.subr.bf16.mxu0 %v10365_v30  ;;  %v5230_v41 = vld [vmem:[#allocation9 + $0x5e0] sm:$0xff]  ;;  %v5227_v30 = vld [vmem:[#allocation9 + $0x5c8] sm:$0xff] }
 0x3b2   :  { %8371 = vmatprep.subr.bf16.mxu1 %v10367_v31  ;;  %v5231_v31 = vld [vmem:[#allocation9 + $0x5e8] sm:$0xff]  ;;  %v10420_v62 = vcombine.low %v5226_v45, %v5230_v41 }
 0x3b3   :  { %8189 = vmatmul.mubr.bf16.vlgmr.msra.gmra.mrb[16].mxu0 %v11663_v63  ;;  %v10423_v39 = vcombine.high %v5227_v30, %v5231_v31 }
 0x3b4   :  { %8361 = vmatmul.mubr.bf16.vlgmr.msra.gmra.mrb[16].mxu1 %v11663_v63  ;;  %8200 = vmatpush1.bf16.msra.mxu0 %v10364_v37  ;;  %v10421_v37 = vcombine.high %v5226_v45, %v5230_v41 }
 0x3b5   :  { %8231 = vmatprep.mubr.bf16.mxu0 %v11672_v2  ;;  %8372 = vmatpush1.bf16.msra.mxu1 %v10366_v42  ;;  %v5238_v42 = vld [vmem:[#allocation9 + $0x620] sm:$0xff] }
 0x3b6   :  { %8403 = vmatprep.mubr.bf16.mxu1 %v11672_v2  ;;  %8201 = vmatprep.subr.bf16.mxu0 %v10373_v43  ;;  %v5235_v43 = vld [vmem:[#allocation9 + $0x608] sm:$0xff]  ;;  %v10429_v47 = vcombine.high %v5234_v32, %v5238_v42  ;;  %v10428_v57 = vcombine.low %v5234_v32, %v5238_v42 }
 0x3b7   :  { %8373 = vmatprep.subr.bf16.mxu1 %v10375_v46  ;;  %v10422_v46 = vcombine.low %v5227_v30, %v5231_v31  ;;  %v10431_v22 = vcombine.high %v5235_v43, %v5239_v44  ;;  %v10430_v60 = vcombine.low %v5235_v43, %v5239_v44 }
 0x3b8   :  { %8202 = vmatpush1.bf16.msra.mxu0 %v10372_v49  ;;  %v5242_v49 = vld [vmem:[#allocation9 + $0x640] sm:$0xff] }
 0x3b9   :  { %8374 = vmatpush1.bf16.msra.mxu1 %v10374_v51  ;;  %8203 = vmatprep.subr.bf16.mxu0 %v10381_v20  ;;  %v5246_v51 = vld [vmem:[#allocation9 + $0x660] sm:$0xff]  ;;  %v5243_v20 = vld [vmem:[#allocation9 + $0x648] sm:$0xff] }
 0x3ba   :  { %8375 = vmatprep.subr.bf16.mxu1 %v10383_v53  ;;  %v5247_v53 = vld [vmem:[#allocation9 + $0x668] sm:$0xff]  ;;  %v10437_v61 = vcombine.high %v5242_v49, %v5246_v51  ;;  %v10436_v58 = vcombine.low %v5242_v49, %v5246_v51 }
 0x3bb   :  { %v10439_v27 = vcombine.high %v5243_v20, %v5247_v53  ;;  %v10438_v23 = vcombine.low %v5243_v20, %v5247_v53 }
 0x3bc   :  { %8204 = vmatpush1.bf16.msra.mxu0 %v10380_v50  ;;  %v5250_v50 = vld [vmem:[#allocation9 + $0x680] sm:$0xff] }
 0x3bd   :  { %8376 = vmatpush1.bf16.msra.mxu1 %v10382_v3  ;;  %8205 = vmatprep.subr.bf16.mxu0 %v10389_v7  ;;  %v5254_v3 = vld [vmem:[#allocation9 + $0x6a0] sm:$0xff]  ;;  %v5251_v7 = vld [vmem:[#allocation9 + $0x688] sm:$0xff] }
 0x3be   :  { %8377 = vmatprep.subr.bf16.mxu1 %v10391_v9  ;;  %v5255_v9 = vld [vmem:[#allocation9 + $0x6a8] sm:$0xff]  ;;  %v10445_v11 = vcombine.high %v5250_v50, %v5254_v3  ;;  %v10444_v16 = vcombine.low %v5250_v50, %v5254_v3 }
 0x3bf   :  { %v10447_v14 = vcombine.high %v5251_v7, %v5255_v9  ;;  %v10446_v4 = vcombine.low %v5251_v7, %v5255_v9 }
 0x3c0   :  { %8206 = vmatpush1.bf16.msra.mxu0 %v10388_v15  ;;  %v5258_v15 = vld [vmem:[#allocation9 + $0x6c0] sm:$0xff] }
 0x3c1   :  { %8378 = vmatpush1.bf16.msra.mxu1 %v10390_v54  ;;  %8207 = vmatprep.subr.bf16.mxu0 %v10397_v56  ;;  %v5262_v54 = vld [vmem:[#allocation9 + $0x6e0] sm:$0xff]  ;;  %v5259_v56 = vld [vmem:[#allocation9 + $0x6c8] sm:$0xff] }
 0x3c2   :  { %8379 = vmatprep.subr.bf16.mxu1 %v10399_v10  ;;  %v5263_v10 = vld [vmem:[#allocation9 + $0x6e8] sm:$0xff]  ;;  %v10453_v5 = vcombine.high %v5258_v15, %v5262_v54  ;;  %v10452_v18 = vcombine.low %v5258_v15, %v5262_v54 }
 0x3c3   :  { %v10455_v12 = vcombine.high %v5259_v56, %v5263_v10  ;;  %v10454_v52 = vcombine.low %v5259_v56, %v5263_v10 }
 0x3c4   :  { %8208 = vmatpush1.bf16.msra.mxu0 %v10396_v6  ;;  %v5266_v6 = vld [vmem:[#allocation9 + $0x700] sm:$0xff] }
 0x3c5   :  { %8380 = vmatpush1.bf16.msra.mxu1 %v10398_v8  ;;  %8209 = vmatprep.subr.bf16.mxu0 %v10405_v13  ;;  %v5270_v8 = vld [vmem:[#allocation9 + $0x720] sm:$0xff]  ;;  %v5267_v13 = vld [vmem:[#allocation9 + $0x708] sm:$0xff] }
 0x3c6   :  { %8381 = vmatprep.subr.bf16.mxu1 %v10407_v17  ;;  %v5271_v17 = vld [vmem:[#allocation9 + $0x728] sm:$0xff]  ;;  %v10461_v19 = vcombine.high %v5266_v6, %v5270_v8  ;;  %v10460_v45 = vcombine.low %v5266_v6, %v5270_v8 }
 0x3c7   :  { %v10463_v25 = vcombine.high %v5267_v13, %v5271_v17  ;;  %v10462_v41 = vcombine.low %v5267_v13, %v5271_v17 }
 0x3c8   :  { %8210 = vmatpush1.bf16.msra.mxu0 %v10404_v26  ;;  %v5274_v26 = vld [vmem:[#allocation9 + $0x740] sm:$0xff] }
 0x3c9   :  { %8382 = vmatpush1.bf16.msra.mxu1 %v10406_v28  ;;  %8211 = vmatprep.subr.bf16.mxu0 %v10413_v29  ;;  %v5278_v28 = vld [vmem:[#allocation9 + $0x760] sm:$0xff]  ;;  %v5275_v29 = vld [vmem:[#allocation9 + $0x748] sm:$0xff] }
 0x3ca   :  { %8383 = vmatprep.subr.bf16.mxu1 %v10415_v48  ;;  %v5279_v48 = vld [vmem:[#allocation9 + $0x768] sm:$0xff]  ;;  %v10469_v30 = vcombine.high %v5274_v26, %v5278_v28  ;;  %v10468_v32 = vcombine.low %v5274_v26, %v5278_v28 }
 0x3cb   :  { %v10471_v31 = vcombine.high %v5275_v29, %v5279_v48  ;;  %v10470_v42 = vcombine.low %v5275_v29, %v5279_v48 }
 0x3cc   :  { %8212 = vmatpush1.bf16.msra.mxu0 %v10412_v33  ;;  %v5282_v33 = vld [vmem:[#allocation9 + $0x780] sm:$0xff] }
 0x3cd   :  { %8384 = vmatpush1.bf16.msra.mxu1 %v10414_v34  ;;  %8213 = vmatprep.subr.bf16.mxu0 %v10421_v37  ;;  %v5286_v34 = vld [vmem:[#allocation9 + $0x7a0] sm:$0xff]  ;;  %v5283_v37 = vld [vmem:[#allocation9 + $0x788] sm:$0xff] }
 0x3ce   :  { %8385 = vmatprep.subr.bf16.mxu1 %v10423_v39  ;;  %v5287_v39 = vld [vmem:[#allocation9 + $0x7a8] sm:$0xff]  ;;  %v10477_v43 = vcombine.high %v5282_v33, %v5286_v34  ;;  %v10476_v49 = vcombine.low %v5282_v33, %v5286_v34 }
 0x3cf   :  { %v10479_v44 = vcombine.high %v5283_v37, %v5287_v39  ;;  %v10478_v51 = vcombine.low %v5283_v37, %v5287_v39 }
 0x3d0   :  { %8214 = vmatpush1.bf16.msra.mxu0 %v10420_v62  ;;  %v5290_v62 = vld [vmem:[#allocation9 + $0x7c0] sm:$0xff] }
 0x3d1   :  { %8386 = vmatpush1.bf16.msra.mxu1 %v10422_v46  ;;  %8215 = vmatprep.subr.bf16.mxu0 %v10429_v47  ;;  %v5294_v46 = vld [vmem:[#allocation9 + $0x7e0] sm:$0xff]  ;;  %v5291_v47 = vld [vmem:[#allocation9 + $0x7c8] sm:$0xff] }
 0x3d2   :  { %8387 = vmatprep.subr.bf16.mxu1 %v10431_v22  ;;  %v5295_v22 = vld [vmem:[#allocation9 + $0x7e8] sm:$0xff]  ;;  %v10485_v20 = vcombine.high %v5290_v62, %v5294_v46  ;;  %v10484_v50 = vcombine.low %v5290_v62, %v5294_v46 }
 0x3d3   :  { %v10487_v53 = vcombine.high %v5291_v47, %v5295_v22  ;;  %v10486_v3 = vcombine.low %v5291_v47, %v5295_v22 }
 0x3d4   :  { %8216 = vmatpush1.bf16.msra.mxu0 %v10428_v57  ;;  %v5298_v57 = vld [vmem:[#allocation9 + $0x800] sm:$0xff] }
 0x3d5   :  { %8388 = vmatpush1.bf16.msra.mxu1 %v10430_v60  ;;  %8217 = vmatprep.subr.bf16.mxu0 %v10437_v61  ;;  %v5302_v60 = vld [vmem:[#allocation9 + $0x820] sm:$0xff]  ;;  %v5299_v61 = vld [vmem:[#allocation9 + $0x808] sm:$0xff] }
 0x3d6   :  { %8389 = vmatprep.subr.bf16.mxu1 %v10439_v27  ;;  %v5303_v27 = vld [vmem:[#allocation9 + $0x828] sm:$0xff]  ;;  %v10493_v7 = vcombine.high %v5298_v57, %v5302_v60  ;;  %v10492_v15 = vcombine.low %v5298_v57, %v5302_v60 }
 0x3d7   :  { %v10495_v9 = vcombine.high %v5299_v61, %v5303_v27  ;;  %v10494_v54 = vcombine.low %v5299_v61, %v5303_v27 }
 0x3d8   :  { %8218 = vmatpush1.bf16.msra.mxu0 %v10436_v58  ;;  %v5306_v58 = vld [vmem:[#allocation9 + $0x840] sm:$0xff] }
 0x3d9   :  { %8390 = vmatpush1.bf16.msra.mxu1 %v10438_v23  ;;  %8219 = vmatprep.subr.bf16.mxu0 %v10445_v11  ;;  %v5310_v23 = vld [vmem:[#allocation9 + $0x860] sm:$0xff]  ;;  %v5307_v11 = vld [vmem:[#allocation9 + $0x848] sm:$0xff] }
 0x3da   :  { %8391 = vmatprep.subr.bf16.mxu1 %v10447_v14  ;;  %v5311_v14 = vld [vmem:[#allocation9 + $0x868] sm:$0xff]  ;;  %v10501_v56 = vcombine.high %v5306_v58, %v5310_v23  ;;  %v10500_v6 = vcombine.low %v5306_v58, %v5310_v23 }
 0x3db   :  { %v10503_v10 = vcombine.high %v5307_v11, %v5311_v14  ;;  %v10502_v8 = vcombine.low %v5307_v11, %v5311_v14 }
 0x3dc   :  { %8220 = vmatpush1.bf16.msra.mxu0 %v10444_v16  ;;  %v5314_v16 = vld [vmem:[#allocation9 + $0x880] sm:$0xff] }
 0x3dd   :  { %8392 = vmatpush1.bf16.msra.mxu1 %v10446_v4  ;;  %8221 = vmatprep.subr.bf16.mxu0 %v10453_v5  ;;  %v5318_v4 = vld [vmem:[#allocation9 + $0x8a0] sm:$0xff]  ;;  %v5315_v5 = vld [vmem:[#allocation9 + $0x888] sm:$0xff] }
 0x3de   :  { %8393 = vmatprep.subr.bf16.mxu1 %v10455_v12  ;;  %v5319_v12 = vld [vmem:[#allocation9 + $0x8a8] sm:$0xff]  ;;  %v10509_v13 = vcombine.high %v5314_v16, %v5318_v4  ;;  %v10508_v26 = vcombine.low %v5314_v16, %v5318_v4 }
 0x3df   :  { %v10511_v17 = vcombine.high %v5315_v5, %v5319_v12  ;;  %v10510_v28 = vcombine.low %v5315_v5, %v5319_v12 }
 0x3e0   :  { %8222 = vmatpush1.bf16.msra.mxu0 %v10452_v18  ;;  %v5322_v18 = vld [vmem:[#allocation9 + $0x8c0] sm:$0xff] }
 0x3e1   :  { %8394 = vmatpush1.bf16.msra.mxu1 %v10454_v52  ;;  %8223 = vmatprep.subr.bf16.mxu0 %v10461_v19  ;;  %v5326_v52 = vld [vmem:[#allocation9 + $0x8e0] sm:$0xff]  ;;  %v5323_v19 = vld [vmem:[#allocation9 + $0x8c8] sm:$0xff] }
 0x3e2   :  { %8395 = vmatprep.subr.bf16.mxu1 %v10463_v25  ;;  %v5327_v25 = vld [vmem:[#allocation9 + $0x8e8] sm:$0xff]  ;;  %v10517_v29 = vcombine.high %v5322_v18, %v5326_v52  ;;  %v10516_v33 = vcombine.low %v5322_v18, %v5326_v52 }
 0x3e3   :  { %v10519_v48 = vcombine.high %v5323_v19, %v5327_v25  ;;  %v10518_v34 = vcombine.low %v5323_v19, %v5327_v25 }
 0x3e4   :  { %8224 = vmatpush1.bf16.msra.mxu0 %v10460_v45  ;;  %v5330_v45 = vld [vmem:[#allocation9 + $0x900] sm:$0xff] }
 0x3e5   :  { %8396 = vmatpush1.bf16.msra.mxu1 %v10462_v41  ;;  %8225 = vmatprep.subr.bf16.mxu0 %v10469_v30  ;;  %v5334_v41 = vld [vmem:[#allocation9 + $0x920] sm:$0xff]  ;;  %v5331_v30 = vld [vmem:[#allocation9 + $0x908] sm:$0xff] }
 0x3e6   :  { %8397 = vmatprep.subr.bf16.mxu1 %v10471_v31  ;;  %v5335_v31 = vld [vmem:[#allocation9 + $0x928] sm:$0xff]  ;;  %v10525_v37 = vcombine.high %v5330_v45, %v5334_v41  ;;  %v10524_v62 = vcombine.low %v5330_v45, %v5334_v41 }
 0x3e7   :  { %v10527_v39 = vcombine.high %v5331_v30, %v5335_v31  ;;  %v10526_v46 = vcombine.low %v5331_v30, %v5335_v31 }
 0x3e8   :  { %8226 = vmatpush1.bf16.msra.mxu0 %v10468_v32  ;;  %v5338_v32 = vld [vmem:[#allocation9 + $0x940] sm:$0xff] }
 0x3e9   :  { %8398 = vmatpush1.bf16.msra.mxu1 %v10470_v42  ;;  %8227 = vmatprep.subr.bf16.mxu0 %v10477_v43  ;;  %v5342_v42 = vld [vmem:[#allocation9 + $0x960] sm:$0xff]  ;;  %v5339_v43 = vld [vmem:[#allocation9 + $0x948] sm:$0xff] }
 0x3ea   :  { %8399 = vmatprep.subr.bf16.mxu1 %v10479_v44  ;;  %v5343_v44 = vld [vmem:[#allocation9 + $0x968] sm:$0xff]  ;;  %v10533_v47 = vcombine.high %v5338_v32, %v5342_v42  ;;  %v10532_v57 = vcombine.low %v5338_v32, %v5342_v42 }
 0x3eb   :  { %v10535_v22 = vcombine.high %v5339_v43, %v5343_v44  ;;  %v10534_v60 = vcombine.low %v5339_v43, %v5343_v44 }
 0x3ec   :  { %8228 = vmatpush1.bf16.msra.mxu0 %v10476_v49  ;;  %v5346_v49 = vld [vmem:[#allocation9 + $0x980] sm:$0xff] }
 0x3ed   :  { %8400 = vmatpush1.bf16.msra.mxu1 %v10478_v51  ;;  %8229 = vmatprep.subr.bf16.mxu0 %v10485_v20  ;;  %v5350_v51 = vld [vmem:[#allocation9 + $0x9a0] sm:$0xff]  ;;  %v5347_v20 = vld [vmem:[#allocation9 + $0x988] sm:$0xff] }
 0x3ee   :  { %8401 = vmatprep.subr.bf16.mxu1 %v10487_v53  ;;  %v5351_v53 = vld [vmem:[#allocation9 + $0x9a8] sm:$0xff]  ;;  %v10541_v61 = vcombine.high %v5346_v49, %v5350_v51  ;;  %v10540_v58 = vcombine.low %v5346_v49, %v5350_v51 }
 0x3ef   :  { %v10543_v27 = vcombine.high %v5347_v20, %v5351_v53  ;;  %v10542_v23 = vcombine.low %v5347_v20, %v5351_v53 }
 0x3f0   :  { %8230 = vmatpush1.bf16.msra.mxu0 %v10484_v50  ;;  %v5354_v50 = vld [vmem:[#allocation9 + $0x9c0] sm:$0xff] }
 0x3f1   :  { %8402 = vmatpush1.bf16.msra.mxu1 %v10486_v3  ;;  %8242 = vmatprep.subr.bf16.mxu0 %v10493_v7  ;;  %v5358_v3 = vld [vmem:[#allocation9 + $0x9e0] sm:$0xff]  ;;  %v5355_v7 = vld [vmem:[#allocation9 + $0x9c8] sm:$0xff] }
 0x3f2   :  { %8414 = vmatprep.subr.bf16.mxu1 %v10495_v9  ;;  %v5359_v9 = vld [vmem:[#allocation9 + $0x9e8] sm:$0xff]  ;;  %v10549_v11 = vcombine.high %v5354_v50, %v5358_v3  ;;  %v10548_v16 = vcombine.low %v5354_v50, %v5358_v3 }
 0x3f3   :  { %8232 = vmatmul.mubr.bf16.vlgmr.msra.gmra.mrb[16].mxu0 %v11665_v0  ;;  %v10551_v14 = vcombine.high %v5355_v7, %v5359_v9  ;;  %v10550_v4 = vcombine.low %v5355_v7, %v5359_v9 }
 0x3f4   :  { %8404 = vmatmul.mubr.bf16.vlgmr.msra.gmra.mrb[16].mxu1 %v11665_v0  ;;  %8243 = vmatpush1.bf16.msra.mxu0 %v10492_v15  ;;  %v5362_v15 = vld [vmem:[#allocation9 + $0xa00] sm:$0xff] }
 0x3f5   :  { %8415 = vmatpush1.bf16.msra.mxu1 %v10494_v54  ;;  %8244 = vmatprep.subr.bf16.mxu0 %v10501_v56  ;;  %v5366_v54 = vld [vmem:[#allocation9 + $0xa20] sm:$0xff]  ;;  %v5363_v56 = vld [vmem:[#allocation9 + $0xa08] sm:$0xff] }
 0x3f6   :  { %8416 = vmatprep.subr.bf16.mxu1 %v10503_v10  ;;  %v5367_v10 = vld [vmem:[#allocation9 + $0xa28] sm:$0xff]  ;;  %v10557_v5 = vcombine.high %v5362_v15, %v5366_v54  ;;  %v10556_v18 = vcombine.low %v5362_v15, %v5366_v54 }
 0x3f7   :  { %v10559_v12 = vcombine.high %v5363_v56, %v5367_v10  ;;  %v10558_v52 = vcombine.low %v5363_v56, %v5367_v10 }
 0x3f8   :  { %8245 = vmatpush1.bf16.msra.mxu0 %v10500_v6  ;;  %v5370_v6 = vld [vmem:[#allocation9 + $0xa40] sm:$0xff] }
 0x3f9   :  { %8417 = vmatpush1.bf16.msra.mxu1 %v10502_v8  ;;  %8246 = vmatprep.subr.bf16.mxu0 %v10509_v13  ;;  %v5374_v8 = vld [vmem:[#allocation9 + $0xa60] sm:$0xff]  ;;  %v5371_v13 = vld [vmem:[#allocation9 + $0xa48] sm:$0xff] }
 0x3fa   :  { %8418 = vmatprep.subr.bf16.mxu1 %v10511_v17  ;;  %v5375_v17 = vld [vmem:[#allocation9 + $0xa68] sm:$0xff]  ;;  %v10565_v19 = vcombine.high %v5370_v6, %v5374_v8  ;;  %v10564_v45 = vcombine.low %v5370_v6, %v5374_v8 }
 0x3fb   :  { %v10567_v25 = vcombine.high %v5371_v13, %v5375_v17  ;;  %v10566_v41 = vcombine.low %v5371_v13, %v5375_v17 }
 0x3fc   :  { %8247 = vmatpush1.bf16.msra.mxu0 %v10508_v26  ;;  %v5378_v26 = vld [vmem:[#allocation9 + $0xa80] sm:$0xff] }
 0x3fd   :  { %8419 = vmatpush1.bf16.msra.mxu1 %v10510_v28  ;;  %8248 = vmatprep.subr.bf16.mxu0 %v10517_v29  ;;  %v5382_v28 = vld [vmem:[#allocation9 + $0xaa0] sm:$0xff]  ;;  %v5379_v29 = vld [vmem:[#allocation9 + $0xa88] sm:$0xff] }
 0x3fe   :  { %8420 = vmatprep.subr.bf16.mxu1 %v10519_v48  ;;  %v5383_v48 = vld [vmem:[#allocation9 + $0xaa8] sm:$0xff]  ;;  %v10573_v30 = vcombine.high %v5378_v26, %v5382_v28  ;;  %v10572_v32 = vcombine.low %v5378_v26, %v5382_v28 }
 0x3ff   :  { %v10575_v31 = vcombine.high %v5379_v29, %v5383_v48  ;;  %v10574_v42 = vcombine.low %v5379_v29, %v5383_v48 }
 0x400   :  { %8249 = vmatpush1.bf16.msra.mxu0 %v10516_v33  ;;  %v5386_v33 = vld [vmem:[#allocation9 + $0xac0] sm:$0xff] }
 0x401   :  { %8421 = vmatpush1.bf16.msra.mxu1 %v10518_v34  ;;  %8250 = vmatprep.subr.bf16.mxu0 %v10525_v37  ;;  %v5390_v34 = vld [vmem:[#allocation9 + $0xae0] sm:$0xff]  ;;  %v5387_v37 = vld [vmem:[#allocation9 + $0xac8] sm:$0xff] }
 0x402   :  { %8422 = vmatprep.subr.bf16.mxu1 %v10527_v39  ;;  %v5391_v39 = vld [vmem:[#allocation9 + $0xae8] sm:$0xff]  ;;  %v10581_v43 = vcombine.high %v5386_v33, %v5390_v34  ;;  %v10580_v49 = vcombine.low %v5386_v33, %v5390_v34 }
 0x403   :  { %v10583_v44 = vcombine.high %v5387_v37, %v5391_v39  ;;  %v10582_v51 = vcombine.low %v5387_v37, %v5391_v39 }
 0x404   :  { %8251 = vmatpush1.bf16.msra.mxu0 %v10524_v62  ;;  %v5394_v62 = vld [vmem:[#allocation9 + $0xb00] sm:$0xff] }
 0x405   :  { %8423 = vmatpush1.bf16.msra.mxu1 %v10526_v46  ;;  %8252 = vmatprep.subr.bf16.mxu0 %v10533_v47  ;;  %v5398_v46 = vld [vmem:[#allocation9 + $0xb20] sm:$0xff]  ;;  %v5395_v47 = vld [vmem:[#allocation9 + $0xb08] sm:$0xff] }
 0x406   :  { %8424 = vmatprep.subr.bf16.mxu1 %v10535_v22  ;;  %v5399_v22 = vld [vmem:[#allocation9 + $0xb28] sm:$0xff]  ;;  %v10589_v20 = vcombine.high %v5394_v62, %v5398_v46  ;;  %v10588_v50 = vcombine.low %v5394_v62, %v5398_v46 }
 0x407   :  { %v10591_v53 = vcombine.high %v5395_v47, %v5399_v22  ;;  %v10590_v3 = vcombine.low %v5395_v47, %v5399_v22 }
 0x408   :  { %8253 = vmatpush1.bf16.msra.mxu0 %v10532_v57  ;;  %v5402_v57 = vld [vmem:[#allocation9 + $0xb40] sm:$0xff] }
 0x409   :  { %8425 = vmatpush1.bf16.msra.mxu1 %v10534_v60  ;;  %8254 = vmatprep.subr.bf16.mxu0 %v10541_v61  ;;  %v5406_v60 = vld [vmem:[#allocation9 + $0xb60] sm:$0xff]  ;;  %v5403_v61 = vld [vmem:[#allocation9 + $0xb48] sm:$0xff] }
 0x40a   :  { %8426 = vmatprep.subr.bf16.mxu1 %v10543_v27  ;;  %v5407_v27 = vld [vmem:[#allocation9 + $0xb68] sm:$0xff]  ;;  %v10597_v7 = vcombine.high %v5402_v57, %v5406_v60  ;;  %v10596_v15 = vcombine.low %v5402_v57, %v5406_v60 }
 0x40b   :  { %v10599_v9 = vcombine.high %v5403_v61, %v5407_v27  ;;  %v10598_v54 = vcombine.low %v5403_v61, %v5407_v27 }
 0x40c   :  { %8255 = vmatpush1.bf16.msra.mxu0 %v10540_v58  ;;  %v5410_v58 = vld [vmem:[#allocation9 + $0xb80] sm:$0xff] }
 0x40d   :  { %8427 = vmatpush1.bf16.msra.mxu1 %v10542_v23  ;;  %8256 = vmatprep.subr.bf16.mxu0 %v10549_v11  ;;  %v5414_v23 = vld [vmem:[#allocation9 + $0xba0] sm:$0xff]  ;;  %v5411_v11 = vld [vmem:[#allocation9 + $0xb88] sm:$0xff] }
 0x40e   :  { %8428 = vmatprep.subr.bf16.mxu1 %v10551_v14  ;;  %v5415_v14 = vld [vmem:[#allocation9 + $0xba8] sm:$0xff]  ;;  %v10605_v56 = vcombine.high %v5410_v58, %v5414_v23  ;;  %v10604_v6 = vcombine.low %v5410_v58, %v5414_v23 }
 0x40f   :  { %v10607_v10 = vcombine.high %v5411_v11, %v5415_v14  ;;  %v10606_v8 = vcombine.low %v5411_v11, %v5415_v14 }
 0x410   :  { %8257 = vmatpush1.bf16.msra.mxu0 %v10548_v16  ;;  %v5418_v16 = vld [vmem:[#allocation9 + $0xbc0] sm:$0xff] }
 0x411   :  { %8429 = vmatpush1.bf16.msra.mxu1 %v10550_v4  ;;  %8258 = vmatprep.subr.bf16.mxu0 %v10557_v5  ;;  %v5422_v4 = vld [vmem:[#allocation9 + $0xbe0] sm:$0xff]  ;;  %v5419_v5 = vld [vmem:[#allocation9 + $0xbc8] sm:$0xff] }
 0x412   :  { %8430 = vmatprep.subr.bf16.mxu1 %v10559_v12  ;;  %v5423_v12 = vld [vmem:[#allocation9 + $0xbe8] sm:$0xff]  ;;  %v10613_v13 = vcombine.high %v5418_v16, %v5422_v4  ;;  %v10612_v26 = vcombine.low %v5418_v16, %v5422_v4 }
 0x413   :  { %v10615_v17 = vcombine.high %v5419_v5, %v5423_v12  ;;  %v10614_v28 = vcombine.low %v5419_v5, %v5423_v12  ;;  %v5438_v12 = vld [vmem:[#allocation9 + $0xc60] sm:$0xff] }
 0x414   :  { %8259 = vmatpush1.bf16.msra.mxu0 %v10556_v18  ;;  %v11684_v18 = vld [vmem:[#allocation9 + $0xc00] sm:$0xff] }
 0x415   :  { %8431 = vmatpush1.bf16.msra.mxu1 %v10558_v52  ;;  %8260 = vmatprep.subr.bf16.mxu0 %v10565_v19  ;;  %v11686_v52 = vld [vmem:[#allocation9 + $0xc20] sm:$0xff]  ;;  %v11688_v19 = vld [vmem:[#allocation9 + $0xc08] sm:$0xff] }
 0x416   :  { %8432 = vmatprep.subr.bf16.mxu1 %v10567_v25  ;;  %v11690_v25 = vld [vmem:[#allocation9 + $0xc28] sm:$0xff]  ;;  %v10621_v29 = vcombine.high %v11684_v18, %v11686_v52  ;;  %v10620_v5 = vcombine.low %v11684_v18, %v11686_v52  ;;  %v5446_v52 = vld [vmem:[#allocation9 + $0xca0] sm:$0xff] }
 0x417   :  { %v10623_v48 = vcombine.high %v11688_v19, %v11690_v25 }
 0x418   :  { %8261 = vmatpush1.bf16.msra.mxu0 %v10564_v45  ;;  %v11108_v45 = vld [vmem:[#allocation7] sm:$0xff] }
 0x419   :  { %8433 = vmatpush1.bf16.msra.mxu1 %v10566_v41  ;;  %8262 = vmatprep.subr.bf16.mxu0 %v10573_v30  ;;  %v1717_v41 = vrot.slane %v11108_v45, %v11555_v55  ;;  %v1725_v30 = vrot.slane %v11108_v45, %v11565_v36  ;;  %v1729_v33 = vrot.slane %v11108_v45, %v11568_v40 }
 0x41a   :  { %8434 = vmatprep.subr.bf16.mxu1 %v10575_v31  ;;  %v1721_v31 = vrot.slane %v11108_v45, %v11558_v59 }
 0x41c   :  { %8263 = vmatpush1.bf16.msra.mxu0 %v10572_v32 }
 0x41d   :  { %8435 = vmatpush1.bf16.msra.mxu1 %v10574_v42  ;;  %8264 = vmatprep.subr.bf16.mxu0 %v10581_v43 }
 0x41e   :  { %8436 = vmatprep.subr.bf16.mxu1 %v10583_v44 }
 0x420   :  { %8265 = vmatpush1.bf16.msra.mxu0 %v10580_v49 }
 0x421   :  { %8437 = vmatpush1.bf16.msra.mxu1 %v10582_v51  ;;  %8266 = vmatprep.subr.bf16.mxu0 %v10589_v20 }
 0x422   :  { %8438 = vmatprep.subr.bf16.mxu1 %v10591_v53 }
 0x424   :  { %8267 = vmatpush1.bf16.msra.mxu0 %v10588_v50 }
 0x425   :  { %8439 = vmatpush1.bf16.msra.mxu1 %v10590_v3  ;;  %8268 = vmatprep.subr.bf16.mxu0 %v10597_v7 }
 0x426   :  { %8440 = vmatprep.subr.bf16.mxu1 %v10599_v9 }
 0x428   :  { %8269 = vmatpush1.bf16.msra.mxu0 %v10596_v15 }
 0x429   :  { %8441 = vmatpush1.bf16.msra.mxu1 %v10598_v54  ;;  %8270 = vmatprep.subr.bf16.mxu0 %v10605_v56  ;;  %v5434_v56 = vld [vmem:[#allocation9 + $0xc40] sm:$0xff] }
 0x42a   :  { %8442 = vmatprep.subr.bf16.mxu1 %v10607_v10  ;;  %v10629_v45 = vcombine.high %v5434_v56, %v5438_v12 }
 0x42c   :  { %8271 = vmatpush1.bf16.msra.mxu0 %v10604_v6  ;;  %v5435_v6 = vld [vmem:[#allocation9 + $0xc48] sm:$0xff] }
 0x42d   :  { %8443 = vmatpush1.bf16.msra.mxu1 %v10606_v8  ;;  %8272 = vmatprep.subr.bf16.mxu0 %v10613_v13  ;;  %v5439_v8 = vld [vmem:[#allocation9 + $0xc68] sm:$0xff] }
 0x42e   :  { %8444 = vmatprep.subr.bf16.mxu1 %v10615_v17  ;;  %v10631_v18 = vcombine.high %v5435_v6, %v5439_v8 }
 0x430   :  { %8273 = vmatpush1.bf16.msra.mxu0 %v10612_v26 }
 0x431   :  { %8445 = vmatpush1.bf16.msra.mxu1 %v10614_v28  ;;  %8285 = vmatprep.subr.bf16.mxu0 %v10621_v29  ;;  %v10622_v28 = vcombine.low %v11688_v19, %v11690_v25  ;;  %v10630_v19 = vcombine.low %v5435_v6, %v5439_v8  ;;  %v5486_v6 = vld [vmem:[#allocation9 + $0xde0] sm:$0xff]  ;;  %v5483_v8 = vld [vmem:[#allocation9 + $0xdc8] sm:$0xff] }
 0x432   :  { %8457 = vmatprep.subr.bf16.mxu1 %v10623_v48  ;;  %v5442_v48 = vld [vmem:[#allocation9 + $0xc80] sm:$0xff] }
 0x433   :  { %v10637_v25 = vcombine.high %v5442_v48, %v5446_v52 }
 0x446   :  { %v4805_v34 = vpop.f32.mrb[12].mxu0 }
 0x447   :  { %v10909_v37 = vadd.f32 %v4805_v34, %v1717_v41  ;;  %v4977_v39 = vpop.f32.mrb[12].mxu1  ;;  %v4807_v32 = vpop.f32.mrb[13].mxu0  ;;  %v5450_v34 = vld [vmem:[#allocation9 + $0xcc0] sm:$0xff] }
 0x448   :  { %v10913_v42 = vadd.f32 %v4977_v39, %v1725_v30  ;;  %v10910_v43 = vadd.f32 %v4807_v32, %v1721_v31  ;;  %v4979_v44 = vpop.f32.mrb[13].mxu1  ;;  %v4809_v62 = vpop.f32.mrb[14].mxu0  ;;  %v5451_v39 = vld [vmem:[#allocation9 + $0xcc8] sm:$0xff] }
 0x449   :  { %v5006_v46 = vmul.f32 0.1, %v10909_v37  ;;  %v10914_v47 = vadd.f32 %v4979_v44, %v1729_v33  ;;  %v10911_v22 = vadd.f32 %v4809_v62, %v1717_v41  ;;  %v4981_v49 = vpop.f32.mrb[14].mxu1  ;;  %v4811_v51 = vpop.f32.mrb[15].mxu0  ;;  %vm4990_vm8 = vcmp.gt.f32.partialorder %v10909_v37, 0.0  ;;  %v5443_v41 = vld [vmem:[#allocation9 + $0xc88] sm:$0xff] }
 0x44a   :  { %vm4992_vm9 = vcmp.gt.f32.partialorder %v10913_v42, 0.0  ;;  %v5008_v20 = vmul.f32 0.1, %v10913_v42  ;;  %v4983_v53 = vpop.f32.mrb[15].mxu1  ;;  %vm4991_vm11 = vcmp.gt.f32.partialorder %v10910_v43, 0.0  ;;  %v10915_v61 = vadd.f32 %v4981_v49, %v1725_v30  ;;  %v5447_v30 = vld [vmem:[#allocation9 + $0xca8] sm:$0xff] }
 0x44b   :  { %vm4998_vm10 = vcmp.gt.f32.partialorder %v10911_v22, 0.0  ;;  %v5007_v57 = vmul.f32 0.1, %v10910_v43  ;;  %v5014_v60 = vmul.f32 0.1, %v10911_v22  ;;  %v5022_v27 = vsel %vm4990_vm8, %v10909_v37, %v5006_v46  ;;  %v5454_v37 = vld [vmem:[#allocation9 + $0xce0] sm:$0xff] }
 0x44c   :  { %vm4993_vm12 = vcmp.gt.f32.partialorder %v10914_v47, 0.0  ;;  %v10912_v50 = vadd.f32 %v4811_v51, %v1721_v31  ;;  %v10916_v3 = vadd.f32 %v4983_v53, %v1729_v33  ;;  %v5009_v7 = vmul.f32 0.1, %v10914_v47  ;;  %v5455_v32 = vld [vmem:[#allocation9 + $0xce8] sm:$0xff]  ;;  %v5458_v46 = vld [vmem:[#allocation9 + $0xd00] sm:$0xff] }
 0x44d   :  { %v5030_v9 = vsel %vm4998_vm10, %v10911_v22, %v5014_v60  ;;  %vm5000_vm13 = vcmp.gt.f32.partialorder %v10915_v61, 0.0  ;;  %v5016_v58 = vmul.f32 0.1, %v10915_v61  ;;  %v5024_v14 = vsel %vm4992_vm9, %v10913_v42, %v5008_v20  ;;  %v5459_v22 = vld [vmem:[#allocation9 + $0xd08] sm:$0xff]  ;;  %v5466_v60 = vld [vmem:[#allocation9 + $0xd40] sm:$0xff] }
 0x44e   :  { %v11700_v23 = vpack.c.bf16 %v5030_v9, %v5022_v27  ;;  %vm4999_vm14 = vcmp.gt.f32.partialorder %v10912_v50, 0.0  ;;  %v5015_v11 = vmul.f32 0.1, %v10912_v50  ;;  %vm5001_vm15 = vcmp.gt.f32.partialorder %v10916_v3, 0.0  ;;  %v5463_v49 = vld [vmem:[#allocation9 + $0xd28] sm:$0xff] }
 0x44f   :  { %v5032_v15 = vsel %vm5000_vm13, %v10915_v61, %v5016_v58  ;;  %v5017_v54 = vmul.f32 0.1, %v10916_v3  ;;  %v5023_v10 = vsel %vm4991_vm11, %v10910_v43, %v5007_v57  ;;  %v5025_v13 = vsel %vm4993_vm12, %v10914_v47, %v5009_v7  ;;  %v5462_v47 = vld [vmem:[#allocation9 + $0xd20] sm:$0xff]  ;;  %v5467_v27 = vld [vmem:[#allocation9 + $0xd48] sm:$0xff] }
 0x450   :  { %v11704_v16 = vpack.c.bf16 %v5032_v15, %v5024_v14  ;;  %v5031_v4 = vsel %vm4999_vm14, %v10912_v50, %v5015_v11  ;;  %v10628_v31 = vcombine.low %v5434_v56, %v5438_v12  ;;  %v10639_v33 = vcombine.high %v5443_v41, %v5447_v30  ;;  %v5470_v61 = vld [vmem:[#allocation9 + $0xd60] sm:$0xff]  ;;  %v5471_v50 = vld [vmem:[#allocation9 + $0xd68] sm:$0xff] }
 0x451   :  { %v11709_v17 = vpack.c.bf16 %v5031_v4, %v5023_v10  ;;  %v5033_v26 = vsel %vm5001_vm15, %v10916_v3, %v5017_v54  ;;  %v10636_v42 = vcombine.low %v5442_v48, %v5446_v52  ;;  %v10638_v43 = vcombine.low %v5443_v41, %v5447_v30  ;;  %v5474_v11 = vld [vmem:[#allocation9 + $0xd80] sm:$0xff]  ;;  %v5475_v15 = vld [vmem:[#allocation9 + $0xd88] sm:$0xff] }
 0x452   :  { %v11713_v29 = vpack.c.bf16 %v5033_v26, %v5025_v13  ;;  %v10645_v44 = vcombine.high %v5450_v34, %v5454_v37  ;;  %v10647_v62 = vcombine.high %v5451_v39, %v5455_v32  ;;  %v10644_v51 = vcombine.low %v5450_v34, %v5454_v37  ;;  %v5478_v14 = vld [vmem:[#allocation9 + $0xda0] sm:$0xff]  ;;  %v5479_v54 = vld [vmem:[#allocation9 + $0xda8] sm:$0xff] }
 0x453   :  { %8274 = vmatprep.mubr.bf16.mxu0 %v11709_v17  ;;  %8446 = vmatprep.mubr.bf16.mxu1 %v11709_v17  ;;  %v10646_v20 = vcombine.low %v5451_v39, %v5455_v32  ;;  %v10653_v53 = vcombine.high %v5458_v46, %v5462_v47  ;;  %v10655_v57 = vcombine.high %v5459_v22, %v5463_v49  ;;  %v5482_v12 = vld [vmem:[#allocation9 + $0xdc0] sm:$0xff]  ;;  %v5487_v13 = vld [vmem:[#allocation9 + $0xde8] sm:$0xff] }
 0x454   :  { %8275 = vmatmul.mubr.bf16.vlgmr.msra.gmra.mrb[16].mxu0 %v11700_v23  ;;  %8447 = vmatmul.mubr.bf16.vlgmr.msra.gmra.mrb[16].mxu1 %v11700_v23  ;;  %v10652_v3 = vcombine.low %v5458_v46, %v5462_v47  ;;  %v10654_v7 = vcombine.low %v5459_v22, %v5463_v49  ;;  %v10661_v9 = vcombine.high %v5466_v60, %v5470_v61  ;;  %v5494_v52 = vld [vmem:[#allocation9 + $0xe20] sm:$0xff]  ;;  %v5491_v41 = vld [vmem:[#allocation9 + $0xe08] sm:$0xff] }
 0x455   :  { %8286 = vmatpush1.bf16.msra.mxu0 %v10620_v5  ;;  %8458 = vmatpush1.bf16.msra.mxu1 %v10622_v28  ;;  %v10663_v58 = vcombine.high %v5467_v27, %v5471_v50  ;;  %v10660_v56 = vcombine.low %v5466_v60, %v5470_v61  ;;  %v10662_v10 = vcombine.low %v5467_v27, %v5471_v50  ;;  %v5495_v30 = vld [vmem:[#allocation9 + $0xe28] sm:$0xff]  ;;  %v5498_v34 = vld [vmem:[#allocation9 + $0xe40] sm:$0xff] }
 0x456   :  { %8317 = vmatprep.mubr.bf16.mxu0 %v11713_v29  ;;  %8489 = vmatprep.mubr.bf16.mxu1 %v11713_v29  ;;  %v10669_v4 = vcombine.high %v5474_v11, %v5478_v14  ;;  %v10671_v5 = vcombine.high %v5475_v15, %v5479_v54  ;;  %v10668_v26 = vcombine.low %v5474_v11, %v5478_v14  ;;  %v5502_v37 = vld [vmem:[#allocation9 + $0xe60] sm:$0xff]  ;;  %v5499_v39 = vld [vmem:[#allocation9 + $0xe48] sm:$0xff] }
 0x457   :  { %8287 = vmatprep.subr.bf16.mxu0 %v10629_v45  ;;  %8459 = vmatprep.subr.bf16.mxu1 %v10631_v18  ;;  %v10670_v28 = vcombine.low %v5475_v15, %v5479_v54  ;;  %v10677_v48 = vcombine.high %v5482_v12, %v5486_v6  ;;  %v10679_v45 = vcombine.high %v5483_v8, %v5487_v13  ;;  %v5490_v18 = vld [vmem:[#allocation9 + $0xe00] sm:$0xff]  ;;  %v5503_v32 = vld [vmem:[#allocation9 + $0xe68] sm:$0xff] }
 0x458   :  { %v5506_v46 = vld [vmem:[#allocation9 + $0xe80] sm:$0xff]  ;;  %v5507_v22 = vld [vmem:[#allocation9 + $0xe88] sm:$0xff] }
 0x459   :  { %8288 = vmatpush1.bf16.msra.mxu0 %v10628_v31  ;;  %8460 = vmatpush1.bf16.msra.mxu1 %v10630_v19  ;;  %v10676_v31 = vcombine.low %v5482_v12, %v5486_v6  ;;  %v10678_v19 = vcombine.low %v5483_v8, %v5487_v13  ;;  %v5510_v47 = vld [vmem:[#allocation9 + $0xea0] sm:$0xff]  ;;  %v5511_v49 = vld [vmem:[#allocation9 + $0xea8] sm:$0xff] }
 0x45a   :  { %8289 = vmatprep.subr.bf16.mxu0 %v10637_v25  ;;  %8461 = vmatprep.subr.bf16.mxu1 %v10639_v33  ;;  %v10685_v25 = vcombine.high %v5490_v18, %v5494_v52  ;;  %v10687_v33 = vcombine.high %v5491_v41, %v5495_v30  ;;  %v5514_v60 = vld [vmem:[#allocation9 + $0xec0] sm:$0xff]  ;;  %v5515_v27 = vld [vmem:[#allocation9 + $0xec8] sm:$0xff] }
 0x45b   :  { %v5518_v61 = vld [vmem:[#allocation9 + $0xee0] sm:$0xff]  ;;  %v5519_v50 = vld [vmem:[#allocation9 + $0xee8] sm:$0xff] }
 0x45c   :  { %v5522_v11 = vld [vmem:[#allocation9 + $0xf00] sm:$0xff]  ;;  %v5523_v15 = vld [vmem:[#allocation9 + $0xf08] sm:$0xff] }
 0x45d   :  { %8290 = vmatpush1.bf16.msra.mxu0 %v10636_v42  ;;  %8462 = vmatpush1.bf16.msra.mxu1 %v10638_v43  ;;  %v10684_v42 = vcombine.low %v5490_v18, %v5494_v52  ;;  %v10686_v43 = vcombine.low %v5491_v41, %v5495_v30  ;;  %v5526_v14 = vld [vmem:[#allocation9 + $0xf20] sm:$0xff]  ;;  %v5527_v54 = vld [vmem:[#allocation9 + $0xf28] sm:$0xff] }
 0x45e   :  { %8291 = vmatprep.subr.bf16.mxu0 %v10645_v44  ;;  %8463 = vmatprep.subr.bf16.mxu1 %v10647_v62  ;;  %v10693_v44 = vcombine.high %v5498_v34, %v5502_v37  ;;  %v10695_v62 = vcombine.high %v5499_v39, %v5503_v32  ;;  %v5530_v12 = vld [vmem:[#allocation9 + $0xf40] sm:$0xff]  ;;  %v5531_v8 = vld [vmem:[#allocation9 + $0xf48] sm:$0xff] }
 0x45f   :  { %v5534_v6 = vld [vmem:[#allocation9 + $0xf60] sm:$0xff]  ;;  %v5535_v13 = vld [vmem:[#allocation9 + $0xf68] sm:$0xff] }
 0x460   :  { %v5538_v18 = vld [vmem:[#allocation9 + $0xf80] sm:$0xff]  ;;  %v5539_v41 = vld [vmem:[#allocation9 + $0xf88] sm:$0xff] }
 0x461   :  { %8292 = vmatpush1.bf16.msra.mxu0 %v10644_v51  ;;  %8464 = vmatpush1.bf16.msra.mxu1 %v10646_v20  ;;  %v10692_v51 = vcombine.low %v5498_v34, %v5502_v37  ;;  %v10694_v20 = vcombine.low %v5499_v39, %v5503_v32  ;;  %v5542_v52 = vld [vmem:[#allocation9 + $0xfa0] sm:$0xff]  ;;  %v5543_v30 = vld [vmem:[#allocation9 + $0xfa8] sm:$0xff] }
 0x462   :  { %8293 = vmatprep.subr.bf16.mxu0 %v10653_v53  ;;  %8465 = vmatprep.subr.bf16.mxu1 %v10655_v57  ;;  %v10701_v53 = vcombine.high %v5506_v46, %v5510_v47  ;;  %v10703_v57 = vcombine.high %v5507_v22, %v5511_v49  ;;  %v5546_v34 = vld [vmem:[#allocation9 + $0xfc0] sm:$0xff]  ;;  %v5547_v39 = vld [vmem:[#allocation9 + $0xfc8] sm:$0xff] }
 0x463   :  { %v5550_v37 = vld [vmem:[#allocation9 + $0xfe0] sm:$0xff]  ;;  %v5551_v32 = vld [vmem:[#allocation9 + $0xfe8] sm:$0xff] }
 0x465   :  { %8294 = vmatpush1.bf16.msra.mxu0 %v10652_v3  ;;  %8466 = vmatpush1.bf16.msra.mxu1 %v10654_v7  ;;  %v10700_v3 = vcombine.low %v5506_v46, %v5510_v47  ;;  %v10702_v7 = vcombine.low %v5507_v22, %v5511_v49  ;;  %v5044_v46 = vld [vmem:[#allocation9 + $0x10] sm:$0xff]  ;;  %v5045_v22 = vld [vmem:[#allocation9 + $0x18] sm:$0xff] }
 0x466   :  { %8295 = vmatprep.subr.bf16.mxu0 %v10661_v9  ;;  %8467 = vmatprep.subr.bf16.mxu1 %v10663_v58  ;;  %v10709_v9 = vcombine.high %v5514_v60, %v5518_v61  ;;  %v10711_v58 = vcombine.high %v5515_v27, %v5519_v50  ;;  %v5048_v47 = vld [vmem:[#allocation9 + $0x30] sm:$0xff]  ;;  %v5049_v49 = vld [vmem:[#allocation9 + $0x38] sm:$0xff] }
 0x469   :  { %8296 = vmatpush1.bf16.msra.mxu0 %v10660_v56  ;;  %8468 = vmatpush1.bf16.msra.mxu1 %v10662_v10  ;;  %v10708_v56 = vcombine.low %v5514_v60, %v5518_v61  ;;  %v10710_v10 = vcombine.low %v5515_v27, %v5519_v50  ;;  %v5052_v60 = vld [vmem:[#allocation9 + $0x50] sm:$0xff]  ;;  %v5053_v27 = vld [vmem:[#allocation9 + $0x58] sm:$0xff] }
 0x46a   :  { %8297 = vmatprep.subr.bf16.mxu0 %v10669_v4  ;;  %8469 = vmatprep.subr.bf16.mxu1 %v10671_v5  ;;  %v10717_v4 = vcombine.high %v5522_v11, %v5526_v14  ;;  %v10719_v5 = vcombine.high %v5523_v15, %v5527_v54  ;;  %v5056_v61 = vld [vmem:[#allocation9 + $0x70] sm:$0xff]  ;;  %v5057_v50 = vld [vmem:[#allocation9 + $0x78] sm:$0xff] }
 0x46d   :  { %8298 = vmatpush1.bf16.msra.mxu0 %v10668_v26  ;;  %8470 = vmatpush1.bf16.msra.mxu1 %v10670_v28  ;;  %v10716_v26 = vcombine.low %v5522_v11, %v5526_v14  ;;  %v10718_v28 = vcombine.low %v5523_v15, %v5527_v54  ;;  %v5060_v11 = vld [vmem:[#allocation9 + $0x90] sm:$0xff]  ;;  %v5061_v15 = vld [vmem:[#allocation9 + $0x98] sm:$0xff] }
 0x46e   :  { %8299 = vmatprep.subr.bf16.mxu0 %v10677_v48  ;;  %8471 = vmatprep.subr.bf16.mxu1 %v10679_v45  ;;  %v10725_v48 = vcombine.high %v5530_v12, %v5534_v6  ;;  %v10727_v45 = vcombine.high %v5531_v8, %v5535_v13  ;;  %v5064_v14 = vld [vmem:[#allocation9 + $0xb0] sm:$0xff]  ;;  %v5065_v54 = vld [vmem:[#allocation9 + $0xb8] sm:$0xff] }
 0x471   :  { %8300 = vmatpush1.bf16.msra.mxu0 %v10676_v31  ;;  %8472 = vmatpush1.bf16.msra.mxu1 %v10678_v19  ;;  %v10724_v31 = vcombine.low %v5530_v12, %v5534_v6  ;;  %v10726_v19 = vcombine.low %v5531_v8, %v5535_v13  ;;  %v5068_v12 = vld [vmem:[#allocation9 + $0xd0] sm:$0xff]  ;;  %v5069_v8 = vld [vmem:[#allocation9 + $0xd8] sm:$0xff] }
 0x472   :  { %8301 = vmatprep.subr.bf16.mxu0 %v10685_v25  ;;  %8473 = vmatprep.subr.bf16.mxu1 %v10687_v33  ;;  %v10733_v25 = vcombine.high %v5538_v18, %v5542_v52  ;;  %v10735_v33 = vcombine.high %v5539_v41, %v5543_v30  ;;  %v5072_v6 = vld [vmem:[#allocation9 + $0xf0] sm:$0xff]  ;;  %v5073_v13 = vld [vmem:[#allocation9 + $0xf8] sm:$0xff] }
 0x475   :  { %8302 = vmatpush1.bf16.msra.mxu0 %v10684_v42  ;;  %8474 = vmatpush1.bf16.msra.mxu1 %v10686_v43  ;;  %v10732_v42 = vcombine.low %v5538_v18, %v5542_v52  ;;  %v10734_v43 = vcombine.low %v5539_v41, %v5543_v30  ;;  %v5076_v18 = vld [vmem:[#allocation9 + $0x110] sm:$0xff]  ;;  %v5081_v41 = vld [vmem:[#allocation9 + $0x138] sm:$0xff]  ;;  %v10264_v30 = vcombine.low %v5068_v12, %v5072_v6 }
 0x476   :  { %8303 = vmatprep.subr.bf16.mxu0 %v10693_v44  ;;  %8475 = vmatprep.subr.bf16.mxu1 %v10695_v62  ;;  %v10741_v44 = vcombine.high %v5546_v34, %v5550_v37  ;;  %v10743_v62 = vcombine.high %v5547_v39, %v5551_v32  ;;  %v5080_v52 = vld [vmem:[#allocation9 + $0x130] sm:$0xff] }
 0x479   :  { %8304 = vmatpush1.bf16.msra.mxu0 %v10692_v51  ;;  %8476 = vmatpush1.bf16.msra.mxu1 %v10694_v20  ;;  %v10740_v51 = vcombine.low %v5546_v34, %v5550_v37  ;;  %v10742_v20 = vcombine.low %v5547_v39, %v5551_v32  ;;  %v5088_v34 = vld [vmem:[#allocation9 + $0x170] sm:$0xff]  ;;  %v5085_v37 = vld [vmem:[#allocation9 + $0x158] sm:$0xff]  ;;  %v10272_v32 = vcombine.low %v5076_v18, %v5080_v52 }
 0x47a   :  { %8305 = vmatprep.subr.bf16.mxu0 %v10701_v53  ;;  %8477 = vmatprep.subr.bf16.mxu1 %v10703_v57  ;;  %v10241_v53 = vcombine.high %v5044_v46, %v5048_v47  ;;  %v10243_v57 = vcombine.high %v5045_v22, %v5049_v49  ;;  %v5089_v39 = vld [vmem:[#allocation9 + $0x178] sm:$0xff] }
 0x47d   :  { %8306 = vmatpush1.bf16.msra.mxu0 %v10700_v3  ;;  %8478 = vmatpush1.bf16.msra.mxu1 %v10702_v7  ;;  %v10240_v3 = vcombine.low %v5044_v46, %v5048_v47  ;;  %v10242_v7 = vcombine.low %v5045_v22, %v5049_v49  ;;  %v5096_v46 = vld [vmem:[#allocation9 + $0x1b0] sm:$0xff]  ;;  %v5093_v47 = vld [vmem:[#allocation9 + $0x198] sm:$0xff] }
 0x47e   :  { %8307 = vmatprep.subr.bf16.mxu0 %v10709_v9  ;;  %8479 = vmatprep.subr.bf16.mxu1 %v10711_v58  ;;  %v10249_v9 = vcombine.high %v5052_v60, %v5056_v61  ;;  %v10251_v58 = vcombine.high %v5053_v27, %v5057_v50  ;;  %v5097_v22 = vld [vmem:[#allocation9 + $0x1b8] sm:$0xff] }
 0x481   :  { %8308 = vmatpush1.bf16.msra.mxu0 %v10708_v56  ;;  %8480 = vmatpush1.bf16.msra.mxu1 %v10710_v10  ;;  %v10248_v56 = vcombine.low %v5052_v60, %v5056_v61  ;;  %v10250_v10 = vcombine.low %v5053_v27, %v5057_v50  ;;  %v5104_v60 = vld [vmem:[#allocation9 + $0x1f0] sm:$0xff]  ;;  %v5101_v61 = vld [vmem:[#allocation9 + $0x1d8] sm:$0xff] }
 0x482   :  { %8309 = vmatprep.subr.bf16.mxu0 %v10717_v4  ;;  %8481 = vmatprep.subr.bf16.mxu1 %v10719_v5  ;;  %v10257_v4 = vcombine.high %v5060_v11, %v5064_v14  ;;  %v10259_v5 = vcombine.high %v5061_v15, %v5065_v54  ;;  %v5105_v27 = vld [vmem:[#allocation9 + $0x1f8] sm:$0xff] }
 0x485   :  { %8310 = vmatpush1.bf16.msra.mxu0 %v10716_v26  ;;  %8482 = vmatpush1.bf16.msra.mxu1 %v10718_v28  ;;  %v10256_v26 = vcombine.low %v5060_v11, %v5064_v14  ;;  %v10258_v28 = vcombine.low %v5061_v15, %v5065_v54  ;;  %v5112_v11 = vld [vmem:[#allocation9 + $0x230] sm:$0xff]  ;;  %v5109_v14 = vld [vmem:[#allocation9 + $0x218] sm:$0xff] }
 0x486   :  { %8311 = vmatprep.subr.bf16.mxu0 %v10725_v48  ;;  %8483 = vmatprep.subr.bf16.mxu1 %v10727_v45  ;;  %v10265_v48 = vcombine.high %v5068_v12, %v5072_v6  ;;  %v10267_v45 = vcombine.high %v5069_v8, %v5073_v13  ;;  %v5113_v15 = vld [vmem:[#allocation9 + $0x238] sm:$0xff]  ;;  %v5120_v12 = vld [vmem:[#allocation9 + $0x270] sm:$0xff] }
 0x487   :  { %v5117_v6 = vld [vmem:[#allocation9 + $0x258] sm:$0xff] }
 0x489   :  { %8312 = vmatpush1.bf16.msra.mxu0 %v10724_v31  ;;  %8484 = vmatpush1.bf16.msra.mxu1 %v10726_v19  ;;  %v10266_v31 = vcombine.low %v5069_v8, %v5073_v13  ;;  %v10273_v19 = vcombine.high %v5076_v18, %v5080_v52  ;;  %v5121_v8 = vld [vmem:[#allocation9 + $0x278] sm:$0xff]  ;;  %v5128_v18 = vld [vmem:[#allocation9 + $0x2b0] sm:$0xff] }
 0x48a   :  { %8313 = vmatprep.subr.bf16.mxu0 %v10733_v25  ;;  %8485 = vmatprep.subr.bf16.mxu1 %v10735_v33  ;;  %v5084_v33 = vld [vmem:[#allocation9 + $0x150] sm:$0xff]  ;;  %v5125_v52 = vld [vmem:[#allocation9 + $0x298] sm:$0xff] }
 0x48b   :  { %v10280_v49 = vcombine.low %v5084_v33, %v5088_v34 }
 0x48d   :  { %8314 = vmatpush1.bf16.msra.mxu0 %v10732_v42  ;;  %8486 = vmatpush1.bf16.msra.mxu1 %v10734_v43  ;;  %v10281_v43 = vcombine.high %v5084_v33, %v5088_v34  ;;  %v5136_v33 = vld [vmem:[#allocation9 + $0x2f0] sm:$0xff]  ;;  %v5133_v34 = vld [vmem:[#allocation9 + $0x2d8] sm:$0xff] }
 0x48e   :  { %8315 = vmatprep.subr.bf16.mxu0 %v10741_v44  ;;  %8487 = vmatprep.subr.bf16.mxu1 %v10743_v62  ;;  %v10283_v44 = vcombine.high %v5085_v37, %v5089_v39  ;;  %v5092_v62 = vld [vmem:[#allocation9 + $0x190] sm:$0xff] }
 0x48f   :  { %v10288_v50 = vcombine.low %v5092_v62, %v5096_v46 }
 0x491   :  { %8316 = vmatpush1.bf16.msra.mxu0 %v10740_v51  ;;  %8488 = vmatpush1.bf16.msra.mxu1 %v10742_v20  ;;  %v10282_v51 = vcombine.low %v5085_v37, %v5089_v39  ;;  %v10289_v20 = vcombine.high %v5092_v62, %v5096_v46  ;;  %v5137_v37 = vld [vmem:[#allocation9 + $0x2f8] sm:$0xff]  ;;  %v5144_v62 = vld [vmem:[#allocation9 + $0x330] sm:$0xff] }
 0x492   :  { %8500 = vmatprep.subr.bf16.mxu0 %v10241_v53  ;;  %8672 = vmatprep.subr.bf16.mxu1 %v10243_v57  ;;  %v10291_v53 = vcombine.high %v5093_v47, %v5097_v22  ;;  %v5100_v57 = vld [vmem:[#allocation9 + $0x1d0] sm:$0xff]  ;;  %v5141_v46 = vld [vmem:[#allocation9 + $0x318] sm:$0xff] }
 0x493   :  { %v10296_v54 = vcombine.low %v5100_v57, %v5104_v60 }
 0x494   :  { %8318 = vmatmul.mubr.bf16.vlgmr.msra.gmra.mrb[16].mxu0 %v11704_v16  ;;  %8490 = vmatmul.mubr.bf16.vlgmr.msra.gmra.mrb[16].mxu1 %v11704_v16 }
 0x495   :  { %8501 = vmatpush1.bf16.msra.mxu0 %v10240_v3  ;;  %8532 = vmatprep.mubr.bf16.mxu0 %v11670_v1  ;;  %v10290_v3 = vcombine.low %v5093_v47, %v5097_v22  ;;  %v5145_v47 = vld [vmem:[#allocation9 + $0x338] sm:$0xff] }
 0x496   :  { %8673 = vmatpush1.bf16.msra.mxu1 %v10242_v7  ;;  %8704 = vmatprep.mubr.bf16.mxu1 %v11670_v1  ;;  %v5077_v1 = vld [vmem:[#allocation9 + $0x118] sm:$0xff]  ;;  %v10297_v7 = vcombine.high %v5100_v57, %v5104_v60  ;;  %v5152_v57 = vld [vmem:[#allocation9 + $0x370] sm:$0xff] }
 0x497   :  { %8502 = vmatprep.subr.bf16.mxu0 %v10249_v9  ;;  %8674 = vmatprep.subr.bf16.mxu1 %v10251_v58  ;;  %v10275_v25 = vcombine.high %v5077_v1, %v5081_v41  ;;  %v10274_v42 = vcombine.low %v5077_v1, %v5081_v41  ;;  %v10299_v9 = vcombine.high %v5101_v61, %v5105_v27  ;;  %v5108_v58 = vld [vmem:[#allocation9 + $0x210] sm:$0xff]  ;;  %v5129_v1 = vld [vmem:[#allocation9 + $0x2b8] sm:$0xff] }
 0x498   :  { %v10304_v13 = vcombine.low %v5108_v58, %v5112_v11  ;;  %v5149_v60 = vld [vmem:[#allocation9 + $0x358] sm:$0xff] }
 0x499   :  { %8503 = vmatpush1.bf16.msra.mxu0 %v10248_v56  ;;  %v10298_v56 = vcombine.low %v5101_v61, %v5105_v27  ;;  %v5153_v61 = vld [vmem:[#allocation9 + $0x378] sm:$0xff] }
 0x49a   :  { %8675 = vmatpush1.bf16.msra.mxu1 %v10250_v10  ;;  %8504 = vmatprep.subr.bf16.mxu0 %v10257_v4  ;;  %v10305_v10 = vcombine.high %v5108_v58, %v5112_v11  ;;  %v10307_v4 = vcombine.high %v5109_v14, %v5113_v15  ;;  %v5160_v58 = vld [vmem:[#allocation9 + $0x3b0] sm:$0xff]  ;;  %v5157_v11 = vld [vmem:[#allocation9 + $0x398] sm:$0xff] }
 0x49b   :  { %8676 = vmatprep.subr.bf16.mxu1 %v10259_v5  ;;  %v5116_v5 = vld [vmem:[#allocation9 + $0x250] sm:$0xff] }
 0x49c   :  { %v10312_v41 = vcombine.low %v5116_v5, %v5120_v12 }
 0x49d   :  { %8505 = vmatpush1.bf16.msra.mxu0 %v10256_v26  ;;  %v10306_v26 = vcombine.low %v5109_v14, %v5113_v15  ;;  %v5161_v14 = vld [vmem:[#allocation9 + $0x3b8] sm:$0xff] }
 0x49e   :  { %8677 = vmatpush1.bf16.msra.mxu1 %v10258_v28  ;;  %8506 = vmatprep.subr.bf16.mxu0 %v10265_v48  ;;  %v10313_v28 = vcombine.high %v5116_v5, %v5120_v12  ;;  %v10315_v48 = vcombine.high %v5117_v6, %v5121_v8  ;;  %v5168_v5 = vld [vmem:[#allocation9 + $0x3f0] sm:$0xff]  ;;  %v5165_v12 = vld [vmem:[#allocation9 + $0x3d8] sm:$0xff] }
 0x49f   :  { %8678 = vmatprep.subr.bf16.mxu1 %v10267_v45  ;;  %v5124_v45 = vld [vmem:[#allocation9 + $0x290] sm:$0xff] }
 0x4a0   :  { %v10320_v39 = vcombine.low %v5124_v45, %v5128_v18 }
 0x4a1   :  { %8507 = vmatpush1.bf16.msra.mxu0 %v10264_v30  ;;  %v10314_v30 = vcombine.low %v5117_v6, %v5121_v8  ;;  %v5169_v6 = vld [vmem:[#allocation9 + $0x3f8] sm:$0xff] }
 0x4a2   :  { %8679 = vmatpush1.bf16.msra.mxu1 %v10266_v31  ;;  %8508 = vmatprep.subr.bf16.mxu0 %v10273_v19  ;;  %v10321_v31 = vcombine.high %v5124_v45, %v5128_v18  ;;  %v10323_v19 = vcombine.high %v5125_v52, %v5129_v1  ;;  %v5176_v45 = vld [vmem:[#allocation9 + $0x430] sm:$0xff]  ;;  %v5173_v18 = vld [vmem:[#allocation9 + $0x418] sm:$0xff] }
 0x4a3   :  { %8680 = vmatprep.subr.bf16.mxu1 %v10275_v25  ;;  %v5132_v25 = vld [vmem:[#allocation9 + $0x2d0] sm:$0xff] }
 0x4a4   :  { %v10328_v22 = vcombine.low %v5132_v25, %v5136_v33 }
 0x4a5   :  { %8509 = vmatpush1.bf16.msra.mxu0 %v10272_v32  ;;  %v10322_v32 = vcombine.low %v5125_v52, %v5129_v1  ;;  %v5177_v52 = vld [vmem:[#allocation9 + $0x438] sm:$0xff] }
 0x4a6   :  { %8681 = vmatpush1.bf16.msra.mxu1 %v10274_v42  ;;  %8510 = vmatprep.subr.bf16.mxu0 %v10281_v43  ;;  %v10329_v42 = vcombine.high %v5132_v25, %v5136_v33  ;;  %v10331_v43 = vcombine.high %v5133_v34, %v5137_v37  ;;  %v5184_v25 = vld [vmem:[#allocation9 + $0x470] sm:$0xff] }
 0x4a7   :  { %8682 = vmatprep.subr.bf16.mxu1 %v10283_v44  ;;  %v5140_v44 = vld [vmem:[#allocation9 + $0x310] sm:$0xff] }
 0x4a8   :  { %v10336_v27 = vcombine.low %v5140_v44, %v5144_v62 }
 0x4a9   :  { %8511 = vmatpush1.bf16.msra.mxu0 %v10280_v49  ;;  %v10330_v49 = vcombine.low %v5133_v34, %v5137_v37  ;;  %v5181_v34 = vld [vmem:[#allocation9 + $0x458] sm:$0xff] }
 0x4aa   :  { %8683 = vmatpush1.bf16.msra.mxu1 %v10282_v51  ;;  %8512 = vmatprep.subr.bf16.mxu0 %v10289_v20  ;;  %v10337_v51 = vcombine.high %v5140_v44, %v5144_v62  ;;  %v10339_v20 = vcombine.high %v5141_v46, %v5145_v47  ;;  %v5185_v37 = vld [vmem:[#allocation9 + $0x478] sm:$0xff] }
 0x4ab   :  { %8684 = vmatprep.subr.bf16.mxu1 %v10291_v53  ;;  %v5148_v53 = vld [vmem:[#allocation9 + $0x350] sm:$0xff]  ;;  %v10379_v44 = vcombine.high %v5181_v34, %v5185_v37  ;;  %v5189_v62 = vld [vmem:[#allocation9 + $0x498] sm:$0xff] }
 0x4ac   :  { %v10344_v15 = vcombine.low %v5148_v53, %v5152_v57 }
 0x4ad   :  { %8513 = vmatpush1.bf16.msra.mxu0 %v10288_v50  ;;  %v10338_v50 = vcombine.low %v5141_v46, %v5145_v47  ;;  %v5193_v46 = vld [vmem:[#allocation9 + $0x4b8] sm:$0xff] }
 0x4ae   :  { %8685 = vmatpush1.bf16.msra.mxu1 %v10290_v3  ;;  %8514 = vmatprep.subr.bf16.mxu0 %v10297_v7  ;;  %v10345_v3 = vcombine.high %v5148_v53, %v5152_v57  ;;  %v10347_v7 = vcombine.high %v5149_v60, %v5153_v61  ;;  %v5200_v53 = vld [vmem:[#allocation9 + $0x4f0] sm:$0xff]  ;;  %v5197_v57 = vld [vmem:[#allocation9 + $0x4d8] sm:$0xff] }
 0x4af   :  { %8686 = vmatprep.subr.bf16.mxu1 %v10299_v9  ;;  %v5156_v9 = vld [vmem:[#allocation9 + $0x390] sm:$0xff] }
 0x4b0   :  { %v10352_v8 = vcombine.low %v5156_v9, %v5160_v58 }
 0x4b1   :  { %8515 = vmatpush1.bf16.msra.mxu0 %v10296_v54  ;;  %v10346_v54 = vcombine.low %v5149_v60, %v5153_v61  ;;  %v5201_v60 = vld [vmem:[#allocation9 + $0x4f8] sm:$0xff] }
 0x4b2   :  { %8687 = vmatpush1.bf16.msra.mxu1 %v10298_v56  ;;  %8516 = vmatprep.subr.bf16.mxu0 %v10305_v10  ;;  %v10353_v56 = vcombine.high %v5156_v9, %v5160_v58  ;;  %v10355_v10 = vcombine.high %v5157_v11, %v5161_v14  ;;  %v5205_v9 = vld [vmem:[#allocation9 + $0x518] sm:$0xff] }
 0x4b3   :  { %8688 = vmatprep.subr.bf16.mxu1 %v10307_v4  ;;  %v5164_v4 = vld [vmem:[#allocation9 + $0x3d0] sm:$0xff]  ;;  %v5209_v58 = vld [vmem:[#allocation9 + $0x538] sm:$0xff] }
 0x4b4   :  { %v10360_v1 = vcombine.low %v5164_v4, %v5168_v5 }
 0x4b5   :  { %8517 = vmatpush1.bf16.msra.mxu0 %v10304_v13  ;;  %v10354_v13 = vcombine.low %v5157_v11, %v5161_v14  ;;  %v10394_v11 = vcombine.low %v5197_v57, %v5201_v60 }
 0x4b6   :  { %8689 = vmatpush1.bf16.msra.mxu1 %v10306_v26  ;;  %8518 = vmatprep.subr.bf16.mxu0 %v10313_v28  ;;  %v10361_v26 = vcombine.high %v5164_v4, %v5168_v5  ;;  %v10363_v28 = vcombine.high %v5165_v12, %v5169_v6  ;;  %v5217_v4 = vld [vmem:[#allocation9 + $0x578] sm:$0xff] }
 0x4b7   :  { %8690 = vmatprep.subr.bf16.mxu1 %v10315_v48  ;;  %v5172_v48 = vld [vmem:[#allocation9 + $0x410] sm:$0xff] }
 0x4b8   :  { %v10368_v33 = vcombine.low %v5172_v48, %v5176_v45 }
 0x4b9   :  { %8519 = vmatpush1.bf16.msra.mxu0 %v10312_v41  ;;  %v10362_v41 = vcombine.low %v5165_v12, %v5169_v6  ;;  %v10402_v12 = vcombine.low %v5205_v9, %v5209_v58 }
 0x4ba   :  { %8691 = vmatpush1.bf16.msra.mxu1 %v10314_v30  ;;  %8520 = vmatprep.subr.bf16.mxu0 %v10321_v31  ;;  %v10369_v30 = vcombine.high %v5172_v48, %v5176_v45  ;;  %v10371_v31 = vcombine.high %v5173_v18, %v5177_v52  ;;  %v5225_v48 = vld [vmem:[#allocation9 + $0x5b8] sm:$0xff] }
 0x4bb   :  { %8692 = vmatprep.subr.bf16.mxu1 %v10323_v19  ;;  %v5180_v19 = vld [vmem:[#allocation9 + $0x450] sm:$0xff] }
 0x4bc   :  { %v10376_v47 = vcombine.low %v5180_v19, %v5184_v25 }
 0x4bd   :  { %8521 = vmatpush1.bf16.msra.mxu0 %v10320_v39  ;;  %v10370_v39 = vcombine.low %v5173_v18, %v5177_v52 }
 0x4be   :  { %8693 = vmatpush1.bf16.msra.mxu1 %v10322_v32  ;;  %8522 = vmatprep.subr.bf16.mxu0 %v10329_v42  ;;  %v10377_v32 = vcombine.high %v5180_v19, %v5184_v25  ;;  %v5188_v42 = vld [vmem:[#allocation9 + $0x490] sm:$0xff]  ;;  %v5233_v19 = vld [vmem:[#allocation9 + $0x5f8] sm:$0xff] }
 0x4bf   :  { %8694 = vmatprep.subr.bf16.mxu1 %v10331_v43  ;;  %v5192_v43 = vld [vmem:[#allocation9 + $0x4b0] sm:$0xff] }
 0x4c0   :  { %v10384_v61 = vcombine.low %v5188_v42, %v5192_v43 }
 0x4c1   :  { %8523 = vmatpush1.bf16.msra.mxu0 %v10328_v22  ;;  %v10378_v22 = vcombine.low %v5181_v34, %v5185_v37 }
 0x4c2   :  { %8695 = vmatpush1.bf16.msra.mxu1 %v10330_v49  ;;  %8524 = vmatprep.subr.bf16.mxu0 %v10337_v51  ;;  %v10385_v49 = vcombine.high %v5188_v42, %v5192_v43  ;;  %v10387_v51 = vcombine.high %v5189_v62, %v5193_v46  ;;  %v5237_v42 = vld [vmem:[#allocation9 + $0x618] sm:$0xff] }
 0x4c3   :  { %8696 = vmatprep.subr.bf16.mxu1 %v10339_v20  ;;  %v5196_v20 = vld [vmem:[#allocation9 + $0x4d0] sm:$0xff]  ;;  %v5241_v43 = vld [vmem:[#allocation9 + $0x638] sm:$0xff] }
 0x4c5   :  { %8525 = vmatpush1.bf16.msra.mxu0 %v10336_v27  ;;  %v10393_v27 = vcombine.high %v5196_v20, %v5200_v53 }
 0x4c6   :  { %8697 = vmatpush1.bf16.msra.mxu1 %v10338_v50  ;;  %8526 = vmatprep.subr.bf16.mxu0 %v10345_v3  ;;  %v10395_v50 = vcombine.high %v5197_v57, %v5201_v60  ;;  %v5204_v3 = vld [vmem:[#allocation9 + $0x510] sm:$0xff]  ;;  %v10434_v57 = vcombine.low %v5237_v42, %v5241_v43 }
 0x4c7   :  { %8698 = vmatprep.subr.bf16.mxu1 %v10347_v7  ;;  %v5208_v7 = vld [vmem:[#allocation9 + $0x530] sm:$0xff] }
 0x4c8   :  { %v10401_v14 = vcombine.high %v5204_v3, %v5208_v7  ;;  %v10400_v5 = vcombine.low %v5204_v3, %v5208_v7  ;;  %v5257_v3 = vld [vmem:[#allocation9 + $0x6b8] sm:$0xff] }
 0x4c9   :  { %8527 = vmatpush1.bf16.msra.mxu0 %v10344_v15  ;;  %v10403_v15 = vcombine.high %v5205_v9, %v5209_v58 }
 0x4ca   :  { %8699 = vmatpush1.bf16.msra.mxu1 %v10346_v54  ;;  %8528 = vmatprep.subr.bf16.mxu0 %v10353_v56  ;;  %v5212_v54 = vld [vmem:[#allocation9 + $0x550] sm:$0xff] }
 0x4cb   :  { %8700 = vmatprep.subr.bf16.mxu1 %v10355_v10  ;;  %v5216_v56 = vld [vmem:[#allocation9 + $0x570] sm:$0xff]  ;;  %v5213_v10 = vld [vmem:[#allocation9 + $0x558] sm:$0xff] }
 0x4cc   :  { %v10409_v6 = vcombine.high %v5212_v54, %v5216_v56  ;;  %v10408_v45 = vcombine.low %v5212_v54, %v5216_v56  ;;  %v10410_v18 = vcombine.low %v5213_v10, %v5217_v4  ;;  %v5265_v54 = vld [vmem:[#allocation9 + $0x6f8] sm:$0xff] }
 0x4cd   :  { %8529 = vmatpush1.bf16.msra.mxu0 %v10352_v8  ;;  %v10411_v8 = vcombine.high %v5213_v10, %v5217_v4 }
 0x4ce   :  { %8701 = vmatpush1.bf16.msra.mxu1 %v10354_v13  ;;  %8530 = vmatprep.subr.bf16.mxu0 %v10361_v26  ;;  %v5220_v13 = vld [vmem:[#allocation9 + $0x590] sm:$0xff] }
 0x4cf   :  { %8702 = vmatprep.subr.bf16.mxu1 %v10363_v28  ;;  %v5224_v26 = vld [vmem:[#allocation9 + $0x5b0] sm:$0xff]  ;;  %v5221_v28 = vld [vmem:[#allocation9 + $0x598] sm:$0xff] }
 0x4d0   :  { %v10417_v52 = vcombine.high %v5220_v13, %v5224_v26  ;;  %v10416_v25 = vcombine.low %v5220_v13, %v5224_v26  ;;  %v5273_v13 = vld [vmem:[#allocation9 + $0x738] sm:$0xff] }
 0x4d1   :  { %8531 = vmatpush1.bf16.msra.mxu0 %v10360_v1  ;;  %v10419_v1 = vcombine.high %v5221_v28, %v5225_v48 }
 0x4d2   :  { %8703 = vmatpush1.bf16.msra.mxu1 %v10362_v41  ;;  %8543 = vmatprep.subr.bf16.mxu0 %v10369_v30  ;;  %v5228_v41 = vld [vmem:[#allocation9 + $0x5d0] sm:$0xff] }
 0x4d3   :  { %8715 = vmatprep.subr.bf16.mxu1 %v10371_v31  ;;  %v5232_v30 = vld [vmem:[#allocation9 + $0x5f0] sm:$0xff]  ;;  %v5229_v31 = vld [vmem:[#allocation9 + $0x5d8] sm:$0xff] }
 0x4d4   :  { %8533 = vmatmul.mubr.bf16.vlgmr.msra.gmra.mrb[20].mxu0 %v11663_v63  ;;  %v10425_v34 = vcombine.high %v5228_v41, %v5232_v30  ;;  %v10427_v37 = vcombine.high %v5229_v31, %v5233_v19 }
 0x4d5   :  { %8705 = vmatmul.mubr.bf16.vlgmr.msra.gmra.mrb[20].mxu1 %v11663_v63  ;;  %8544 = vmatpush1.bf16.msra.mxu0 %v10368_v33  ;;  %v10386_v63 = vcombine.low %v5189_v62, %v5193_v46  ;;  %v10418_v33 = vcombine.low %v5221_v28, %v5225_v48  ;;  %v10426_v62 = vcombine.low %v5229_v31, %v5233_v19 }
 0x4d6   :  { %8575 = vmatprep.mubr.bf16.mxu0 %v11672_v2  ;;  %8716 = vmatpush1.bf16.msra.mxu1 %v10370_v39  ;;  %v5236_v39 = vld [vmem:[#allocation9 + $0x610] sm:$0xff] }
 0x4d7   :  { %8747 = vmatprep.mubr.bf16.mxu1 %v11672_v2  ;;  %8545 = vmatprep.subr.bf16.mxu0 %v10377_v32  ;;  %v10392_v2 = vcombine.low %v5196_v20, %v5200_v53  ;;  %v5240_v32 = vld [vmem:[#allocation9 + $0x630] sm:$0xff]  ;;  %v5249_v20 = vld [vmem:[#allocation9 + $0x678] sm:$0xff] }
 0x4d8   :  { %8717 = vmatprep.subr.bf16.mxu1 %v10379_v44  ;;  %v10424_v44 = vcombine.low %v5228_v41, %v5232_v30  ;;  %v10433_v46 = vcombine.high %v5236_v39, %v5240_v32  ;;  %v10432_v53 = vcombine.low %v5236_v39, %v5240_v32  ;;  %v5281_v41 = vld [vmem:[#allocation9 + $0x778] sm:$0xff] }
 0x4d9   :  { %8546 = vmatpush1.bf16.msra.mxu0 %v10376_v47  ;;  %v10435_v47 = vcombine.high %v5237_v42, %v5241_v43  ;;  %v5289_v39 = vld [vmem:[#allocation9 + $0x7b8] sm:$0xff] }
 0x4da   :  { %8718 = vmatpush1.bf16.msra.mxu1 %v10378_v22  ;;  %8547 = vmatprep.subr.bf16.mxu0 %v10385_v49  ;;  %v5244_v22 = vld [vmem:[#allocation9 + $0x650] sm:$0xff] }
 0x4db   :  { %8719 = vmatprep.subr.bf16.mxu1 %v10387_v51  ;;  %v5248_v49 = vld [vmem:[#allocation9 + $0x670] sm:$0xff]  ;;  %v5245_v51 = vld [vmem:[#allocation9 + $0x658] sm:$0xff] }
 0x4dc   :  { %v10441_v60 = vcombine.high %v5244_v22, %v5248_v49  ;;  %v10440_v7 = vcombine.low %v5244_v22, %v5248_v49  ;;  %v10442_v9 = vcombine.low %v5245_v51, %v5249_v20  ;;  %v5297_v22 = vld [vmem:[#allocation9 + $0x7f8] sm:$0xff] }
 0x4dd   :  { %8548 = vmatpush1.bf16.msra.mxu0 %v10384_v61  ;;  %v10443_v61 = vcombine.high %v5245_v51, %v5249_v20 }
 0x4de   :  { %8720 = vmatpush1.bf16.msra.mxu1 %v10386_v63  ;;  %8549 = vmatprep.subr.bf16.mxu0 %v10393_v27  ;;  %v5252_v63 = vld [vmem:[#allocation9 + $0x690] sm:$0xff] }
 0x4df   :  { %8721 = vmatprep.subr.bf16.mxu1 %v10395_v50  ;;  %v5256_v27 = vld [vmem:[#allocation9 + $0x6b0] sm:$0xff]  ;;  %v5253_v50 = vld [vmem:[#allocation9 + $0x698] sm:$0xff] }
 0x4e0   :  { %v10449_v58 = vcombine.high %v5252_v63, %v5256_v27  ;;  %v10448_v56 = vcombine.low %v5252_v63, %v5256_v27  ;;  %v10450_v10 = vcombine.low %v5253_v50, %v5257_v3  ;;  %v5305_v63 = vld [vmem:[#allocation9 + $0x838] sm:$0xff] }
 0x4e1   :  { %8550 = vmatpush1.bf16.msra.mxu0 %v10392_v2  ;;  %v10451_v2 = vcombine.high %v5253_v50, %v5257_v3 }
 0x4e2   :  { %8722 = vmatpush1.bf16.msra.mxu1 %v10394_v11  ;;  %8551 = vmatprep.subr.bf16.mxu0 %v10401_v14  ;;  %v5260_v11 = vld [vmem:[#allocation9 + $0x6d0] sm:$0xff] }
 0x4e3   :  { %8723 = vmatprep.subr.bf16.mxu1 %v10403_v15  ;;  %v5264_v14 = vld [vmem:[#allocation9 + $0x6f0] sm:$0xff]  ;;  %v5261_v15 = vld [vmem:[#allocation9 + $0x6d8] sm:$0xff] }
 0x4e4   :  { %v10457_v4 = vcombine.high %v5260_v11, %v5264_v14  ;;  %v10456_v26 = vcombine.low %v5260_v11, %v5264_v14  ;;  %v10458_v28 = vcombine.low %v5261_v15, %v5265_v54  ;;  %v5309_v11 = vld [vmem:[#allocation9 + $0x858] sm:$0xff] }
 0x4e5   :  { %8552 = vmatpush1.bf16.msra.mxu0 %v10400_v5  ;;  %v10459_v5 = vcombine.high %v5261_v15, %v5265_v54  ;;  %v5313_v14 = vld [vmem:[#allocation9 + $0x878] sm:$0xff] }
 0x4e6   :  { %8724 = vmatpush1.bf16.msra.mxu1 %v10402_v12  ;;  %8553 = vmatprep.subr.bf16.mxu0 %v10409_v6  ;;  %v5268_v12 = vld [vmem:[#allocation9 + $0x710] sm:$0xff] }
 0x4e7   :  { %8725 = vmatprep.subr.bf16.mxu1 %v10411_v8  ;;  %v5272_v6 = vld [vmem:[#allocation9 + $0x730] sm:$0xff]  ;;  %v5269_v8 = vld [vmem:[#allocation9 + $0x718] sm:$0xff] }
 0x4e8   :  { %v10465_v48 = vcombine.high %v5268_v12, %v5272_v6  ;;  %v10464_v30 = vcombine.low %v5268_v12, %v5272_v6  ;;  %v10466_v31 = vcombine.low %v5269_v8, %v5273_v13  ;;  %v5321_v12 = vld [vmem:[#allocation9 + $0x8b8] sm:$0xff] }
 0x4e9   :  { %8554 = vmatpush1.bf16.msra.mxu0 %v10408_v45  ;;  %v10467_v45 = vcombine.high %v5269_v8, %v5273_v13  ;;  %v10506_v8 = vcombine.low %v5309_v11, %v5313_v14 }
 0x4ea   :  { %8726 = vmatpush1.bf16.msra.mxu1 %v10410_v18  ;;  %8555 = vmatprep.subr.bf16.mxu0 %v10417_v52  ;;  %v5276_v18 = vld [vmem:[#allocation9 + $0x750] sm:$0xff] }
 0x4eb   :  { %8727 = vmatprep.subr.bf16.mxu1 %v10419_v1  ;;  %v5280_v52 = vld [vmem:[#allocation9 + $0x770] sm:$0xff]  ;;  %v5277_v1 = vld [vmem:[#allocation9 + $0x758] sm:$0xff] }
 0x4ec   :  { %v10473_v19 = vcombine.high %v5276_v18, %v5280_v52  ;;  %v10472_v32 = vcombine.low %v5276_v18, %v5280_v52  ;;  %v10474_v42 = vcombine.low %v5277_v1, %v5281_v41  ;;  %v5329_v18 = vld [vmem:[#allocation9 + $0x8f8] sm:$0xff] }
 0x4ed   :  { %8556 = vmatpush1.bf16.msra.mxu0 %v10416_v25  ;;  %v10475_v25 = vcombine.high %v5277_v1, %v5281_v41 }
 0x4ee   :  { %8728 = vmatpush1.bf16.msra.mxu1 %v10418_v33  ;;  %8557 = vmatprep.subr.bf16.mxu0 %v10425_v34  ;;  %v5284_v33 = vld [vmem:[#allocation9 + $0x790] sm:$0xff] }
 0x4ef   :  { %8729 = vmatprep.subr.bf16.mxu1 %v10427_v37  ;;  %v5288_v34 = vld [vmem:[#allocation9 + $0x7b0] sm:$0xff]  ;;  %v5285_v37 = vld [vmem:[#allocation9 + $0x798] sm:$0xff] }
 0x4f0   :  { %v10481_v43 = vcombine.high %v5284_v33, %v5288_v34  ;;  %v10480_v49 = vcombine.low %v5284_v33, %v5288_v34  ;;  %v10482_v51 = vcombine.low %v5285_v37, %v5289_v39 }
 0x4f1   :  { %8558 = vmatpush1.bf16.msra.mxu0 %v10424_v44  ;;  %v10483_v44 = vcombine.high %v5285_v37, %v5289_v39  ;;  %v5340_v39 = vld [vmem:[#allocation9 + $0x950] sm:$0xff] }
 0x4f2   :  { %8730 = vmatpush1.bf16.msra.mxu1 %v10426_v62  ;;  %8559 = vmatprep.subr.bf16.mxu0 %v10433_v46  ;;  %v5292_v62 = vld [vmem:[#allocation9 + $0x7d0] sm:$0xff] }
 0x4f3   :  { %8731 = vmatprep.subr.bf16.mxu1 %v10435_v47  ;;  %v5296_v46 = vld [vmem:[#allocation9 + $0x7f0] sm:$0xff]  ;;  %v5293_v47 = vld [vmem:[#allocation9 + $0x7d8] sm:$0xff] }
 0x4f4   :  { %v10489_v20 = vcombine.high %v5292_v62, %v5296_v46  ;;  %v10488_v27 = vcombine.low %v5292_v62, %v5296_v46  ;;  %v10490_v50 = vcombine.low %v5293_v47, %v5297_v22 }
 0x4f5   :  { %8560 = vmatpush1.bf16.msra.mxu0 %v10432_v53  ;;  %v10491_v53 = vcombine.high %v5293_v47, %v5297_v22  ;;  %v5348_v22 = vld [vmem:[#allocation9 + $0x990] sm:$0xff] }
 0x4f6   :  { %8732 = vmatpush1.bf16.msra.mxu1 %v10434_v57  ;;  %8561 = vmatprep.subr.bf16.mxu0 %v10441_v60  ;;  %v5300_v57 = vld [vmem:[#allocation9 + $0x810] sm:$0xff] }
 0x4f7   :  { %8733 = vmatprep.subr.bf16.mxu1 %v10443_v61  ;;  %v5304_v60 = vld [vmem:[#allocation9 + $0x830] sm:$0xff]  ;;  %v5301_v61 = vld [vmem:[#allocation9 + $0x818] sm:$0xff] }
 0x4f8   :  { %v10497_v3 = vcombine.high %v5300_v57, %v5304_v60  ;;  %v10498_v15 = vcombine.low %v5301_v61, %v5305_v63 }
 0x4f9   :  { %8562 = vmatpush1.bf16.msra.mxu0 %v10440_v7  ;;  %v10499_v7 = vcombine.high %v5301_v61, %v5305_v63  ;;  %v5356_v63 = vld [vmem:[#allocation9 + $0x9d0] sm:$0xff] }
 0x4fa   :  { %8734 = vmatpush1.bf16.msra.mxu1 %v10442_v9  ;;  %8563 = vmatprep.subr.bf16.mxu0 %v10449_v58  ;;  %v5308_v9 = vld [vmem:[#allocation9 + $0x850] sm:$0xff] }
 0x4fb   :  { %8735 = vmatprep.subr.bf16.mxu1 %v10451_v2  ;;  %v5312_v58 = vld [vmem:[#allocation9 + $0x870] sm:$0xff]  ;;  %v10496_v2 = vcombine.low %v5300_v57, %v5304_v60 }
 0x4fc   :  { %v10505_v54 = vcombine.high %v5308_v9, %v5312_v58  ;;  %v10504_v6 = vcombine.low %v5308_v9, %v5312_v58 }
 0x4fd   :  { %8564 = vmatpush1.bf16.msra.mxu0 %v10448_v56  ;;  %v5316_v56 = vld [vmem:[#allocation9 + $0x890] sm:$0xff] }
 0x4fe   :  { %8736 = vmatpush1.bf16.msra.mxu1 %v10450_v10  ;;  %8565 = vmatprep.subr.bf16.mxu0 %v10457_v4  ;;  %v5320_v10 = vld [vmem:[#allocation9 + $0x8b0] sm:$0xff]  ;;  %v10507_v4 = vcombine.high %v5309_v11, %v5313_v14 }
 0x4ff   :  { %8737 = vmatprep.subr.bf16.mxu1 %v10459_v5  ;;  %v5317_v5 = vld [vmem:[#allocation9 + $0x898] sm:$0xff]  ;;  %v10513_v13 = vcombine.high %v5316_v56, %v5320_v10  ;;  %v10512_v52 = vcombine.low %v5316_v56, %v5320_v10  ;;  %v5364_v11 = vld [vmem:[#allocation9 + $0xa10] sm:$0xff] }
 0x500   :  { %v5368_v14 = vld [vmem:[#allocation9 + $0xa30] sm:$0xff] }
 0x501   :  { %8566 = vmatpush1.bf16.msra.mxu0 %v10456_v26  ;;  %v10515_v26 = vcombine.high %v5317_v5, %v5321_v12 }
 0x502   :  { %8738 = vmatpush1.bf16.msra.mxu1 %v10458_v28  ;;  %8567 = vmatprep.subr.bf16.mxu0 %v10465_v48  ;;  %v5324_v28 = vld [vmem:[#allocation9 + $0x8d0] sm:$0xff] }
 0x503   :  { %8739 = vmatprep.subr.bf16.mxu1 %v10467_v45  ;;  %v5328_v48 = vld [vmem:[#allocation9 + $0x8f0] sm:$0xff]  ;;  %v5325_v45 = vld [vmem:[#allocation9 + $0x8d8] sm:$0xff] }
 0x504   :  { %v10521_v1 = vcombine.high %v5324_v28, %v5328_v48  ;;  %v10523_v41 = vcombine.high %v5325_v45, %v5329_v18  ;;  %v10522_v33 = vcombine.low %v5325_v45, %v5329_v18  ;;  %v5380_v18 = vld [vmem:[#allocation9 + $0xa90] sm:$0xff] }
 0x505   :  { %8568 = vmatpush1.bf16.msra.mxu0 %v10464_v30  ;;  %v5332_v30 = vld [vmem:[#allocation9 + $0x910] sm:$0xff] }
 0x506   :  { %8740 = vmatpush1.bf16.msra.mxu1 %v10466_v31  ;;  %8569 = vmatprep.subr.bf16.mxu0 %v10473_v19  ;;  %v5336_v31 = vld [vmem:[#allocation9 + $0x930] sm:$0xff]  ;;  %v5333_v19 = vld [vmem:[#allocation9 + $0x918] sm:$0xff] }
 0x507   :  { %8741 = vmatprep.subr.bf16.mxu1 %v10475_v25  ;;  %v5337_v25 = vld [vmem:[#allocation9 + $0x938] sm:$0xff]  ;;  %v10529_v34 = vcombine.high %v5332_v30, %v5336_v31 }
 0x508   :  { %v10531_v37 = vcombine.high %v5333_v19, %v5337_v25  ;;  %v10530_v62 = vcombine.low %v5333_v19, %v5337_v25  ;;  %v5388_v25 = vld [vmem:[#allocation9 + $0xad0] sm:$0xff] }
 0x509   :  { %8570 = vmatpush1.bf16.msra.mxu0 %v10472_v32  ;;  %v5344_v32 = vld [vmem:[#allocation9 + $0x970] sm:$0xff] }
 0x50a   :  { %8742 = vmatpush1.bf16.msra.mxu1 %v10474_v42  ;;  %8571 = vmatprep.subr.bf16.mxu0 %v10481_v43  ;;  %v5341_v42 = vld [vmem:[#allocation9 + $0x958] sm:$0xff]  ;;  %v10537_v46 = vcombine.high %v5340_v39, %v5344_v32 }
 0x50b   :  { %8743 = vmatprep.subr.bf16.mxu1 %v10483_v44  ;;  %v5345_v43 = vld [vmem:[#allocation9 + $0x978] sm:$0xff]  ;;  %v10528_v44 = vcombine.low %v5332_v30, %v5336_v31 }
 0x50c   :  { %v10539_v47 = vcombine.high %v5341_v42, %v5345_v43  ;;  %v10538_v57 = vcombine.low %v5341_v42, %v5345_v43  ;;  %v5396_v43 = vld [vmem:[#allocation9 + $0xb10] sm:$0xff] }
 0x50d   :  { %8572 = vmatpush1.bf16.msra.mxu0 %v10480_v49  ;;  %v5352_v49 = vld [vmem:[#allocation9 + $0x9b0] sm:$0xff] }
 0x50e   :  { %8744 = vmatpush1.bf16.msra.mxu1 %v10482_v51  ;;  %8573 = vmatprep.subr.bf16.mxu0 %v10489_v20  ;;  %v5349_v51 = vld [vmem:[#allocation9 + $0x998] sm:$0xff]  ;;  %v10545_v60 = vcombine.high %v5348_v22, %v5352_v49 }
 0x50f   :  { %8745 = vmatprep.subr.bf16.mxu1 %v10491_v53  ;;  %v5353_v20 = vld [vmem:[#allocation9 + $0x9b8] sm:$0xff]  ;;  %v10536_v53 = vcombine.low %v5340_v39, %v5344_v32 }
 0x510   :  { %v10547_v61 = vcombine.high %v5349_v51, %v5353_v20  ;;  %v10546_v9 = vcombine.low %v5349_v51, %v5353_v20  ;;  %v5404_v20 = vld [vmem:[#allocation9 + $0xb50] sm:$0xff] }
 0x511   :  { %8574 = vmatpush1.bf16.msra.mxu0 %v10488_v27  ;;  %v5360_v27 = vld [vmem:[#allocation9 + $0x9f0] sm:$0xff] }
 0x512   :  { %8746 = vmatpush1.bf16.msra.mxu1 %v10490_v50  ;;  %8586 = vmatprep.subr.bf16.mxu0 %v10497_v3  ;;  %v5357_v50 = vld [vmem:[#allocation9 + $0x9d8] sm:$0xff]  ;;  %v10553_v58 = vcombine.high %v5356_v63, %v5360_v27  ;;  %v10552_v56 = vcombine.low %v5356_v63, %v5360_v27 }
 0x513   :  { %8758 = vmatprep.subr.bf16.mxu1 %v10499_v7  ;;  %v5361_v3 = vld [vmem:[#allocation9 + $0x9f8] sm:$0xff]  ;;  %v10544_v7 = vcombine.low %v5348_v22, %v5352_v49 }
 0x514   :  { %8576 = vmatmul.mubr.bf16.vlgmr.msra.gmra.mrb[20].mxu0 %v11665_v0  ;;  %v10554_v10 = vcombine.low %v5357_v50, %v5361_v3 }
 0x515   :  { %8748 = vmatmul.mubr.bf16.vlgmr.msra.gmra.mrb[20].mxu1 %v11665_v0  ;;  %8587 = vmatpush1.bf16.msra.mxu0 %v10496_v2  ;;  %v10514_v0 = vcombine.low %v5317_v5, %v5321_v12  ;;  %v10555_v2 = vcombine.high %v5357_v50, %v5361_v3  ;;  %v5372_v12 = vld [vmem:[#allocation9 + $0xa50] sm:$0xff] }
 0x516   :  { %8618 = vmatprep.mubr.bf16.mxu0 %v11709_v17  ;;  %8759 = vmatpush1.bf16.msra.mxu1 %v10498_v15  ;;  %v5365_v15 = vld [vmem:[#allocation9 + $0xa18] sm:$0xff]  ;;  %v5412_v3 = vld [vmem:[#allocation9 + $0xb90] sm:$0xff] }
 0x517   :  { %8790 = vmatprep.mubr.bf16.mxu1 %v11709_v17  ;;  %8588 = vmatprep.subr.bf16.mxu0 %v10505_v54  ;;  %v10520_v17 = vcombine.low %v5324_v28, %v5328_v48  ;;  %v5369_v54 = vld [vmem:[#allocation9 + $0xa38] sm:$0xff] }
 0x518   :  { %8760 = vmatprep.subr.bf16.mxu1 %v10507_v4  ;;  %v10561_v4 = vcombine.high %v5364_v11, %v5368_v14  ;;  %v10563_v5 = vcombine.high %v5365_v15, %v5369_v54  ;;  %v10562_v28 = vcombine.low %v5365_v15, %v5369_v54  ;;  %v5420_v54 = vld [vmem:[#allocation9 + $0xbd0] sm:$0xff] }
 0x519   :  { %8589 = vmatpush1.bf16.msra.mxu0 %v10504_v6  ;;  %v5376_v6 = vld [vmem:[#allocation9 + $0xa70] sm:$0xff] }
 0x51a   :  { %8761 = vmatpush1.bf16.msra.mxu1 %v10506_v8  ;;  %8590 = vmatprep.subr.bf16.mxu0 %v10513_v13  ;;  %v5373_v8 = vld [vmem:[#allocation9 + $0xa58] sm:$0xff]  ;;  %v10569_v48 = vcombine.high %v5372_v12, %v5376_v6 }
 0x51b   :  { %8762 = vmatprep.subr.bf16.mxu1 %v10515_v26  ;;  %v5377_v13 = vld [vmem:[#allocation9 + $0xa78] sm:$0xff]  ;;  %v10560_v26 = vcombine.low %v5364_v11, %v5368_v14 }
 0x51c   :  { %v10571_v45 = vcombine.high %v5373_v8, %v5377_v13  ;;  %v10570_v30 = vcombine.low %v5373_v8, %v5377_v13  ;;  %v5428_v13 = vld [vmem:[#allocation9 + $0xc10] sm:$0xff] }
 0x51d   :  { %8591 = vmatpush1.bf16.msra.mxu0 %v10512_v52  ;;  %v5384_v52 = vld [vmem:[#allocation9 + $0xab0] sm:$0xff] }
 0x51e   :  { %8763 = vmatpush1.bf16.msra.mxu1 %v10514_v0  ;;  %8592 = vmatprep.subr.bf16.mxu0 %v10521_v1  ;;  %v5381_v0 = vld [vmem:[#allocation9 + $0xa98] sm:$0xff]  ;;  %v10577_v31 = vcombine.high %v5380_v18, %v5384_v52 }
 0x51f   :  { %8764 = vmatprep.subr.bf16.mxu1 %v10523_v41  ;;  %v5385_v1 = vld [vmem:[#allocation9 + $0xab8] sm:$0xff]  ;;  %v10568_v41 = vcombine.low %v5372_v12, %v5376_v6 }
 0x520   :  { %v10579_v19 = vcombine.high %v5381_v0, %v5385_v1  ;;  %v10578_v39 = vcombine.low %v5381_v0, %v5385_v1  ;;  %v5436_v1 = vld [vmem:[#allocation9 + $0xc50] sm:$0xff] }
 0x521   :  { %8593 = vmatpush1.bf16.msra.mxu0 %v10520_v17  ;;  %v5392_v17 = vld [vmem:[#allocation9 + $0xaf0] sm:$0xff] }
 0x522   :  { %8765 = vmatpush1.bf16.msra.mxu1 %v10522_v33  ;;  %8594 = vmatprep.subr.bf16.mxu0 %v10529_v34  ;;  %v5389_v33 = vld [vmem:[#allocation9 + $0xad8] sm:$0xff]  ;;  %v10585_v32 = vcombine.high %v5388_v25, %v5392_v17 }
 0x523   :  { %8766 = vmatprep.subr.bf16.mxu1 %v10531_v37  ;;  %v5393_v34 = vld [vmem:[#allocation9 + $0xaf8] sm:$0xff]  ;;  %v10576_v37 = vcombine.low %v5380_v18, %v5384_v52 }
 0x524   :  { %v10587_v42 = vcombine.high %v5389_v33, %v5393_v34  ;;  %v10586_v22 = vcombine.low %v5389_v33, %v5393_v34  ;;  %v5444_v33 = vld [vmem:[#allocation9 + $0xc90] sm:$0xff] }
 0x525   :  { %8595 = vmatpush1.bf16.msra.mxu0 %v10528_v44  ;;  %v5400_v44 = vld [vmem:[#allocation9 + $0xb30] sm:$0xff] }
 0x526   :  { %8767 = vmatpush1.bf16.msra.mxu1 %v10530_v62  ;;  %8596 = vmatprep.subr.bf16.mxu0 %v10537_v46  ;;  %v5397_v62 = vld [vmem:[#allocation9 + $0xb18] sm:$0xff]  ;;  %v10593_v49 = vcombine.high %v5396_v43, %v5400_v44  ;;  %v5448_v34 = vld [vmem:[#allocation9 + $0xcb0] sm:$0xff] }
 0x527   :  { %8768 = vmatprep.subr.bf16.mxu1 %v10539_v47  ;;  %v5401_v46 = vld [vmem:[#allocation9 + $0xb38] sm:$0xff]  ;;  %v10584_v47 = vcombine.low %v5388_v25, %v5392_v17 }
 0x528   :  { %v10595_v51 = vcombine.high %v5397_v62, %v5401_v46  ;;  %v10594_v63 = vcombine.low %v5397_v62, %v5401_v46  ;;  %v5452_v46 = vld [vmem:[#allocation9 + $0xcd0] sm:$0xff] }
 0x529   :  { %8597 = vmatpush1.bf16.msra.mxu0 %v10536_v53  ;;  %v5408_v53 = vld [vmem:[#allocation9 + $0xb70] sm:$0xff] }
 0x52a   :  { %8769 = vmatpush1.bf16.msra.mxu1 %v10538_v57  ;;  %8598 = vmatprep.subr.bf16.mxu0 %v10545_v60  ;;  %v5405_v57 = vld [vmem:[#allocation9 + $0xb58] sm:$0xff]  ;;  %v10601_v27 = vcombine.high %v5404_v20, %v5408_v53 }
 0x52b   :  { %8770 = vmatprep.subr.bf16.mxu1 %v10547_v61  ;;  %v5409_v60 = vld [vmem:[#allocation9 + $0xb78] sm:$0xff]  ;;  %v10592_v61 = vcombine.low %v5396_v43, %v5400_v44  ;;  %v10641_v44 = vcombine.high %v5444_v33, %v5448_v34 }
 0x52c   :  { %v10603_v50 = vcombine.high %v5405_v57, %v5409_v60  ;;  %v10602_v11 = vcombine.low %v5405_v57, %v5409_v60  ;;  %v5460_v57 = vld [vmem:[#allocation9 + $0xd10] sm:$0xff] }
 0x52d   :  { %8599 = vmatpush1.bf16.msra.mxu0 %v10544_v7  ;;  %v5416_v7 = vld [vmem:[#allocation9 + $0xbb0] sm:$0xff] }
 0x52e   :  { %8771 = vmatpush1.bf16.msra.mxu1 %v10546_v9  ;;  %8600 = vmatprep.subr.bf16.mxu0 %v10553_v58  ;;  %v5413_v9 = vld [vmem:[#allocation9 + $0xb98] sm:$0xff]  ;;  %v10609_v14 = vcombine.high %v5412_v3, %v5416_v7  ;;  %v5464_v60 = vld [vmem:[#allocation9 + $0xd30] sm:$0xff] }
 0x52f   :  { %8772 = vmatprep.subr.bf16.mxu1 %v10555_v2  ;;  %v5417_v58 = vld [vmem:[#allocation9 + $0xbb8] sm:$0xff]  ;;  %v10600_v2 = vcombine.low %v5404_v20, %v5408_v53 }
 0x530   :  { %v10611_v15 = vcombine.high %v5413_v9, %v5417_v58  ;;  %v10610_v12 = vcombine.low %v5413_v9, %v5417_v58  ;;  %v5472_v9 = vld [vmem:[#allocation9 + $0xd70] sm:$0xff]  ;;  %v5469_v58 = vld [vmem:[#allocation9 + $0xd58] sm:$0xff] }
 0x531   :  { %8601 = vmatpush1.bf16.msra.mxu0 %v10552_v56  ;;  %v5424_v56 = vld [vmem:[#allocation9 + $0xbf0] sm:$0xff] }
 0x532   :  { %8773 = vmatpush1.bf16.msra.mxu1 %v10554_v10  ;;  %8602 = vmatprep.subr.bf16.mxu0 %v10561_v4  ;;  %v5421_v10 = vld [vmem:[#allocation9 + $0xbd8] sm:$0xff]  ;;  %v10617_v6 = vcombine.high %v5420_v54, %v5424_v56 }
 0x533   :  { %8774 = vmatprep.subr.bf16.mxu1 %v10563_v5  ;;  %v5425_v4 = vld [vmem:[#allocation9 + $0xbf8] sm:$0xff]  ;;  %v10608_v5 = vcombine.low %v5412_v3, %v5416_v7  ;;  %v5468_v7 = vld [vmem:[#allocation9 + $0xd50] sm:$0xff] }
 0x534   :  { %v10619_v8 = vcombine.high %v5421_v10, %v5425_v4  ;;  %v10618_v18 = vcombine.low %v5421_v10, %v5425_v4  ;;  %v11739_v10 = vld [vmem:[#allocation9 + $0xd90] sm:$0xff] }
 0x535   :  { %8603 = vmatpush1.bf16.msra.mxu0 %v10560_v26  ;;  %v5432_v26 = vld [vmem:[#allocation9 + $0xc30] sm:$0xff] }
 0x536   :  { %8775 = vmatpush1.bf16.msra.mxu1 %v10562_v28  ;;  %8604 = vmatprep.subr.bf16.mxu0 %v10569_v48  ;;  %v5429_v28 = vld [vmem:[#allocation9 + $0xc18] sm:$0xff]  ;;  %v10625_v52 = vcombine.high %v5428_v13, %v5432_v26  ;;  %v11741_v4 = vld [vmem:[#allocation9 + $0xdb0] sm:$0xff] }
 0x537   :  { %8776 = vmatprep.subr.bf16.mxu1 %v10571_v45  ;;  %v5433_v48 = vld [vmem:[#allocation9 + $0xc38] sm:$0xff]  ;;  %v10616_v45 = vcombine.low %v5420_v54, %v5424_v56  ;;  %v10665_v54 = vcombine.high %v5468_v7, %v5472_v9 }
 0x538   :  { %v10627_v0 = vcombine.high %v5429_v28, %v5433_v48  ;;  %v10626_v25 = vcombine.low %v5429_v28, %v5433_v48 }
 0x539   :  { %8605 = vmatpush1.bf16.msra.mxu0 %v10568_v41  ;;  %v5440_v41 = vld [vmem:[#allocation9 + $0xc70] sm:$0xff] }
 0x53a   :  { %8777 = vmatpush1.bf16.msra.mxu1 %v10570_v30  ;;  %8606 = vmatprep.subr.bf16.mxu0 %v10577_v31  ;;  %v10624_v30 = vcombine.low %v5428_v13, %v5432_v26  ;;  %v5437_v31 = vld [vmem:[#allocation9 + $0xc58] sm:$0xff]  ;;  %v10633_v17 = vcombine.high %v5436_v1, %v5440_v41  ;;  %v11751_v13 = vld [vmem:[#allocation9 + $0xdd0] sm:$0xff] }
 0x53b   :  { %8778 = vmatprep.subr.bf16.mxu1 %v10579_v19  ;;  %v5441_v19 = vld [vmem:[#allocation9 + $0xc78] sm:$0xff]  ;;  %v11753_v26 = vld [vmem:[#allocation9 + $0xdf0] sm:$0xff] }
 0x53c   :  { %v10634_v43 = vcombine.low %v5437_v31, %v5441_v19 }
 0x53d   :  { %8607 = vmatpush1.bf16.msra.mxu0 %v10576_v37  ;;  %v10635_v37 = vcombine.high %v5437_v31, %v5441_v19  ;;  %v10680_v19 = vcombine.low %v11751_v13, %v11753_v26 }
 0x53e   :  { %8779 = vmatpush1.bf16.msra.mxu1 %v10578_v39  ;;  %8608 = vmatprep.subr.bf16.mxu0 %v10585_v32  ;;  %v5445_v39 = vld [vmem:[#allocation9 + $0xc98] sm:$0xff] }
 0x53f   :  { %8780 = vmatprep.subr.bf16.mxu1 %v10587_v42  ;;  %v5449_v32 = vld [vmem:[#allocation9 + $0xcb8] sm:$0xff]  ;;  %v10632_v42 = vcombine.low %v5436_v1, %v5440_v41  ;;  %v11767_v1 = vld [vmem:[#allocation9 + $0xe10] sm:$0xff] }
 0x540   :  { %v10643_v62 = vcombine.high %v5445_v39, %v5449_v32 }
 0x541   :  { %8609 = vmatpush1.bf16.msra.mxu0 %v10584_v47  ;;  %v5456_v47 = vld [vmem:[#allocation9 + $0xcf0] sm:$0xff] }
 0x542   :  { %8781 = vmatpush1.bf16.msra.mxu1 %v10586_v22  ;;  %8610 = vmatprep.subr.bf16.mxu0 %v10593_v49  ;;  %v5453_v22 = vld [vmem:[#allocation9 + $0xcd8] sm:$0xff]  ;;  %v10649_v20 = vcombine.high %v5452_v46, %v5456_v47 }
 0x543   :  { %8782 = vmatprep.subr.bf16.mxu1 %v10595_v51  ;;  %v5457_v49 = vld [vmem:[#allocation9 + $0xcf8] sm:$0xff]  ;;  %v10640_v51 = vcombine.low %v5444_v33, %v5448_v34 }
 0x544   :  { %v10651_v53 = vcombine.high %v5453_v22, %v5457_v49 }
 0x545   :  { %8611 = vmatpush1.bf16.msra.mxu0 %v10592_v61  ;;  %v5461_v61 = vld [vmem:[#allocation9 + $0xd18] sm:$0xff] }
 0x546   :  { %8783 = vmatpush1.bf16.msra.mxu1 %v10594_v63  ;;  %8612 = vmatprep.subr.bf16.mxu0 %v10601_v27  ;;  %v5465_v63 = vld [vmem:[#allocation9 + $0xd38] sm:$0xff]  ;;  %v10650_v27 = vcombine.low %v5453_v22, %v5457_v49 }
 0x547   :  { %8784 = vmatprep.subr.bf16.mxu1 %v10603_v50  ;;  %v10657_v50 = vcombine.high %v5460_v57, %v5464_v60  ;;  %v10659_v3 = vcombine.high %v5461_v61, %v5465_v63 }
 0x549   :  { %8613 = vmatpush1.bf16.msra.mxu0 %v10600_v2  ;;  %v5473_v2 = vld [vmem:[#allocation9 + $0xd78] sm:$0xff] }
 0x54a   :  { %8785 = vmatpush1.bf16.msra.mxu1 %v10602_v11  ;;  %8614 = vmatprep.subr.bf16.mxu0 %v10609_v14  ;;  %v10656_v11 = vcombine.low %v5460_v57, %v5464_v60  ;;  %v11737_v14 = vld [vmem:[#allocation10] sm:$0xff]  ;;  %v10667_v56 = vcombine.high %v5469_v58, %v5473_v2 }
 0x54b   :  { %8786 = vmatprep.subr.bf16.mxu1 %v10611_v15  ;;  %v10658_v15 = vcombine.low %v5461_v61, %v5465_v63  ;;  %v5563_v28 = vrot.slane %v11737_v14, %v11518_v24  ;;  %v5571_v48 = vrot.slane %v11737_v14, %v11528_v38  ;;  %v11769_v24 = vld [vmem:[#allocation9 + $0xe30] sm:$0xff] }
 0x54c   :  { %v10688_v22 = vcombine.low %v11767_v1, %v11769_v24  ;;  %v10689_v49 = vcombine.high %v11767_v1, %v11769_v24  ;;  %v5509_v1 = vld [vmem:[#allocation9 + $0xe98] sm:$0xff] }
 0x54d   :  { %8615 = vmatpush1.bf16.msra.mxu0 %v10608_v5  ;;  %v11743_v5 = vld [vmem:[#allocation9 + $0xd98] sm:$0xff] }
 0x54e   :  { %8787 = vmatpush1.bf16.msra.mxu1 %v10610_v12  ;;  %8616 = vmatprep.subr.bf16.mxu0 %v10617_v6  ;;  %v5559_v12 = vrot.slane %v11737_v14, %v11513_v21  ;;  %v5567_v6 = vrot.slane %v11737_v14, %v11525_v35  ;;  %v11761_v21 = vld [vmem:[#allocation9 + $0xdf8] sm:$0xff]  ;;  %v10666_v35 = vcombine.low %v5469_v58, %v5473_v2  ;;  %v5500_v58 = vld [vmem:[#allocation9 + $0xe50] sm:$0xff] }
 0x54f   :  { %8788 = vmatprep.subr.bf16.mxu1 %v10619_v8  ;;  %v11749_v8 = vld [vmem:[#allocation9 + $0xdb8] sm:$0xff]  ;;  %v5504_v2 = vld [vmem:[#allocation9 + $0xe70] sm:$0xff] }
 0x550   :  { %v10675_v31 = vcombine.high %v11743_v5, %v11749_v8  ;;  %v5513_v24 = vld [vmem:[#allocation9 + $0xeb8] sm:$0xff] }
 0x551   :  { %8617 = vmatpush1.bf16.msra.mxu0 %v10616_v45  ;;  %v10664_v45 = vcombine.low %v5468_v7, %v5472_v9 }
 0x552   :  { %8789 = vmatpush1.bf16.msra.mxu1 %v10618_v18  ;;  %8629 = vmatprep.subr.bf16.mxu0 %v10625_v52  ;;  %v11759_v18 = vld [vmem:[#allocation9 + $0xdd8] sm:$0xff]  ;;  %v10672_v52 = vcombine.low %v11739_v10, %v11741_v4 }
 0x553   :  { %8801 = vmatprep.subr.bf16.mxu1 %v10627_v0  ;;  %v10673_v0 = vcombine.high %v11739_v10, %v11741_v4 }
 0x554   :  { %8619 = vmatmul.mubr.bf16.vlgmr.msra.gmra.mrb[20].mxu0 %v11700_v23 }
 0x555   :  { %8791 = vmatmul.mubr.bf16.vlgmr.msra.gmra.mrb[20].mxu1 %v11700_v23  ;;  %8630 = vmatpush1.bf16.msra.mxu0 %v10624_v30  ;;  %v10642_v23 = vcombine.low %v5445_v39, %v5449_v32  ;;  %v10674_v30 = vcombine.low %v11743_v5, %v11749_v8  ;;  %v10682_v39 = vcombine.low %v11759_v18, %v11761_v21  ;;  %v5501_v5 = vld [vmem:[#allocation9 + $0xe58] sm:$0xff] }
 0x556   :  { %8661 = vmatprep.mubr.bf16.mxu0 %v11713_v29  ;;  %8802 = vmatpush1.bf16.msra.mxu1 %v10626_v25  ;;  %v10681_v25 = vcombine.high %v11751_v13, %v11753_v26  ;;  %v10683_v32 = vcombine.high %v11759_v18, %v11761_v21 }
 0x557   :  { %8833 = vmatprep.mubr.bf16.mxu1 %v11713_v29  ;;  %8631 = vmatprep.subr.bf16.mxu0 %v10633_v17  ;;  %v10648_v29 = vcombine.low %v5452_v46, %v5456_v47 }
 0x558   :  { %8803 = vmatprep.subr.bf16.mxu1 %v10635_v37 }
 0x559   :  { %8632 = vmatpush1.bf16.msra.mxu0 %v10632_v42  ;;  %v11783_v42 = vld [vmem:[#allocation9 + $0xe18] sm:$0xff] }
 0x55a   :  { %8804 = vmatpush1.bf16.msra.mxu1 %v10634_v43  ;;  %8633 = vmatprep.subr.bf16.mxu0 %v10641_v44  ;;  %v11785_v43 = vld [vmem:[#allocation9 + $0xe38] sm:$0xff] }
 0x55b   :  { %8805 = vmatprep.subr.bf16.mxu1 %v10643_v62  ;;  %v10691_v57 = vcombine.high %v11783_v42, %v11785_v43 }
 0x55d   :  { %8634 = vmatpush1.bf16.msra.mxu0 %v10640_v51 }
 0x55e   :  { %8806 = vmatpush1.bf16.msra.mxu1 %v10642_v23  ;;  %8635 = vmatprep.subr.bf16.mxu0 %v10649_v20 }
 0x55f   :  { %8807 = vmatprep.subr.bf16.mxu1 %v10651_v53  ;;  %v10690_v53 = vcombine.low %v11783_v42, %v11785_v43  ;;  %v5524_v42 = vld [vmem:[#allocation9 + $0xf10] sm:$0xff] }
 0x560   :  { %v5528_v43 = vld [vmem:[#allocation9 + $0xf30] sm:$0xff] }
 0x561   :  { %8636 = vmatpush1.bf16.msra.mxu0 %v10648_v29 }
 0x562   :  { %8808 = vmatpush1.bf16.msra.mxu1 %v10650_v27  ;;  %8637 = vmatprep.subr.bf16.mxu0 %v10657_v50 }
 0x563   :  { %8809 = vmatprep.subr.bf16.mxu1 %v10659_v3 }
 0x565   :  { %8638 = vmatpush1.bf16.msra.mxu0 %v10656_v11 }
 0x566   :  { %8810 = vmatpush1.bf16.msra.mxu1 %v10658_v15  ;;  %8639 = vmatprep.subr.bf16.mxu0 %v10665_v54 }
 0x567   :  { %v8319_v41 = vpop.f32.mrb[16].mxu0  ;;  %v8491_v38 = vpop.f32.mrb[16].mxu1  ;;  %8811 = vmatprep.subr.bf16.mxu1 %v10667_v56 }
 0x568   :  { %v10917_v17 = vadd.f32 %v8319_v41, %v5559_v12  ;;  %v10921_v33 = vadd.f32 %v8491_v38, %v5567_v6  ;;  %v8321_v34 = vpop.f32.mrb[17].mxu0  ;;  %v8493_v37 = vpop.f32.mrb[17].mxu1  ;;  %v10696_v41 = vcombine.low %v5500_v58, %v5504_v2 }
 0x569   :  { %v10918_v44 = vadd.f32 %v8321_v34, %v5563_v28  ;;  %v10922_v62 = vadd.f32 %v8493_v37, %v5571_v48  ;;  %v8323_v46 = vpop.f32.mrb[18].mxu0  ;;  %v8495_v47 = vpop.f32.mrb[18].mxu1  ;;  %8640 = vmatpush1.bf16.msra.mxu0 %v10664_v45  ;;  %v10697_v45 = vcombine.high %v5500_v58, %v5504_v2  ;;  %v10706_v37 = vcombine.low %v5509_v1, %v5513_v24 }
 0x56a   :  { %vm8844_vm0 = vcmp.gt.f32.partialorder %v10917_v17, 0.0  ;;  %v8860_v51 = vmul.f32 0.1, %v10917_v17  ;;  %vm8846_vm1 = vcmp.gt.f32.partialorder %v10921_v33, 0.0  ;;  %v8862_v23 = vmul.f32 0.1, %v10921_v33  ;;  %8812 = vmatpush1.bf16.msra.mxu1 %v10666_v35  ;;  %8641 = vmatprep.subr.bf16.mxu0 %v10673_v0 }
 0x56b   :  { %vm8845_vm2 = vcmp.gt.f32.partialorder %v10918_v44, 0.0  ;;  %v8861_v20 = vmul.f32 0.1, %v10918_v44  ;;  %8813 = vmatprep.subr.bf16.mxu1 %v10675_v31  ;;  %vm8847_vm3 = vcmp.gt.f32.partialorder %v10922_v62, 0.0  ;;  %v8863_v60 = vmul.f32 0.1, %v10922_v62 }
 0x56c   :  { %v10919_v61 = vadd.f32 %v8323_v46, %v5559_v12  ;;  %v10923_v63 = vadd.f32 %v8495_v47, %v5567_v6  ;;  %v8325_v29 = vpop.f32.mrb[19].mxu0  ;;  %v8497_v27 = vpop.f32.mrb[19].mxu1  ;;  %v11796_v50 = vsel %vm8844_vm0, %v10917_v17, %v8860_v51  ;;  %v11799_v3 = vsel %vm8846_vm1, %v10921_v33, %v8862_v23  ;;  %v5505_v12 = vld [vmem:[#allocation9 + $0xe78] sm:$0xff]  ;;  %v5512_v0 = vld [vmem:[#allocation9 + $0xeb0] sm:$0xff] }
 0x56d   :  { %v10920_v7 = vadd.f32 %v8325_v29, %v5563_v28  ;;  %v10924_v9 = vadd.f32 %v8497_v27, %v5571_v48  ;;  %8642 = vmatpush1.bf16.msra.mxu0 %v10672_v52  ;;  %v11806_v6 = vsel %vm8845_vm2, %v10918_v44, %v8861_v20  ;;  %v11809_v8 = vsel %vm8847_vm3, %v10922_v62, %v8863_v60  ;;  %v5508_v52 = vld [vmem:[#allocation9 + $0xe90] sm:$0xff]  ;;  %v5517_v17 = vld [vmem:[#allocation9 + $0xed8] sm:$0xff] }
 0x56e   :  { %vm8852_vm4 = vcmp.gt.f32.partialorder %v10919_v61, 0.0  ;;  %v8868_v11 = vmul.f32 0.1, %v10919_v61  ;;  %vm8854_vm5 = vcmp.gt.f32.partialorder %v10923_v63, 0.0  ;;  %v8870_v15 = vmul.f32 0.1, %v10923_v63  ;;  %8814 = vmatpush1.bf16.msra.mxu1 %v10674_v30  ;;  %8643 = vmatprep.subr.bf16.mxu0 %v10681_v25 }
 0x56f   :  { %vm8853_vm6 = vcmp.gt.f32.partialorder %v10920_v7, 0.0  ;;  %v8869_v54 = vmul.f32 0.1, %v10920_v7  ;;  %vm8855_vm7 = vcmp.gt.f32.partialorder %v10924_v9, 0.0  ;;  %v8871_v56 = vmul.f32 0.1, %v10924_v9  ;;  %8815 = vmatprep.subr.bf16.mxu1 %v10683_v32 }
 0x570   :  { %v11801_v10 = vsel %vm8852_vm4, %v10919_v61, %v8868_v11  ;;  %v11803_v4 = vsel %vm8854_vm5, %v10923_v63, %v8870_v15  ;;  %v10699_v35 = vcombine.high %v5501_v5, %v5505_v12  ;;  %v10698_v38 = vcombine.low %v5501_v5, %v5505_v12  ;;  %v5520_v25 = vld [vmem:[#allocation9 + $0xef0] sm:$0xff]  ;;  %v5521_v33 = vld [vmem:[#allocation9 + $0xef8] sm:$0xff] }
 0x571   :  { %v8892_v13 = vpack.c.bf16 %v11801_v10, %v11796_v50  ;;  %v8894_v26 = vpack.c.bf16 %v11803_v4, %v11799_v3  ;;  %8644 = vmatpush1.bf16.msra.mxu0 %v10680_v19  ;;  %v11815_v28 = vsel %vm8853_vm6, %v10920_v7, %v8869_v54  ;;  %v11817_v48 = vsel %vm8855_vm7, %v10924_v9, %v8871_v56  ;;  %v5516_v19 = vld [vmem:[#allocation9 + $0xed0] sm:$0xff]  ;;  %v5525_v44 = vld [vmem:[#allocation9 + $0xf18] sm:$0xff]  ;;  %v11089_v50 = vld [vmem:[#allocation12 + $0x1d8] sm:$0xff]  }
 0x572   :  { %8816 = vmatpush1.bf16.msra.mxu1 %v10682_v39  ;;  %8645 = vmatprep.subr.bf16.mxu0 %v10689_v49  ;;  %v8893_v18 = vpack.c.bf16 %v11815_v28, %v11806_v6  ;;  %v8895_v21 = vpack.c.bf16 %v11817_v48, %v11809_v8  ;;  %v10705_v30 = vcombine.high %v5508_v52, %v5512_v0  ;;  %v5529_v62 = vld [vmem:[#allocation9 + $0xf38] sm:$0xff]  ;;  %v5532_v51 = vld [vmem:[#allocation9 + $0xf50] sm:$0xff]  ;;  %v11058_v6 = vld [vmem:[#allocation12 + $0x18] sm:$0xff]  }
 0x573   :  { %8817 = vmatprep.subr.bf16.mxu1 %v10691_v57  ;;  %v10707_v31 = vcombine.high %v5509_v1, %v5513_v24  ;;  %v10704_v34 = vcombine.low %v5508_v52, %v5512_v0  ;;  %v10713_v39 = vcombine.high %v5516_v19, %v5520_v25  ;;  %v10715_v32 = vcombine.high %v5517_v17, %v5521_v33  ;;  %v5536_v23 = vld [vmem:[#allocation9 + $0xf70] sm:$0xff]  ;;  %v5533_v20 = vld [vmem:[#allocation9 + $0xf58] sm:$0xff]  ;;  %v11059_v28 = vld [vmem:[#allocation12 + $0x98] sm:$0xff]  }
 0x574   :  { %v10712_v46 = vcombine.low %v5516_v19, %v5520_v25  ;;  %v10714_v47 = vcombine.low %v5517_v17, %v5521_v33  ;;  %v10723_v49 = vcombine.high %v5525_v44, %v5529_v62  ;;  %v10720_v57 = vcombine.low %v5524_v42, %v5528_v43  ;;  %v5540_v29 = vld [vmem:[#allocation9 + $0xf90] sm:$0xff]  ;;  %v5541_v7 = vld [vmem:[#allocation9 + $0xf98] sm:$0xff]  ;;  %v11061_v8 = vld [vmem:[#allocation12 + $0xe0] sm:$0xff]  }
 0x575   :  { %8646 = vmatpush1.bf16.msra.mxu0 %v10688_v22  ;;  %v10721_v22 = vcombine.high %v5524_v42, %v5528_v43  ;;  %v10722_v60 = vcombine.low %v5525_v44, %v5529_v62  ;;  %v10729_v61 = vcombine.high %v5532_v51, %v5536_v23  ;;  %v5544_v27 = vld [vmem:[#allocation9 + $0xfb0] sm:$0xff]  ;;  %v5545_v9 = vld [vmem:[#allocation9 + $0xfb8] sm:$0xff]  ;;  %v10728_v58 = vcombine.low %v5532_v51, %v5536_v23  ;;  %v11057_v42 = vld [vmem:[#allocation12 + $0xd8] sm:$0xff]  }
 0x576   :  { %8818 = vmatpush1.bf16.msra.mxu1 %v10690_v53  ;;  %8647 = vmatprep.subr.bf16.mxu0 %v10697_v45  ;;  %v5537_v53 = vld [vmem:[#allocation9 + $0xf78] sm:$0xff]  ;;  %v10737_v11 = vcombine.high %v5540_v29, %v5544_v27  ;;  %v10739_v15 = vcombine.high %v5541_v7, %v5545_v9  ;;  %v5548_v54 = vld [vmem:[#allocation9 + $0xfd0] sm:$0xff]  ;;  %v10736_v45 = vcombine.low %v5540_v29, %v5544_v27  ;;  %v11062_v48 = vld [vmem:[#allocation12 + $0x20] sm:$0xff]  }
 0x577   :  { %8819 = vmatprep.subr.bf16.mxu1 %v10699_v35  ;;  %v10731_v63 = vcombine.high %v5533_v20, %v5537_v53  ;;  %v10730_v2 = vcombine.low %v5533_v20, %v5537_v53  ;;  %v5552_v56 = vld [vmem:[#allocation9 + $0xff0] sm:$0xff]  ;;  %v5549_v5 = vld [vmem:[#allocation9 + $0xfd8] sm:$0xff]  ;;  %v10738_v35 = vcombine.low %v5541_v7, %v5545_v9  ;;  %v11072_v23 = vld [vmem:[#allocation12 + $0x78] sm:$0xff]  }
 0x578   :  { %v5553_v12 = vld [vmem:[#allocation9 + $0xff8] sm:$0xff]  ;;  %v10745_v52 = vcombine.high %v5548_v54, %v5552_v56  ;;  %v10744_v1 = vcombine.low %v5548_v54, %v5552_v56  ;;  %v11048_v19 = vld [vmem:[#allocation12 + $0x48] sm:$0xff]   ;;  %v11073_v20 = vld [vmem:[#allocation12 + $0xf8] sm:$0xff]  }
 0x579   :  { %8648 = vmatpush1.bf16.msra.mxu0 %v10696_v41  ;;  %v10747_v0 = vcombine.high %v5549_v5, %v5553_v12  ;;  %v10746_v24 = vcombine.low %v5549_v5, %v5553_v12  ;;  %v11044_v41 = vld [vmem:[#allocation12 + $0x40] sm:$0xff]   ;;  %v11049_v25 = vld [vmem:[#allocation12 + $0xc8] sm:$0xff]   ;;  %v11071_v51 = vld [vmem:[#allocation12 + $0xb0] sm:$0xff]  }
 0x57a   :  { %8820 = vmatpush1.bf16.msra.mxu1 %v10698_v38  ;;  %8649 = vmatprep.subr.bf16.mxu0 %v10705_v30  ;;  %v11045_v38 = vld [vmem:[#allocation12 + $0xc0] sm:$0xff]   ;;  %v11050_v17 = vld [vmem:[#allocation12 + $0x8] sm:$0xff]   ;;  %v11074_v53 = vld [vmem:[#allocation12 + $0x38] sm:$0xff]  }
 0x57b   :  { %8821 = vmatprep.subr.bf16.mxu1 %v10707_v31  ;;  %v11046_v30 = vld [vmem:[#allocation12] sm:$0xff]   ;;  %v11051_v33 = vld [vmem:[#allocation12 + $0x88] sm:$0xff]   ;;  %v11087_v54 = vld [vmem:[#allocation12 + $0x190] sm:$0xff]  }
 0x57c   :  { %v11047_v31 = vld [vmem:[#allocation12 + $0x80] sm:$0xff]   ;;  %v11064_v43 = vld [vmem:[#allocation12 + $0x68] sm:$0xff]   ;;  %v11088_v56 = vld [vmem:[#allocation12 + $0x158] sm:$0xff]  }
 0x57d   :  { %8650 = vmatpush1.bf16.msra.mxu0 %v10704_v34  ;;  %v11052_v34 = vld [vmem:[#allocation12 + $0x50] sm:$0xff]   ;;  %v11065_v44 = vld [vmem:[#allocation12 + $0xe8] sm:$0xff]   ;;  %v11079_v29 = vld [vmem:[#allocation12 + $0x180] sm:$0xff]  }
 0x57e   :  { %8822 = vmatpush1.bf16.msra.mxu1 %v10706_v37  ;;  %8651 = vmatprep.subr.bf16.mxu0 %v10713_v39  ;;  %v11053_v37 = vld [vmem:[#allocation12 + $0xd0] sm:$0xff]   ;;  %v11066_v62 = vld [vmem:[#allocation12 + $0x28] sm:$0xff]   ;;  %v11090_v10 = vld [vmem:[#allocation12 + $0x118] sm:$0xff]  }
 0x57f   :  { %8823 = vmatprep.subr.bf16.mxu1 %v10715_v32  ;;  %v11054_v39 = vld [vmem:[#allocation12 + $0x10] sm:$0xff]   ;;  %v11056_v32 = vld [vmem:[#allocation12 + $0x58] sm:$0xff]   ;;  %v11080_v27 = vld [vmem:[#allocation12 + $0x148] sm:$0xff]  }
 0x580   :  { %v11081_v7 = vld [vmem:[#allocation12 + $0x1c8] sm:$0xff]   ;;  %v11091_v3 = vld [vmem:[#allocation12 + $0x198] sm:$0xff]   ;;  %v11092_v4 = vld [vmem:[#allocation12 + $0x160] sm:$0xff]  }
 0x581   :  { %8652 = vmatpush1.bf16.msra.mxu0 %v10712_v46  ;;  %v11067_v46 = vld [vmem:[#allocation12 + $0xa8] sm:$0xff]   ;;  %v11095_v5 = vld [vmem:[#allocation12 + $0x1a0] sm:$0xff]  }
 0x582   :  { %8824 = vmatpush1.bf16.msra.mxu1 %v10714_v47  ;;  %8653 = vmatprep.subr.bf16.mxu0 %v10721_v22  ;;  %v11068_v47 = vld [vmem:[#allocation12 + $0x70] sm:$0xff]   ;;  %v11082_v9 = vld [vmem:[#allocation12 + $0x108] sm:$0xff]  }
 0x583   :  { %8825 = vmatprep.subr.bf16.mxu1 %v10723_v49  ;;  %v11069_v22 = vld [vmem:[#allocation12 + $0xf0] sm:$0xff]   ;;  %v11096_v12 = vld [vmem:[#allocation12 + $0x168] sm:$0xff]  }
 0x584   :  { %v11070_v49 = vld [vmem:[#allocation12 + $0x30] sm:$0xff]  }
 0x585   :  { %8654 = vmatpush1.bf16.msra.mxu0 %v10720_v57  ;;  %v11075_v57 = vld [vmem:[#allocation12 + $0xb8] sm:$0xff]  }
 0x586   :  { %8826 = vmatpush1.bf16.msra.mxu1 %v10722_v60  ;;  %8655 = vmatprep.subr.bf16.mxu0 %v10729_v61  ;;  %v11076_v60 = vld [vmem:[#allocation12 + $0x140] sm:$0xff]  }
 0x587   :  { %8827 = vmatprep.subr.bf16.mxu1 %v10731_v63  ;;  %v11077_v61 = vld [vmem:[#allocation12 + $0x1c0] sm:$0xff]  }
 0x588   :  { %v11078_v63 = vld [vmem:[#allocation12 + $0x100] sm:$0xff]  }
 0x589   :  { %8656 = vmatpush1.bf16.msra.mxu0 %v10728_v58  ;;  %v11083_v58 = vld [vmem:[#allocation12 + $0x188] sm:$0xff]  }
 0x58a   :  { %8828 = vmatpush1.bf16.msra.mxu1 %v10730_v2  ;;  %8657 = vmatprep.subr.bf16.mxu0 %v10737_v11  ;;  %v11084_v2 = vld [vmem:[#allocation12 + $0x150] sm:$0xff]  }
 0x58b   :  { %8829 = vmatprep.subr.bf16.mxu1 %v10739_v15  ;;  %v11085_v11 = vld [vmem:[#allocation12 + $0x1d0] sm:$0xff]  }
 0x58c   :  { %v11086_v15 = vld [vmem:[#allocation12 + $0x110] sm:$0xff]  }
 0x58d   :  { %8658 = vmatpush1.bf16.msra.mxu0 %v10736_v45  ;;  %v11097_v45 = vld [vmem:[#allocation12 + $0x1e8] sm:$0xff]  }
 0x58e   :  { %8830 = vmatpush1.bf16.msra.mxu1 %v10738_v35  ;;  %8659 = vmatprep.subr.bf16.mxu0 %v10745_v52  ;;  %v11098_v35 = vld [vmem:[#allocation12 + $0x128] sm:$0xff]  }
 0x58f   :  { %8831 = vmatprep.subr.bf16.mxu1 %v10747_v0  ;;  %v11099_v52 = vld [vmem:[#allocation12 + $0x1a8] sm:$0xff]   ;;  %v11100_v0 = vld [vmem:[#allocation12 + $0x170] sm:$0xff]  }
 0x591   :  { %8660 = vmatpush1.bf16.msra.mxu0 %v10744_v1  ;;  %v11101_v1 = vld [vmem:[#allocation12 + $0x1f0] sm:$0xff]  }
 0x592   :  { %8832 = vmatpush1.bf16.msra.mxu1 %v10746_v24  ;;  %10813 = vmatprep.subr.bf16.mxu0 %v11044_v41  ;;  %v11102_v24 = vld [vmem:[#allocation12 + $0x130] sm:$0xff]  }
 0x593   :  { %10835 = vmatprep.subr.bf16.mxu1 %v11045_v38  ;;  %v11103_v41 = vld [vmem:[#allocation12 + $0x1b0] sm:$0xff]   ;;  %v11104_v38 = vld [vmem:[#allocation12 + $0x178] sm:$0xff]  }
 0x594   :  { %8662 = vmatmul.mubr.bf16.vlgmr.msra.gmra.mrb[20].mxu0 %v11704_v16 }
 0x595   :  { %8834 = vmatmul.mubr.bf16.vlgmr.msra.gmra.mrb[20].mxu1 %v11704_v16  ;;  %10814 = vmatpush3.bf16.msra.mxu0 %v11046_v30  ;;  %v11055_v16 = vld [vmem:[#allocation12 + $0x90] sm:$0xff]   ;;  %v11105_v30 = vld [vmem:[#allocation12 + $0x1f8] sm:$0xff]  }
 0x596   :  { %9451 = vmatprep.mubr.bf16.mxu0 %v8893_v18  ;;  %10836 = vmatpush3.bf16.msra.mxu1 %v11047_v31  ;;  %v11060_v18 = vld [vmem:[#allocation12 + $0x60] sm:$0xff]   ;;  %v11106_v31 = vld [vmem:[#allocation12 + $0x138] sm:$0xff]  }
 0x597   :  { %9492 = vmatprep.mubr.bf16.mxu1 %v8895_v21  ;;  %10815 = vmatprep.subr.bf16.mxu0 %v11048_v19  ;;  %v11063_v21 = vld [vmem:[#allocation12 + $0xa0] sm:$0xff]   ;;  %v11107_v19 = vld [vmem:[#allocation12 + $0x1b8] sm:$0xff]  }
 0x598   :  { %10837 = vmatprep.subr.bf16.mxu1 %v11049_v25  ;;  %v5575_v25 = vrot.slane %v11737_v14, %v11555_v55 }
 0x599   :  { %10816 = vmatpush3.bf16.msra.mxu0 %v11050_v17  ;;  %v5583_v17 = vrot.slane %v11737_v14, %v11565_v36 }
 0x59a   :  { %10838 = vmatpush3.bf16.msra.mxu1 %v11051_v33  ;;  %10817 = vmatprep.subr.bf16.mxu0 %v11052_v34  ;;  %v5579_v33 = vrot.slane %v11737_v14, %v11558_v59  ;;  %v5587_v34 = vrot.slane %v11737_v14, %v11568_v40 }
 0x59b   :  { %10839 = vmatprep.subr.bf16.mxu1 %v11053_v37 }
 0x59d   :  { %10818 = vmatpush3.bf16.msra.mxu0 %v11054_v39 }
 0x59e   :  { %10840 = vmatpush3.bf16.msra.mxu1 %v11055_v16  ;;  %10819 = vmatprep.subr.bf16.mxu0 %v11056_v32 }
 0x59f   :  { %10841 = vmatprep.subr.bf16.mxu1 %v11057_v42 }
 0x5a1   :  { %10820 = vmatpush3.bf16.msra.mxu0 %v11058_v6 }
 0x5a2   :  { %10842 = vmatpush3.bf16.msra.mxu1 %v11059_v28  ;;  %10821 = vmatprep.subr.bf16.mxu0 %v11060_v18 }
 0x5a3   :  { %10843 = vmatprep.subr.bf16.mxu1 %v11061_v8 }
 0x5a5   :  { %10822 = vmatpush3.bf16.msra.mxu0 %v11062_v48 }
 0x5a6   :  { %10844 = vmatpush3.bf16.msra.mxu1 %v11063_v21  ;;  %10823 = vmatprep.subr.bf16.mxu0 %v11064_v43 }
 0x5a7   :  { %10845 = vmatprep.subr.bf16.mxu1 %v11065_v44 }
 0x5a9   :  { %10824 = vmatpush3.bf16.msra.mxu0 %v11066_v62 }
 0x5aa   :  { %10846 = vmatpush3.bf16.msra.mxu1 %v11067_v46  ;;  %10825 = vmatprep.subr.bf16.mxu0 %v11068_v47 }
 0x5ab   :  { %10847 = vmatprep.subr.bf16.mxu1 %v11069_v22 }
 0x5ad   :  { %10826 = vmatpush3.bf16.msra.mxu0 %v11070_v49 }
 0x5ae   :  { %10848 = vmatpush3.bf16.msra.mxu1 %v11071_v51  ;;  %10827 = vmatprep.subr.bf16.mxu0 %v11072_v23 }
 0x5af   :  { %10849 = vmatprep.subr.bf16.mxu1 %v11073_v20 }
 0x5b1   :  { %10828 = vmatpush3.bf16.msra.mxu0 %v11074_v53 }
 0x5b2   :  { %10850 = vmatpush3.bf16.msra.mxu1 %v11075_v57  ;;  %10857 = vmatprep.subr.bf16.mxu0 %v11076_v60 }
 0x5b3   :  { %10879 = vmatprep.subr.bf16.mxu1 %v11077_v61 }
 0x5b4   :  { %9452 = vmatmul.mubr.bf16.vlgmr.msra.gmra.mrb[24].mxu0 %v8892_v13  ;;  %v11093_v13 = vld [vmem:[#allocation12 + $0x1e0] sm:$0xff]  }
 0x5b5   :  { %9493 = vmatmul.mubr.bf16.vlgmr.msra.gmra.mrb[24].mxu1 %v8894_v26  ;;  %10858 = vmatpush3.bf16.msra.mxu0 %v11078_v63  ;;  %v11094_v26 = vld [vmem:[#allocation12 + $0x120] sm:$0xff]  }
 0x5b6   :  { %10880 = vmatpush3.bf16.msra.mxu1 %v11079_v29  ;;  %10859 = vmatprep.subr.bf16.mxu0 %v11080_v27 }
 0x5b7   :  { %10881 = vmatprep.subr.bf16.mxu1 %v11081_v7 }
 0x5b9   :  { %10860 = vmatpush3.bf16.msra.mxu0 %v11082_v9 }
 0x5ba   :  { %10882 = vmatpush3.bf16.msra.mxu1 %v11083_v58  ;;  %10861 = vmatprep.subr.bf16.mxu0 %v11084_v2 }
 0x5bb   :  { %10883 = vmatprep.subr.bf16.mxu1 %v11085_v11 }
 0x5bd   :  { %10862 = vmatpush3.bf16.msra.mxu0 %v11086_v15  ;;  %v10748_v15 = vld [vmem:[#allocation13] ss:$0 sm:$0xff] }
 0x5be   :  { %10884 = vmatpush3.bf16.msra.mxu1 %v11087_v54  ;;  %10863 = vmatprep.subr.bf16.mxu0 %v11088_v56 }
 0x5bf   :  { %10885 = vmatprep.subr.bf16.mxu1 %v11089_v50 }
 0x5c1   :  { %10864 = vmatpush3.bf16.msra.mxu0 %v11090_v10 }
 0x5c2   :  { %10886 = vmatpush3.bf16.msra.mxu1 %v11091_v3  ;;  %10865 = vmatprep.subr.bf16.mxu0 %v11092_v4 }
 0x5c3   :  { %10887 = vmatprep.subr.bf16.mxu1 %v11093_v13 }
 0x5c5   :  { %10866 = vmatpush3.bf16.msra.mxu0 %v11094_v26 }
 0x5c6   :  { %10888 = vmatpush3.bf16.msra.mxu1 %v11095_v5  ;;  %10867 = vmatprep.subr.bf16.mxu0 %v11096_v12 }
 0x5c7   :  { %10889 = vmatprep.subr.bf16.mxu1 %v11097_v45 }
 0x5c9   :  { %10868 = vmatpush3.bf16.msra.mxu0 %v11098_v35 }
 0x5ca   :  { %10890 = vmatpush3.bf16.msra.mxu1 %v11099_v52  ;;  %10869 = vmatprep.subr.bf16.mxu0 %v11100_v0 }
 0x5cb   :  { %10891 = vmatprep.subr.bf16.mxu1 %v11101_v1 }
 0x5cd   :  { %10870 = vmatpush3.bf16.msra.mxu0 %v11102_v24 }
 0x5ce   :  { %10892 = vmatpush3.bf16.msra.mxu1 %v11103_v41  ;;  %10871 = vmatprep.subr.bf16.mxu0 %v11104_v38 }
 0x5cf   :  { %10893 = vmatprep.subr.bf16.mxu1 %v11105_v30 }
 0x5d1   :  { %10872 = vmatpush3.bf16.msra.mxu0 %v11106_v31 }
 0x5d2   :  { %10894 = vmatpush3.bf16.msra.mxu1 %v11107_v19 }
 0x667   :  { %v8663_v37 = vpop.f32.mrb[20].mxu0 }
 0x668   :  { %v10925_v39 = vadd.f32 %v8663_v37, %v5575_v25  ;;  %v8835_v16 = vpop.f32.mrb[20].mxu1  ;;  %v8665_v32 = vpop.f32.mrb[21].mxu0 }
 0x669   :  { %v10929_v42 = vadd.f32 %v8835_v16, %v5583_v17  ;;  %v10926_v6 = vadd.f32 %v8665_v32, %v5579_v33  ;;  %v8837_v28 = vpop.f32.mrb[21].mxu1  ;;  %v8667_v18 = vpop.f32.mrb[22].mxu0 }
 0x66a   :  { %v8864_v8 = vmul.f32 0.1, %v10925_v39  ;;  %v10930_v48 = vadd.f32 %v8837_v28, %v5587_v34  ;;  %v10927_v55 = vadd.f32 %v8667_v18, %v5575_v25  ;;  %v8839_v21 = vpop.f32.mrb[22].mxu1  ;;  %v8669_v43 = vpop.f32.mrb[23].mxu0  ;;  %vm8848_vm8 = vcmp.gt.f32.partialorder %v10925_v39, 0.0 }
 0x66b   :  { %vm8850_vm9 = vcmp.gt.f32.partialorder %v10929_v42, 0.0  ;;  %v8866_v36 = vmul.f32 0.1, %v10929_v42  ;;  %vm8849_vm10 = vcmp.gt.f32.partialorder %v10926_v6, 0.0  ;;  %v8841_v59 = vpop.f32.mrb[23].mxu1  ;;  %v10931_v44 = vadd.f32 %v8839_v21, %v5583_v17 }
 0x66c   :  { %vm8856_vm11 = vcmp.gt.f32.partialorder %v10927_v55, 0.0  ;;  %v8865_v40 = vmul.f32 0.1, %v10926_v6  ;;  %v8872_v14 = vmul.f32 0.1, %v10927_v55  ;;  %v10928_v62 = vadd.f32 %v8669_v43, %v5579_v33 }
 0x66d   :  { %v8880_v46 = vsel %vm8848_vm8, %v10925_v39, %v8864_v8  ;;  %vm8851_vm12 = vcmp.gt.f32.partialorder %v10930_v48, 0.0  ;;  %v8867_v47 = vmul.f32 0.1, %v10930_v48  ;;  %v10932_v22 = vadd.f32 %v8841_v59, %v5587_v34 }
 0x66e   :  { %v8888_v49 = vsel %vm8856_vm11, %v10927_v55, %v8872_v14  ;;  %vm8858_vm13 = vcmp.gt.f32.partialorder %v10931_v44, 0.0  ;;  %v8874_v51 = vmul.f32 0.1, %v10931_v44  ;;  %vm8857_vm14 = vcmp.gt.f32.partialorder %v10928_v62, 0.0 }
 0x66f   :  { %v8896_v23 = vpack.c.bf16 %v8888_v49, %v8880_v46  ;;  %v8873_v20 = vmul.f32 0.1, %v10928_v62  ;;  %vm8859_vm15 = vcmp.gt.f32.partialorder %v10932_v22, 0.0  ;;  %v8875_v53 = vmul.f32 0.1, %v10932_v22 }
 0x670   :  { %v8882_v57 = vsel %vm8850_vm9, %v10929_v42, %v8866_v36  ;;  %v8890_v60 = vsel %vm8858_vm13, %v10931_v44, %v8874_v51  ;;  %v8881_v61 = vsel %vm8849_vm10, %v10926_v6, %v8865_v40  ;;  %v8883_v27 = vsel %vm8851_vm12, %v10930_v48, %v8867_v47 }
 0x671   :  { %v8898_v63 = vpack.c.bf16 %v8890_v60, %v8882_v57  ;;  %v8889_v29 = vsel %vm8857_vm14, %v10928_v62, %v8873_v20  ;;  %v8891_v7 = vsel %vm8859_vm15, %v10932_v22, %v8875_v53 }
 0x672   :  { %v8897_v9 = vpack.c.bf16 %v8889_v29, %v8881_v61  ;;  %v8899_v58 = vpack.c.bf16 %v8891_v7, %v8883_v27 }
 0x674   :  { %9533 = vmatprep.mubr.bf16.mxu0 %v8897_v9  ;;  %9574 = vmatprep.mubr.bf16.mxu1 %v8899_v58 }
 0x675   :  { %9534 = vmatmul.mubr.bf16.vlgmr.msra.gmra.mrb[28].mxu0 %v8896_v23  ;;  %9575 = vmatmul.mubr.bf16.vlgmr.msra.gmra.mrb[28].mxu1 %v8898_v63 }
 0x687   :  { %v10829_v2 = vpop.f32.mrb[24].mxu0 }
 0x688   :  { %v10851_v11 = vpop.f32.mrb[24].mxu1  ;;  %v10830_v54 = vpop.f32.mrb[25].mxu0 }
 0x689   :  { %v10831_v56 = vadd.f32 %v10830_v54, %v10829_v2  ;;  %v10852_v50 = vpop.f32.mrb[25].mxu1  ;;  %v10832_v10 = vpop.f32.mrb[26].mxu0 }
 0x68a   :  { %v10853_v3 = vadd.f32 %v10852_v50, %v10851_v11  ;;  %v10854_v4 = vpop.f32.mrb[26].mxu1  ;;  %v10833_v13 = vpop.f32.mrb[27].mxu0 }
 0x68b   :  { %v9454_v26 = vadd.f32 %v10831_v56, %v10748_v15  ;;  %v10834_v5 = vadd.f32 %v10833_v13, %v10832_v10  ;;  %v10855_v12 = vpop.f32.mrb[27].mxu1 }
 0x68c   :  { %v10856_v45 = vadd.f32 %v10855_v12, %v10854_v4 }
 0x68d   :  { %v9495_v35 = vadd.f32 %v10853_v3, %v9454_v26  ;;  %v9457_v52 = vadd.f32 %v10834_v5, %v10748_v15 }
 0x68f   :  { %v9498_v0 = vadd.f32 %v10856_v45, %v9457_v52 }
 0x748   :  { %v10873_v1 = vpop.f32.mrb[28].mxu0  ;;  %v10895_v24 = vpop.f32.mrb[28].mxu1 }
 0x749   :  { %v10874_v41 = vpop.f32.mrb[29].mxu0  ;;  %v10896_v38 = vpop.f32.mrb[29].mxu1 }
 0x74a   :  { %v10875_v30 = vadd.f32 %v10874_v41, %v10873_v1  ;;  %v10897_v31 = vadd.f32 %v10896_v38, %v10895_v24  ;;  %v10876_v19 = vpop.f32.mrb[30].mxu0  ;;  %v10898_v25 = vpop.f32.mrb[30].mxu1 }
 0x74b   :  { %v10877_v17 = vpop.f32.mrb[31].mxu0  ;;  %v10899_v33 = vpop.f32.mrb[31].mxu1 }
 0x74c   :  { %v9536_v34 = vadd.f32 %v10875_v30, %v9495_v35  ;;  %v10878_v37 = vadd.f32 %v10877_v17, %v10876_v19  ;;  %v10900_v39 = vadd.f32 %v10899_v33, %v10898_v25 }
 0x74e   :  { %v9577_v16 = vadd.f32 %v10897_v31, %v9536_v34  ;;  %v9539_v32 = vadd.f32 %v10878_v37, %v9498_v0 }
 0x750   :  { %9583 = vst [vmem:[%s11863_s9] sm:$0xff] %v9577_v16  ;;  %v9580_v42 = vadd.f32 %v10900_v39, %v9539_v32 }
 0x752   :  { %9584 = vst [vmem:[%s11863_s9 + $0x8] sm:$0xff] %v9580_v42 }
 0x753   :  { %9589 = vsyncpa [#allocation3], 1 }
 0x754   :  { %9590 = vsyncpa [#allocation5], 1 }
 0x755   :  { %9591 = vsyncpa [#allocation8], 1 }
 0x756   :  { %9592 = vsyncpa [#allocation11], 1 }
 0x757   :  { %9593 = vsyncpa [#allocation14], 1 }

</bundles_post_ra>
